<compile_context>
chip_gen: v6e
topology: v6e:2x2x1
jax: 0.10.0
libtpu: 0.0.40
codegen_flags: <defaults>
</compile_context>

<pallas_src>
import functools

import jax
import jax.numpy as jnp
from jax.experimental import pallas as pl
from jax.experimental.pallas import tpu as pltpu

D_MIX_LORA = 32
D_DECAY_LORA = 64
D_AAA_LORA = 16
D_KKK_LORA = 16
D_GATE_LORA = 128
D_MA_LORA = 16
D_MK_LORA = 16
LN_EPS = 0.00064


def _pick(dim, pref, align):
    """Largest block <= pref that divides dim and is a multiple of align."""
    if dim <= pref:
        return dim
    d = (pref // align) * align
    while d >= align:
        if dim % d == 0:
            return d
        d -= align
    return dim          # fall back to the full extent (last resort)


def _seq_chunk(T, max_chunk):
    """Largest multiple-of-8 chunk <= max_chunk dividing T (else full T)."""
    c = min(max_chunk, T)
    c -= c % 8
    while c >= 8:
        if T % c == 0:
            return c
        c -= 8
    return T


def _softplus(x):
    return jnp.maximum(x, 0.0) + jnp.log(1.0 + jnp.exp(-jnp.abs(x)))


def _sigmoid(x):
    return 1.0 / (1.0 + jnp.exp(-x))


# ----------------------------------------------------------------------------
# Kernel 1: fused time-shift + 4-way LoRA mixing  (wind_rwkv.fused_time_shift)
# T-chunked; previous-token row carried in a (1, C) VMEM scratch.
# ----------------------------------------------------------------------------
def _time_shift_kernel(x_ref, maax_ref, maa_ref, w1_ref, w2_ref, o_ref, prev_ref):
    @pl.when(pl.program_id(1) == 0)
    def _():
        prev_ref[...] = jnp.zeros_like(prev_ref)

    xcur = x_ref[0].astype(jnp.float32)                      # (Tb, C)
    Tb, C = xcur.shape
    prev_row = prev_ref[...]                                 # (1, C)
    xprev = jnp.concatenate([prev_row, xcur[:Tb - 1, :]], axis=0)
    prev_ref[...] = xcur[Tb - 1:Tb, :]                       # carry to next chunk

    xx = xprev - xcur
    xxx = (xcur + xx * maax_ref[...]).astype(jnp.bfloat16)

    # one 128-wide first-stage LoRA matmul, then one block-diagonal (128, 4C)
    # second-stage matmul (K and N fully filled on the MXU).
    lora = jax.lax.dot_general(xxx, w1_ref[...], (((1,), (0,)), ((), ())),
                               preferred_element_type=jnp.float32)     # (Tb, 128)
    lora = jnp.tanh(lora).astype(jnp.bfloat16)
    mixed = jax.lax.dot_general(lora, w2_ref[...], (((1,), (0,)), ((), ())),
                                preferred_element_type=jnp.float32)    # (Tb, 4C)

    for i in range(4):                                       # rg, wa, k, v
        m = mixed[:, i * C:(i + 1) * C]
        maa_i = maa_ref[i:i + 1, :]
        o_ref[i, 0, :, :] = (xcur + xx * (maa_i + m)).astype(o_ref.dtype)


def fused_time_shift(x_bf16, time_maa_x, time_maa, maa_w1, maa_w2_block):
    B, T, C = x_bf16.shape
    Tb = _seq_chunk(T, 128)
    NT = T // Tb
    return pl.pallas_call(
        _time_shift_kernel,
        grid=(B, NT),
        in_specs=[
            pl.BlockSpec((1, Tb, C), lambda b, t: (b, t, 0)),
            pl.BlockSpec((1, C), lambda b, t: (0, 0)),
            pl.BlockSpec((4, C), lambda b, t: (0, 0)),
            pl.BlockSpec((C, 4 * D_MIX_LORA), lambda b, t: (0, 0)),
            pl.BlockSpec((4 * D_MIX_LORA, 4 * C), lambda b, t: (0, 0)),
        ],
        out_specs=pl.BlockSpec((4, 1, Tb, C), lambda b, t: (0, b, t, 0)),
        out_shape=jax.ShapeDtypeStruct((4, B, T, C), jnp.bfloat16),
        scratch_shapes=[pltpu.VMEM((1, C), jnp.float32)],
        compiler_params=pltpu.CompilerParams(
            dimension_semantics=("parallel", "arbitrary")),
    )(x_bf16, time_maa_x, time_maa, maa_w1, maa_w2_block)


# ----------------------------------------------------------------------------
# Kernel 2: tiled projection  y = x @ W   (W pre-transposed to (K, N))
# bf16 operands, fp32 VMEM accumulator, pipelined over (M, N, K).
# ----------------------------------------------------------------------------
def _linear_kernel(x_ref, w_ref, o_ref, acc_ref):
    @pl.when(pl.program_id(2) == 0)
    def _():
        acc_ref[...] = jnp.zeros_like(acc_ref)

    acc_ref[...] += jax.lax.dot_general(
        x_ref[...], w_ref[...], (((1,), (0,)), ((), ())),
        preferred_element_type=jnp.float32)

    @pl.when(pl.program_id(2) == pl.num_programs(2) - 1)
    def _():
        o_ref[...] = acc_ref[...].astype(o_ref.dtype)


def linear(x, w_t, out_dtype=jnp.bfloat16, tm=256, tn=512, tk=512):
    M, K = x.shape
    K2, N = w_t.shape
    assert K == K2
    bm = _pick(M, tm, 8)
    bn = _pick(N, tn, 128)
    bk = _pick(K, tk, 128)
    return pl.pallas_call(
        _linear_kernel,
        grid=(M // bm, N // bn, K // bk),
        in_specs=[pl.BlockSpec((bm, bk), lambda i, j, k: (i, k)),
                  pl.BlockSpec((bk, bn), lambda i, j, k: (k, j))],
        out_specs=pl.BlockSpec((bm, bn), lambda i, j, k: (i, j)),
        out_shape=jax.ShapeDtypeStruct((M, N), out_dtype),
        scratch_shapes=[pltpu.VMEM((bm, bn), jnp.float32)],
        compiler_params=pltpu.CompilerParams(
            dimension_semantics=("parallel", "parallel", "arbitrary")),
    )(x, w_t)


# ----------------------------------------------------------------------------
# Kernel 2b: fused receptance + gate path, xrg read from HBM once:
#   h = xrg @ [Wr | Wg1]  ->  r = h[:, :C],  g = tanh(h[:, C:]) @ Wg2
# ----------------------------------------------------------------------------
def _recept_gate_kernel(x_ref, wrg_ref, wg2_ref, r_ref, g_ref, acc_ref, *, C):
    @pl.when(pl.program_id(1) == 0)
    def _():
        acc_ref[...] = jnp.zeros_like(acc_ref)

    acc_ref[...] += jax.lax.dot_general(
        x_ref[...], wrg_ref[...], (((1,), (0,)), ((), ())),
        preferred_element_type=jnp.float32)

    @pl.when(pl.program_id(1) == pl.num_programs(1) - 1)
    def _():
        h = acc_ref[...]
        r_ref[...] = h[:, :C].astype(r_ref.dtype)
        g1 = jnp.tanh(h[:, C:]).astype(jnp.bfloat16)
        g_ref[...] = jax.lax.dot_general(
            g1, wg2_ref[...], (((1,), (0,)), ((), ())),
            preferred_element_type=jnp.float32).astype(g_ref.dtype)


def fused_recept_gate(x, wrg, wg2, C, tm=256, tk=512):
    M, K = x.shape
    Nrg = wrg.shape[1]
    bm = _pick(M, tm, 8)
    bk = _pick(K, tk, 128)
    return pl.pallas_call(
        functools.partial(_recept_gate_kernel, C=C),
        grid=(M // bm, K // bk),
        in_specs=[pl.BlockSpec((bm, bk), lambda i, k: (i, k)),
                  pl.BlockSpec((bk, Nrg), lambda i, k: (k, 0)),
                  pl.BlockSpec(wg2.shape, lambda i, k: (0, 0))],
        out_specs=[pl.BlockSpec((bm, C), lambda i, k: (i, 0)),
                   pl.BlockSpec((bm, C), lambda i, k: (i, 0))],
        out_shape=[jax.ShapeDtypeStruct((M, C), jnp.bfloat16),
                   jax.ShapeDtypeStruct((M, C), jnp.bfloat16)],
        scratch_shapes=[pltpu.VMEM((bm, Nrg), jnp.float32)],
        compiler_params=pltpu.CompilerParams(
            dimension_semantics=("parallel", "arbitrary")),
    )(x, wrg, wg2)


# ----------------------------------------------------------------------------
# Kernel 3: fused pre-attention math, lane-dense (rows, C):
#   two block-diagonal second-stage LoRA matmuls (no in-kernel lane concat),
#   bias adds, softplus/sigmoids, per-head L2 normalize (segment matmul).
# Emits w (log-decay), kk (normalized), k (final), b = -kk*a — all bf16.
# ----------------------------------------------------------------------------
def _pre_attn_kernel(kkm_ref, wam_ref, w2wam_ref, w2kkm_ref, bias_ref, seg_ref,
                     w_ref, kk_ref, k_ref, b_ref, *, C):
    kkm = kkm_ref[...]                                   # (R, C+32) bf16: [k|kk1|mk1]
    k = kkm[:, :C].astype(jnp.float32)
    ext = kkm[:, C:].astype(jnp.float32)                 # (R, 32): [kk1|mk1]
    wam = wam_ref[...].astype(jnp.float32)               # (R, 96): [w1|a1|ma1]

    lane_w = jax.lax.broadcasted_iota(jnp.int32, wam.shape, 1)
    wam_t = jnp.where(lane_w < D_DECAY_LORA, jnp.tanh(wam), wam).astype(jnp.bfloat16)
    lane_e = jax.lax.broadcasted_iota(jnp.int32, ext.shape, 1)
    ext_t = jnp.where(lane_e < D_KKK_LORA, jnp.tanh(ext), ext).astype(jnp.bfloat16)

    adds3 = jax.lax.dot_general(wam_t, w2wam_ref[...], (((1,), (0,)), ((), ())),
                                preferred_element_type=jnp.float32)    # (R, 3C)
    adds2 = jax.lax.dot_general(ext_t, w2kkm_ref[...], (((1,), (0,)), ((), ())),
                                preferred_element_type=jnp.float32)    # (R, 2C)
    wadd = adds3[:, :C]
    aadd = adds3[:, C:2 * C]
    maadd = adds3[:, 2 * C:]
    kkadd = adds2[:, :C]
    mkadd = adds2[:, C:]

    bias = bias_ref[...]                                  # (4, C) fp32
    w = -_softplus(-(bias[0:1, :] + wadd)) - 0.5
    a = _sigmoid(bias[1:2, :] + aadd)
    ma = _sigmoid(bias[2:3, :] + maadd)
    mk = _sigmoid(bias[3:4, :] + mkadd)

    kkf = k + kkadd
    seg = seg_ref[...]                                    # (C, H) indicator
    sumsq = jax.lax.dot_general(kkf * kkf, seg, (((1,), (0,)), ((), ())),
                                preferred_element_type=jnp.float32)    # (R, H)
    nrm = jnp.sqrt(jax.lax.dot_general(sumsq, seg, (((1,), (1,)), ((), ())),
                                       preferred_element_type=jnp.float32))
    kkn = kkf / jnp.maximum(nrm, 1e-12)                   # F.normalize(dim=-1)
    kkn = kkn.astype(jnp.bfloat16).astype(jnp.float32)    # reference .bfloat16()

    kfin = (k * ma + k * a * (1.0 - ma)) * jnp.exp(w * mk)

    w_ref[...] = w.astype(w_ref.dtype)
    kk_ref[...] = kkn.astype(kk_ref.dtype)
    k_ref[...] = kfin.astype(k_ref.dtype)
    b_ref[...] = (-kkn * a).astype(b_ref.dtype)


def fused_pre_attention(kkm, wam, w2_wam, w2_kkm, bias4, seg, C, tm=128):
    M = kkm.shape[0]
    bm = _pick(M, tm, 8)
    outs = tuple(jax.ShapeDtypeStruct((M, C), jnp.bfloat16) for _ in range(4))
    return pl.pallas_call(
        functools.partial(_pre_attn_kernel, C=C),
        grid=(M // bm,),
        in_specs=[pl.BlockSpec((bm, kkm.shape[1]), lambda i: (i, 0)),
                  pl.BlockSpec((bm, wam.shape[1]), lambda i: (i, 0)),
                  pl.BlockSpec(w2_wam.shape, lambda i: (0, 0)),
                  pl.BlockSpec(w2_kkm.shape, lambda i: (0, 0)),
                  pl.BlockSpec(bias4.shape, lambda i: (0, 0)),
                  pl.BlockSpec(seg.shape, lambda i: (0, 0))],
        out_specs=[pl.BlockSpec((bm, C), lambda i: (i, 0))] * 4,
        out_shape=outs,
        compiler_params=pltpu.CompilerParams(dimension_semantics=("parallel",)),
    )(kkm, wam, w2_wam, w2_kkm, bias4, seg)


# ----------------------------------------------------------------------------
# Kernel 4: RWKV-7 recurrence + GroupNorm + bonus + gate (wind_rwkv.fused_attn_ln)
# grid = (B, T-chunks); batch parallel, T arbitrary.  Per-head (N,N) fp32 state
# lives in a (N, C) VMEM scratch carried across T-chunks.  The per-token delta
# rule uses lane-dense (1,N)x(N,N) MXU matvecs and row-wise y; the GroupNorm +
# bonus + gate epilogue is fused per chunk (nothing full-(T,C) resident).
# ----------------------------------------------------------------------------
def _attn_ln_kernel(r_ref, w_ref, k_ref, v_ref, a_ref, b_ref, g_ref,
                    lnw_ref, lnb_ref, u_ref, seg_ref, o_ref, st_ref, *, H, eps):
    _, Tb, C = o_ref.shape
    N = C // H
    contract = (((1,), (0,)), ((), ()))

    @pl.when(pl.program_id(1) == 0)
    def _():
        st_ref[...] = jnp.zeros_like(st_ref)

    rc = r_ref[0].astype(jnp.float32)                               # (Tb, C)
    dc = jnp.exp(-jnp.exp(w_ref[0].astype(jnp.float32)))            # decay in fp32
    kc = k_ref[0].astype(jnp.float32)
    vc = v_ref[0].astype(jnp.float32)
    ac = a_ref[0].astype(jnp.float32)
    bc = b_ref[0].astype(jnp.float32)

    y_heads = []
    for h in range(H):
        lo = h * N
        St = st_ref[:, lo:lo + N]            # (N_key, N_val) fp32, transposed state
        wT = dc[:, lo:lo + N].T              # (N, Tb): one transpose per chunk each
        kT = kc[:, lo:lo + N].T
        bT = bc[:, lo:lo + N].T
        a_rows = ac[:, lo:lo + N]            # (Tb, N) row operands
        r_rows = rc[:, lo:lo + N]
        v_rows = vc[:, lo:lo + N]
        rows = []
        for i in range(Tb):                  # exact per-token delta rule
            sa = jax.lax.dot_general(a_rows[i:i + 1, :], St, contract,
                                     preferred_element_type=jnp.float32)   # (1, N)
            St = (wT[:, i:i + 1] * St + bT[:, i:i + 1] * sa
                  + kT[:, i:i + 1] * v_rows[i:i + 1, :])
            rows.append(jax.lax.dot_general(r_rows[i:i + 1, :], St, contract,
                                            preferred_element_type=jnp.float32))
        st_ref[:, lo:lo + N] = St                                  # carry state
        y_heads.append(jnp.concatenate(rows, axis=0))              # (Tb, N) rows

    y = jnp.concatenate(y_heads, axis=1)                           # (Tb, C)

    # ---- fused per-chunk epilogue: per-head GroupNorm, bonus, gate ----------
    seg = seg_ref[...]                                             # (C, H)
    inv_n = 1.0 / N

    def per_head(m):                                               # per-head sums -> (Tb, C)
        s = jax.lax.dot_general(m, seg, contract, preferred_element_type=jnp.float32)
        return jax.lax.dot_general(s, seg, (((1,), (1,)), ((), ())),
                                   preferred_element_type=jnp.float32)

    mean = per_head(y) * inv_n
    cen = y - mean
    var = per_head(cen * cen) * inv_n
    yn = cen * jax.lax.rsqrt(var + eps) * lnw_ref[...] + lnb_ref[...]
    bonus = per_head(rc * kc * u_ref[...]) * vc                    # ((r*k*faaaa).sum_head)*v
    gg = g_ref[0].astype(jnp.float32)
    o_ref[0, :, :] = ((yn + bonus) * gg).astype(o_ref.dtype)


def rwkv7_attn_ln(r, w, k, v, a, b, g, ln_w, ln_b, faaaa, seg, H, eps=LN_EPS):
    B, T, C = r.shape
    N = C // H
    Tb = _seq_chunk(T, 16)                  # inner token loop is unrolled
    NT = T // Tb
    data = pl.BlockSpec((1, Tb, C), lambda bi, ti: (bi, ti, 0))
    vec = pl.BlockSpec((1, C), lambda bi, ti: (0, 0))
    return pl.pallas_call(
        functools.partial(_attn_ln_kernel, H=H, eps=eps),
        grid=(B, NT),
        in_specs=[data] * 7 + [vec, vec, vec,
                               pl.BlockSpec((C, H), lambda bi, ti: (0, 0))],
        out_specs=data,
        out_shape=jax.ShapeDtypeStruct((B, T, C), jnp.bfloat16),
        scratch_shapes=[pltpu.VMEM((N, C), jnp.float32)],   # per-head states, carried
        compiler_params=pltpu.CompilerParams(
            dimension_semantics=("parallel", "arbitrary")),
    )(r, w, k, v, a, b, g, ln_w, ln_b, faaaa, seg)


# ----------------------------------------------------------------------------
# Parameter init (shapes from TimeMixer.__init__; deterministic values).
# Zero-initialized params are replaced by small random values so the kernel
# paths are exercised; weights feeding matmuls are pre-transposed to (K, N),
# pre-fused, and cast to bf16.
# ----------------------------------------------------------------------------
def init_params(rng, C, H, n_layer=4, layer_id=1):
    N = C // H
    ks = jax.random.split(rng, 24)
    r01 = layer_id / max(n_layer - 1, 1)
    r1a0 = 1.0 - layer_id / n_layer
    ddd = jnp.arange(C, dtype=jnp.float32) / C
    time_maa_x = 1.0 - jnp.power(ddd, 0.6 * r1a0 ** 0.9)
    maa_rg = 1.0 - jnp.power(ddd, 0.2 * r1a0)
    maa_wa = 1.0 - jnp.power(ddd, 0.9 * r1a0)
    maa_k = 1.0 - (jnp.power(ddd, 0.9 * r1a0) + 0.4 * r01)
    maa_v = 1.0 - (jnp.power(ddd, 0.4 * r1a0) + 0.6 * r01)
    time_maa = jnp.stack([maa_rg, maa_wa, maa_k, maa_v])             # (4, C)
    n = jnp.arange(C, dtype=jnp.float32)
    decay_speed = -7.0 + 5.0 * (n / (C - 1)) ** (0.85 + 1.0 * r01 ** 0.5)
    time_decay = decay_speed + 0.5

    def rn(k_, shape, scale):
        return scale * jax.random.normal(k_, shape, jnp.float32)

    def un(k_, shape, m, scale):
        lim = scale / (m ** 0.5)
        return jax.random.uniform(k_, shape, jnp.float32, -lim, lim)

    time_faaaa = rn(ks[0], (C,), 0.05)
    time_aaaaa = rn(ks[1], (C,), 0.05)
    time_misc_a = rn(ks[2], (C,), 0.05)
    time_misc_k = rn(ks[3], (C,), 0.05)
    maa_w1 = rn(ks[4], (4 * D_MIX_LORA, C), 0.05)      # math layout (128, C)
    maa_w2 = rn(ks[5], (4, D_MIX_LORA, C), 0.1)        # math layout (4, 32, C)
    decay_w1 = rn(ks[6], (D_DECAY_LORA, C), 0.05)
    decay_w2 = rn(ks[7], (D_DECAY_LORA, C), 0.1)
    aaa_w1 = rn(ks[8], (D_AAA_LORA, C), 0.05)
    aaa_w2 = rn(ks[9], (D_AAA_LORA, C), 0.1)
    kkk_w1 = rn(ks[10], (D_KKK_LORA, C), 0.05)
    kkk_w2 = rn(ks[11], (D_KKK_LORA, C), 0.1)
    gate_w1 = rn(ks[12], (D_GATE_LORA, C), 0.1)
    gate_w2 = rn(ks[13], (D_GATE_LORA, C), 0.1)
    ma_w1 = rn(ks[14], (D_MA_LORA, C), 0.05)
    ma_w2 = rn(ks[15], (D_MA_LORA, C), 0.1)
    mk_w1 = rn(ks[16], (D_MK_LORA, C), 0.05)
    mk_w2 = rn(ks[17], (D_MK_LORA, C), 0.1)
    w_recept = un(ks[18], (C, C), C, 0.5)              # (out, in)
    w_key = un(ks[19], (C, C), C, 0.05)
    w_value = un(ks[20], (C, C), C, 0.5)
    w_output = un(ks[21], (C, C), C, 0.5)              # module inits to 0; nonzero here
    ln_w = jnp.ones((C,), jnp.float32) + rn(ks[22], (C,), 0.02)
    ln_b = rn(ks[23], (C,), 0.02)

    bf = lambda t: t.astype(jnp.bfloat16)

    # time-shift second stage: block-diagonal (128, 4C)
    maa_w2_block = jnp.zeros((4 * D_MIX_LORA, 4 * C), jnp.float32)
    for i in range(4):
        maa_w2_block = maa_w2_block.at[
            i * D_MIX_LORA:(i + 1) * D_MIX_LORA, i * C:(i + 1) * C].set(maa_w2[i])

    # receptance + gate stage-1 fused along N: (C, C+128)
    w_rg1 = jnp.concatenate([w_recept.T, gate_w1.T], axis=1)
    # key | kkk_w1 | mk_w1 fused: (C, C+32)
    w_key_fused = jnp.concatenate([w_key.T, kkk_w1.T, mk_w1.T], axis=1)
    # decay | aaa | ma first stage fused: (C, 96)
    w_wam = jnp.concatenate([decay_w1.T, aaa_w1.T, ma_w1.T], axis=1)

    # second-stage LoRA block-diagonals
    w2_wam = jnp.zeros((96, 3 * C), jnp.float32)               # [w1|a1|ma1] -> [wadd|aadd|maadd]
    w2_wam = w2_wam.at[0:64, 0:C].set(decay_w2)
    w2_wam = w2_wam.at[64:80, C:2 * C].set(aaa_w2)
    w2_wam = w2_wam.at[80:96, 2 * C:3 * C].set(ma_w2)
    w2_kkm = jnp.zeros((32, 2 * C), jnp.float32)               # [kk1|mk1] -> [kkadd|mkadd]
    w2_kkm = w2_kkm.at[0:16, 0:C].set(kkk_w2)
    w2_kkm = w2_kkm.at[16:32, C:2 * C].set(mk_w2)

    seg = (jnp.arange(C)[:, None] // N == jnp.arange(H)[None, :]).astype(jnp.float32)

    return dict(
        time_maa_x=time_maa_x.reshape(1, C),
        time_maa=time_maa,
        maa_w1=bf(maa_w1.T),                 # (C, 128)
        maa_w2_block=bf(maa_w2_block),       # (128, 4C)
        w_rg1=bf(w_rg1),                     # (C, C+128)
        gate_w2=bf(gate_w2),                 # (128, C)
        w_key_fused=bf(w_key_fused),         # (C, C+32)
        w_value=bf(w_value.T),               # (C, C)
        w_wam=bf(w_wam),                     # (C, 96)
        w2_wam=bf(w2_wam),                   # (96, 3C)
        w2_kkm=bf(w2_kkm),                   # (32, 2C)
        w_output=bf(w_output.T),             # (C, C)
        bias4=jnp.stack([time_decay, time_aaaaa, time_misc_a, time_misc_k]),
        seg=seg,
        ln_w=ln_w.reshape(1, C),
        ln_b=ln_b.reshape(1, C),
        faaaa=time_faaaa.reshape(1, C),
    )


# ----------------------------------------------------------------------------
# Full TimeMixer forward (no wrapper-side transposes; reshapes only).
# ----------------------------------------------------------------------------
def time_mixer_forward(x, p, H):
    B, T, C = x.shape
    BT = B * T

    mix = fused_time_shift(x.astype(jnp.bfloat16), p["time_maa_x"], p["time_maa"],
                           p["maa_w1"], p["maa_w2_block"])      # (4, B, T, C) bf16
    xrg = mix[0].reshape(BT, C)
    xwa = mix[1].reshape(BT, C)
    xk = mix[2].reshape(BT, C)
    xv = mix[3].reshape(BT, C)

    r, g = fused_recept_gate(xrg, p["w_rg1"], p["gate_w2"], C)  # (BT, C) bf16 each
    kkm = linear(xk, p["w_key_fused"])                          # (BT, C+32): k|kk1|mk1
    v = linear(xv, p["w_value"])                                # (BT, C)
    wam = linear(xwa, p["w_wam"])                               # (BT, 96): w1|a1|ma1

    w_log, kk, kfin, bb = fused_pre_attention(kkm, wam, p["w2_wam"], p["w2_kkm"],
                                              p["bias4"], p["seg"], C=C)

    def btc(t):
        return t.reshape(B, T, C)

    y = rwkv7_attn_ln(btc(r), btc(w_log), btc(kfin), btc(v), btc(kk), btc(bb), btc(g),
                      p["ln_w"], p["ln_b"], p["faaaa"], p["seg"], H=H)   # (B,T,C) bf16

    out = linear(y.reshape(BT, C), p["w_output"], out_dtype=jnp.bfloat16)
    return out.reshape(B, T, C)


if __name__ == "__main__":
    B, T, C, H = 2, 16, 64, 2     # batch=2, seq=16, n_embd=64, n_head=2 (head_size=32)
    rng = jax.random.PRNGKey(0)
    kx, kp = jax.random.split(rng)
    x = jax.random.normal(kx, (B, T, C), jnp.float32)
    params = init_params(kp, C, H)

    fwd = jax.jit(functools.partial(time_mixer_forward, H=H))
    out = jax.block_until_ready(fwd(x, params))

    assert out.shape == (B, T, C), out.shape
    assert bool(jnp.all(jnp.isfinite(out.astype(jnp.float32))))
    print("KERNEL_OK")
</pallas_src>

<mosaic_0001>
module attributes {stable_mosaic.version = 11 : i64} {
  func.func @_time_shift_kernel(%arg0: i32, %arg1: i32, %arg2: memref<1x16x64xbf16, #tpu.memory_space<vmem>>, %arg3: memref<1x64xf32, #tpu.memory_space<vmem>>, %arg4: memref<4x64xf32, #tpu.memory_space<vmem>>, %arg5: memref<64x128xbf16, #tpu.memory_space<vmem>>, %arg6: memref<128x256xbf16, #tpu.memory_space<vmem>>, %arg7: memref<4x1x16x64xbf16, #tpu.memory_space<vmem>>, %arg8: memref<1x64xf32, #tpu.memory_space<vmem>>) attributes {dimension_semantics = [#tpu.dimension_semantics<parallel>, #tpu.dimension_semantics<arbitrary>], iteration_bounds = array<i64: 2, 1>, scalar_prefetch = 0 : i64, scratch_operands = 1 : i64, tpu.core_type = #tpu.core_type<tc>, window_params = [{transform_indices = @transform_0, window_bounds = array<i64: 1, 16, 64>}, {pipeline_mode = #tpu.pipeline_mode<synchronous>, transform_indices = @transform_1, window_bounds = array<i64: 1, 64>}, {pipeline_mode = #tpu.pipeline_mode<synchronous>, transform_indices = @transform_2, window_bounds = array<i64: 4, 64>}, {pipeline_mode = #tpu.pipeline_mode<synchronous>, transform_indices = @transform_3, window_bounds = array<i64: 64, 128>}, {pipeline_mode = #tpu.pipeline_mode<synchronous>, transform_indices = @transform_4, window_bounds = array<i64: 128, 256>}, {transform_indices = @transform_5, window_bounds = array<i64: 4, 1, 16, 64>}]} {
    %c0_i32 = arith.constant 0 : i32
    %0 = arith.cmpi eq, %arg1, %c0_i32 : i32
    %1 = arith.extui %0 : i1 to i32
    %c0_i32_0 = arith.constant 0 : i32
    %2 = arith.cmpi ne, %1, %c0_i32_0 : i32
    scf.if %2 {
      %cst_35 = arith.constant 0.000000e+00 : f32
      %63 = vector.broadcast %cst_35 : f32 to vector<1x64xf32>
      %c0_36 = arith.constant 0 : index
      %c0_37 = arith.constant 0 : index
      %64 = vector.load %arg8[%c0_36, %c0_37] : memref<1x64xf32, #tpu.memory_space<vmem>>, vector<1x64xf32>
      tpu.vector_store %arg8[%c0_36, %c0_37], %63 {strides = array<i32>} : memref<1x64xf32, #tpu.memory_space<vmem>>, vector<1x64xf32>,
    } else {
    }
    %c0 = arith.constant 0 : index
    %c0_1 = arith.constant 0 : index
    %c0_2 = arith.constant 0 : index
    %3 = vector.load %arg2[%c0, %c0_1, %c0_2] : memref<1x16x64xbf16, #tpu.memory_space<vmem>>, vector<1x16x64xbf16>
    %4 = vector.shape_cast %3 : vector<1x16x64xbf16> to vector<16x64xbf16>
    %5 = arith.extf %4 : vector<16x64xbf16> to vector<16x64xf32>
    %c0_3 = arith.constant 0 : index
    %c0_4 = arith.constant 0 : index
    %6 = vector.load %arg8[%c0_3, %c0_4] : memref<1x64xf32, #tpu.memory_space<vmem>>, vector<1x64xf32>
    %7 = vector.extract_strided_slice %5 {offsets = [0, 0], sizes = [15, 64], strides = [1, 1]} : vector<16x64xf32> to vector<15x64xf32>
    %8 = tpu.concatenate %6, %7 in 0 : vector<1x64xf32>, vector<15x64xf32> -> vector<16x64xf32>
    %9 = vector.extract_strided_slice %5 {offsets = [15, 0], sizes = [1, 64], strides = [1, 1]} : vector<16x64xf32> to vector<1x64xf32>
    %c0_5 = arith.constant 0 : index
    %c0_6 = arith.constant 0 : index
    %10 = vector.load %arg8[%c0_5, %c0_6] : memref<1x64xf32, #tpu.memory_space<vmem>>, vector<1x64xf32>
    tpu.vector_store %arg8[%c0_5, %c0_6], %9 {strides = array<i32>} : memref<1x64xf32, #tpu.memory_space<vmem>>, vector<1x64xf32>,
    %11 = arith.subf %8, %5 : vector<16x64xf32>
    %c0_7 = arith.constant 0 : index
    %c0_8 = arith.constant 0 : index
    %12 = vector.load %arg3[%c0_7, %c0_8] : memref<1x64xf32, #tpu.memory_space<vmem>>, vector<1x64xf32>
    %13 = vector.broadcast %12 : vector<1x64xf32> to vector<16x64xf32>
    %14 = arith.mulf %11, %13 : vector<16x64xf32>
    %15 = arith.addf %5, %14 : vector<16x64xf32>
    %16 = arith.truncf %15 : vector<16x64xf32> to vector<16x64xbf16>
    %c0_9 = arith.constant 0 : index
    %c0_10 = arith.constant 0 : index
    %17 = vector.load %arg5[%c0_9, %c0_10] : memref<64x128xbf16, #tpu.memory_space<vmem>>, vector<64x128xbf16>
    %cst = arith.constant dense<0.000000e+00> : vector<16x128xf32>
    %18 = tpu.matmul %16, %17, %cst {dimension_numbers = #tpu.dot_dimension_numbers<[1], [0], [0], [1], [0, 0, 1, 1], [], []>} : vector<16x64xbf16>, vector<64x128xbf16>, vector<16x128xf32> -> vector<16x128xf32>
    %19 = math.tanh %18 : vector<16x128xf32>
    %20 = arith.truncf %19 : vector<16x128xf32> to vector<16x128xbf16>
    %c0_11 = arith.constant 0 : index
    %c0_12 = arith.constant 0 : index
    %21 = vector.load %arg6[%c0_11, %c0_12] : memref<128x256xbf16, #tpu.memory_space<vmem>>, vector<128x256xbf16>
    %cst_13 = arith.constant dense<0.000000e+00> : vector<16x256xf32>
    %22 = tpu.matmul %20, %21, %cst_13 {dimension_numbers = #tpu.dot_dimension_numbers<[1], [0], [0], [1], [0, 0, 1, 1], [], []>} : vector<16x128xbf16>, vector<128x256xbf16>, vector<16x256xf32> -> vector<16x256xf32>
    %23 = vector.extract_strided_slice %22 {offsets = [0, 0], sizes = [16, 64], strides = [1, 1]} : vector<16x256xf32> to vector<16x64xf32>
    %c0_14 = arith.constant 0 : index
    %c0_15 = arith.constant 0 : index
    %24 = vector.load %arg4[%c0_14, %c0_15] : memref<4x64xf32, #tpu.memory_space<vmem>>, vector<1x64xf32>
    %25 = vector.broadcast %24 : vector<1x64xf32> to vector<16x64xf32>
    %26 = arith.addf %25, %23 : vector<16x64xf32>
    %27 = arith.mulf %11, %26 : vector<16x64xf32>
    %28 = arith.addf %5, %27 : vector<16x64xf32>
    %29 = arith.truncf %28 : vector<16x64xf32> to vector<16x64xbf16>
    %c0_16 = arith.constant 0 : index
    %c0_17 = arith.constant 0 : index
    %c0_18 = arith.constant 0 : index
    %c0_19 = arith.constant 0 : index
    %30 = vector.load %arg7[%c0_16, %c0_17, %c0_18, %c0_19] : memref<4x1x16x64xbf16, #tpu.memory_space<vmem>>, vector<1x1x16x64xbf16>
    %31 = vector.shape_cast %30 : vector<1x1x16x64xbf16> to vector<16x64xbf16>
    %32 = vector.shape_cast %29 : vector<16x64xbf16> to vector<1x1x16x64xbf16>
    tpu.vector_store %arg7[%c0_16, %c0_17, %c0_18, %c0_19], %32 {strides = array<i32>} : memref<4x1x16x64xbf16, #tpu.memory_space<vmem>>, vector<1x1x16x64xbf16>,
    %33 = vector.extract_strided_slice %22 {offsets = [0, 64], sizes = [16, 64], strides = [1, 1]} : vector<16x256xf32> to vector<16x64xf32>
    %c1 = arith.constant 1 : index
    %c0_20 = arith.constant 0 : index
    %34 = vector.load %arg4[%c1, %c0_20] : memref<4x64xf32, #tpu.memory_space<vmem>>, vector<1x64xf32>
    %35 = vector.broadcast %34 : vector<1x64xf32> to vector<16x64xf32>
    %36 = arith.addf %35, %33 : vector<16x64xf32>
    %37 = arith.mulf %11, %36 : vector<16x64xf32>
    %38 = arith.addf %5, %37 : vector<16x64xf32>
    %39 = arith.truncf %38 : vector<16x64xf32> to vector<16x64xbf16>
    %c1_21 = arith.constant 1 : index
    %c0_22 = arith.constant 0 : index
    %c0_23 = arith.constant 0 : index
    %c0_24 = arith.constant 0 : index
    %40 = vector.load %arg7[%c1_21, %c0_22, %c0_23, %c0_24] : memref<4x1x16x64xbf16, #tpu.memory_space<vmem>>, vector<1x1x16x64xbf16>
    %41 = vector.shape_cast %40 : vector<1x1x16x64xbf16> to vector<16x64xbf16>
    %42 = vector.shape_cast %39 : vector<16x64xbf16> to vector<1x1x16x64xbf16>
    tpu.vector_store %arg7[%c1_21, %c0_22, %c0_23, %c0_24], %42 {strides = array<i32>} : memref<4x1x16x64xbf16, #tpu.memory_space<vmem>>, vector<1x1x16x64xbf16>,
    %43 = vector.extract_strided_slice %22 {offsets = [0, 128], sizes = [16, 64], strides = [1, 1]} : vector<16x256xf32> to vector<16x64xf32>
    %c2 = arith.constant 2 : index
    %c0_25 = arith.constant 0 : index
    %44 = vector.load %arg4[%c2, %c0_25] : memref<4x64xf32, #tpu.memory_space<vmem>>, vector<1x64xf32>
    %45 = vector.broadcast %44 : vector<1x64xf32> to vector<16x64xf32>
    %46 = arith.addf %45, %43 : vector<16x64xf32>
    %47 = arith.mulf %11, %46 : vector<16x64xf32>
    %48 = arith.addf %5, %47 : vector<16x64xf32>
    %49 = arith.truncf %48 : vector<16x64xf32> to vector<16x64xbf16>
    %c2_26 = arith.constant 2 : index
    %c0_27 = arith.constant 0 : index
    %c0_28 = arith.constant 0 : index
    %c0_29 = arith.constant 0 : index
    %50 = vector.load %arg7[%c2_26, %c0_27, %c0_28, %c0_29] : memref<4x1x16x64xbf16, #tpu.memory_space<vmem>>, vector<1x1x16x64xbf16>
    %51 = vector.shape_cast %50 : vector<1x1x16x64xbf16> to vector<16x64xbf16>
    %52 = vector.shape_cast %49 : vector<16x64xbf16> to vector<1x1x16x64xbf16>
    tpu.vector_store %arg7[%c2_26, %c0_27, %c0_28, %c0_29], %52 {strides = array<i32>} : memref<4x1x16x64xbf16, #tpu.memory_space<vmem>>, vector<1x1x16x64xbf16>,
    %53 = vector.extract_strided_slice %22 {offsets = [0, 192], sizes = [16, 64], strides = [1, 1]} : vector<16x256xf32> to vector<16x64xf32>
    %c3 = arith.constant 3 : index
    %c0_30 = arith.constant 0 : index
    %54 = vector.load %arg4[%c3, %c0_30] : memref<4x64xf32, #tpu.memory_space<vmem>>, vector<1x64xf32>
    %55 = vector.broadcast %54 : vector<1x64xf32> to vector<16x64xf32>
    %56 = arith.addf %55, %53 : vector<16x64xf32>
    %57 = arith.mulf %11, %56 : vector<16x64xf32>
    %58 = arith.addf %5, %57 : vector<16x64xf32>
    %59 = arith.truncf %58 : vector<16x64xf32> to vector<16x64xbf16>
    %c3_31 = arith.constant 3 : index
    %c0_32 = arith.constant 0 : index
    %c0_33 = arith.constant 0 : index
    %c0_34 = arith.constant 0 : index
    %60 = vector.load %arg7[%c3_31, %c0_32, %c0_33, %c0_34] : memref<4x1x16x64xbf16, #tpu.memory_space<vmem>>, vector<1x1x16x64xbf16>
    %61 = vector.shape_cast %60 : vector<1x1x16x64xbf16> to vector<16x64xbf16>
    %62 = vector.shape_cast %59 : vector<16x64xbf16> to vector<1x1x16x64xbf16>
    tpu.vector_store %arg7[%c3_31, %c0_32, %c0_33, %c0_34], %62 {strides = array<i32>} : memref<4x1x16x64xbf16, #tpu.memory_space<vmem>>, vector<1x1x16x64xbf16>,
    return
  }
  func.func @transform_0(%arg0: i32, %arg1: i32) -> (i32, i32, i32) {
    %c0_i32 = arith.constant 0 : i32
    %c0_i32_0 = arith.constant 0 : i32
    return %arg0, %arg1, %c0_i32 : i32, i32, i32
  }
  func.func @transform_1(%arg0: i32, %arg1: i32) -> (i32, i32) {
    %c0_i32 = arith.constant 0 : i32
    %c0_i32_0 = arith.constant 0 : i32
    %c0_i32_1 = arith.constant 0 : i32
    return %c0_i32, %c0_i32_0 : i32, i32
  }
  func.func @transform_2(%arg0: i32, %arg1: i32) -> (i32, i32) {
    %c0_i32 = arith.constant 0 : i32
    %c0_i32_0 = arith.constant 0 : i32
    %c0_i32_1 = arith.constant 0 : i32
    return %c0_i32, %c0_i32_0 : i32, i32
  }
  func.func @transform_3(%arg0: i32, %arg1: i32) -> (i32, i32) {
    %c0_i32 = arith.constant 0 : i32
    %c0_i32_0 = arith.constant 0 : i32
    %c0_i32_1 = arith.constant 0 : i32
    return %c0_i32, %c0_i32_0 : i32, i32
  }
  func.func @transform_4(%arg0: i32, %arg1: i32) -> (i32, i32) {
    %c0_i32 = arith.constant 0 : i32
    %c0_i32_0 = arith.constant 0 : i32
    %c0_i32_1 = arith.constant 0 : i32
    return %c0_i32, %c0_i32_0 : i32, i32
  }
  func.func @transform_5(%arg0: i32, %arg1: i32) -> (i32, i32, i32, i32) {
    %c0_i32 = arith.constant 0 : i32
    %c0_i32_0 = arith.constant 0 : i32
    %c0_i32_1 = arith.constant 0 : i32
    return %c0_i32, %arg0, %arg1, %c0_i32_0 : i32, i32, i32, i32
  }
}

module attributes {stable_mosaic.version = 11 : i64} {
  func.func @_linear_kernel(%arg0: i32, %arg1: i32, %arg2: i32, %arg3: memref<32x64xbf16, #tpu.memory_space<vmem>>, %arg4: memref<64x96xbf16, #tpu.memory_space<vmem>>, %arg5: memref<32x96xbf16, #tpu.memory_space<vmem>>, %arg6: memref<32x96xf32, #tpu.memory_space<vmem>>) attributes {dimension_semantics = [#tpu.dimension_semantics<parallel>, #tpu.dimension_semantics<parallel>, #tpu.dimension_semantics<arbitrary>], iteration_bounds = array<i64: 1, 1, 1>, scalar_prefetch = 0 : i64, scratch_operands = 1 : i64, tpu.core_type = #tpu.core_type<tc>, window_params = [{transform_indices = @transform_0, window_bounds = array<i64: 32, 64>}, {transform_indices = @transform_1, window_bounds = array<i64: 64, 96>}, {transform_indices = @transform_2, window_bounds = array<i64: 32, 96>}]} {
    %c0_i32 = arith.constant 0 : i32
    %0 = arith.cmpi eq, %arg2, %c0_i32 : i32
    %1 = arith.extui %0 : i1 to i32
    %c0_i32_0 = arith.constant 0 : i32
    %2 = arith.cmpi ne, %1, %c0_i32_0 : i32
    scf.if %2 {
      %cst_10 = arith.constant 0.000000e+00 : f32
      %12 = vector.broadcast %cst_10 : f32 to vector<32x96xf32>
      %c0_11 = arith.constant 0 : index
      %c0_12 = arith.constant 0 : index
      %13 = vector.load %arg6[%c0_11, %c0_12] : memref<32x96xf32, #tpu.memory_space<vmem>>, vector<32x96xf32>
      tpu.vector_store %arg6[%c0_11, %c0_12], %12 {strides = array<i32>} : memref<32x96xf32, #tpu.memory_space<vmem>>, vector<32x96xf32>,
    } else {
    }
    %c0 = arith.constant 0 : index
    %c0_1 = arith.constant 0 : index
    %3 = vector.load %arg6[%c0, %c0_1] : memref<32x96xf32, #tpu.memory_space<vmem>>, vector<32x96xf32>
    %c0_2 = arith.constant 0 : index
    %c0_3 = arith.constant 0 : index
    %4 = vector.load %arg3[%c0_2, %c0_3] : memref<32x64xbf16, #tpu.memory_space<vmem>>, vector<32x64xbf16>
    %c0_4 = arith.constant 0 : index
    %c0_5 = arith.constant 0 : index
    %5 = vector.load %arg4[%c0_4, %c0_5] : memref<64x96xbf16, #tpu.memory_space<vmem>>, vector<64x96xbf16>
    %cst = arith.constant dense<0.000000e+00> : vector<32x96xf32>
    %6 = tpu.matmul %4, %5, %cst {dimension_numbers = #tpu.dot_dimension_numbers<[1], [0], [0], [1], [0, 0, 1, 1], [], []>} : vector<32x64xbf16>, vector<64x96xbf16>, vector<32x96xf32> -> vector<32x96xf32>
    %7 = arith.addf %3, %6 : vector<32x96xf32>
    %c0_6 = arith.constant 0 : index
    %c0_7 = arith.constant 0 : index
    %8 = vector.load %arg6[%c0_6, %c0_7] : memref<32x96xf32, #tpu.memory_space<vmem>>, vector<32x96xf32>
    tpu.vector_store %arg6[%c0_6, %c0_7], %7 {strides = array<i32>} : memref<32x96xf32, #tpu.memory_space<vmem>>, vector<32x96xf32>,
    %c0_i32_8 = arith.constant 0 : i32
    %9 = arith.cmpi eq, %arg2, %c0_i32_8 : i32
    %10 = arith.extui %9 : i1 to i32
    %c0_i32_9 = arith.constant 0 : i32
    %11 = arith.cmpi ne, %10, %c0_i32_9 : i32
    scf.if %11 {
      %c0_10 = arith.constant 0 : index
      %c0_11 = arith.constant 0 : index
      %12 = vector.load %arg6[%c0_10, %c0_11] : memref<32x96xf32, #tpu.memory_space<vmem>>, vector<32x96xf32>
      %13 = arith.truncf %12 : vector<32x96xf32> to vector<32x96xbf16>
      %c0_12 = arith.constant 0 : index
      %c0_13 = arith.constant 0 : index
      %14 = vector.load %arg5[%c0_12, %c0_13] : memref<32x96xbf16, #tpu.memory_space<vmem>>, vector<32x96xbf16>
      tpu.vector_store %arg5[%c0_12, %c0_13], %13 {strides = array<i32>} : memref<32x96xbf16, #tpu.memory_space<vmem>>, vector<32x96xbf16>,
    } else {
    }
    return
  }
  func.func @transform_0(%arg0: i32, %arg1: i32, %arg2: i32) -> (i32, i32) {
    %c0_i32 = arith.constant 0 : i32
    return %arg0, %arg2 : i32, i32
  }
  func.func @transform_1(%arg0: i32, %arg1: i32, %arg2: i32) -> (i32, i32) {
    %c0_i32 = arith.constant 0 : i32
    return %arg2, %arg1 : i32, i32
  }
  func.func @transform_2(%arg0: i32, %arg1: i32, %arg2: i32) -> (i32, i32) {
    %c0_i32 = arith.constant 0 : i32
    return %arg0, %arg1 : i32, i32
  }
}

module attributes {stable_mosaic.version = 11 : i64} {
  func.func @_recept_gate_kernel(%arg0: i32, %arg1: i32, %arg2: memref<32x64xbf16, #tpu.memory_space<vmem>>, %arg3: memref<64x192xbf16, #tpu.memory_space<vmem>>, %arg4: memref<128x64xbf16, #tpu.memory_space<vmem>>, %arg5: memref<32x64xbf16, #tpu.memory_space<vmem>>, %arg6: memref<32x64xbf16, #tpu.memory_space<vmem>>, %arg7: memref<32x192xf32, #tpu.memory_space<vmem>>) attributes {dimension_semantics = [#tpu.dimension_semantics<parallel>, #tpu.dimension_semantics<arbitrary>], iteration_bounds = array<i64: 1, 1>, scalar_prefetch = 0 : i64, scratch_operands = 1 : i64, tpu.core_type = #tpu.core_type<tc>, window_params = [{transform_indices = @transform_0, window_bounds = array<i64: 32, 64>}, {transform_indices = @transform_1, window_bounds = array<i64: 64, 192>}, {pipeline_mode = #tpu.pipeline_mode<synchronous>, transform_indices = @transform_2, window_bounds = array<i64: 128, 64>}, {transform_indices = @transform_3, window_bounds = array<i64: 32, 64>}, {transform_indices = @transform_4, window_bounds = array<i64: 32, 64>}]} {
    %c0_i32 = arith.constant 0 : i32
    %0 = arith.cmpi eq, %arg1, %c0_i32 : i32
    %1 = arith.extui %0 : i1 to i32
    %c0_i32_0 = arith.constant 0 : i32
    %2 = arith.cmpi ne, %1, %c0_i32_0 : i32
    scf.if %2 {
      %cst_10 = arith.constant 0.000000e+00 : f32
      %12 = vector.broadcast %cst_10 : f32 to vector<32x192xf32>
      %c0_11 = arith.constant 0 : index
      %c0_12 = arith.constant 0 : index
      %13 = vector.load %arg7[%c0_11, %c0_12] : memref<32x192xf32, #tpu.memory_space<vmem>>, vector<32x192xf32>
      tpu.vector_store %arg7[%c0_11, %c0_12], %12 {strides = array<i32>} : memref<32x192xf32, #tpu.memory_space<vmem>>, vector<32x192xf32>,
    } else {
    }
    %c0 = arith.constant 0 : index
    %c0_1 = arith.constant 0 : index
    %3 = vector.load %arg7[%c0, %c0_1] : memref<32x192xf32, #tpu.memory_space<vmem>>, vector<32x192xf32>
    %c0_2 = arith.constant 0 : index
    %c0_3 = arith.constant 0 : index
    %4 = vector.load %arg2[%c0_2, %c0_3] : memref<32x64xbf16, #tpu.memory_space<vmem>>, vector<32x64xbf16>
    %c0_4 = arith.constant 0 : index
    %c0_5 = arith.constant 0 : index
    %5 = vector.load %arg3[%c0_4, %c0_5] : memref<64x192xbf16, #tpu.memory_space<vmem>>, vector<64x192xbf16>
    %cst = arith.constant dense<0.000000e+00> : vector<32x192xf32>
    %6 = tpu.matmul %4, %5, %cst {dimension_numbers = #tpu.dot_dimension_numbers<[1], [0], [0], [1], [0, 0, 1, 1], [], []>} : vector<32x64xbf16>, vector<64x192xbf16>, vector<32x192xf32> -> vector<32x192xf32>
    %7 = arith.addf %3, %6 : vector<32x192xf32>
    %c0_6 = arith.constant 0 : index
    %c0_7 = arith.constant 0 : index
    %8 = vector.load %arg7[%c0_6, %c0_7] : memref<32x192xf32, #tpu.memory_space<vmem>>, vector<32x192xf32>
    tpu.vector_store %arg7[%c0_6, %c0_7], %7 {strides = array<i32>} : memref<32x192xf32, #tpu.memory_space<vmem>>, vector<32x192xf32>,
    %c0_i32_8 = arith.constant 0 : i32
    %9 = arith.cmpi eq, %arg1, %c0_i32_8 : i32
    %10 = arith.extui %9 : i1 to i32
    %c0_i32_9 = arith.constant 0 : i32
    %11 = arith.cmpi ne, %10, %c0_i32_9 : i32
    scf.if %11 {
      %c0_10 = arith.constant 0 : index
      %c0_11 = arith.constant 0 : index
      %12 = vector.load %arg7[%c0_10, %c0_11] : memref<32x192xf32, #tpu.memory_space<vmem>>, vector<32x192xf32>
      %13 = vector.extract_strided_slice %12 {offsets = [0, 0], sizes = [32, 64], strides = [1, 1]} : vector<32x192xf32> to vector<32x64xf32>
      %14 = arith.truncf %13 : vector<32x64xf32> to vector<32x64xbf16>
      %c0_12 = arith.constant 0 : index
      %c0_13 = arith.constant 0 : index
      %15 = vector.load %arg5[%c0_12, %c0_13] : memref<32x64xbf16, #tpu.memory_space<vmem>>, vector<32x64xbf16>
      tpu.vector_store %arg5[%c0_12, %c0_13], %14 {strides = array<i32>} : memref<32x64xbf16, #tpu.memory_space<vmem>>, vector<32x64xbf16>,
      %16 = vector.extract_strided_slice %12 {offsets = [0, 64], sizes = [32, 128], strides = [1, 1]} : vector<32x192xf32> to vector<32x128xf32>
      %17 = math.tanh %16 : vector<32x128xf32>
      %18 = arith.truncf %17 : vector<32x128xf32> to vector<32x128xbf16>
      %c0_14 = arith.constant 0 : index
      %c0_15 = arith.constant 0 : index
      %19 = vector.load %arg4[%c0_14, %c0_15] : memref<128x64xbf16, #tpu.memory_space<vmem>>, vector<128x64xbf16>
      %cst_16 = arith.constant dense<0.000000e+00> : vector<32x64xf32>
      %20 = tpu.matmul %18, %19, %cst_16 {dimension_numbers = #tpu.dot_dimension_numbers<[1], [0], [0], [1], [0, 0, 1, 1], [], []>} : vector<32x128xbf16>, vector<128x64xbf16>, vector<32x64xf32> -> vector<32x64xf32>
      %21 = arith.truncf %20 : vector<32x64xf32> to vector<32x64xbf16>
      %c0_17 = arith.constant 0 : index
      %c0_18 = arith.constant 0 : index
      %22 = vector.load %arg6[%c0_17, %c0_18] : memref<32x64xbf16, #tpu.memory_space<vmem>>, vector<32x64xbf16>
      tpu.vector_store %arg6[%c0_17, %c0_18], %21 {strides = array<i32>} : memref<32x64xbf16, #tpu.memory_space<vmem>>, vector<32x64xbf16>,
    } else {
    }
    return
  }
  func.func @transform_0(%arg0: i32, %arg1: i32) -> (i32, i32) {
    %c0_i32 = arith.constant 0 : i32
    return %arg0, %arg1 : i32, i32
  }
  func.func @transform_1(%arg0: i32, %arg1: i32) -> (i32, i32) {
    %c0_i32 = arith.constant 0 : i32
    %c0_i32_0 = arith.constant 0 : i32
    return %arg1, %c0_i32 : i32, i32
  }
  func.func @transform_2(%arg0: i32, %arg1: i32) -> (i32, i32) {
    %c0_i32 = arith.constant 0 : i32
    %c0_i32_0 = arith.constant 0 : i32
    %c0_i32_1 = arith.constant 0 : i32
    return %c0_i32, %c0_i32_0 : i32, i32
  }
  func.func @transform_3(%arg0: i32, %arg1: i32) -> (i32, i32) {
    %c0_i32 = arith.constant 0 : i32
    %c0_i32_0 = arith.constant 0 : i32
    return %arg0, %c0_i32 : i32, i32
  }
  func.func @transform_4(%arg0: i32, %arg1: i32) -> (i32, i32) {
    %c0_i32 = arith.constant 0 : i32
    %c0_i32_0 = arith.constant 0 : i32
    return %arg0, %c0_i32 : i32, i32
  }
}

module attributes {stable_mosaic.version = 11 : i64} {
  func.func @_pre_attn_kernel(%arg0: i32, %arg1: memref<32x96xbf16, #tpu.memory_space<vmem>>, %arg2: memref<32x96xbf16, #tpu.memory_space<vmem>>, %arg3: memref<96x192xbf16, #tpu.memory_space<vmem>>, %arg4: memref<32x128xbf16, #tpu.memory_space<vmem>>, %arg5: memref<4x64xf32, #tpu.memory_space<vmem>>, %arg6: memref<64x2xf32, #tpu.memory_space<vmem>>, %arg7: memref<32x64xbf16, #tpu.memory_space<vmem>>, %arg8: memref<32x64xbf16, #tpu.memory_space<vmem>>, %arg9: memref<32x64xbf16, #tpu.memory_space<vmem>>, %arg10: memref<32x64xbf16, #tpu.memory_space<vmem>>) attributes {dimension_semantics = [#tpu.dimension_semantics<parallel>], iteration_bounds = array<i64: 1>, scalar_prefetch = 0 : i64, scratch_operands = 0 : i64, tpu.core_type = #tpu.core_type<tc>, window_params = [{transform_indices = @transform_0, window_bounds = array<i64: 32, 96>}, {transform_indices = @transform_1, window_bounds = array<i64: 32, 96>}, {pipeline_mode = #tpu.pipeline_mode<synchronous>, transform_indices = @transform_2, window_bounds = array<i64: 96, 192>}, {pipeline_mode = #tpu.pipeline_mode<synchronous>, transform_indices = @transform_3, window_bounds = array<i64: 32, 128>}, {pipeline_mode = #tpu.pipeline_mode<synchronous>, transform_indices = @transform_4, window_bounds = array<i64: 4, 64>}, {pipeline_mode = #tpu.pipeline_mode<synchronous>, transform_indices = @transform_5, window_bounds = array<i64: 64, 2>}, {transform_indices = @transform_6, window_bounds = array<i64: 32, 64>}, {transform_indices = @transform_7, window_bounds = array<i64: 32, 64>}, {transform_indices = @transform_8, window_bounds = array<i64: 32, 64>}, {transform_indices = @transform_9, window_bounds = array<i64: 32, 64>}]} {
    %c0 = arith.constant 0 : index
    %c0_0 = arith.constant 0 : index
    %0 = vector.load %arg1[%c0, %c0_0] : memref<32x96xbf16, #tpu.memory_space<vmem>>, vector<32x96xbf16>
    %1 = vector.extract_strided_slice %0 {offsets = [0, 0], sizes = [32, 64], strides = [1, 1]} : vector<32x96xbf16> to vector<32x64xbf16>
    %2 = arith.extf %1 : vector<32x64xbf16> to vector<32x64xf32>
    %3 = vector.extract_strided_slice %0 {offsets = [0, 64], sizes = [32, 32], strides = [1, 1]} : vector<32x96xbf16> to vector<32x32xbf16>
    %4 = arith.extf %3 : vector<32x32xbf16> to vector<32x32xf32>
    %c0_1 = arith.constant 0 : index
    %c0_2 = arith.constant 0 : index
    %5 = vector.load %arg2[%c0_1, %c0_2] : memref<32x96xbf16, #tpu.memory_space<vmem>>, vector<32x96xbf16>
    %6 = arith.extf %5 : vector<32x96xbf16> to vector<32x96xf32>
    %7 = tpu.iota {dimensions = array<i32: 1>} : vector<32x96xi32>
    %c64_i32 = arith.constant 64 : i32
    %8 = vector.broadcast %c64_i32 : i32 to vector<32x96xi32>
    %9 = arith.cmpi slt, %7, %8 : vector<32x96xi32>
    %10 = math.tanh %6 : vector<32x96xf32>
    %11 = arith.select %9, %10, %6 : vector<32x96xi1>, vector<32x96xf32>
    %12 = arith.truncf %11 : vector<32x96xf32> to vector<32x96xbf16>
    %13 = tpu.iota {dimensions = array<i32: 1>} : vector<32x32xi32>
    %c16_i32 = arith.constant 16 : i32
    %14 = vector.broadcast %c16_i32 : i32 to vector<32x32xi32>
    %15 = arith.cmpi slt, %13, %14 : vector<32x32xi32>
    %16 = math.tanh %4 : vector<32x32xf32>
    %17 = arith.select %15, %16, %4 : vector<32x32xi1>, vector<32x32xf32>
    %18 = arith.truncf %17 : vector<32x32xf32> to vector<32x32xbf16>
    %c0_3 = arith.constant 0 : index
    %c0_4 = arith.constant 0 : index
    %19 = vector.load %arg3[%c0_3, %c0_4] : memref<96x192xbf16, #tpu.memory_space<vmem>>, vector<96x192xbf16>
    %cst = arith.constant dense<0.000000e+00> : vector<32x192xf32>
    %20 = tpu.matmul %12, %19, %cst {dimension_numbers = #tpu.dot_dimension_numbers<[1], [0], [0], [1], [0, 0, 1, 1], [], []>} : vector<32x96xbf16>, vector<96x192xbf16>, vector<32x192xf32> -> vector<32x192xf32>
    %c0_5 = arith.constant 0 : index
    %c0_6 = arith.constant 0 : index
    %21 = vector.load %arg4[%c0_5, %c0_6] : memref<32x128xbf16, #tpu.memory_space<vmem>>, vector<32x128xbf16>
    %cst_7 = arith.constant dense<0.000000e+00> : vector<32x128xf32>
    %22 = tpu.matmul %18, %21, %cst_7 {dimension_numbers = #tpu.dot_dimension_numbers<[1], [0], [0], [1], [0, 0, 1, 1], [], []>} : vector<32x32xbf16>, vector<32x128xbf16>, vector<32x128xf32> -> vector<32x128xf32>
    %23 = vector.extract_strided_slice %20 {offsets = [0, 0], sizes = [32, 64], strides = [1, 1]} : vector<32x192xf32> to vector<32x64xf32>
    %24 = vector.extract_strided_slice %20 {offsets = [0, 64], sizes = [32, 64], strides = [1, 1]} : vector<32x192xf32> to vector<32x64xf32>
    %25 = vector.extract_strided_slice %20 {offsets = [0, 128], sizes = [32, 64], strides = [1, 1]} : vector<32x192xf32> to vector<32x64xf32>
    %26 = vector.extract_strided_slice %22 {offsets = [0, 0], sizes = [32, 64], strides = [1, 1]} : vector<32x128xf32> to vector<32x64xf32>
    %27 = vector.extract_strided_slice %22 {offsets = [0, 64], sizes = [32, 64], strides = [1, 1]} : vector<32x128xf32> to vector<32x64xf32>
    %c0_8 = arith.constant 0 : index
    %c0_9 = arith.constant 0 : index
    %28 = vector.load %arg5[%c0_8, %c0_9] : memref<4x64xf32, #tpu.memory_space<vmem>>, vector<4x64xf32>
    %29 = vector.extract_strided_slice %28 {offsets = [0, 0], sizes = [1, 64], strides = [1, 1]} : vector<4x64xf32> to vector<1x64xf32>
    %30 = vector.broadcast %29 : vector<1x64xf32> to vector<32x64xf32>
    %31 = arith.addf %30, %23 : vector<32x64xf32>
    %cst_10 = arith.constant 0.000000e+00 : f32
    %32 = vector.broadcast %cst_10 : f32 to vector<32x64xf32>
    %33 = arith.subf %32, %31 : vector<32x64xf32>
    %cst_11 = arith.constant 0.000000e+00 : f32
    %34 = vector.broadcast %cst_11 : f32 to vector<32x64xf32>
    %35 = arith.maximumf %33, %34 : vector<32x64xf32>
    %36 = math.absf %33 : vector<32x64xf32>
    %cst_12 = arith.constant 0.000000e+00 : f32
    %37 = vector.broadcast %cst_12 : f32 to vector<32x64xf32>
    %38 = arith.subf %37, %36 : vector<32x64xf32>
    %39 = math.exp %38 : vector<32x64xf32>
    %cst_13 = arith.constant 1.000000e+00 : f32
    %40 = vector.broadcast %cst_13 : f32 to vector<32x64xf32>
    %41 = arith.addf %40, %39 : vector<32x64xf32>
    %42 = math.log %41 : vector<32x64xf32>
    %43 = arith.addf %35, %42 : vector<32x64xf32>
    %cst_14 = arith.constant 0.000000e+00 : f32
    %44 = vector.broadcast %cst_14 : f32 to vector<32x64xf32>
    %45 = arith.subf %44, %43 : vector<32x64xf32>
    %cst_15 = arith.constant 5.000000e-01 : f32
    %46 = vector.broadcast %cst_15 : f32 to vector<32x64xf32>
    %47 = arith.subf %45, %46 : vector<32x64xf32>
    %48 = vector.extract_strided_slice %28 {offsets = [1, 0], sizes = [1, 64], strides = [1, 1]} : vector<4x64xf32> to vector<1x64xf32>
    %49 = vector.broadcast %48 : vector<1x64xf32> to vector<32x64xf32>
    %50 = arith.addf %49, %24 : vector<32x64xf32>
    %cst_16 = arith.constant 0.000000e+00 : f32
    %51 = vector.broadcast %cst_16 : f32 to vector<32x64xf32>
    %52 = arith.subf %51, %50 : vector<32x64xf32>
    %53 = math.exp %52 : vector<32x64xf32>
    %cst_17 = arith.constant 1.000000e+00 : f32
    %54 = vector.broadcast %cst_17 : f32 to vector<32x64xf32>
    %55 = arith.addf %54, %53 : vector<32x64xf32>
    %cst_18 = arith.constant 1.000000e+00 : f32
    %56 = vector.broadcast %cst_18 : f32 to vector<32x64xf32>
    %57 = arith.divf %56, %55 : vector<32x64xf32>
    %58 = vector.extract_strided_slice %28 {offsets = [2, 0], sizes = [1, 64], strides = [1, 1]} : vector<4x64xf32> to vector<1x64xf32>
    %59 = vector.broadcast %58 : vector<1x64xf32> to vector<32x64xf32>
    %60 = arith.addf %59, %25 : vector<32x64xf32>
    %cst_19 = arith.constant 0.000000e+00 : f32
    %61 = vector.broadcast %cst_19 : f32 to vector<32x64xf32>
    %62 = arith.subf %61, %60 : vector<32x64xf32>
    %63 = math.exp %62 : vector<32x64xf32>
    %cst_20 = arith.constant 1.000000e+00 : f32
    %64 = vector.broadcast %cst_20 : f32 to vector<32x64xf32>
    %65 = arith.addf %64, %63 : vector<32x64xf32>
    %cst_21 = arith.constant 1.000000e+00 : f32
    %66 = vector.broadcast %cst_21 : f32 to vector<32x64xf32>
    %67 = arith.divf %66, %65 : vector<32x64xf32>
    %68 = vector.extract_strided_slice %28 {offsets = [3, 0], sizes = [1, 64], strides = [1, 1]} : vector<4x64xf32> to vector<1x64xf32>
    %69 = vector.broadcast %68 : vector<1x64xf32> to vector<32x64xf32>
    %70 = arith.addf %69, %27 : vector<32x64xf32>
    %cst_22 = arith.constant 0.000000e+00 : f32
    %71 = vector.broadcast %cst_22 : f32 to vector<32x64xf32>
    %72 = arith.subf %71, %70 : vector<32x64xf32>
    %73 = math.exp %72 : vector<32x64xf32>
    %cst_23 = arith.constant 1.000000e+00 : f32
    %74 = vector.broadcast %cst_23 : f32 to vector<32x64xf32>
    %75 = arith.addf %74, %73 : vector<32x64xf32>
    %cst_24 = arith.constant 1.000000e+00 : f32
    %76 = vector.broadcast %cst_24 : f32 to vector<32x64xf32>
    %77 = arith.divf %76, %75 : vector<32x64xf32>
    %78 = arith.addf %2, %26 : vector<32x64xf32>
    %c0_25 = arith.constant 0 : index
    %c0_26 = arith.constant 0 : index
    %79 = vector.load %arg6[%c0_25, %c0_26] : memref<64x2xf32, #tpu.memory_space<vmem>>, vector<64x2xf32>
    %80 = arith.mulf %78, %78 : vector<32x64xf32>
    %cst_27 = arith.constant dense<0.000000e+00> : vector<32x2xf32>
    %81 = tpu.matmul %80, %79, %cst_27 {dimension_numbers = #tpu.dot_dimension_numbers<[1], [0], [0], [1], [0, 0, 1, 1], [], []>} : vector<32x64xf32>, vector<64x2xf32>, vector<32x2xf32> -> vector<32x2xf32>
    %cst_28 = arith.constant dense<0.000000e+00> : vector<32x64xf32>
    %82 = tpu.matmul %81, %79, %cst_28 {dimension_numbers = #tpu.dot_dimension_numbers<[1], [1], [0], [0], [0, 0, 1, 0], [], []>} : vector<32x2xf32>, vector<64x2xf32>, vector<32x64xf32> -> vector<32x64xf32>
    %83 = math.sqrt %82 : vector<32x64xf32>
    %cst_29 = arith.constant 9.99999996E-13 : f32
    %84 = vector.broadcast %cst_29 : f32 to vector<32x64xf32>
    %85 = arith.maximumf %83, %84 : vector<32x64xf32>
    %86 = arith.divf %78, %85 : vector<32x64xf32>
    %87 = arith.truncf %86 : vector<32x64xf32> to vector<32x64xbf16>
    %88 = arith.extf %87 : vector<32x64xbf16> to vector<32x64xf32>
    %89 = arith.mulf %2, %67 : vector<32x64xf32>
    %90 = arith.mulf %2, %57 : vector<32x64xf32>
    %cst_30 = arith.constant 1.000000e+00 : f32
    %91 = vector.broadcast %cst_30 : f32 to vector<32x64xf32>
    %92 = arith.subf %91, %67 : vector<32x64xf32>
    %93 = arith.mulf %90, %92 : vector<32x64xf32>
    %94 = arith.addf %89, %93 : vector<32x64xf32>
    %95 = arith.mulf %47, %77 : vector<32x64xf32>
    %96 = math.exp %95 : vector<32x64xf32>
    %97 = arith.mulf %94, %96 : vector<32x64xf32>
    %98 = arith.truncf %47 : vector<32x64xf32> to vector<32x64xbf16>
    %c0_31 = arith.constant 0 : index
    %c0_32 = arith.constant 0 : index
    %99 = vector.load %arg7[%c0_31, %c0_32] : memref<32x64xbf16, #tpu.memory_space<vmem>>, vector<32x64xbf16>
    tpu.vector_store %arg7[%c0_31, %c0_32], %98 {strides = array<i32>} : memref<32x64xbf16, #tpu.memory_space<vmem>>, vector<32x64xbf16>,
    %100 = arith.truncf %88 : vector<32x64xf32> to vector<32x64xbf16>
    %c0_33 = arith.constant 0 : index
    %c0_34 = arith.constant 0 : index
    %101 = vector.load %arg8[%c0_33, %c0_34] : memref<32x64xbf16, #tpu.memory_space<vmem>>, vector<32x64xbf16>
    tpu.vector_store %arg8[%c0_33, %c0_34], %100 {strides = array<i32>} : memref<32x64xbf16, #tpu.memory_space<vmem>>, vector<32x64xbf16>,
    %102 = arith.truncf %97 : vector<32x64xf32> to vector<32x64xbf16>
    %c0_35 = arith.constant 0 : index
    %c0_36 = arith.constant 0 : index
    %103 = vector.load %arg9[%c0_35, %c0_36] : memref<32x64xbf16, #tpu.memory_space<vmem>>, vector<32x64xbf16>
    tpu.vector_store %arg9[%c0_35, %c0_36], %102 {strides = array<i32>} : memref<32x64xbf16, #tpu.memory_space<vmem>>, vector<32x64xbf16>,
    %cst_37 = arith.constant 0.000000e+00 : f32
    %104 = vector.broadcast %cst_37 : f32 to vector<32x64xf32>
    %105 = arith.subf %104, %88 : vector<32x64xf32>
    %106 = arith.mulf %105, %57 : vector<32x64xf32>
    %107 = arith.truncf %106 : vector<32x64xf32> to vector<32x64xbf16>
    %c0_38 = arith.constant 0 : index
    %c0_39 = arith.constant 0 : index
    %108 = vector.load %arg10[%c0_38, %c0_39] : memref<32x64xbf16, #tpu.memory_space<vmem>>, vector<32x64xbf16>
    tpu.vector_store %arg10[%c0_38, %c0_39], %107 {strides = array<i32>} : memref<32x64xbf16, #tpu.memory_space<vmem>>, vector<32x64xbf16>,
    return
  }
  func.func @transform_0(%arg0: i32) -> (i32, i32) {
    %c0_i32 = arith.constant 0 : i32
    %c0_i32_0 = arith.constant 0 : i32
    return %arg0, %c0_i32 : i32, i32
  }
  func.func @transform_1(%arg0: i32) -> (i32, i32) {
    %c0_i32 = arith.constant 0 : i32
    %c0_i32_0 = arith.constant 0 : i32
    return %arg0, %c0_i32 : i32, i32
  }
  func.func @transform_2(%arg0: i32) -> (i32, i32) {
    %c0_i32 = arith.constant 0 : i32
    %c0_i32_0 = arith.constant 0 : i32
    %c0_i32_1 = arith.constant 0 : i32
    return %c0_i32, %c0_i32_0 : i32, i32
  }
  func.func @transform_3(%arg0: i32) -> (i32, i32) {
    %c0_i32 = arith.constant 0 : i32
    %c0_i32_0 = arith.constant 0 : i32
    %c0_i32_1 = arith.constant 0 : i32
    return %c0_i32, %c0_i32_0 : i32, i32
  }
  func.func @transform_4(%arg0: i32) -> (i32, i32) {
    %c0_i32 = arith.constant 0 : i32
    %c0_i32_0 = arith.constant 0 : i32
    %c0_i32_1 = arith.constant 0 : i32
    return %c0_i32, %c0_i32_0 : i32, i32
  }
  func.func @transform_5(%arg0: i32) -> (i32, i32) {
    %c0_i32 = arith.constant 0 : i32
    %c0_i32_0 = arith.constant 0 : i32
    %c0_i32_1 = arith.constant 0 : i32
    return %c0_i32, %c0_i32_0 : i32, i32
  }
  func.func @transform_6(%arg0: i32) -> (i32, i32) {
    %c0_i32 = arith.constant 0 : i32
    %c0_i32_0 = arith.constant 0 : i32
    return %arg0, %c0_i32 : i32, i32
  }
  func.func @transform_7(%arg0: i32) -> (i32, i32) {
    %c0_i32 = arith.constant 0 : i32
    %c0_i32_0 = arith.constant 0 : i32
    return %arg0, %c0_i32 : i32, i32
  }
  func.func @transform_8(%arg0: i32) -> (i32, i32) {
    %c0_i32 = arith.constant 0 : i32
    %c0_i32_0 = arith.constant 0 : i32
    return %arg0, %c0_i32 : i32, i32
  }
  func.func @transform_9(%arg0: i32) -> (i32, i32) {
    %c0_i32 = arith.constant 0 : i32
    %c0_i32_0 = arith.constant 0 : i32
    return %arg0, %c0_i32 : i32, i32
  }
}

module attributes {stable_mosaic.version = 11 : i64} {
  func.func @_linear_kernel(%arg0: i32, %arg1: i32, %arg2: i32, %arg3: memref<32x64xbf16, #tpu.memory_space<vmem>>, %arg4: memref<64x64xbf16, #tpu.memory_space<vmem>>, %arg5: memref<32x64xbf16, #tpu.memory_space<vmem>>, %arg6: memref<32x64xf32, #tpu.memory_space<vmem>>) attributes {dimension_semantics = [#tpu.dimension_semantics<parallel>, #tpu.dimension_semantics<parallel>, #tpu.dimension_semantics<arbitrary>], iteration_bounds = array<i64: 1, 1, 1>, scalar_prefetch = 0 : i64, scratch_operands = 1 : i64, tpu.core_type = #tpu.core_type<tc>, window_params = [{transform_indices = @transform_0, window_bounds = array<i64: 32, 64>}, {transform_indices = @transform_1, window_bounds = array<i64: 64, 64>}, {transform_indices = @transform_2, window_bounds = array<i64: 32, 64>}]} {
    %c0_i32 = arith.constant 0 : i32
    %0 = arith.cmpi eq, %arg2, %c0_i32 : i32
    %1 = arith.extui %0 : i1 to i32
    %c0_i32_0 = arith.constant 0 : i32
    %2 = arith.cmpi ne, %1, %c0_i32_0 : i32
    scf.if %2 {
      %cst_10 = arith.constant 0.000000e+00 : f32
      %12 = vector.broadcast %cst_10 : f32 to vector<32x64xf32>
      %c0_11 = arith.constant 0 : index
      %c0_12 = arith.constant 0 : index
      %13 = vector.load %arg6[%c0_11, %c0_12] : memref<32x64xf32, #tpu.memory_space<vmem>>, vector<32x64xf32>
      tpu.vector_store %arg6[%c0_11, %c0_12], %12 {strides = array<i32>} : memref<32x64xf32, #tpu.memory_space<vmem>>, vector<32x64xf32>,
    } else {
    }
    %c0 = arith.constant 0 : index
    %c0_1 = arith.constant 0 : index
    %3 = vector.load %arg6[%c0, %c0_1] : memref<32x64xf32, #tpu.memory_space<vmem>>, vector<32x64xf32>
    %c0_2 = arith.constant 0 : index
    %c0_3 = arith.constant 0 : index
    %4 = vector.load %arg3[%c0_2, %c0_3] : memref<32x64xbf16, #tpu.memory_space<vmem>>, vector<32x64xbf16>
    %c0_4 = arith.constant 0 : index
    %c0_5 = arith.constant 0 : index
    %5 = vector.load %arg4[%c0_4, %c0_5] : memref<64x64xbf16, #tpu.memory_space<vmem>>, vector<64x64xbf16>
    %cst = arith.constant dense<0.000000e+00> : vector<32x64xf32>
    %6 = tpu.matmul %4, %5, %cst {dimension_numbers = #tpu.dot_dimension_numbers<[1], [0], [0], [1], [0, 0, 1, 1], [], []>} : vector<32x64xbf16>, vector<64x64xbf16>, vector<32x64xf32> -> vector<32x64xf32>
    %7 = arith.addf %3, %6 : vector<32x64xf32>
    %c0_6 = arith.constant 0 : index
    %c0_7 = arith.constant 0 : index
    %8 = vector.load %arg6[%c0_6, %c0_7] : memref<32x64xf32, #tpu.memory_space<vmem>>, vector<32x64xf32>
    tpu.vector_store %arg6[%c0_6, %c0_7], %7 {strides = array<i32>} : memref<32x64xf32, #tpu.memory_space<vmem>>, vector<32x64xf32>,
    %c0_i32_8 = arith.constant 0 : i32
    %9 = arith.cmpi eq, %arg2, %c0_i32_8 : i32
    %10 = arith.extui %9 : i1 to i32
    %c0_i32_9 = arith.constant 0 : i32
    %11 = arith.cmpi ne, %10, %c0_i32_9 : i32
    scf.if %11 {
      %c0_10 = arith.constant 0 : index
      %c0_11 = arith.constant 0 : index
      %12 = vector.load %arg6[%c0_10, %c0_11] : memref<32x64xf32, #tpu.memory_space<vmem>>, vector<32x64xf32>
      %13 = arith.truncf %12 : vector<32x64xf32> to vector<32x64xbf16>
      %c0_12 = arith.constant 0 : index
      %c0_13 = arith.constant 0 : index
      %14 = vector.load %arg5[%c0_12, %c0_13] : memref<32x64xbf16, #tpu.memory_space<vmem>>, vector<32x64xbf16>
      tpu.vector_store %arg5[%c0_12, %c0_13], %13 {strides = array<i32>} : memref<32x64xbf16, #tpu.memory_space<vmem>>, vector<32x64xbf16>,
    } else {
    }
    return
  }
  func.func @transform_0(%arg0: i32, %arg1: i32, %arg2: i32) -> (i32, i32) {
    %c0_i32 = arith.constant 0 : i32
    return %arg0, %arg2 : i32, i32
  }
  func.func @transform_1(%arg0: i32, %arg1: i32, %arg2: i32) -> (i32, i32) {
    %c0_i32 = arith.constant 0 : i32
    return %arg2, %arg1 : i32, i32
  }
  func.func @transform_2(%arg0: i32, %arg1: i32, %arg2: i32) -> (i32, i32) {
    %c0_i32 = arith.constant 0 : i32
    return %arg0, %arg1 : i32, i32
  }
}

module attributes {stable_mosaic.version = 11 : i64} {
  func.func @_linear_kernel(%arg0: i32, %arg1: i32, %arg2: i32, %arg3: memref<32x64xbf16, #tpu.memory_space<vmem>>, %arg4: memref<64x64xbf16, #tpu.memory_space<vmem>>, %arg5: memref<32x64xbf16, #tpu.memory_space<vmem>>, %arg6: memref<32x64xf32, #tpu.memory_space<vmem>>) attributes {dimension_semantics = [#tpu.dimension_semantics<parallel>, #tpu.dimension_semantics<parallel>, #tpu.dimension_semantics<arbitrary>], iteration_bounds = array<i64: 1, 1, 1>, scalar_prefetch = 0 : i64, scratch_operands = 1 : i64, tpu.core_type = #tpu.core_type<tc>, window_params = [{transform_indices = @transform_0, window_bounds = array<i64: 32, 64>}, {transform_indices = @transform_1, window_bounds = array<i64: 64, 64>}, {transform_indices = @transform_2, window_bounds = array<i64: 32, 64>}]} {
    %c0_i32 = arith.constant 0 : i32
    %0 = arith.cmpi eq, %arg2, %c0_i32 : i32
    %1 = arith.extui %0 : i1 to i32
    %c0_i32_0 = arith.constant 0 : i32
    %2 = arith.cmpi ne, %1, %c0_i32_0 : i32
    scf.if %2 {
      %cst_10 = arith.constant 0.000000e+00 : f32
      %12 = vector.broadcast %cst_10 : f32 to vector<32x64xf32>
      %c0_11 = arith.constant 0 : index
      %c0_12 = arith.constant 0 : index
      %13 = vector.load %arg6[%c0_11, %c0_12] : memref<32x64xf32, #tpu.memory_space<vmem>>, vector<32x64xf32>
      tpu.vector_store %arg6[%c0_11, %c0_12], %12 {strides = array<i32>} : memref<32x64xf32, #tpu.memory_space<vmem>>, vector<32x64xf32>,
    } else {
    }
    %c0 = arith.constant 0 : index
    %c0_1 = arith.constant 0 : index
    %3 = vector.load %arg6[%c0, %c0_1] : memref<32x64xf32, #tpu.memory_space<vmem>>, vector<32x64xf32>
    %c0_2 = arith.constant 0 : index
    %c0_3 = arith.constant 0 : index
    %4 = vector.load %arg3[%c0_2, %c0_3] : memref<32x64xbf16, #tpu.memory_space<vmem>>, vector<32x64xbf16>
    %c0_4 = arith.constant 0 : index
    %c0_5 = arith.constant 0 : index
    %5 = vector.load %arg4[%c0_4, %c0_5] : memref<64x64xbf16, #tpu.memory_space<vmem>>, vector<64x64xbf16>
    %cst = arith.constant dense<0.000000e+00> : vector<32x64xf32>
    %6 = tpu.matmul %4, %5, %cst {dimension_numbers = #tpu.dot_dimension_numbers<[1], [0], [0], [1], [0, 0, 1, 1], [], []>} : vector<32x64xbf16>, vector<64x64xbf16>, vector<32x64xf32> -> vector<32x64xf32>
    %7 = arith.addf %3, %6 : vector<32x64xf32>
    %c0_6 = arith.constant 0 : index
    %c0_7 = arith.constant 0 : index
    %8 = vector.load %arg6[%c0_6, %c0_7] : memref<32x64xf32, #tpu.memory_space<vmem>>, vector<32x64xf32>
    tpu.vector_store %arg6[%c0_6, %c0_7], %7 {strides = array<i32>} : memref<32x64xf32, #tpu.memory_space<vmem>>, vector<32x64xf32>,
    %c0_i32_8 = arith.constant 0 : i32
    %9 = arith.cmpi eq, %arg2, %c0_i32_8 : i32
    %10 = arith.extui %9 : i1 to i32
    %c0_i32_9 = arith.constant 0 : i32
    %11 = arith.cmpi ne, %10, %c0_i32_9 : i32
    scf.if %11 {
      %c0_10 = arith.constant 0 : index
      %c0_11 = arith.constant 0 : index
      %12 = vector.load %arg6[%c0_10, %c0_11] : memref<32x64xf32, #tpu.memory_space<vmem>>, vector<32x64xf32>
      %13 = arith.truncf %12 : vector<32x64xf32> to vector<32x64xbf16>
      %c0_12 = arith.constant 0 : index
      %c0_13 = arith.constant 0 : index
      %14 = vector.load %arg5[%c0_12, %c0_13] : memref<32x64xbf16, #tpu.memory_space<vmem>>, vector<32x64xbf16>
      tpu.vector_store %arg5[%c0_12, %c0_13], %13 {strides = array<i32>} : memref<32x64xbf16, #tpu.memory_space<vmem>>, vector<32x64xbf16>,
    } else {
    }
    return
  }
  func.func @transform_0(%arg0: i32, %arg1: i32, %arg2: i32) -> (i32, i32) {
    %c0_i32 = arith.constant 0 : i32
    return %arg0, %arg2 : i32, i32
  }
  func.func @transform_1(%arg0: i32, %arg1: i32, %arg2: i32) -> (i32, i32) {
    %c0_i32 = arith.constant 0 : i32
    return %arg2, %arg1 : i32, i32
  }
  func.func @transform_2(%arg0: i32, %arg1: i32, %arg2: i32) -> (i32, i32) {
    %c0_i32 = arith.constant 0 : i32
    return %arg0, %arg1 : i32, i32
  }
}

module attributes {stable_mosaic.version = 11 : i64} {
  func.func @_attn_ln_kernel(%arg0: i32, %arg1: i32, %arg2: memref<1x16x64xbf16, #tpu.memory_space<vmem>>, %arg3: memref<1x16x64xbf16, #tpu.memory_space<vmem>>, %arg4: memref<1x16x64xbf16, #tpu.memory_space<vmem>>, %arg5: memref<1x16x64xbf16, #tpu.memory_space<vmem>>, %arg6: memref<1x16x64xbf16, #tpu.memory_space<vmem>>, %arg7: memref<1x16x64xbf16, #tpu.memory_space<vmem>>, %arg8: memref<1x16x64xbf16, #tpu.memory_space<vmem>>, %arg9: memref<1x64xf32, #tpu.memory_space<vmem>>, %arg10: memref<1x64xf32, #tpu.memory_space<vmem>>, %arg11: memref<1x64xf32, #tpu.memory_space<vmem>>, %arg12: memref<64x2xf32, #tpu.memory_space<vmem>>, %arg13: memref<1x16x64xbf16, #tpu.memory_space<vmem>>, %arg14: memref<32x64xf32, #tpu.memory_space<vmem>>) attributes {dimension_semantics = [#tpu.dimension_semantics<parallel>, #tpu.dimension_semantics<arbitrary>], iteration_bounds = array<i64: 2, 1>, scalar_prefetch = 0 : i64, scratch_operands = 1 : i64, tpu.core_type = #tpu.core_type<tc>, window_params = [{transform_indices = @transform_0, window_bounds = array<i64: 1, 16, 64>}, {transform_indices = @transform_1, window_bounds = array<i64: 1, 16, 64>}, {transform_indices = @transform_2, window_bounds = array<i64: 1, 16, 64>}, {transform_indices = @transform_3, window_bounds = array<i64: 1, 16, 64>}, {transform_indices = @transform_4, window_bounds = array<i64: 1, 16, 64>}, {transform_indices = @transform_5, window_bounds = array<i64: 1, 16, 64>}, {transform_indices = @transform_6, window_bounds = array<i64: 1, 16, 64>}, {pipeline_mode = #tpu.pipeline_mode<synchronous>, transform_indices = @transform_7, window_bounds = array<i64: 1, 64>}, {pipeline_mode = #tpu.pipeline_mode<synchronous>, transform_indices = @transform_8, window_bounds = array<i64: 1, 64>}, {pipeline_mode = #tpu.pipeline_mode<synchronous>, transform_indices = @transform_9, window_bounds = array<i64: 1, 64>}, {pipeline_mode = #tpu.pipeline_mode<synchronous>, transform_indices = @transform_10, window_bounds = array<i64: 64, 2>}, {transform_indices = @transform_11, window_bounds = array<i64: 1, 16, 64>}]} {
    %c0_i32 = arith.constant 0 : i32
    %0 = arith.cmpi eq, %arg1, %c0_i32 : i32
    %1 = arith.extui %0 : i1 to i32
    %c0_i32_0 = arith.constant 0 : i32
    %2 = arith.cmpi ne, %1, %c0_i32_0 : i32
    scf.if %2 {
      %cst_112 = arith.constant 0.000000e+00 : f32
      %663 = vector.broadcast %cst_112 : f32 to vector<32x64xf32>
      %c0_113 = arith.constant 0 : index
      %c0_114 = arith.constant 0 : index
      %664 = vector.load %arg14[%c0_113, %c0_114] : memref<32x64xf32, #tpu.memory_space<vmem>>, vector<32x64xf32>
      tpu.vector_store %arg14[%c0_113, %c0_114], %663 {strides = array<i32>} : memref<32x64xf32, #tpu.memory_space<vmem>>, vector<32x64xf32>,
    } else {
    }
    %c0 = arith.constant 0 : index
    %c0_1 = arith.constant 0 : index
    %c0_2 = arith.constant 0 : index
    %3 = vector.load %arg2[%c0, %c0_1, %c0_2] : memref<1x16x64xbf16, #tpu.memory_space<vmem>>, vector<1x16x64xbf16>
    %4 = vector.shape_cast %3 : vector<1x16x64xbf16> to vector<16x64xbf16>
    %5 = arith.extf %4 : vector<16x64xbf16> to vector<16x64xf32>
    %c0_3 = arith.constant 0 : index
    %c0_4 = arith.constant 0 : index
    %c0_5 = arith.constant 0 : index
    %6 = vector.load %arg3[%c0_3, %c0_4, %c0_5] : memref<1x16x64xbf16, #tpu.memory_space<vmem>>, vector<1x16x64xbf16>
    %7 = vector.shape_cast %6 : vector<1x16x64xbf16> to vector<16x64xbf16>
    %8 = arith.extf %7 : vector<16x64xbf16> to vector<16x64xf32>
    %9 = math.exp %8 : vector<16x64xf32>
    %cst = arith.constant 0.000000e+00 : f32
    %10 = vector.broadcast %cst : f32 to vector<16x64xf32>
    %11 = arith.subf %10, %9 : vector<16x64xf32>
    %12 = math.exp %11 : vector<16x64xf32>
    %c0_6 = arith.constant 0 : index
    %c0_7 = arith.constant 0 : index
    %c0_8 = arith.constant 0 : index
    %13 = vector.load %arg4[%c0_6, %c0_7, %c0_8] : memref<1x16x64xbf16, #tpu.memory_space<vmem>>, vector<1x16x64xbf16>
    %14 = vector.shape_cast %13 : vector<1x16x64xbf16> to vector<16x64xbf16>
    %15 = arith.extf %14 : vector<16x64xbf16> to vector<16x64xf32>
    %c0_9 = arith.constant 0 : index
    %c0_10 = arith.constant 0 : index
    %c0_11 = arith.constant 0 : index
    %16 = vector.load %arg5[%c0_9, %c0_10, %c0_11] : memref<1x16x64xbf16, #tpu.memory_space<vmem>>, vector<1x16x64xbf16>
    %17 = vector.shape_cast %16 : vector<1x16x64xbf16> to vector<16x64xbf16>
    %18 = arith.extf %17 : vector<16x64xbf16> to vector<16x64xf32>
    %c0_12 = arith.constant 0 : index
    %c0_13 = arith.constant 0 : index
    %c0_14 = arith.constant 0 : index
    %19 = vector.load %arg6[%c0_12, %c0_13, %c0_14] : memref<1x16x64xbf16, #tpu.memory_space<vmem>>, vector<1x16x64xbf16>
    %20 = vector.shape_cast %19 : vector<1x16x64xbf16> to vector<16x64xbf16>
    %21 = arith.extf %20 : vector<16x64xbf16> to vector<16x64xf32>
    %c0_15 = arith.constant 0 : index
    %c0_16 = arith.constant 0 : index
    %c0_17 = arith.constant 0 : index
    %22 = vector.load %arg7[%c0_15, %c0_16, %c0_17] : memref<1x16x64xbf16, #tpu.memory_space<vmem>>, vector<1x16x64xbf16>
    %23 = vector.shape_cast %22 : vector<1x16x64xbf16> to vector<16x64xbf16>
    %24 = arith.extf %23 : vector<16x64xbf16> to vector<16x64xf32>
    %c0_18 = arith.constant 0 : index
    %c0_19 = arith.constant 0 : index
    %25 = vector.load %arg14[%c0_18, %c0_19] : memref<32x64xf32, #tpu.memory_space<vmem>>, vector<32x32xf32>
    %26 = vector.extract_strided_slice %12 {offsets = [0, 0], sizes = [16, 32], strides = [1, 1]} : vector<16x64xf32> to vector<16x32xf32>
    %27 = tpu.transpose %26, [1, 0] : vector<16x32xf32> -> vector<32x16xf32>
    %28 = vector.extract_strided_slice %15 {offsets = [0, 0], sizes = [16, 32], strides = [1, 1]} : vector<16x64xf32> to vector<16x32xf32>
    %29 = tpu.transpose %28, [1, 0] : vector<16x32xf32> -> vector<32x16xf32>
    %30 = vector.extract_strided_slice %24 {offsets = [0, 0], sizes = [16, 32], strides = [1, 1]} : vector<16x64xf32> to vector<16x32xf32>
    %31 = tpu.transpose %30, [1, 0] : vector<16x32xf32> -> vector<32x16xf32>
    %32 = vector.extract_strided_slice %21 {offsets = [0, 0], sizes = [16, 32], strides = [1, 1]} : vector<16x64xf32> to vector<16x32xf32>
    %33 = vector.extract_strided_slice %5 {offsets = [0, 0], sizes = [16, 32], strides = [1, 1]} : vector<16x64xf32> to vector<16x32xf32>
    %34 = vector.extract_strided_slice %18 {offsets = [0, 0], sizes = [16, 32], strides = [1, 1]} : vector<16x64xf32> to vector<16x32xf32>
    %35 = vector.extract_strided_slice %32 {offsets = [0, 0], sizes = [1, 32], strides = [1, 1]} : vector<16x32xf32> to vector<1x32xf32>
    %cst_20 = arith.constant dense<0.000000e+00> : vector<1x32xf32>
    %36 = tpu.matmul %35, %25, %cst_20 {dimension_numbers = #tpu.dot_dimension_numbers<[1], [0], [0], [1], [0, 0, 1, 1], [], []>} : vector<1x32xf32>, vector<32x32xf32>, vector<1x32xf32> -> vector<1x32xf32>
    %37 = vector.extract_strided_slice %27 {offsets = [0, 0], sizes = [32, 1], strides = [1, 1]} : vector<32x16xf32> to vector<32x1xf32>
    %38 = vector.broadcast %37 : vector<32x1xf32> to vector<32x32xf32>
    %39 = arith.mulf %38, %25 : vector<32x32xf32>
    %40 = vector.extract_strided_slice %31 {offsets = [0, 0], sizes = [32, 1], strides = [1, 1]} : vector<32x16xf32> to vector<32x1xf32>
    %41 = vector.broadcast %40 : vector<32x1xf32> to vector<32x32xf32>
    %42 = vector.broadcast %36 : vector<1x32xf32> to vector<32x32xf32>
    %43 = arith.mulf %41, %42 : vector<32x32xf32>
    %44 = arith.addf %39, %43 : vector<32x32xf32>
    %45 = vector.extract_strided_slice %29 {offsets = [0, 0], sizes = [32, 1], strides = [1, 1]} : vector<32x16xf32> to vector<32x1xf32>
    %46 = vector.extract_strided_slice %34 {offsets = [0, 0], sizes = [1, 32], strides = [1, 1]} : vector<16x32xf32> to vector<1x32xf32>
    %47 = vector.broadcast %45 : vector<32x1xf32> to vector<32x32xf32>
    %48 = vector.broadcast %46 : vector<1x32xf32> to vector<32x32xf32>
    %49 = arith.mulf %47, %48 : vector<32x32xf32>
    %50 = arith.addf %44, %49 : vector<32x32xf32>
    %51 = vector.extract_strided_slice %33 {offsets = [0, 0], sizes = [1, 32], strides = [1, 1]} : vector<16x32xf32> to vector<1x32xf32>
    %cst_21 = arith.constant dense<0.000000e+00> : vector<1x32xf32>
    %52 = tpu.matmul %51, %50, %cst_21 {dimension_numbers = #tpu.dot_dimension_numbers<[1], [0], [0], [1], [0, 0, 1, 1], [], []>} : vector<1x32xf32>, vector<32x32xf32>, vector<1x32xf32> -> vector<1x32xf32>
    %53 = vector.extract_strided_slice %32 {offsets = [1, 0], sizes = [1, 32], strides = [1, 1]} : vector<16x32xf32> to vector<1x32xf32>
    %cst_22 = arith.constant dense<0.000000e+00> : vector<1x32xf32>
    %54 = tpu.matmul %53, %50, %cst_22 {dimension_numbers = #tpu.dot_dimension_numbers<[1], [0], [0], [1], [0, 0, 1, 1], [], []>} : vector<1x32xf32>, vector<32x32xf32>, vector<1x32xf32> -> vector<1x32xf32>
    %55 = vector.extract_strided_slice %27 {offsets = [0, 1], sizes = [32, 1], strides = [1, 1]} : vector<32x16xf32> to vector<32x1xf32>
    %56 = vector.broadcast %55 : vector<32x1xf32> to vector<32x32xf32>
    %57 = arith.mulf %56, %50 : vector<32x32xf32>
    %58 = vector.extract_strided_slice %31 {offsets = [0, 1], sizes = [32, 1], strides = [1, 1]} : vector<32x16xf32> to vector<32x1xf32>
    %59 = vector.broadcast %58 : vector<32x1xf32> to vector<32x32xf32>
    %60 = vector.broadcast %54 : vector<1x32xf32> to vector<32x32xf32>
    %61 = arith.mulf %59, %60 : vector<32x32xf32>
    %62 = arith.addf %57, %61 : vector<32x32xf32>
    %63 = vector.extract_strided_slice %29 {offsets = [0, 1], sizes = [32, 1], strides = [1, 1]} : vector<32x16xf32> to vector<32x1xf32>
    %64 = vector.extract_strided_slice %34 {offsets = [1, 0], sizes = [1, 32], strides = [1, 1]} : vector<16x32xf32> to vector<1x32xf32>
    %65 = vector.broadcast %63 : vector<32x1xf32> to vector<32x32xf32>
    %66 = vector.broadcast %64 : vector<1x32xf32> to vector<32x32xf32>
    %67 = arith.mulf %65, %66 : vector<32x32xf32>
    %68 = arith.addf %62, %67 : vector<32x32xf32>
    %69 = vector.extract_strided_slice %33 {offsets = [1, 0], sizes = [1, 32], strides = [1, 1]} : vector<16x32xf32> to vector<1x32xf32>
    %cst_23 = arith.constant dense<0.000000e+00> : vector<1x32xf32>
    %70 = tpu.matmul %69, %68, %cst_23 {dimension_numbers = #tpu.dot_dimension_numbers<[1], [0], [0], [1], [0, 0, 1, 1], [], []>} : vector<1x32xf32>, vector<32x32xf32>, vector<1x32xf32> -> vector<1x32xf32>
    %71 = vector.extract_strided_slice %32 {offsets = [2, 0], sizes = [1, 32], strides = [1, 1]} : vector<16x32xf32> to vector<1x32xf32>
    %cst_24 = arith.constant dense<0.000000e+00> : vector<1x32xf32>
    %72 = tpu.matmul %71, %68, %cst_24 {dimension_numbers = #tpu.dot_dimension_numbers<[1], [0], [0], [1], [0, 0, 1, 1], [], []>} : vector<1x32xf32>, vector<32x32xf32>, vector<1x32xf32> -> vector<1x32xf32>
    %73 = vector.extract_strided_slice %27 {offsets = [0, 2], sizes = [32, 1], strides = [1, 1]} : vector<32x16xf32> to vector<32x1xf32>
    %74 = vector.broadcast %73 : vector<32x1xf32> to vector<32x32xf32>
    %75 = arith.mulf %74, %68 : vector<32x32xf32>
    %76 = vector.extract_strided_slice %31 {offsets = [0, 2], sizes = [32, 1], strides = [1, 1]} : vector<32x16xf32> to vector<32x1xf32>
    %77 = vector.broadcast %76 : vector<32x1xf32> to vector<32x32xf32>
    %78 = vector.broadcast %72 : vector<1x32xf32> to vector<32x32xf32>
    %79 = arith.mulf %77, %78 : vector<32x32xf32>
    %80 = arith.addf %75, %79 : vector<32x32xf32>
    %81 = vector.extract_strided_slice %29 {offsets = [0, 2], sizes = [32, 1], strides = [1, 1]} : vector<32x16xf32> to vector<32x1xf32>
    %82 = vector.extract_strided_slice %34 {offsets = [2, 0], sizes = [1, 32], strides = [1, 1]} : vector<16x32xf32> to vector<1x32xf32>
    %83 = vector.broadcast %81 : vector<32x1xf32> to vector<32x32xf32>
    %84 = vector.broadcast %82 : vector<1x32xf32> to vector<32x32xf32>
    %85 = arith.mulf %83, %84 : vector<32x32xf32>
    %86 = arith.addf %80, %85 : vector<32x32xf32>
    %87 = vector.extract_strided_slice %33 {offsets = [2, 0], sizes = [1, 32], strides = [1, 1]} : vector<16x32xf32> to vector<1x32xf32>
    %cst_25 = arith.constant dense<0.000000e+00> : vector<1x32xf32>
    %88 = tpu.matmul %87, %86, %cst_25 {dimension_numbers = #tpu.dot_dimension_numbers<[1], [0], [0], [1], [0, 0, 1, 1], [], []>} : vector<1x32xf32>, vector<32x32xf32>, vector<1x32xf32> -> vector<1x32xf32>
    %89 = vector.extract_strided_slice %32 {offsets = [3, 0], sizes = [1, 32], strides = [1, 1]} : vector<16x32xf32> to vector<1x32xf32>
    %cst_26 = arith.constant dense<0.000000e+00> : vector<1x32xf32>
    %90 = tpu.matmul %89, %86, %cst_26 {dimension_numbers = #tpu.dot_dimension_numbers<[1], [0], [0], [1], [0, 0, 1, 1], [], []>} : vector<1x32xf32>, vector<32x32xf32>, vector<1x32xf32> -> vector<1x32xf32>
    %91 = vector.extract_strided_slice %27 {offsets = [0, 3], sizes = [32, 1], strides = [1, 1]} : vector<32x16xf32> to vector<32x1xf32>
    %92 = vector.broadcast %91 : vector<32x1xf32> to vector<32x32xf32>
    %93 = arith.mulf %92, %86 : vector<32x32xf32>
    %94 = vector.extract_strided_slice %31 {offsets = [0, 3], sizes = [32, 1], strides = [1, 1]} : vector<32x16xf32> to vector<32x1xf32>
    %95 = vector.broadcast %94 : vector<32x1xf32> to vector<32x32xf32>
    %96 = vector.broadcast %90 : vector<1x32xf32> to vector<32x32xf32>
    %97 = arith.mulf %95, %96 : vector<32x32xf32>
    %98 = arith.addf %93, %97 : vector<32x32xf32>
    %99 = vector.extract_strided_slice %29 {offsets = [0, 3], sizes = [32, 1], strides = [1, 1]} : vector<32x16xf32> to vector<32x1xf32>
    %100 = vector.extract_strided_slice %34 {offsets = [3, 0], sizes = [1, 32], strides = [1, 1]} : vector<16x32xf32> to vector<1x32xf32>
    %101 = vector.broadcast %99 : vector<32x1xf32> to vector<32x32xf32>
    %102 = vector.broadcast %100 : vector<1x32xf32> to vector<32x32xf32>
    %103 = arith.mulf %101, %102 : vector<32x32xf32>
    %104 = arith.addf %98, %103 : vector<32x32xf32>
    %105 = vector.extract_strided_slice %33 {offsets = [3, 0], sizes = [1, 32], strides = [1, 1]} : vector<16x32xf32> to vector<1x32xf32>
    %cst_27 = arith.constant dense<0.000000e+00> : vector<1x32xf32>
    %106 = tpu.matmul %105, %104, %cst_27 {dimension_numbers = #tpu.dot_dimension_numbers<[1], [0], [0], [1], [0, 0, 1, 1], [], []>} : vector<1x32xf32>, vector<32x32xf32>, vector<1x32xf32> -> vector<1x32xf32>
    %107 = vector.extract_strided_slice %32 {offsets = [4, 0], sizes = [1, 32], strides = [1, 1]} : vector<16x32xf32> to vector<1x32xf32>
    %cst_28 = arith.constant dense<0.000000e+00> : vector<1x32xf32>
    %108 = tpu.matmul %107, %104, %cst_28 {dimension_numbers = #tpu.dot_dimension_numbers<[1], [0], [0], [1], [0, 0, 1, 1], [], []>} : vector<1x32xf32>, vector<32x32xf32>, vector<1x32xf32> -> vector<1x32xf32>
    %109 = vector.extract_strided_slice %27 {offsets = [0, 4], sizes = [32, 1], strides = [1, 1]} : vector<32x16xf32> to vector<32x1xf32>
    %110 = vector.broadcast %109 : vector<32x1xf32> to vector<32x32xf32>
    %111 = arith.mulf %110, %104 : vector<32x32xf32>
    %112 = vector.extract_strided_slice %31 {offsets = [0, 4], sizes = [32, 1], strides = [1, 1]} : vector<32x16xf32> to vector<32x1xf32>
    %113 = vector.broadcast %112 : vector<32x1xf32> to vector<32x32xf32>
    %114 = vector.broadcast %108 : vector<1x32xf32> to vector<32x32xf32>
    %115 = arith.mulf %113, %114 : vector<32x32xf32>
    %116 = arith.addf %111, %115 : vector<32x32xf32>
    %117 = vector.extract_strided_slice %29 {offsets = [0, 4], sizes = [32, 1], strides = [1, 1]} : vector<32x16xf32> to vector<32x1xf32>
    %118 = vector.extract_strided_slice %34 {offsets = [4, 0], sizes = [1, 32], strides = [1, 1]} : vector<16x32xf32> to vector<1x32xf32>
    %119 = vector.broadcast %117 : vector<32x1xf32> to vector<32x32xf32>
    %120 = vector.broadcast %118 : vector<1x32xf32> to vector<32x32xf32>
    %121 = arith.mulf %119, %120 : vector<32x32xf32>
    %122 = arith.addf %116, %121 : vector<32x32xf32>
    %123 = vector.extract_strided_slice %33 {offsets = [4, 0], sizes = [1, 32], strides = [1, 1]} : vector<16x32xf32> to vector<1x32xf32>
    %cst_29 = arith.constant dense<0.000000e+00> : vector<1x32xf32>
    %124 = tpu.matmul %123, %122, %cst_29 {dimension_numbers = #tpu.dot_dimension_numbers<[1], [0], [0], [1], [0, 0, 1, 1], [], []>} : vector<1x32xf32>, vector<32x32xf32>, vector<1x32xf32> -> vector<1x32xf32>
    %125 = vector.extract_strided_slice %32 {offsets = [5, 0], sizes = [1, 32], strides = [1, 1]} : vector<16x32xf32> to vector<1x32xf32>
    %cst_30 = arith.constant dense<0.000000e+00> : vector<1x32xf32>
    %126 = tpu.matmul %125, %122, %cst_30 {dimension_numbers = #tpu.dot_dimension_numbers<[1], [0], [0], [1], [0, 0, 1, 1], [], []>} : vector<1x32xf32>, vector<32x32xf32>, vector<1x32xf32> -> vector<1x32xf32>
    %127 = vector.extract_strided_slice %27 {offsets = [0, 5], sizes = [32, 1], strides = [1, 1]} : vector<32x16xf32> to vector<32x1xf32>
    %128 = vector.broadcast %127 : vector<32x1xf32> to vector<32x32xf32>
    %129 = arith.mulf %128, %122 : vector<32x32xf32>
    %130 = vector.extract_strided_slice %31 {offsets = [0, 5], sizes = [32, 1], strides = [1, 1]} : vector<32x16xf32> to vector<32x1xf32>
    %131 = vector.broadcast %130 : vector<32x1xf32> to vector<32x32xf32>
    %132 = vector.broadcast %126 : vector<1x32xf32> to vector<32x32xf32>
    %133 = arith.mulf %131, %132 : vector<32x32xf32>
    %134 = arith.addf %129, %133 : vector<32x32xf32>
    %135 = vector.extract_strided_slice %29 {offsets = [0, 5], sizes = [32, 1], strides = [1, 1]} : vector<32x16xf32> to vector<32x1xf32>
    %136 = vector.extract_strided_slice %34 {offsets = [5, 0], sizes = [1, 32], strides = [1, 1]} : vector<16x32xf32> to vector<1x32xf32>
    %137 = vector.broadcast %135 : vector<32x1xf32> to vector<32x32xf32>
    %138 = vector.broadcast %136 : vector<1x32xf32> to vector<32x32xf32>
    %139 = arith.mulf %137, %138 : vector<32x32xf32>
    %140 = arith.addf %134, %139 : vector<32x32xf32>
    %141 = vector.extract_strided_slice %33 {offsets = [5, 0], sizes = [1, 32], strides = [1, 1]} : vector<16x32xf32> to vector<1x32xf32>
    %cst_31 = arith.constant dense<0.000000e+00> : vector<1x32xf32>
    %142 = tpu.matmul %141, %140, %cst_31 {dimension_numbers = #tpu.dot_dimension_numbers<[1], [0], [0], [1], [0, 0, 1, 1], [], []>} : vector<1x32xf32>, vector<32x32xf32>, vector<1x32xf32> -> vector<1x32xf32>
    %143 = vector.extract_strided_slice %32 {offsets = [6, 0], sizes = [1, 32], strides = [1, 1]} : vector<16x32xf32> to vector<1x32xf32>
    %cst_32 = arith.constant dense<0.000000e+00> : vector<1x32xf32>
    %144 = tpu.matmul %143, %140, %cst_32 {dimension_numbers = #tpu.dot_dimension_numbers<[1], [0], [0], [1], [0, 0, 1, 1], [], []>} : vector<1x32xf32>, vector<32x32xf32>, vector<1x32xf32> -> vector<1x32xf32>
    %145 = vector.extract_strided_slice %27 {offsets = [0, 6], sizes = [32, 1], strides = [1, 1]} : vector<32x16xf32> to vector<32x1xf32>
    %146 = vector.broadcast %145 : vector<32x1xf32> to vector<32x32xf32>
    %147 = arith.mulf %146, %140 : vector<32x32xf32>
    %148 = vector.extract_strided_slice %31 {offsets = [0, 6], sizes = [32, 1], strides = [1, 1]} : vector<32x16xf32> to vector<32x1xf32>
    %149 = vector.broadcast %148 : vector<32x1xf32> to vector<32x32xf32>
    %150 = vector.broadcast %144 : vector<1x32xf32> to vector<32x32xf32>
    %151 = arith.mulf %149, %150 : vector<32x32xf32>
    %152 = arith.addf %147, %151 : vector<32x32xf32>
    %153 = vector.extract_strided_slice %29 {offsets = [0, 6], sizes = [32, 1], strides = [1, 1]} : vector<32x16xf32> to vector<32x1xf32>
    %154 = vector.extract_strided_slice %34 {offsets = [6, 0], sizes = [1, 32], strides = [1, 1]} : vector<16x32xf32> to vector<1x32xf32>
    %155 = vector.broadcast %153 : vector<32x1xf32> to vector<32x32xf32>
    %156 = vector.broadcast %154 : vector<1x32xf32> to vector<32x32xf32>
    %157 = arith.mulf %155, %156 : vector<32x32xf32>
    %158 = arith.addf %152, %157 : vector<32x32xf32>
    %159 = vector.extract_strided_slice %33 {offsets = [6, 0], sizes = [1, 32], strides = [1, 1]} : vector<16x32xf32> to vector<1x32xf32>
    %cst_33 = arith.constant dense<0.000000e+00> : vector<1x32xf32>
    %160 = tpu.matmul %159, %158, %cst_33 {dimension_numbers = #tpu.dot_dimension_numbers<[1], [0], [0], [1], [0, 0, 1, 1], [], []>} : vector<1x32xf32>, vector<32x32xf32>, vector<1x32xf32> -> vector<1x32xf32>
    %161 = vector.extract_strided_slice %32 {offsets = [7, 0], sizes = [1, 32], strides = [1, 1]} : vector<16x32xf32> to vector<1x32xf32>
    %cst_34 = arith.constant dense<0.000000e+00> : vector<1x32xf32>
    %162 = tpu.matmul %161, %158, %cst_34 {dimension_numbers = #tpu.dot_dimension_numbers<[1], [0], [0], [1], [0, 0, 1, 1], [], []>} : vector<1x32xf32>, vector<32x32xf32>, vector<1x32xf32> -> vector<1x32xf32>
    %163 = vector.extract_strided_slice %27 {offsets = [0, 7], sizes = [32, 1], strides = [1, 1]} : vector<32x16xf32> to vector<32x1xf32>
    %164 = vector.broadcast %163 : vector<32x1xf32> to vector<32x32xf32>
    %165 = arith.mulf %164, %158 : vector<32x32xf32>
    %166 = vector.extract_strided_slice %31 {offsets = [0, 7], sizes = [32, 1], strides = [1, 1]} : vector<32x16xf32> to vector<32x1xf32>
    %167 = vector.broadcast %166 : vector<32x1xf32> to vector<32x32xf32>
    %168 = vector.broadcast %162 : vector<1x32xf32> to vector<32x32xf32>
    %169 = arith.mulf %167, %168 : vector<32x32xf32>
    %170 = arith.addf %165, %169 : vector<32x32xf32>
    %171 = vector.extract_strided_slice %29 {offsets = [0, 7], sizes = [32, 1], strides = [1, 1]} : vector<32x16xf32> to vector<32x1xf32>
    %172 = vector.extract_strided_slice %34 {offsets = [7, 0], sizes = [1, 32], strides = [1, 1]} : vector<16x32xf32> to vector<1x32xf32>
    %173 = vector.broadcast %171 : vector<32x1xf32> to vector<32x32xf32>
    %174 = vector.broadcast %172 : vector<1x32xf32> to vector<32x32xf32>
    %175 = arith.mulf %173, %174 : vector<32x32xf32>
    %176 = arith.addf %170, %175 : vector<32x32xf32>
    %177 = vector.extract_strided_slice %33 {offsets = [7, 0], sizes = [1, 32], strides = [1, 1]} : vector<16x32xf32> to vector<1x32xf32>
    %cst_35 = arith.constant dense<0.000000e+00> : vector<1x32xf32>
    %178 = tpu.matmul %177, %176, %cst_35 {dimension_numbers = #tpu.dot_dimension_numbers<[1], [0], [0], [1], [0, 0, 1, 1], [], []>} : vector<1x32xf32>, vector<32x32xf32>, vector<1x32xf32> -> vector<1x32xf32>
    %179 = vector.extract_strided_slice %32 {offsets = [8, 0], sizes = [1, 32], strides = [1, 1]} : vector<16x32xf32> to vector<1x32xf32>
    %cst_36 = arith.constant dense<0.000000e+00> : vector<1x32xf32>
    %180 = tpu.matmul %179, %176, %cst_36 {dimension_numbers = #tpu.dot_dimension_numbers<[1], [0], [0], [1], [0, 0, 1, 1], [], []>} : vector<1x32xf32>, vector<32x32xf32>, vector<1x32xf32> -> vector<1x32xf32>
    %181 = vector.extract_strided_slice %27 {offsets = [0, 8], sizes = [32, 1], strides = [1, 1]} : vector<32x16xf32> to vector<32x1xf32>
    %182 = vector.broadcast %181 : vector<32x1xf32> to vector<32x32xf32>
    %183 = arith.mulf %182, %176 : vector<32x32xf32>
    %184 = vector.extract_strided_slice %31 {offsets = [0, 8], sizes = [32, 1], strides = [1, 1]} : vector<32x16xf32> to vector<32x1xf32>
    %185 = vector.broadcast %184 : vector<32x1xf32> to vector<32x32xf32>
    %186 = vector.broadcast %180 : vector<1x32xf32> to vector<32x32xf32>
    %187 = arith.mulf %185, %186 : vector<32x32xf32>
    %188 = arith.addf %183, %187 : vector<32x32xf32>
    %189 = vector.extract_strided_slice %29 {offsets = [0, 8], sizes = [32, 1], strides = [1, 1]} : vector<32x16xf32> to vector<32x1xf32>
    %190 = vector.extract_strided_slice %34 {offsets = [8, 0], sizes = [1, 32], strides = [1, 1]} : vector<16x32xf32> to vector<1x32xf32>
    %191 = vector.broadcast %189 : vector<32x1xf32> to vector<32x32xf32>
    %192 = vector.broadcast %190 : vector<1x32xf32> to vector<32x32xf32>
    %193 = arith.mulf %191, %192 : vector<32x32xf32>
    %194 = arith.addf %188, %193 : vector<32x32xf32>
    %195 = vector.extract_strided_slice %33 {offsets = [8, 0], sizes = [1, 32], strides = [1, 1]} : vector<16x32xf32> to vector<1x32xf32>
    %cst_37 = arith.constant dense<0.000000e+00> : vector<1x32xf32>
    %196 = tpu.matmul %195, %194, %cst_37 {dimension_numbers = #tpu.dot_dimension_numbers<[1], [0], [0], [1], [0, 0, 1, 1], [], []>} : vector<1x32xf32>, vector<32x32xf32>, vector<1x32xf32> -> vector<1x32xf32>
    %197 = vector.extract_strided_slice %32 {offsets = [9, 0], sizes = [1, 32], strides = [1, 1]} : vector<16x32xf32> to vector<1x32xf32>
    %cst_38 = arith.constant dense<0.000000e+00> : vector<1x32xf32>
    %198 = tpu.matmul %197, %194, %cst_38 {dimension_numbers = #tpu.dot_dimension_numbers<[1], [0], [0], [1], [0, 0, 1, 1], [], []>} : vector<1x32xf32>, vector<32x32xf32>, vector<1x32xf32> -> vector<1x32xf32>
    %199 = vector.extract_strided_slice %27 {offsets = [0, 9], sizes = [32, 1], strides = [1, 1]} : vector<32x16xf32> to vector<32x1xf32>
    %200 = vector.broadcast %199 : vector<32x1xf32> to vector<32x32xf32>
    %201 = arith.mulf %200, %194 : vector<32x32xf32>
    %202 = vector.extract_strided_slice %31 {offsets = [0, 9], sizes = [32, 1], strides = [1, 1]} : vector<32x16xf32> to vector<32x1xf32>
    %203 = vector.broadcast %202 : vector<32x1xf32> to vector<32x32xf32>
    %204 = vector.broadcast %198 : vector<1x32xf32> to vector<32x32xf32>
    %205 = arith.mulf %203, %204 : vector<32x32xf32>
    %206 = arith.addf %201, %205 : vector<32x32xf32>
    %207 = vector.extract_strided_slice %29 {offsets = [0, 9], sizes = [32, 1], strides = [1, 1]} : vector<32x16xf32> to vector<32x1xf32>
    %208 = vector.extract_strided_slice %34 {offsets = [9, 0], sizes = [1, 32], strides = [1, 1]} : vector<16x32xf32> to vector<1x32xf32>
    %209 = vector.broadcast %207 : vector<32x1xf32> to vector<32x32xf32>
    %210 = vector.broadcast %208 : vector<1x32xf32> to vector<32x32xf32>
    %211 = arith.mulf %209, %210 : vector<32x32xf32>
    %212 = arith.addf %206, %211 : vector<32x32xf32>
    %213 = vector.extract_strided_slice %33 {offsets = [9, 0], sizes = [1, 32], strides = [1, 1]} : vector<16x32xf32> to vector<1x32xf32>
    %cst_39 = arith.constant dense<0.000000e+00> : vector<1x32xf32>
    %214 = tpu.matmul %213, %212, %cst_39 {dimension_numbers = #tpu.dot_dimension_numbers<[1], [0], [0], [1], [0, 0, 1, 1], [], []>} : vector<1x32xf32>, vector<32x32xf32>, vector<1x32xf32> -> vector<1x32xf32>
    %215 = vector.extract_strided_slice %32 {offsets = [10, 0], sizes = [1, 32], strides = [1, 1]} : vector<16x32xf32> to vector<1x32xf32>
    %cst_40 = arith.constant dense<0.000000e+00> : vector<1x32xf32>
    %216 = tpu.matmul %215, %212, %cst_40 {dimension_numbers = #tpu.dot_dimension_numbers<[1], [0], [0], [1], [0, 0, 1, 1], [], []>} : vector<1x32xf32>, vector<32x32xf32>, vector<1x32xf32> -> vector<1x32xf32>
    %217 = vector.extract_strided_slice %27 {offsets = [0, 10], sizes = [32, 1], strides = [1, 1]} : vector<32x16xf32> to vector<32x1xf32>
    %218 = vector.broadcast %217 : vector<32x1xf32> to vector<32x32xf32>
    %219 = arith.mulf %218, %212 : vector<32x32xf32>
    %220 = vector.extract_strided_slice %31 {offsets = [0, 10], sizes = [32, 1], strides = [1, 1]} : vector<32x16xf32> to vector<32x1xf32>
    %221 = vector.broadcast %220 : vector<32x1xf32> to vector<32x32xf32>
    %222 = vector.broadcast %216 : vector<1x32xf32> to vector<32x32xf32>
    %223 = arith.mulf %221, %222 : vector<32x32xf32>
    %224 = arith.addf %219, %223 : vector<32x32xf32>
    %225 = vector.extract_strided_slice %29 {offsets = [0, 10], sizes = [32, 1], strides = [1, 1]} : vector<32x16xf32> to vector<32x1xf32>
    %226 = vector.extract_strided_slice %34 {offsets = [10, 0], sizes = [1, 32], strides = [1, 1]} : vector<16x32xf32> to vector<1x32xf32>
    %227 = vector.broadcast %225 : vector<32x1xf32> to vector<32x32xf32>
    %228 = vector.broadcast %226 : vector<1x32xf32> to vector<32x32xf32>
    %229 = arith.mulf %227, %228 : vector<32x32xf32>
    %230 = arith.addf %224, %229 : vector<32x32xf32>
    %231 = vector.extract_strided_slice %33 {offsets = [10, 0], sizes = [1, 32], strides = [1, 1]} : vector<16x32xf32> to vector<1x32xf32>
    %cst_41 = arith.constant dense<0.000000e+00> : vector<1x32xf32>
    %232 = tpu.matmul %231, %230, %cst_41 {dimension_numbers = #tpu.dot_dimension_numbers<[1], [0], [0], [1], [0, 0, 1, 1], [], []>} : vector<1x32xf32>, vector<32x32xf32>, vector<1x32xf32> -> vector<1x32xf32>
    %233 = vector.extract_strided_slice %32 {offsets = [11, 0], sizes = [1, 32], strides = [1, 1]} : vector<16x32xf32> to vector<1x32xf32>
    %cst_42 = arith.constant dense<0.000000e+00> : vector<1x32xf32>
    %234 = tpu.matmul %233, %230, %cst_42 {dimension_numbers = #tpu.dot_dimension_numbers<[1], [0], [0], [1], [0, 0, 1, 1], [], []>} : vector<1x32xf32>, vector<32x32xf32>, vector<1x32xf32> -> vector<1x32xf32>
    %235 = vector.extract_strided_slice %27 {offsets = [0, 11], sizes = [32, 1], strides = [1, 1]} : vector<32x16xf32> to vector<32x1xf32>
    %236 = vector.broadcast %235 : vector<32x1xf32> to vector<32x32xf32>
    %237 = arith.mulf %236, %230 : vector<32x32xf32>
    %238 = vector.extract_strided_slice %31 {offsets = [0, 11], sizes = [32, 1], strides = [1, 1]} : vector<32x16xf32> to vector<32x1xf32>
    %239 = vector.broadcast %238 : vector<32x1xf32> to vector<32x32xf32>
    %240 = vector.broadcast %234 : vector<1x32xf32> to vector<32x32xf32>
    %241 = arith.mulf %239, %240 : vector<32x32xf32>
    %242 = arith.addf %237, %241 : vector<32x32xf32>
    %243 = vector.extract_strided_slice %29 {offsets = [0, 11], sizes = [32, 1], strides = [1, 1]} : vector<32x16xf32> to vector<32x1xf32>
    %244 = vector.extract_strided_slice %34 {offsets = [11, 0], sizes = [1, 32], strides = [1, 1]} : vector<16x32xf32> to vector<1x32xf32>
    %245 = vector.broadcast %243 : vector<32x1xf32> to vector<32x32xf32>
    %246 = vector.broadcast %244 : vector<1x32xf32> to vector<32x32xf32>
    %247 = arith.mulf %245, %246 : vector<32x32xf32>
    %248 = arith.addf %242, %247 : vector<32x32xf32>
    %249 = vector.extract_strided_slice %33 {offsets = [11, 0], sizes = [1, 32], strides = [1, 1]} : vector<16x32xf32> to vector<1x32xf32>
    %cst_43 = arith.constant dense<0.000000e+00> : vector<1x32xf32>
    %250 = tpu.matmul %249, %248, %cst_43 {dimension_numbers = #tpu.dot_dimension_numbers<[1], [0], [0], [1], [0, 0, 1, 1], [], []>} : vector<1x32xf32>, vector<32x32xf32>, vector<1x32xf32> -> vector<1x32xf32>
    %251 = vector.extract_strided_slice %32 {offsets = [12, 0], sizes = [1, 32], strides = [1, 1]} : vector<16x32xf32> to vector<1x32xf32>
    %cst_44 = arith.constant dense<0.000000e+00> : vector<1x32xf32>
    %252 = tpu.matmul %251, %248, %cst_44 {dimension_numbers = #tpu.dot_dimension_numbers<[1], [0], [0], [1], [0, 0, 1, 1], [], []>} : vector<1x32xf32>, vector<32x32xf32>, vector<1x32xf32> -> vector<1x32xf32>
    %253 = vector.extract_strided_slice %27 {offsets = [0, 12], sizes = [32, 1], strides = [1, 1]} : vector<32x16xf32> to vector<32x1xf32>
    %254 = vector.broadcast %253 : vector<32x1xf32> to vector<32x32xf32>
    %255 = arith.mulf %254, %248 : vector<32x32xf32>
    %256 = vector.extract_strided_slice %31 {offsets = [0, 12], sizes = [32, 1], strides = [1, 1]} : vector<32x16xf32> to vector<32x1xf32>
    %257 = vector.broadcast %256 : vector<32x1xf32> to vector<32x32xf32>
    %258 = vector.broadcast %252 : vector<1x32xf32> to vector<32x32xf32>
    %259 = arith.mulf %257, %258 : vector<32x32xf32>
    %260 = arith.addf %255, %259 : vector<32x32xf32>
    %261 = vector.extract_strided_slice %29 {offsets = [0, 12], sizes = [32, 1], strides = [1, 1]} : vector<32x16xf32> to vector<32x1xf32>
    %262 = vector.extract_strided_slice %34 {offsets = [12, 0], sizes = [1, 32], strides = [1, 1]} : vector<16x32xf32> to vector<1x32xf32>
    %263 = vector.broadcast %261 : vector<32x1xf32> to vector<32x32xf32>
    %264 = vector.broadcast %262 : vector<1x32xf32> to vector<32x32xf32>
    %265 = arith.mulf %263, %264 : vector<32x32xf32>
    %266 = arith.addf %260, %265 : vector<32x32xf32>
    %267 = vector.extract_strided_slice %33 {offsets = [12, 0], sizes = [1, 32], strides = [1, 1]} : vector<16x32xf32> to vector<1x32xf32>
    %cst_45 = arith.constant dense<0.000000e+00> : vector<1x32xf32>
    %268 = tpu.matmul %267, %266, %cst_45 {dimension_numbers = #tpu.dot_dimension_numbers<[1], [0], [0], [1], [0, 0, 1, 1], [], []>} : vector<1x32xf32>, vector<32x32xf32>, vector<1x32xf32> -> vector<1x32xf32>
    %269 = vector.extract_strided_slice %32 {offsets = [13, 0], sizes = [1, 32], strides = [1, 1]} : vector<16x32xf32> to vector<1x32xf32>
    %cst_46 = arith.constant dense<0.000000e+00> : vector<1x32xf32>
    %270 = tpu.matmul %269, %266, %cst_46 {dimension_numbers = #tpu.dot_dimension_numbers<[1], [0], [0], [1], [0, 0, 1, 1], [], []>} : vector<1x32xf32>, vector<32x32xf32>, vector<1x32xf32> -> vector<1x32xf32>
    %271 = vector.extract_strided_slice %27 {offsets = [0, 13], sizes = [32, 1], strides = [1, 1]} : vector<32x16xf32> to vector<32x1xf32>
    %272 = vector.broadcast %271 : vector<32x1xf32> to vector<32x32xf32>
    %273 = arith.mulf %272, %266 : vector<32x32xf32>
    %274 = vector.extract_strided_slice %31 {offsets = [0, 13], sizes = [32, 1], strides = [1, 1]} : vector<32x16xf32> to vector<32x1xf32>
    %275 = vector.broadcast %274 : vector<32x1xf32> to vector<32x32xf32>
    %276 = vector.broadcast %270 : vector<1x32xf32> to vector<32x32xf32>
    %277 = arith.mulf %275, %276 : vector<32x32xf32>
    %278 = arith.addf %273, %277 : vector<32x32xf32>
    %279 = vector.extract_strided_slice %29 {offsets = [0, 13], sizes = [32, 1], strides = [1, 1]} : vector<32x16xf32> to vector<32x1xf32>
    %280 = vector.extract_strided_slice %34 {offsets = [13, 0], sizes = [1, 32], strides = [1, 1]} : vector<16x32xf32> to vector<1x32xf32>
    %281 = vector.broadcast %279 : vector<32x1xf32> to vector<32x32xf32>
    %282 = vector.broadcast %280 : vector<1x32xf32> to vector<32x32xf32>
    %283 = arith.mulf %281, %282 : vector<32x32xf32>
    %284 = arith.addf %278, %283 : vector<32x32xf32>
    %285 = vector.extract_strided_slice %33 {offsets = [13, 0], sizes = [1, 32], strides = [1, 1]} : vector<16x32xf32> to vector<1x32xf32>
    %cst_47 = arith.constant dense<0.000000e+00> : vector<1x32xf32>
    %286 = tpu.matmul %285, %284, %cst_47 {dimension_numbers = #tpu.dot_dimension_numbers<[1], [0], [0], [1], [0, 0, 1, 1], [], []>} : vector<1x32xf32>, vector<32x32xf32>, vector<1x32xf32> -> vector<1x32xf32>
    %287 = vector.extract_strided_slice %32 {offsets = [14, 0], sizes = [1, 32], strides = [1, 1]} : vector<16x32xf32> to vector<1x32xf32>
    %cst_48 = arith.constant dense<0.000000e+00> : vector<1x32xf32>
    %288 = tpu.matmul %287, %284, %cst_48 {dimension_numbers = #tpu.dot_dimension_numbers<[1], [0], [0], [1], [0, 0, 1, 1], [], []>} : vector<1x32xf32>, vector<32x32xf32>, vector<1x32xf32> -> vector<1x32xf32>
    %289 = vector.extract_strided_slice %27 {offsets = [0, 14], sizes = [32, 1], strides = [1, 1]} : vector<32x16xf32> to vector<32x1xf32>
    %290 = vector.broadcast %289 : vector<32x1xf32> to vector<32x32xf32>
    %291 = arith.mulf %290, %284 : vector<32x32xf32>
    %292 = vector.extract_strided_slice %31 {offsets = [0, 14], sizes = [32, 1], strides = [1, 1]} : vector<32x16xf32> to vector<32x1xf32>
    %293 = vector.broadcast %292 : vector<32x1xf32> to vector<32x32xf32>
    %294 = vector.broadcast %288 : vector<1x32xf32> to vector<32x32xf32>
    %295 = arith.mulf %293, %294 : vector<32x32xf32>
    %296 = arith.addf %291, %295 : vector<32x32xf32>
    %297 = vector.extract_strided_slice %29 {offsets = [0, 14], sizes = [32, 1], strides = [1, 1]} : vector<32x16xf32> to vector<32x1xf32>
    %298 = vector.extract_strided_slice %34 {offsets = [14, 0], sizes = [1, 32], strides = [1, 1]} : vector<16x32xf32> to vector<1x32xf32>
    %299 = vector.broadcast %297 : vector<32x1xf32> to vector<32x32xf32>
    %300 = vector.broadcast %298 : vector<1x32xf32> to vector<32x32xf32>
    %301 = arith.mulf %299, %300 : vector<32x32xf32>
    %302 = arith.addf %296, %301 : vector<32x32xf32>
    %303 = vector.extract_strided_slice %33 {offsets = [14, 0], sizes = [1, 32], strides = [1, 1]} : vector<16x32xf32> to vector<1x32xf32>
    %cst_49 = arith.constant dense<0.000000e+00> : vector<1x32xf32>
    %304 = tpu.matmul %303, %302, %cst_49 {dimension_numbers = #tpu.dot_dimension_numbers<[1], [0], [0], [1], [0, 0, 1, 1], [], []>} : vector<1x32xf32>, vector<32x32xf32>, vector<1x32xf32> -> vector<1x32xf32>
    %305 = vector.extract_strided_slice %32 {offsets = [15, 0], sizes = [1, 32], strides = [1, 1]} : vector<16x32xf32> to vector<1x32xf32>
    %cst_50 = arith.constant dense<0.000000e+00> : vector<1x32xf32>
    %306 = tpu.matmul %305, %302, %cst_50 {dimension_numbers = #tpu.dot_dimension_numbers<[1], [0], [0], [1], [0, 0, 1, 1], [], []>} : vector<1x32xf32>, vector<32x32xf32>, vector<1x32xf32> -> vector<1x32xf32>
    %307 = vector.extract_strided_slice %27 {offsets = [0, 15], sizes = [32, 1], strides = [1, 1]} : vector<32x16xf32> to vector<32x1xf32>
    %308 = vector.broadcast %307 : vector<32x1xf32> to vector<32x32xf32>
    %309 = arith.mulf %308, %302 : vector<32x32xf32>
    %310 = vector.extract_strided_slice %31 {offsets = [0, 15], sizes = [32, 1], strides = [1, 1]} : vector<32x16xf32> to vector<32x1xf32>
    %311 = vector.broadcast %310 : vector<32x1xf32> to vector<32x32xf32>
    %312 = vector.broadcast %306 : vector<1x32xf32> to vector<32x32xf32>
    %313 = arith.mulf %311, %312 : vector<32x32xf32>
    %314 = arith.addf %309, %313 : vector<32x32xf32>
    %315 = vector.extract_strided_slice %29 {offsets = [0, 15], sizes = [32, 1], strides = [1, 1]} : vector<32x16xf32> to vector<32x1xf32>
    %316 = vector.extract_strided_slice %34 {offsets = [15, 0], sizes = [1, 32], strides = [1, 1]} : vector<16x32xf32> to vector<1x32xf32>
    %317 = vector.broadcast %315 : vector<32x1xf32> to vector<32x32xf32>
    %318 = vector.broadcast %316 : vector<1x32xf32> to vector<32x32xf32>
    %319 = arith.mulf %317, %318 : vector<32x32xf32>
    %320 = arith.addf %314, %319 : vector<32x32xf32>
    %321 = vector.extract_strided_slice %33 {offsets = [15, 0], sizes = [1, 32], strides = [1, 1]} : vector<16x32xf32> to vector<1x32xf32>
    %cst_51 = arith.constant dense<0.000000e+00> : vector<1x32xf32>
    %322 = tpu.matmul %321, %320, %cst_51 {dimension_numbers = #tpu.dot_dimension_numbers<[1], [0], [0], [1], [0, 0, 1, 1], [], []>} : vector<1x32xf32>, vector<32x32xf32>, vector<1x32xf32> -> vector<1x32xf32>
    %c0_52 = arith.constant 0 : index
    %c0_53 = arith.constant 0 : index
    %323 = vector.load %arg14[%c0_52, %c0_53] : memref<32x64xf32, #tpu.memory_space<vmem>>, vector<32x32xf32>
    tpu.vector_store %arg14[%c0_52, %c0_53], %320 {strides = array<i32>} : memref<32x64xf32, #tpu.memory_space<vmem>>, vector<32x32xf32>,
    %324 = tpu.concatenate %52, %70, %88, %106, %124, %142, %160, %178, %196, %214, %232, %250, %268, %286, %304, %322 in 0 : vector<1x32xf32>, vector<1x32xf32>, vector<1x32xf32>, vector<1x32xf32>, vector<1x32xf32>, vector<1x32xf32>, vector<1x32xf32>, vector<1x32xf32>, vector<1x32xf32>, vector<1x32xf32>, vector<1x32xf32>, vector<1x32xf32>, vector<1x32xf32>, vector<1x32xf32>, vector<1x32xf32>, vector<1x32xf32> -> vector<16x32xf32>
    %c0_54 = arith.constant 0 : index
    %c32 = arith.constant 32 : index
    %325 = vector.load %arg14[%c0_54, %c32] : memref<32x64xf32, #tpu.memory_space<vmem>>, vector<32x32xf32>
    %326 = vector.extract_strided_slice %12 {offsets = [0, 32], sizes = [16, 32], strides = [1, 1]} : vector<16x64xf32> to vector<16x32xf32>
    %327 = tpu.transpose %326, [1, 0] : vector<16x32xf32> -> vector<32x16xf32>
    %328 = vector.extract_strided_slice %15 {offsets = [0, 32], sizes = [16, 32], strides = [1, 1]} : vector<16x64xf32> to vector<16x32xf32>
    %329 = tpu.transpose %328, [1, 0] : vector<16x32xf32> -> vector<32x16xf32>
    %330 = vector.extract_strided_slice %24 {offsets = [0, 32], sizes = [16, 32], strides = [1, 1]} : vector<16x64xf32> to vector<16x32xf32>
    %331 = tpu.transpose %330, [1, 0] : vector<16x32xf32> -> vector<32x16xf32>
    %332 = vector.extract_strided_slice %21 {offsets = [0, 32], sizes = [16, 32], strides = [1, 1]} : vector<16x64xf32> to vector<16x32xf32>
    %333 = vector.extract_strided_slice %5 {offsets = [0, 32], sizes = [16, 32], strides = [1, 1]} : vector<16x64xf32> to vector<16x32xf32>
    %334 = vector.extract_strided_slice %18 {offsets = [0, 32], sizes = [16, 32], strides = [1, 1]} : vector<16x64xf32> to vector<16x32xf32>
    %335 = vector.extract_strided_slice %332 {offsets = [0, 0], sizes = [1, 32], strides = [1, 1]} : vector<16x32xf32> to vector<1x32xf32>
    %cst_55 = arith.constant dense<0.000000e+00> : vector<1x32xf32>
    %336 = tpu.matmul %335, %325, %cst_55 {dimension_numbers = #tpu.dot_dimension_numbers<[1], [0], [0], [1], [0, 0, 1, 1], [], []>} : vector<1x32xf32>, vector<32x32xf32>, vector<1x32xf32> -> vector<1x32xf32>
    %337 = vector.extract_strided_slice %327 {offsets = [0, 0], sizes = [32, 1], strides = [1, 1]} : vector<32x16xf32> to vector<32x1xf32>
    %338 = vector.broadcast %337 : vector<32x1xf32> to vector<32x32xf32>
    %339 = arith.mulf %338, %325 : vector<32x32xf32>
    %340 = vector.extract_strided_slice %331 {offsets = [0, 0], sizes = [32, 1], strides = [1, 1]} : vector<32x16xf32> to vector<32x1xf32>
    %341 = vector.broadcast %340 : vector<32x1xf32> to vector<32x32xf32>
    %342 = vector.broadcast %336 : vector<1x32xf32> to vector<32x32xf32>
    %343 = arith.mulf %341, %342 : vector<32x32xf32>
    %344 = arith.addf %339, %343 : vector<32x32xf32>
    %345 = vector.extract_strided_slice %329 {offsets = [0, 0], sizes = [32, 1], strides = [1, 1]} : vector<32x16xf32> to vector<32x1xf32>
    %346 = vector.extract_strided_slice %334 {offsets = [0, 0], sizes = [1, 32], strides = [1, 1]} : vector<16x32xf32> to vector<1x32xf32>
    %347 = vector.broadcast %345 : vector<32x1xf32> to vector<32x32xf32>
    %348 = vector.broadcast %346 : vector<1x32xf32> to vector<32x32xf32>
    %349 = arith.mulf %347, %348 : vector<32x32xf32>
    %350 = arith.addf %344, %349 : vector<32x32xf32>
    %351 = vector.extract_strided_slice %333 {offsets = [0, 0], sizes = [1, 32], strides = [1, 1]} : vector<16x32xf32> to vector<1x32xf32>
    %cst_56 = arith.constant dense<0.000000e+00> : vector<1x32xf32>
    %352 = tpu.matmul %351, %350, %cst_56 {dimension_numbers = #tpu.dot_dimension_numbers<[1], [0], [0], [1], [0, 0, 1, 1], [], []>} : vector<1x32xf32>, vector<32x32xf32>, vector<1x32xf32> -> vector<1x32xf32>
    %353 = vector.extract_strided_slice %332 {offsets = [1, 0], sizes = [1, 32], strides = [1, 1]} : vector<16x32xf32> to vector<1x32xf32>
    %cst_57 = arith.constant dense<0.000000e+00> : vector<1x32xf32>
    %354 = tpu.matmul %353, %350, %cst_57 {dimension_numbers = #tpu.dot_dimension_numbers<[1], [0], [0], [1], [0, 0, 1, 1], [], []>} : vector<1x32xf32>, vector<32x32xf32>, vector<1x32xf32> -> vector<1x32xf32>
    %355 = vector.extract_strided_slice %327 {offsets = [0, 1], sizes = [32, 1], strides = [1, 1]} : vector<32x16xf32> to vector<32x1xf32>
    %356 = vector.broadcast %355 : vector<32x1xf32> to vector<32x32xf32>
    %357 = arith.mulf %356, %350 : vector<32x32xf32>
    %358 = vector.extract_strided_slice %331 {offsets = [0, 1], sizes = [32, 1], strides = [1, 1]} : vector<32x16xf32> to vector<32x1xf32>
    %359 = vector.broadcast %358 : vector<32x1xf32> to vector<32x32xf32>
    %360 = vector.broadcast %354 : vector<1x32xf32> to vector<32x32xf32>
    %361 = arith.mulf %359, %360 : vector<32x32xf32>
    %362 = arith.addf %357, %361 : vector<32x32xf32>
    %363 = vector.extract_strided_slice %329 {offsets = [0, 1], sizes = [32, 1], strides = [1, 1]} : vector<32x16xf32> to vector<32x1xf32>
    %364 = vector.extract_strided_slice %334 {offsets = [1, 0], sizes = [1, 32], strides = [1, 1]} : vector<16x32xf32> to vector<1x32xf32>
    %365 = vector.broadcast %363 : vector<32x1xf32> to vector<32x32xf32>
    %366 = vector.broadcast %364 : vector<1x32xf32> to vector<32x32xf32>
    %367 = arith.mulf %365, %366 : vector<32x32xf32>
    %368 = arith.addf %362, %367 : vector<32x32xf32>
    %369 = vector.extract_strided_slice %333 {offsets = [1, 0], sizes = [1, 32], strides = [1, 1]} : vector<16x32xf32> to vector<1x32xf32>
    %cst_58 = arith.constant dense<0.000000e+00> : vector<1x32xf32>
    %370 = tpu.matmul %369, %368, %cst_58 {dimension_numbers = #tpu.dot_dimension_numbers<[1], [0], [0], [1], [0, 0, 1, 1], [], []>} : vector<1x32xf32>, vector<32x32xf32>, vector<1x32xf32> -> vector<1x32xf32>
    %371 = vector.extract_strided_slice %332 {offsets = [2, 0], sizes = [1, 32], strides = [1, 1]} : vector<16x32xf32> to vector<1x32xf32>
    %cst_59 = arith.constant dense<0.000000e+00> : vector<1x32xf32>
    %372 = tpu.matmul %371, %368, %cst_59 {dimension_numbers = #tpu.dot_dimension_numbers<[1], [0], [0], [1], [0, 0, 1, 1], [], []>} : vector<1x32xf32>, vector<32x32xf32>, vector<1x32xf32> -> vector<1x32xf32>
    %373 = vector.extract_strided_slice %327 {offsets = [0, 2], sizes = [32, 1], strides = [1, 1]} : vector<32x16xf32> to vector<32x1xf32>
    %374 = vector.broadcast %373 : vector<32x1xf32> to vector<32x32xf32>
    %375 = arith.mulf %374, %368 : vector<32x32xf32>
    %376 = vector.extract_strided_slice %331 {offsets = [0, 2], sizes = [32, 1], strides = [1, 1]} : vector<32x16xf32> to vector<32x1xf32>
    %377 = vector.broadcast %376 : vector<32x1xf32> to vector<32x32xf32>
    %378 = vector.broadcast %372 : vector<1x32xf32> to vector<32x32xf32>
    %379 = arith.mulf %377, %378 : vector<32x32xf32>
    %380 = arith.addf %375, %379 : vector<32x32xf32>
    %381 = vector.extract_strided_slice %329 {offsets = [0, 2], sizes = [32, 1], strides = [1, 1]} : vector<32x16xf32> to vector<32x1xf32>
    %382 = vector.extract_strided_slice %334 {offsets = [2, 0], sizes = [1, 32], strides = [1, 1]} : vector<16x32xf32> to vector<1x32xf32>
    %383 = vector.broadcast %381 : vector<32x1xf32> to vector<32x32xf32>
    %384 = vector.broadcast %382 : vector<1x32xf32> to vector<32x32xf32>
    %385 = arith.mulf %383, %384 : vector<32x32xf32>
    %386 = arith.addf %380, %385 : vector<32x32xf32>
    %387 = vector.extract_strided_slice %333 {offsets = [2, 0], sizes = [1, 32], strides = [1, 1]} : vector<16x32xf32> to vector<1x32xf32>
    %cst_60 = arith.constant dense<0.000000e+00> : vector<1x32xf32>
    %388 = tpu.matmul %387, %386, %cst_60 {dimension_numbers = #tpu.dot_dimension_numbers<[1], [0], [0], [1], [0, 0, 1, 1], [], []>} : vector<1x32xf32>, vector<32x32xf32>, vector<1x32xf32> -> vector<1x32xf32>
    %389 = vector.extract_strided_slice %332 {offsets = [3, 0], sizes = [1, 32], strides = [1, 1]} : vector<16x32xf32> to vector<1x32xf32>
    %cst_61 = arith.constant dense<0.000000e+00> : vector<1x32xf32>
    %390 = tpu.matmul %389, %386, %cst_61 {dimension_numbers = #tpu.dot_dimension_numbers<[1], [0], [0], [1], [0, 0, 1, 1], [], []>} : vector<1x32xf32>, vector<32x32xf32>, vector<1x32xf32> -> vector<1x32xf32>
    %391 = vector.extract_strided_slice %327 {offsets = [0, 3], sizes = [32, 1], strides = [1, 1]} : vector<32x16xf32> to vector<32x1xf32>
    %392 = vector.broadcast %391 : vector<32x1xf32> to vector<32x32xf32>
    %393 = arith.mulf %392, %386 : vector<32x32xf32>
    %394 = vector.extract_strided_slice %331 {offsets = [0, 3], sizes = [32, 1], strides = [1, 1]} : vector<32x16xf32> to vector<32x1xf32>
    %395 = vector.broadcast %394 : vector<32x1xf32> to vector<32x32xf32>
    %396 = vector.broadcast %390 : vector<1x32xf32> to vector<32x32xf32>
    %397 = arith.mulf %395, %396 : vector<32x32xf32>
    %398 = arith.addf %393, %397 : vector<32x32xf32>
    %399 = vector.extract_strided_slice %329 {offsets = [0, 3], sizes = [32, 1], strides = [1, 1]} : vector<32x16xf32> to vector<32x1xf32>
    %400 = vector.extract_strided_slice %334 {offsets = [3, 0], sizes = [1, 32], strides = [1, 1]} : vector<16x32xf32> to vector<1x32xf32>
    %401 = vector.broadcast %399 : vector<32x1xf32> to vector<32x32xf32>
    %402 = vector.broadcast %400 : vector<1x32xf32> to vector<32x32xf32>
    %403 = arith.mulf %401, %402 : vector<32x32xf32>
    %404 = arith.addf %398, %403 : vector<32x32xf32>
    %405 = vector.extract_strided_slice %333 {offsets = [3, 0], sizes = [1, 32], strides = [1, 1]} : vector<16x32xf32> to vector<1x32xf32>
    %cst_62 = arith.constant dense<0.000000e+00> : vector<1x32xf32>
    %406 = tpu.matmul %405, %404, %cst_62 {dimension_numbers = #tpu.dot_dimension_numbers<[1], [0], [0], [1], [0, 0, 1, 1], [], []>} : vector<1x32xf32>, vector<32x32xf32>, vector<1x32xf32> -> vector<1x32xf32>
    %407 = vector.extract_strided_slice %332 {offsets = [4, 0], sizes = [1, 32], strides = [1, 1]} : vector<16x32xf32> to vector<1x32xf32>
    %cst_63 = arith.constant dense<0.000000e+00> : vector<1x32xf32>
    %408 = tpu.matmul %407, %404, %cst_63 {dimension_numbers = #tpu.dot_dimension_numbers<[1], [0], [0], [1], [0, 0, 1, 1], [], []>} : vector<1x32xf32>, vector<32x32xf32>, vector<1x32xf32> -> vector<1x32xf32>
    %409 = vector.extract_strided_slice %327 {offsets = [0, 4], sizes = [32, 1], strides = [1, 1]} : vector<32x16xf32> to vector<32x1xf32>
    %410 = vector.broadcast %409 : vector<32x1xf32> to vector<32x32xf32>
    %411 = arith.mulf %410, %404 : vector<32x32xf32>
    %412 = vector.extract_strided_slice %331 {offsets = [0, 4], sizes = [32, 1], strides = [1, 1]} : vector<32x16xf32> to vector<32x1xf32>
    %413 = vector.broadcast %412 : vector<32x1xf32> to vector<32x32xf32>
    %414 = vector.broadcast %408 : vector<1x32xf32> to vector<32x32xf32>
    %415 = arith.mulf %413, %414 : vector<32x32xf32>
    %416 = arith.addf %411, %415 : vector<32x32xf32>
    %417 = vector.extract_strided_slice %329 {offsets = [0, 4], sizes = [32, 1], strides = [1, 1]} : vector<32x16xf32> to vector<32x1xf32>
    %418 = vector.extract_strided_slice %334 {offsets = [4, 0], sizes = [1, 32], strides = [1, 1]} : vector<16x32xf32> to vector<1x32xf32>
    %419 = vector.broadcast %417 : vector<32x1xf32> to vector<32x32xf32>
    %420 = vector.broadcast %418 : vector<1x32xf32> to vector<32x32xf32>
    %421 = arith.mulf %419, %420 : vector<32x32xf32>
    %422 = arith.addf %416, %421 : vector<32x32xf32>
    %423 = vector.extract_strided_slice %333 {offsets = [4, 0], sizes = [1, 32], strides = [1, 1]} : vector<16x32xf32> to vector<1x32xf32>
    %cst_64 = arith.constant dense<0.000000e+00> : vector<1x32xf32>
    %424 = tpu.matmul %423, %422, %cst_64 {dimension_numbers = #tpu.dot_dimension_numbers<[1], [0], [0], [1], [0, 0, 1, 1], [], []>} : vector<1x32xf32>, vector<32x32xf32>, vector<1x32xf32> -> vector<1x32xf32>
    %425 = vector.extract_strided_slice %332 {offsets = [5, 0], sizes = [1, 32], strides = [1, 1]} : vector<16x32xf32> to vector<1x32xf32>
    %cst_65 = arith.constant dense<0.000000e+00> : vector<1x32xf32>
    %426 = tpu.matmul %425, %422, %cst_65 {dimension_numbers = #tpu.dot_dimension_numbers<[1], [0], [0], [1], [0, 0, 1, 1], [], []>} : vector<1x32xf32>, vector<32x32xf32>, vector<1x32xf32> -> vector<1x32xf32>
    %427 = vector.extract_strided_slice %327 {offsets = [0, 5], sizes = [32, 1], strides = [1, 1]} : vector<32x16xf32> to vector<32x1xf32>
    %428 = vector.broadcast %427 : vector<32x1xf32> to vector<32x32xf32>
    %429 = arith.mulf %428, %422 : vector<32x32xf32>
    %430 = vector.extract_strided_slice %331 {offsets = [0, 5], sizes = [32, 1], strides = [1, 1]} : vector<32x16xf32> to vector<32x1xf32>
    %431 = vector.broadcast %430 : vector<32x1xf32> to vector<32x32xf32>
    %432 = vector.broadcast %426 : vector<1x32xf32> to vector<32x32xf32>
    %433 = arith.mulf %431, %432 : vector<32x32xf32>
    %434 = arith.addf %429, %433 : vector<32x32xf32>
    %435 = vector.extract_strided_slice %329 {offsets = [0, 5], sizes = [32, 1], strides = [1, 1]} : vector<32x16xf32> to vector<32x1xf32>
    %436 = vector.extract_strided_slice %334 {offsets = [5, 0], sizes = [1, 32], strides = [1, 1]} : vector<16x32xf32> to vector<1x32xf32>
    %437 = vector.broadcast %435 : vector<32x1xf32> to vector<32x32xf32>
    %438 = vector.broadcast %436 : vector<1x32xf32> to vector<32x32xf32>
    %439 = arith.mulf %437, %438 : vector<32x32xf32>
    %440 = arith.addf %434, %439 : vector<32x32xf32>
    %441 = vector.extract_strided_slice %333 {offsets = [5, 0], sizes = [1, 32], strides = [1, 1]} : vector<16x32xf32> to vector<1x32xf32>
    %cst_66 = arith.constant dense<0.000000e+00> : vector<1x32xf32>
    %442 = tpu.matmul %441, %440, %cst_66 {dimension_numbers = #tpu.dot_dimension_numbers<[1], [0], [0], [1], [0, 0, 1, 1], [], []>} : vector<1x32xf32>, vector<32x32xf32>, vector<1x32xf32> -> vector<1x32xf32>
    %443 = vector.extract_strided_slice %332 {offsets = [6, 0], sizes = [1, 32], strides = [1, 1]} : vector<16x32xf32> to vector<1x32xf32>
    %cst_67 = arith.constant dense<0.000000e+00> : vector<1x32xf32>
    %444 = tpu.matmul %443, %440, %cst_67 {dimension_numbers = #tpu.dot_dimension_numbers<[1], [0], [0], [1], [0, 0, 1, 1], [], []>} : vector<1x32xf32>, vector<32x32xf32>, vector<1x32xf32> -> vector<1x32xf32>
    %445 = vector.extract_strided_slice %327 {offsets = [0, 6], sizes = [32, 1], strides = [1, 1]} : vector<32x16xf32> to vector<32x1xf32>
    %446 = vector.broadcast %445 : vector<32x1xf32> to vector<32x32xf32>
    %447 = arith.mulf %446, %440 : vector<32x32xf32>
    %448 = vector.extract_strided_slice %331 {offsets = [0, 6], sizes = [32, 1], strides = [1, 1]} : vector<32x16xf32> to vector<32x1xf32>
    %449 = vector.broadcast %448 : vector<32x1xf32> to vector<32x32xf32>
    %450 = vector.broadcast %444 : vector<1x32xf32> to vector<32x32xf32>
    %451 = arith.mulf %449, %450 : vector<32x32xf32>
    %452 = arith.addf %447, %451 : vector<32x32xf32>
    %453 = vector.extract_strided_slice %329 {offsets = [0, 6], sizes = [32, 1], strides = [1, 1]} : vector<32x16xf32> to vector<32x1xf32>
    %454 = vector.extract_strided_slice %334 {offsets = [6, 0], sizes = [1, 32], strides = [1, 1]} : vector<16x32xf32> to vector<1x32xf32>
    %455 = vector.broadcast %453 : vector<32x1xf32> to vector<32x32xf32>
    %456 = vector.broadcast %454 : vector<1x32xf32> to vector<32x32xf32>
    %457 = arith.mulf %455, %456 : vector<32x32xf32>
    %458 = arith.addf %452, %457 : vector<32x32xf32>
    %459 = vector.extract_strided_slice %333 {offsets = [6, 0], sizes = [1, 32], strides = [1, 1]} : vector<16x32xf32> to vector<1x32xf32>
    %cst_68 = arith.constant dense<0.000000e+00> : vector<1x32xf32>
    %460 = tpu.matmul %459, %458, %cst_68 {dimension_numbers = #tpu.dot_dimension_numbers<[1], [0], [0], [1], [0, 0, 1, 1], [], []>} : vector<1x32xf32>, vector<32x32xf32>, vector<1x32xf32> -> vector<1x32xf32>
    %461 = vector.extract_strided_slice %332 {offsets = [7, 0], sizes = [1, 32], strides = [1, 1]} : vector<16x32xf32> to vector<1x32xf32>
    %cst_69 = arith.constant dense<0.000000e+00> : vector<1x32xf32>
    %462 = tpu.matmul %461, %458, %cst_69 {dimension_numbers = #tpu.dot_dimension_numbers<[1], [0], [0], [1], [0, 0, 1, 1], [], []>} : vector<1x32xf32>, vector<32x32xf32>, vector<1x32xf32> -> vector<1x32xf32>
    %463 = vector.extract_strided_slice %327 {offsets = [0, 7], sizes = [32, 1], strides = [1, 1]} : vector<32x16xf32> to vector<32x1xf32>
    %464 = vector.broadcast %463 : vector<32x1xf32> to vector<32x32xf32>
    %465 = arith.mulf %464, %458 : vector<32x32xf32>
    %466 = vector.extract_strided_slice %331 {offsets = [0, 7], sizes = [32, 1], strides = [1, 1]} : vector<32x16xf32> to vector<32x1xf32>
    %467 = vector.broadcast %466 : vector<32x1xf32> to vector<32x32xf32>
    %468 = vector.broadcast %462 : vector<1x32xf32> to vector<32x32xf32>
    %469 = arith.mulf %467, %468 : vector<32x32xf32>
    %470 = arith.addf %465, %469 : vector<32x32xf32>
    %471 = vector.extract_strided_slice %329 {offsets = [0, 7], sizes = [32, 1], strides = [1, 1]} : vector<32x16xf32> to vector<32x1xf32>
    %472 = vector.extract_strided_slice %334 {offsets = [7, 0], sizes = [1, 32], strides = [1, 1]} : vector<16x32xf32> to vector<1x32xf32>
    %473 = vector.broadcast %471 : vector<32x1xf32> to vector<32x32xf32>
    %474 = vector.broadcast %472 : vector<1x32xf32> to vector<32x32xf32>
    %475 = arith.mulf %473, %474 : vector<32x32xf32>
    %476 = arith.addf %470, %475 : vector<32x32xf32>
    %477 = vector.extract_strided_slice %333 {offsets = [7, 0], sizes = [1, 32], strides = [1, 1]} : vector<16x32xf32> to vector<1x32xf32>
    %cst_70 = arith.constant dense<0.000000e+00> : vector<1x32xf32>
    %478 = tpu.matmul %477, %476, %cst_70 {dimension_numbers = #tpu.dot_dimension_numbers<[1], [0], [0], [1], [0, 0, 1, 1], [], []>} : vector<1x32xf32>, vector<32x32xf32>, vector<1x32xf32> -> vector<1x32xf32>
    %479 = vector.extract_strided_slice %332 {offsets = [8, 0], sizes = [1, 32], strides = [1, 1]} : vector<16x32xf32> to vector<1x32xf32>
    %cst_71 = arith.constant dense<0.000000e+00> : vector<1x32xf32>
    %480 = tpu.matmul %479, %476, %cst_71 {dimension_numbers = #tpu.dot_dimension_numbers<[1], [0], [0], [1], [0, 0, 1, 1], [], []>} : vector<1x32xf32>, vector<32x32xf32>, vector<1x32xf32> -> vector<1x32xf32>
    %481 = vector.extract_strided_slice %327 {offsets = [0, 8], sizes = [32, 1], strides = [1, 1]} : vector<32x16xf32> to vector<32x1xf32>
    %482 = vector.broadcast %481 : vector<32x1xf32> to vector<32x32xf32>
    %483 = arith.mulf %482, %476 : vector<32x32xf32>
    %484 = vector.extract_strided_slice %331 {offsets = [0, 8], sizes = [32, 1], strides = [1, 1]} : vector<32x16xf32> to vector<32x1xf32>
    %485 = vector.broadcast %484 : vector<32x1xf32> to vector<32x32xf32>
    %486 = vector.broadcast %480 : vector<1x32xf32> to vector<32x32xf32>
    %487 = arith.mulf %485, %486 : vector<32x32xf32>
    %488 = arith.addf %483, %487 : vector<32x32xf32>
    %489 = vector.extract_strided_slice %329 {offsets = [0, 8], sizes = [32, 1], strides = [1, 1]} : vector<32x16xf32> to vector<32x1xf32>
    %490 = vector.extract_strided_slice %334 {offsets = [8, 0], sizes = [1, 32], strides = [1, 1]} : vector<16x32xf32> to vector<1x32xf32>
    %491 = vector.broadcast %489 : vector<32x1xf32> to vector<32x32xf32>
    %492 = vector.broadcast %490 : vector<1x32xf32> to vector<32x32xf32>
    %493 = arith.mulf %491, %492 : vector<32x32xf32>
    %494 = arith.addf %488, %493 : vector<32x32xf32>
    %495 = vector.extract_strided_slice %333 {offsets = [8, 0], sizes = [1, 32], strides = [1, 1]} : vector<16x32xf32> to vector<1x32xf32>
    %cst_72 = arith.constant dense<0.000000e+00> : vector<1x32xf32>
    %496 = tpu.matmul %495, %494, %cst_72 {dimension_numbers = #tpu.dot_dimension_numbers<[1], [0], [0], [1], [0, 0, 1, 1], [], []>} : vector<1x32xf32>, vector<32x32xf32>, vector<1x32xf32> -> vector<1x32xf32>
    %497 = vector.extract_strided_slice %332 {offsets = [9, 0], sizes = [1, 32], strides = [1, 1]} : vector<16x32xf32> to vector<1x32xf32>
    %cst_73 = arith.constant dense<0.000000e+00> : vector<1x32xf32>
    %498 = tpu.matmul %497, %494, %cst_73 {dimension_numbers = #tpu.dot_dimension_numbers<[1], [0], [0], [1], [0, 0, 1, 1], [], []>} : vector<1x32xf32>, vector<32x32xf32>, vector<1x32xf32> -> vector<1x32xf32>
    %499 = vector.extract_strided_slice %327 {offsets = [0, 9], sizes = [32, 1], strides = [1, 1]} : vector<32x16xf32> to vector<32x1xf32>
    %500 = vector.broadcast %499 : vector<32x1xf32> to vector<32x32xf32>
    %501 = arith.mulf %500, %494 : vector<32x32xf32>
    %502 = vector.extract_strided_slice %331 {offsets = [0, 9], sizes = [32, 1], strides = [1, 1]} : vector<32x16xf32> to vector<32x1xf32>
    %503 = vector.broadcast %502 : vector<32x1xf32> to vector<32x32xf32>
    %504 = vector.broadcast %498 : vector<1x32xf32> to vector<32x32xf32>
    %505 = arith.mulf %503, %504 : vector<32x32xf32>
    %506 = arith.addf %501, %505 : vector<32x32xf32>
    %507 = vector.extract_strided_slice %329 {offsets = [0, 9], sizes = [32, 1], strides = [1, 1]} : vector<32x16xf32> to vector<32x1xf32>
    %508 = vector.extract_strided_slice %334 {offsets = [9, 0], sizes = [1, 32], strides = [1, 1]} : vector<16x32xf32> to vector<1x32xf32>
    %509 = vector.broadcast %507 : vector<32x1xf32> to vector<32x32xf32>
    %510 = vector.broadcast %508 : vector<1x32xf32> to vector<32x32xf32>
    %511 = arith.mulf %509, %510 : vector<32x32xf32>
    %512 = arith.addf %506, %511 : vector<32x32xf32>
    %513 = vector.extract_strided_slice %333 {offsets = [9, 0], sizes = [1, 32], strides = [1, 1]} : vector<16x32xf32> to vector<1x32xf32>
    %cst_74 = arith.constant dense<0.000000e+00> : vector<1x32xf32>
    %514 = tpu.matmul %513, %512, %cst_74 {dimension_numbers = #tpu.dot_dimension_numbers<[1], [0], [0], [1], [0, 0, 1, 1], [], []>} : vector<1x32xf32>, vector<32x32xf32>, vector<1x32xf32> -> vector<1x32xf32>
    %515 = vector.extract_strided_slice %332 {offsets = [10, 0], sizes = [1, 32], strides = [1, 1]} : vector<16x32xf32> to vector<1x32xf32>
    %cst_75 = arith.constant dense<0.000000e+00> : vector<1x32xf32>
    %516 = tpu.matmul %515, %512, %cst_75 {dimension_numbers = #tpu.dot_dimension_numbers<[1], [0], [0], [1], [0, 0, 1, 1], [], []>} : vector<1x32xf32>, vector<32x32xf32>, vector<1x32xf32> -> vector<1x32xf32>
    %517 = vector.extract_strided_slice %327 {offsets = [0, 10], sizes = [32, 1], strides = [1, 1]} : vector<32x16xf32> to vector<32x1xf32>
    %518 = vector.broadcast %517 : vector<32x1xf32> to vector<32x32xf32>
    %519 = arith.mulf %518, %512 : vector<32x32xf32>
    %520 = vector.extract_strided_slice %331 {offsets = [0, 10], sizes = [32, 1], strides = [1, 1]} : vector<32x16xf32> to vector<32x1xf32>
    %521 = vector.broadcast %520 : vector<32x1xf32> to vector<32x32xf32>
    %522 = vector.broadcast %516 : vector<1x32xf32> to vector<32x32xf32>
    %523 = arith.mulf %521, %522 : vector<32x32xf32>
    %524 = arith.addf %519, %523 : vector<32x32xf32>
    %525 = vector.extract_strided_slice %329 {offsets = [0, 10], sizes = [32, 1], strides = [1, 1]} : vector<32x16xf32> to vector<32x1xf32>
    %526 = vector.extract_strided_slice %334 {offsets = [10, 0], sizes = [1, 32], strides = [1, 1]} : vector<16x32xf32> to vector<1x32xf32>
    %527 = vector.broadcast %525 : vector<32x1xf32> to vector<32x32xf32>
    %528 = vector.broadcast %526 : vector<1x32xf32> to vector<32x32xf32>
    %529 = arith.mulf %527, %528 : vector<32x32xf32>
    %530 = arith.addf %524, %529 : vector<32x32xf32>
    %531 = vector.extract_strided_slice %333 {offsets = [10, 0], sizes = [1, 32], strides = [1, 1]} : vector<16x32xf32> to vector<1x32xf32>
    %cst_76 = arith.constant dense<0.000000e+00> : vector<1x32xf32>
    %532 = tpu.matmul %531, %530, %cst_76 {dimension_numbers = #tpu.dot_dimension_numbers<[1], [0], [0], [1], [0, 0, 1, 1], [], []>} : vector<1x32xf32>, vector<32x32xf32>, vector<1x32xf32> -> vector<1x32xf32>
    %533 = vector.extract_strided_slice %332 {offsets = [11, 0], sizes = [1, 32], strides = [1, 1]} : vector<16x32xf32> to vector<1x32xf32>
    %cst_77 = arith.constant dense<0.000000e+00> : vector<1x32xf32>
    %534 = tpu.matmul %533, %530, %cst_77 {dimension_numbers = #tpu.dot_dimension_numbers<[1], [0], [0], [1], [0, 0, 1, 1], [], []>} : vector<1x32xf32>, vector<32x32xf32>, vector<1x32xf32> -> vector<1x32xf32>
    %535 = vector.extract_strided_slice %327 {offsets = [0, 11], sizes = [32, 1], strides = [1, 1]} : vector<32x16xf32> to vector<32x1xf32>
    %536 = vector.broadcast %535 : vector<32x1xf32> to vector<32x32xf32>
    %537 = arith.mulf %536, %530 : vector<32x32xf32>
    %538 = vector.extract_strided_slice %331 {offsets = [0, 11], sizes = [32, 1], strides = [1, 1]} : vector<32x16xf32> to vector<32x1xf32>
    %539 = vector.broadcast %538 : vector<32x1xf32> to vector<32x32xf32>
    %540 = vector.broadcast %534 : vector<1x32xf32> to vector<32x32xf32>
    %541 = arith.mulf %539, %540 : vector<32x32xf32>
    %542 = arith.addf %537, %541 : vector<32x32xf32>
    %543 = vector.extract_strided_slice %329 {offsets = [0, 11], sizes = [32, 1], strides = [1, 1]} : vector<32x16xf32> to vector<32x1xf32>
    %544 = vector.extract_strided_slice %334 {offsets = [11, 0], sizes = [1, 32], strides = [1, 1]} : vector<16x32xf32> to vector<1x32xf32>
    %545 = vector.broadcast %543 : vector<32x1xf32> to vector<32x32xf32>
    %546 = vector.broadcast %544 : vector<1x32xf32> to vector<32x32xf32>
    %547 = arith.mulf %545, %546 : vector<32x32xf32>
    %548 = arith.addf %542, %547 : vector<32x32xf32>
    %549 = vector.extract_strided_slice %333 {offsets = [11, 0], sizes = [1, 32], strides = [1, 1]} : vector<16x32xf32> to vector<1x32xf32>
    %cst_78 = arith.constant dense<0.000000e+00> : vector<1x32xf32>
    %550 = tpu.matmul %549, %548, %cst_78 {dimension_numbers = #tpu.dot_dimension_numbers<[1], [0], [0], [1], [0, 0, 1, 1], [], []>} : vector<1x32xf32>, vector<32x32xf32>, vector<1x32xf32> -> vector<1x32xf32>
    %551 = vector.extract_strided_slice %332 {offsets = [12, 0], sizes = [1, 32], strides = [1, 1]} : vector<16x32xf32> to vector<1x32xf32>
    %cst_79 = arith.constant dense<0.000000e+00> : vector<1x32xf32>
    %552 = tpu.matmul %551, %548, %cst_79 {dimension_numbers = #tpu.dot_dimension_numbers<[1], [0], [0], [1], [0, 0, 1, 1], [], []>} : vector<1x32xf32>, vector<32x32xf32>, vector<1x32xf32> -> vector<1x32xf32>
    %553 = vector.extract_strided_slice %327 {offsets = [0, 12], sizes = [32, 1], strides = [1, 1]} : vector<32x16xf32> to vector<32x1xf32>
    %554 = vector.broadcast %553 : vector<32x1xf32> to vector<32x32xf32>
    %555 = arith.mulf %554, %548 : vector<32x32xf32>
    %556 = vector.extract_strided_slice %331 {offsets = [0, 12], sizes = [32, 1], strides = [1, 1]} : vector<32x16xf32> to vector<32x1xf32>
    %557 = vector.broadcast %556 : vector<32x1xf32> to vector<32x32xf32>
    %558 = vector.broadcast %552 : vector<1x32xf32> to vector<32x32xf32>
    %559 = arith.mulf %557, %558 : vector<32x32xf32>
    %560 = arith.addf %555, %559 : vector<32x32xf32>
    %561 = vector.extract_strided_slice %329 {offsets = [0, 12], sizes = [32, 1], strides = [1, 1]} : vector<32x16xf32> to vector<32x1xf32>
    %562 = vector.extract_strided_slice %334 {offsets = [12, 0], sizes = [1, 32], strides = [1, 1]} : vector<16x32xf32> to vector<1x32xf32>
    %563 = vector.broadcast %561 : vector<32x1xf32> to vector<32x32xf32>
    %564 = vector.broadcast %562 : vector<1x32xf32> to vector<32x32xf32>
    %565 = arith.mulf %563, %564 : vector<32x32xf32>
    %566 = arith.addf %560, %565 : vector<32x32xf32>
    %567 = vector.extract_strided_slice %333 {offsets = [12, 0], sizes = [1, 32], strides = [1, 1]} : vector<16x32xf32> to vector<1x32xf32>
    %cst_80 = arith.constant dense<0.000000e+00> : vector<1x32xf32>
    %568 = tpu.matmul %567, %566, %cst_80 {dimension_numbers = #tpu.dot_dimension_numbers<[1], [0], [0], [1], [0, 0, 1, 1], [], []>} : vector<1x32xf32>, vector<32x32xf32>, vector<1x32xf32> -> vector<1x32xf32>
    %569 = vector.extract_strided_slice %332 {offsets = [13, 0], sizes = [1, 32], strides = [1, 1]} : vector<16x32xf32> to vector<1x32xf32>
    %cst_81 = arith.constant dense<0.000000e+00> : vector<1x32xf32>
    %570 = tpu.matmul %569, %566, %cst_81 {dimension_numbers = #tpu.dot_dimension_numbers<[1], [0], [0], [1], [0, 0, 1, 1], [], []>} : vector<1x32xf32>, vector<32x32xf32>, vector<1x32xf32> -> vector<1x32xf32>
    %571 = vector.extract_strided_slice %327 {offsets = [0, 13], sizes = [32, 1], strides = [1, 1]} : vector<32x16xf32> to vector<32x1xf32>
    %572 = vector.broadcast %571 : vector<32x1xf32> to vector<32x32xf32>
    %573 = arith.mulf %572, %566 : vector<32x32xf32>
    %574 = vector.extract_strided_slice %331 {offsets = [0, 13], sizes = [32, 1], strides = [1, 1]} : vector<32x16xf32> to vector<32x1xf32>
    %575 = vector.broadcast %574 : vector<32x1xf32> to vector<32x32xf32>
    %576 = vector.broadcast %570 : vector<1x32xf32> to vector<32x32xf32>
    %577 = arith.mulf %575, %576 : vector<32x32xf32>
    %578 = arith.addf %573, %577 : vector<32x32xf32>
    %579 = vector.extract_strided_slice %329 {offsets = [0, 13], sizes = [32, 1], strides = [1, 1]} : vector<32x16xf32> to vector<32x1xf32>
    %580 = vector.extract_strided_slice %334 {offsets = [13, 0], sizes = [1, 32], strides = [1, 1]} : vector<16x32xf32> to vector<1x32xf32>
    %581 = vector.broadcast %579 : vector<32x1xf32> to vector<32x32xf32>
    %582 = vector.broadcast %580 : vector<1x32xf32> to vector<32x32xf32>
    %583 = arith.mulf %581, %582 : vector<32x32xf32>
    %584 = arith.addf %578, %583 : vector<32x32xf32>
    %585 = vector.extract_strided_slice %333 {offsets = [13, 0], sizes = [1, 32], strides = [1, 1]} : vector<16x32xf32> to vector<1x32xf32>
    %cst_82 = arith.constant dense<0.000000e+00> : vector<1x32xf32>
    %586 = tpu.matmul %585, %584, %cst_82 {dimension_numbers = #tpu.dot_dimension_numbers<[1], [0], [0], [1], [0, 0, 1, 1], [], []>} : vector<1x32xf32>, vector<32x32xf32>, vector<1x32xf32> -> vector<1x32xf32>
    %587 = vector.extract_strided_slice %332 {offsets = [14, 0], sizes = [1, 32], strides = [1, 1]} : vector<16x32xf32> to vector<1x32xf32>
    %cst_83 = arith.constant dense<0.000000e+00> : vector<1x32xf32>
    %588 = tpu.matmul %587, %584, %cst_83 {dimension_numbers = #tpu.dot_dimension_numbers<[1], [0], [0], [1], [0, 0, 1, 1], [], []>} : vector<1x32xf32>, vector<32x32xf32>, vector<1x32xf32> -> vector<1x32xf32>
    %589 = vector.extract_strided_slice %327 {offsets = [0, 14], sizes = [32, 1], strides = [1, 1]} : vector<32x16xf32> to vector<32x1xf32>
    %590 = vector.broadcast %589 : vector<32x1xf32> to vector<32x32xf32>
    %591 = arith.mulf %590, %584 : vector<32x32xf32>
    %592 = vector.extract_strided_slice %331 {offsets = [0, 14], sizes = [32, 1], strides = [1, 1]} : vector<32x16xf32> to vector<32x1xf32>
    %593 = vector.broadcast %592 : vector<32x1xf32> to vector<32x32xf32>
    %594 = vector.broadcast %588 : vector<1x32xf32> to vector<32x32xf32>
    %595 = arith.mulf %593, %594 : vector<32x32xf32>
    %596 = arith.addf %591, %595 : vector<32x32xf32>
    %597 = vector.extract_strided_slice %329 {offsets = [0, 14], sizes = [32, 1], strides = [1, 1]} : vector<32x16xf32> to vector<32x1xf32>
    %598 = vector.extract_strided_slice %334 {offsets = [14, 0], sizes = [1, 32], strides = [1, 1]} : vector<16x32xf32> to vector<1x32xf32>
    %599 = vector.broadcast %597 : vector<32x1xf32> to vector<32x32xf32>
    %600 = vector.broadcast %598 : vector<1x32xf32> to vector<32x32xf32>
    %601 = arith.mulf %599, %600 : vector<32x32xf32>
    %602 = arith.addf %596, %601 : vector<32x32xf32>
    %603 = vector.extract_strided_slice %333 {offsets = [14, 0], sizes = [1, 32], strides = [1, 1]} : vector<16x32xf32> to vector<1x32xf32>
    %cst_84 = arith.constant dense<0.000000e+00> : vector<1x32xf32>
    %604 = tpu.matmul %603, %602, %cst_84 {dimension_numbers = #tpu.dot_dimension_numbers<[1], [0], [0], [1], [0, 0, 1, 1], [], []>} : vector<1x32xf32>, vector<32x32xf32>, vector<1x32xf32> -> vector<1x32xf32>
    %605 = vector.extract_strided_slice %332 {offsets = [15, 0], sizes = [1, 32], strides = [1, 1]} : vector<16x32xf32> to vector<1x32xf32>
    %cst_85 = arith.constant dense<0.000000e+00> : vector<1x32xf32>
    %606 = tpu.matmul %605, %602, %cst_85 {dimension_numbers = #tpu.dot_dimension_numbers<[1], [0], [0], [1], [0, 0, 1, 1], [], []>} : vector<1x32xf32>, vector<32x32xf32>, vector<1x32xf32> -> vector<1x32xf32>
    %607 = vector.extract_strided_slice %327 {offsets = [0, 15], sizes = [32, 1], strides = [1, 1]} : vector<32x16xf32> to vector<32x1xf32>
    %608 = vector.broadcast %607 : vector<32x1xf32> to vector<32x32xf32>
    %609 = arith.mulf %608, %602 : vector<32x32xf32>
    %610 = vector.extract_strided_slice %331 {offsets = [0, 15], sizes = [32, 1], strides = [1, 1]} : vector<32x16xf32> to vector<32x1xf32>
    %611 = vector.broadcast %610 : vector<32x1xf32> to vector<32x32xf32>
    %612 = vector.broadcast %606 : vector<1x32xf32> to vector<32x32xf32>
    %613 = arith.mulf %611, %612 : vector<32x32xf32>
    %614 = arith.addf %609, %613 : vector<32x32xf32>
    %615 = vector.extract_strided_slice %329 {offsets = [0, 15], sizes = [32, 1], strides = [1, 1]} : vector<32x16xf32> to vector<32x1xf32>
    %616 = vector.extract_strided_slice %334 {offsets = [15, 0], sizes = [1, 32], strides = [1, 1]} : vector<16x32xf32> to vector<1x32xf32>
    %617 = vector.broadcast %615 : vector<32x1xf32> to vector<32x32xf32>
    %618 = vector.broadcast %616 : vector<1x32xf32> to vector<32x32xf32>
    %619 = arith.mulf %617, %618 : vector<32x32xf32>
    %620 = arith.addf %614, %619 : vector<32x32xf32>
    %621 = vector.extract_strided_slice %333 {offsets = [15, 0], sizes = [1, 32], strides = [1, 1]} : vector<16x32xf32> to vector<1x32xf32>
    %cst_86 = arith.constant dense<0.000000e+00> : vector<1x32xf32>
    %622 = tpu.matmul %621, %620, %cst_86 {dimension_numbers = #tpu.dot_dimension_numbers<[1], [0], [0], [1], [0, 0, 1, 1], [], []>} : vector<1x32xf32>, vector<32x32xf32>, vector<1x32xf32> -> vector<1x32xf32>
    %c0_87 = arith.constant 0 : index
    %c32_88 = arith.constant 32 : index
    %623 = vector.load %arg14[%c0_87, %c32_88] : memref<32x64xf32, #tpu.memory_space<vmem>>, vector<32x32xf32>
    tpu.vector_store %arg14[%c0_87, %c32_88], %620 {strides = array<i32>} : memref<32x64xf32, #tpu.memory_space<vmem>>, vector<32x32xf32>,
    %624 = tpu.concatenate %352, %370, %388, %406, %424, %442, %460, %478, %496, %514, %532, %550, %568, %586, %604, %622 in 0 : vector<1x32xf32>, vector<1x32xf32>, vector<1x32xf32>, vector<1x32xf32>, vector<1x32xf32>, vector<1x32xf32>, vector<1x32xf32>, vector<1x32xf32>, vector<1x32xf32>, vector<1x32xf32>, vector<1x32xf32>, vector<1x32xf32>, vector<1x32xf32>, vector<1x32xf32>, vector<1x32xf32>, vector<1x32xf32> -> vector<16x32xf32>
    %625 = tpu.concatenate %324, %624 in 1 : vector<16x32xf32>, vector<16x32xf32> -> vector<16x64xf32>
    %c0_89 = arith.constant 0 : index
    %c0_90 = arith.constant 0 : index
    %626 = vector.load %arg12[%c0_89, %c0_90] : memref<64x2xf32, #tpu.memory_space<vmem>>, vector<64x2xf32>
    %cst_91 = arith.constant dense<0.000000e+00> : vector<16x2xf32>
    %627 = tpu.matmul %625, %626, %cst_91 {dimension_numbers = #tpu.dot_dimension_numbers<[1], [0], [0], [1], [0, 0, 1, 1], [], []>} : vector<16x64xf32>, vector<64x2xf32>, vector<16x2xf32> -> vector<16x2xf32>
    %cst_92 = arith.constant dense<0.000000e+00> : vector<16x64xf32>
    %628 = tpu.matmul %627, %626, %cst_92 {dimension_numbers = #tpu.dot_dimension_numbers<[1], [1], [0], [0], [0, 0, 1, 0], [], []>} : vector<16x2xf32>, vector<64x2xf32>, vector<16x64xf32> -> vector<16x64xf32>
    %cst_93 = arith.constant 3.125000e-02 : f32
    %629 = vector.broadcast %cst_93 : f32 to vector<16x64xf32>
    %630 = arith.mulf %628, %629 : vector<16x64xf32>
    %631 = arith.subf %625, %630 : vector<16x64xf32>
    %632 = arith.mulf %631, %631 : vector<16x64xf32>
    %cst_94 = arith.constant dense<0.000000e+00> : vector<16x2xf32>
    %633 = tpu.matmul %632, %626, %cst_94 {dimension_numbers = #tpu.dot_dimension_numbers<[1], [0], [0], [1], [0, 0, 1, 1], [], []>} : vector<16x64xf32>, vector<64x2xf32>, vector<16x2xf32> -> vector<16x2xf32>
    %cst_95 = arith.constant dense<0.000000e+00> : vector<16x64xf32>
    %634 = tpu.matmul %633, %626, %cst_95 {dimension_numbers = #tpu.dot_dimension_numbers<[1], [1], [0], [0], [0, 0, 1, 0], [], []>} : vector<16x2xf32>, vector<64x2xf32>, vector<16x64xf32> -> vector<16x64xf32>
    %cst_96 = arith.constant 3.125000e-02 : f32
    %635 = vector.broadcast %cst_96 : f32 to vector<16x64xf32>
    %636 = arith.mulf %634, %635 : vector<16x64xf32>
    %cst_97 = arith.constant 6.400000e-04 : f32
    %637 = vector.broadcast %cst_97 : f32 to vector<16x64xf32>
    %638 = arith.addf %636, %637 : vector<16x64xf32>
    %639 = math.rsqrt %638 : vector<16x64xf32>
    %640 = arith.mulf %631, %639 : vector<16x64xf32>
    %c0_98 = arith.constant 0 : index
    %c0_99 = arith.constant 0 : index
    %641 = vector.load %arg9[%c0_98, %c0_99] : memref<1x64xf32, #tpu.memory_space<vmem>>, vector<1x64xf32>
    %642 = vector.broadcast %641 : vector<1x64xf32> to vector<16x64xf32>
    %643 = arith.mulf %640, %642 : vector<16x64xf32>
    %c0_100 = arith.constant 0 : index
    %c0_101 = arith.constant 0 : index
    %644 = vector.load %arg10[%c0_100, %c0_101] : memref<1x64xf32, #tpu.memory_space<vmem>>, vector<1x64xf32>
    %645 = vector.broadcast %644 : vector<1x64xf32> to vector<16x64xf32>
    %646 = arith.addf %643, %645 : vector<16x64xf32>
    %647 = arith.mulf %5, %15 : vector<16x64xf32>
    %c0_102 = arith.constant 0 : index
    %c0_103 = arith.constant 0 : index
    %648 = vector.load %arg11[%c0_102, %c0_103] : memref<1x64xf32, #tpu.memory_space<vmem>>, vector<1x64xf32>
    %649 = vector.broadcast %648 : vector<1x64xf32> to vector<16x64xf32>
    %650 = arith.mulf %647, %649 : vector<16x64xf32>
    %cst_104 = arith.constant dense<0.000000e+00> : vector<16x2xf32>
    %651 = tpu.matmul %650, %626, %cst_104 {dimension_numbers = #tpu.dot_dimension_numbers<[1], [0], [0], [1], [0, 0, 1, 1], [], []>} : vector<16x64xf32>, vector<64x2xf32>, vector<16x2xf32> -> vector<16x2xf32>
    %cst_105 = arith.constant dense<0.000000e+00> : vector<16x64xf32>
    %652 = tpu.matmul %651, %626, %cst_105 {dimension_numbers = #tpu.dot_dimension_numbers<[1], [1], [0], [0], [0, 0, 1, 0], [], []>} : vector<16x2xf32>, vector<64x2xf32>, vector<16x64xf32> -> vector<16x64xf32>
    %653 = arith.mulf %652, %18 : vector<16x64xf32>
    %c0_106 = arith.constant 0 : index
    %c0_107 = arith.constant 0 : index
    %c0_108 = arith.constant 0 : index
    %654 = vector.load %arg8[%c0_106, %c0_107, %c0_108] : memref<1x16x64xbf16, #tpu.memory_space<vmem>>, vector<1x16x64xbf16>
    %655 = vector.shape_cast %654 : vector<1x16x64xbf16> to vector<16x64xbf16>
    %656 = arith.extf %655 : vector<16x64xbf16> to vector<16x64xf32>
    %657 = arith.addf %646, %653 : vector<16x64xf32>
    %658 = arith.mulf %657, %656 : vector<16x64xf32>
    %659 = arith.truncf %658 : vector<16x64xf32> to vector<16x64xbf16>
    %c0_109 = arith.constant 0 : index
    %c0_110 = arith.constant 0 : index
    %c0_111 = arith.constant 0 : index
    %660 = vector.load %arg13[%c0_109, %c0_110, %c0_111] : memref<1x16x64xbf16, #tpu.memory_space<vmem>>, vector<1x16x64xbf16>
    %661 = vector.shape_cast %660 : vector<1x16x64xbf16> to vector<16x64xbf16>
    %662 = vector.shape_cast %659 : vector<16x64xbf16> to vector<1x16x64xbf16>
    tpu.vector_store %arg13[%c0_109, %c0_110, %c0_111], %662 {strides = array<i32>} : memref<1x16x64xbf16, #tpu.memory_space<vmem>>, vector<1x16x64xbf16>,
    return
  }
  func.func @transform_0(%arg0: i32, %arg1: i32) -> (i32, i32, i32) {
    %c0_i32 = arith.constant 0 : i32
    %c0_i32_0 = arith.constant 0 : i32
    return %arg0, %arg1, %c0_i32 : i32, i32, i32
  }
  func.func @transform_1(%arg0: i32, %arg1: i32) -> (i32, i32, i32) {
    %c0_i32 = arith.constant 0 : i32
    %c0_i32_0 = arith.constant 0 : i32
    return %arg0, %arg1, %c0_i32 : i32, i32, i32
  }
  func.func @transform_2(%arg0: i32, %arg1: i32) -> (i32, i32, i32) {
    %c0_i32 = arith.constant 0 : i32
    %c0_i32_0 = arith.constant 0 : i32
    return %arg0, %arg1, %c0_i32 : i32, i32, i32
  }
  func.func @transform_3(%arg0: i32, %arg1: i32) -> (i32, i32, i32) {
    %c0_i32 = arith.constant 0 : i32
    %c0_i32_0 = arith.constant 0 : i32
    return %arg0, %arg1, %c0_i32 : i32, i32, i32
  }
  func.func @transform_4(%arg0: i32, %arg1: i32) -> (i32, i32, i32) {
    %c0_i32 = arith.constant 0 : i32
    %c0_i32_0 = arith.constant 0 : i32
    return %arg0, %arg1, %c0_i32 : i32, i32, i32
  }
  func.func @transform_5(%arg0: i32, %arg1: i32) -> (i32, i32, i32) {
    %c0_i32 = arith.constant 0 : i32
    %c0_i32_0 = arith.constant 0 : i32
    return %arg0, %arg1, %c0_i32 : i32, i32, i32
  }
  func.func @transform_6(%arg0: i32, %arg1: i32) -> (i32, i32, i32) {
    %c0_i32 = arith.constant 0 : i32
    %c0_i32_0 = arith.constant 0 : i32
    return %arg0, %arg1, %c0_i32 : i32, i32, i32
  }
  func.func @transform_7(%arg0: i32, %arg1: i32) -> (i32, i32) {
    %c0_i32 = arith.constant 0 : i32
    %c0_i32_0 = arith.constant 0 : i32
    %c0_i32_1 = arith.constant 0 : i32
    return %c0_i32, %c0_i32_0 : i32, i32
  }
  func.func @transform_8(%arg0: i32, %arg1: i32) -> (i32, i32) {
    %c0_i32 = arith.constant 0 : i32
    %c0_i32_0 = arith.constant 0 : i32
    %c0_i32_1 = arith.constant 0 : i32
    return %c0_i32, %c0_i32_0 : i32, i32
  }
  func.func @transform_9(%arg0: i32, %arg1: i32) -> (i32, i32) {
    %c0_i32 = arith.constant 0 : i32
    %c0_i32_0 = arith.constant 0 : i32
    %c0_i32_1 = arith.constant 0 : i32
    return %c0_i32, %c0_i32_0 : i32, i32
  }
  func.func @transform_10(%arg0: i32, %arg1: i32) -> (i32, i32) {
    %c0_i32 = arith.constant 0 : i32
    %c0_i32_0 = arith.constant 0 : i32
    %c0_i32_1 = arith.constant 0 : i32
    return %c0_i32, %c0_i32_0 : i32, i32
  }
  func.func @transform_11(%arg0: i32, %arg1: i32) -> (i32, i32, i32) {
    %c0_i32 = arith.constant 0 : i32
    %c0_i32_0 = arith.constant 0 : i32
    return %arg0, %arg1, %c0_i32 : i32, i32, i32
  }
}

</mosaic_0001>

<bundles_post_ra>
// kernel: time_mixer_forward.10
= control target key start
LH: loop header
LB: loop body
LE: loop exit
PB: predicated region body
PF: predicated region fallthrough
CT: control target
= control target key end

     0   :  { %vm16_vm0 = vcmask 785408   ;;  %v209_v1 = vmov 0.0   ;;  %vm71_vm1 = vcmask 523264   ;;  %vm159_vm2 = vcmask 781312   ;;  %s263_s1 = inlined_call_operand.vmem [shape: bf16[64,96], index: 1, kind: input, shape index: {}]   ;;  %s264_s0 = inlined_call_operand.vmem [shape: bf16[32,64], index: 0, kind: input, shape index: {}]   ;;  %s265_s2 = inlined_call_operand.vmem [shape: bf16[32,96], index: 2, kind: output, shape index: {}]  }
   0x1   :  { %v203_v0 = vld [vmem:[%s263_s1 + $0x18] sm:$0xff]   ;;  %19 = vst.msk [vmem:[#allocation2 + $0x10] sm:$0xff] %vm16_vm0, %v209_v1  ;;  %17 = vst.msk [vmem:[#allocation2] sm:$0xff] %vm16_vm0, %v209_v1  ;;  %v204_v2 = vld [vmem:[%s263_s1 + $0x10] sm:$0xff]  }
   0x2   :  { %18 = vst.msk [vmem:[#allocation2 + $0x8] sm:$0xff] %vm16_vm0, %v209_v1  ;;  %20 = vst.msk [vmem:[#allocation2 + $0x18] sm:$0xff] %vm16_vm0, %v209_v1  ;;  %190 = vmatprep.subr.bf16.mxu0 %v203_v0  ;;  %v205_v3 = vld [vmem:[%s263_s1 + $0x8] sm:$0xff]   ;;  %v207_v4 = vld [vmem:[%s264_s0] sm:$0xff]  }
   0x3   :  { %191 = vmatpush3.bf16.msra.mxu0 %v203_v0  ;;  %198 = vmatprep.mubr.msk.bf16.mxu0 %vm71_vm1, %v207_v4  ;;  %v206_v5 = vld [vmem:[%s263_s1] sm:$0xff]   ;;  %v208_v6 = vld [vmem:[%s264_s0 + $0x8] sm:$0xff]  }
   0x4   :  { %192 = vmatprep.subr.bf16.mxu0 %v204_v2 }
   0x7   :  { %193 = vmatpush3.bf16.msra.mxu0 %v204_v2 }
   0x8   :  { %194 = vmatprep.subr.bf16.mxu0 %v205_v3  ;;  %v23_v7 = vld [vmem:[#allocation2 + $0x10] sm:$0xff]  ;;  %v21_v9 = vld [vmem:[#allocation2] sm:$0xff] }
   0x9   :  { %v24_v12 = vld [vmem:[#allocation2 + $0x18] sm:$0xff]  ;;  %v22_v15 = vld [vmem:[#allocation2 + $0x8] sm:$0xff] }
   0xb   :  { %195 = vmatpush3.bf16.msra.mxu0 %v205_v3 }
   0xc   :  { %196 = vmatprep.subr.bf16.mxu0 %v206_v5 }
   0xf   :  { %197 = vmatpush3.bf16.msra.mxu0 %v206_v5 }
  0x12   :  { %199 = vmatmul.mubr.msk.bf16.vlgmr.msra.gmra.mxu0 %vm71_vm1, %v208_v6 }
  0xd2   :  { %v200_v8 = vpop.f32.mrf.mxu0 }
  0xd3   :  { %v129_v10 = vadd.f32 %v200_v8, %v23_v7 }
  0xd4   :  { %v112_v11 = vpop.f32.mrf.mxu0 }
  0xd5   :  { %134 = vst.msk [vmem:[#allocation2 + $0x10] sm:$0xff] %vm16_vm0, %v129_v10  ;;  %v127_v13 = vadd.f32 %v112_v11, %v21_v9 }
  0xd6   :  { %v201_v14 = vpop.f32.mrf.mxu0 }
  0xd7   :  { %132 = vst.msk [vmem:[#allocation2] sm:$0xff] %vm16_vm0, %v127_v13  ;;  %v130_v16 = vadd.f32 %v201_v14, %v24_v12 }
  0xd8   :  { %v115_v17 = vpop.f32.mrf.mxu0 }
  0xd9   :  { %135 = vst.msk [vmem:[#allocation2 + $0x18] sm:$0xff] %vm16_vm0, %v130_v16  ;;  %v128_v18 = vadd.f32 %v115_v17, %v22_v15 }
  0xdb   :  { %133 = vst.msk [vmem:[#allocation2 + $0x8] sm:$0xff] %vm16_vm0, %v128_v18 }
  0xdc   :  { %v141_v19 = vld [vmem:[#allocation2 + $0x10] sm:$0xff] }
  0xdd   :  { %v182_v20 = vpack.c.bf16 %v141_v19, %v141_v19 }
  0xde   :  { %v139_v21 = vld [vmem:[#allocation2] sm:$0xff] }
  0xdf   :  { %162 = vst.msk [vmem:[%s265_s2 + $0x8] sm:$0xf] %vm159_vm2, %v182_v20  ;;  %v180_v22 = vpack.c.bf16 %v139_v21, %v139_v21 }
  0xe0   :  { %v142_v23 = vld [vmem:[#allocation2 + $0x18] sm:$0xff] }
  0xe1   :  { %160 = vst.msk [vmem:[%s265_s2] sm:$0xf] %vm159_vm2, %v180_v22  ;;  %v183_v24 = vpack.c.bf16 %v142_v23, %v142_v23 }
  0xe2   :  { %v140_v25 = vld [vmem:[#allocation2 + $0x8] sm:$0xff] }
  0xe3   :  { %163 = vst.msk [vmem:[%s265_s2 + $0xc] sm:$0xf] %vm159_vm2, %v183_v24  ;;  %v181_v26 = vpack.c.bf16 %v140_v25, %v140_v25 }
  0xe5   :  { %161 = vst.msk [vmem:[%s265_s2 + $0x4] sm:$0xf] %vm159_vm2, %v181_v26 }

// kernel: time_mixer_forward.8
= control target key start
LH: loop header
LB: loop body
LE: loop exit
PB: predicated region body
PF: predicated region fallthrough
CT: control target
= control target key end

     0   :  { %10 = vsyncpa [#allocation4], 0  ;;  %s1068_s18 = smov 0   ;;  %s1070_s19 = smov 0   ;;  %s1241_s0 = inlined_call_operand.vmem [shape: bf16[2,16,64], index: 0, kind: input, shape index: {}]   ;;  %s1242_s1 = inlined_call_operand.vmem [shape: f32[1,64], index: 1, kind: input, shape index: {}]   ;;  %s1243_s2 = inlined_call_operand.vmem [shape: f32[4,64], index: 2, kind: input, shape index: {}]   ;;  %s1244_s3 = inlined_call_operand.vmem [shape: bf16[64,128], index: 3, kind: input, shape index: {}]   ;;  %s1245_s4 = inlined_call_operand.hbm [shape: bf16[128,256], index: 4, kind: input, shape index: {}]   ;;  %s1246_s5 = inlined_call_operand.vmem [shape: bf16[4,2,16,64], index: 5, kind: output, shape index: {}]  }
   0x1   :  { %s1072_s20 = smov 0   ;;  %s1074_s21 = smov 0  }
   0x2   :  { %s1076_s22 = smov 0  }
   0x3 LB: > { %s786_s23 = sadd.s32 4294967295, %s1029_s22   ;;  %s28_s24 = sadd.s32 1, %s1025_s21  ;;  %s1029_s22 = sphi %s1076_s22, %s16_s22   ;;  %s1025_s21 = sphi %s1074_s21, %s1253_s21   ;;  %s1021_s20 = sphi %s1072_s20, %s1252_s20   ;;  %s1017_s19 = sphi %s1070_s19, %s1251_s19   ;;  %s1013_s18 = sphi %s1068_s18, %s1250_s18  }
   0x4   : > { %p30_p0 = scmp.ge.s32.totalorder %s28_s24, 2  ;;  %s149_s25 = sadd.s32 1, %s1017_s19 }
   0x5   : > { %p159_p1 = scmp.ne.s32.totalorder %s1017_s19, %s1013_s18  ;;  %p160_p2 = scmp.eq.s32.totalorder %s786_s23, 1 }
   0x6   : > { %s1255_s24 = smov (%p30_p0, %s28_s24), 0  ;;  %p788_p4 = scmp.ge.s32.totalorder %s1029_s22, 1 }
   0x7   : > { %p1100_p3 = por %p160_p2, %p159_p1  ;;  %s144_s27 = ssub.s32 %s1025_s21, %s1255_s24 }
   0x8   : > { %p173_p5 = scmp.lt.s32.totalorder %s1029_s22, 3  ;;  %p147_p6 = scmp.eq.s32.totalorder %s144_s27, 0 }
   0x9   : > { %p1112_p8 = scmp.eq.s32.totalorder %s786_s23, 0  ;;  %s1031_s6 = smov [#allocation3]  }
   0xa   : > { %p1108_p7 = pnand %p788_p4, %p173_p5  ;;  %s194_s7 = sshll.u32 %s1031_s6, 4  ;;  %s195_s7 = int_to_ptr.vmem [resolvable:$true] %s194_s7 }
   0xb   : > { %s1117_s30 = scalar_select %p147_p6, %s1017_s19, %s149_s25  }
   0xc   : > { %p876_p9 = pneg %p1108_p7  ;;  %s972_s8 = scalar_lea.vmem %s195_s7, 2048 }
   0xd   : > { %p973_p12 = scmp.ne.s32.totalorder %s195_s7, %s972_s8  ;;  %p980_p1 = scmp.lt.s32.totalorder %s195_s7, %s195_s7 }
   0xe   : > { %p877_p10 = pnand %p1112_p8, %p876_p9  ;;  %p981_p2 = scmp.lt.s32.totalorder %s972_s8, %s972_s8 }
  0x10   : > { %p963_p11 = pneg %p877_p10  ;;  %p982_p4 = por %p981_p2, %p980_p1 }
  0x12   : > { %p975_p13 = pnand %p973_p12, %p963_p11 }
  0x14   : > { %p976_p0 = pneg %p975_p13 }
  0x16   : > { %p983_p5 = pnand %p982_p4, %p976_p0 }
  0x18   : > { %986 = shalt.err (!%p983_p5)
}
  0x19   : > { %s1032_s9 = smov 128   ;;  %s1033_s10 = smov 8  }
  0x1a   : > { %879 = dma.hbm_to_vmem [thread:$0]  (!%p877_p10), %s1245_s4, 2048, %s195_s7, [#allocation4], %s1032_s9, %s1032_s9, %s1033_s10  }
  0x1b   : > { %223 = sbr.rel (%p1108_p7) target bundleno = 597 (0x255), region = 40 }
  0x20   : > { %1008 = dma.done.wait (%p1112_p8), [#allocation4], 2048  }
  0x21   : > { %1010 = vsyncadd (%p1112_p8), [#allocation4], 4294965248  ;;  %p255_p6 = scmp.lt.s32.totalorder %s1021_s20, 1  ;;  %vm270_vm0 = vcmask 516096   ;;  %v1034_v0 = vmov 0.0   ;;  %vm1035_vm1 = vmmov 0  }
  0x22   : > { %271 = vst.msk [vmem:[#allocation2] sm:$0x1] %vm270_vm0, %v1034_v0  ;;  %860 = vmatprep.subr.bf16.mxu0 %v1034_v0  ;;  %868 = vmatprep.mubr.msk.bf16.mxu0 %vm1035_vm1, %v1034_v0  ;;  %vm286_vm2 = vcmask 523271   ;;  %v929_v3 = vld [vmem:[%s1244_s3 + $0x18] sm:$0xff]   ;;  %vm279_vm3 = vcmask 1040384   ;;  %v930_v6 = vld [vmem:[%s1244_s3 + $0x10] sm:$0xff]  }
  0x23   : > { %s256_s13 = scalar_select %p255_p6, %s1021_s20, 1  ;;  %861 = vmatpush3.bf16.msra.mxu0 %v929_v3  ;;  %v796_v9 = vld [vmem:[%s1242_s1] ss:$0 sm:$0xff]  ;;  %v935_v14 = vld [vmem:[#allocation3 + $0x70] ss:$8 sps:$4 sm:$0xff]   ;;  %v931_v15 = vld [vmem:[%s1244_s3 + $0x8] sm:$0xff]  }
  0x24   : > { %862 = vmatprep.subr.bf16.mxu0 %v1034_v0  ;;  %v933_v11 = vld [vmem:[#allocation3 + $0x74] ss:$8 sps:$4 sm:$0xff]   ;;  %v936_v17 = vld [vmem:[#allocation3 + $0x64] ss:$8 sps:$4 sm:$0xff]   ;;  %v938_v19 = vld [vmem:[#allocation3 + $0x60] ss:$8 sps:$4 sm:$0xff]  }
  0x25   : > { %s841_s14 = sshll.u32 %s256_s13, 3  ;;  %478 = vmatprep.subr.bf16.mxu1 %v933_v11  ;;  %v939_v20 = vld [vmem:[#allocation3 + $0x54] ss:$8 sps:$4 sm:$0xff]   ;;  %v941_v25 = vld [vmem:[#allocation3 + $0x50] ss:$8 sps:$4 sm:$0xff]   ;;  %vm334_vm4 = vcmask 523264  }
  0x26   : > { %s262_s17 = scalar_lea.vmem %s1241_s0, %s841_s14  ;;  %479 = vmatpush1.bf16.msra.mxu1 %v935_v14  ;;  %v932_v21 = vld [vmem:[%s1244_s3] sm:$0xff]   ;;  %v947_v30 = vld [vmem:[#allocation3 + $0x30] ss:$8 sps:$4 sm:$0xff]   ;;  %v1036_v34 = vmov 0   ;;  %s251_s13 = sand.u32 1, %s1013_s18   ;;  %vm540_vm5 = vcmask 519168  }
  0x27   : > { %v852_v1 = vld [vmem:[%s262_s17] sm:$0xff]   ;;  %863 = vmatpush3.bf16.msra.mxu0 %v930_v6  ;;  %480 = vmatprep.subr.bf16.mxu1 %v936_v17  ;;  %v953_v35 = vld [vmem:[#allocation3 + $0x10] ss:$8 sps:$4 sm:$0xff]   ;;  %s1037_s16 = smov 64   ;;  %s793_s17 = sshll.u32 %s251_s13, 5 }
  0x28   : > { %v1137_v2 = vunpack.c.h.bf16 %v852_v1  ;;  %v1142_v4 = vunpack.c.l.bf16 %v852_v1  ;;  %864 = vmatprep.subr.bf16.mxu0 %v1034_v0  ;;  %v942_v27 = vld [vmem:[#allocation3 + $0x44] ss:$8 sps:$4 sm:$0xff]   ;;  %v944_v28 = vld [vmem:[#allocation3 + $0x40] ss:$8 sps:$4 sm:$0xff]   ;;  %v945_v29 = vld [vmem:[#allocation3 + $0x34] ss:$8 sps:$4 sm:$0xff]   ;;  %510 = vmatprep.mubr.bf16.mxu1 %v1036_v34 }
  0x29   : > { %v276_v5 = vld [vmem:[#allocation2] sm:$0x1]  ;;  %v948_v31 = vld [vmem:[#allocation3 + $0x24] ss:$8 sps:$4 sm:$0xff]   ;;  %v950_v32 = vld [vmem:[#allocation3 + $0x20] ss:$8 sps:$4 sm:$0xff]  }
  0x2a   : > { %287 = vst.msk [vmem:[#allocation2 - $0x7] sm:$0x80] %vm286_vm2, %v1137_v2  ;;  %v280_v7 = vrot.slane %v1142_v4, 7  ;;  %v281_v8 = vrot.slane %v1137_v2, 7  ;;  %481 = vmatpush1.bf16.msra.mxu1 %v938_v19  ;;  %v951_v33 = vld [vmem:[#allocation3 + $0x14] ss:$8 sps:$4 sm:$0xff]  }
  0x2b   : > { %865 = vmatpush3.bf16.msra.mxu0 %v931_v15  ;;  %482 = vmatprep.subr.bf16.mxu1 %v939_v20  ;;  %v954_v36 = vld [vmem:[#allocation3 + $0x4] ss:$8 sps:$4 sm:$0xff]   ;;  %v956_v37 = vld [vmem:[#allocation3] ss:$8 sps:$4 sm:$0xff]   ;;  %v818_v45 = vld [vmem:[%s1243_s2] ss:$0 sm:$0xff] }
  0x2c   : > { %v285_v10 = vsel %vm279_vm3, %v276_v5, %v280_v7  ;;  %v282_v12 = vsel %vm279_vm3, %v280_v7, %v281_v8  ;;  %866 = vmatprep.subr.bf16.mxu0 %v1034_v0  ;;  %v826_v47 = vld [vmem:[%s1243_s2 + $0x2] ss:$0 sm:$0xff]  ;;  %s1181_s18 = scalar_lea.vmem [#allocation5], %s793_s17  ;;  %v821_v5 = vld [vmem:[%s1243_s2 + $0x1] ss:$0 sm:$0xff]  ;;  %s850_s29 = sshll.u32 (%p1100_p3), %s1021_s20, 3 }
  0x2d   : > { %v1154_v13 = vsub.f32 %v285_v10, %v1142_v4  ;;  %v1160_v16 = vsub.f32 %v282_v12, %v1137_v2  ;;  %v831_v7 = vld [vmem:[%s1243_s2 + $0x3] ss:$0 sm:$0xff]  ;;  %s636_s8 = scalar_lea.vmem (%p1100_p3), %s1246_s5, %s850_s29 }
  0x2e   : > { %483 = vmatpush1.bf16.msra.mxu1 %v941_v25 }
  0x2f   : > { %v297_v18 = vmul.f32 %v796_v9, %v1154_v13  ;;  %v298_v22 = vmul.f32 %v796_v9, %v1160_v16  ;;  %867 = vmatpush3.bf16.msra.mxu0 %v932_v21  ;;  %484 = vmatprep.subr.bf16.mxu1 %v942_v27 }
  0x31   : > { %v299_v23 = vadd.f32 %v1142_v4, %v297_v18  ;;  %v300_v24 = vadd.f32 %v1137_v2, %v298_v22 }
  0x32   : > { %485 = vmatpush1.bf16.msra.mxu1 %v944_v28 }
  0x33   : > { %v301_v26 = vpack.c.bf16 %v300_v24, %v299_v23  ;;  %486 = vmatprep.subr.bf16.mxu1 %v945_v29 }
  0x35   : > { %869 = vmatmul.mubr.msk.bf16.vlgmr.msra.gmra.mxu0 %vm334_vm4, %v301_v26 }
  0x36   : > { %487 = vmatpush1.bf16.msra.mxu1 %v947_v30 }
  0x37   : > { %488 = vmatprep.subr.bf16.mxu1 %v948_v31 }
  0x3a   : > { %489 = vmatpush1.bf16.msra.mxu1 %v950_v32 }
  0x3b   : > { %490 = vmatprep.subr.bf16.mxu1 %v951_v33 }
  0x3e   : > { %491 = vmatpush1.bf16.msra.mxu1 %v953_v35 }
  0x3f   : > { %492 = vmatprep.subr.bf16.mxu1 %v954_v36 }
  0x42   : > { %493 = vmatpush1.bf16.msra.mxu1 %v956_v37 }
  0xf5   : > { %v372_v38 = vpop.f32.mrf.mxu0 }
  0xf6   : > { %957 = vtanh.f32 %v372_v38 }
  0xf7   : > { %v870_v39 = vpop.f32.mrf.mxu0 }
  0xf9   : > { %v375_v40 = vpop.f32.mrf.mxu0 }
  0xfa   : > { %959 = vtanh.f32 %v375_v40 }
  0xfb   : > { %v871_v41 = vpop.f32.mrf.mxu0 }
 0x103   : > { %v958_v42 = vpop.eup %957 }
 0x107   : > { %v960_v43 = vpop.eup %959 }
 0x108   : > { %v381_v44 = vpack.c.bf16 %v960_v43, %v958_v42 }
 0x10a   : > { %511 = vmatmul.mubr.bf16.vlgmr.msra.gmra.mxu1 %v381_v44 }
 0x1ca   : > { %v512_v46 = vpop.f32.mrf.mxu1 }
 0x1cb   : > { %v526_v48 = vadd.f32 %v818_v45, %v512_v46  ;;  %550 = vrot.lane.b32.xlu0 %v512_v46, %s1037_s16 }
 0x1cc   : > { %v514_v49 = vpop.f32.mrf.mxu1 }
 0x1cd   : > { %v528_v50 = vmul.f32 %v526_v48, %v1154_v13  ;;  %602 = vrot.lane.b32.xlu1 %v514_v49, %s1037_s16  ;;  %v578_v51 = vadd.f32 %v826_v47, %v514_v49 }
 0x1ce   : > { %v516_v52 = vpop.f32.mrf.mxu1 }
 0x1cf   : > { %v530_v53 = vadd.f32 %v1142_v4, %v528_v50  ;;  %v527_v54 = vadd.f32 %v818_v45, %v516_v52  ;;  %552 = vrot.lane.b32.xlu0 %v516_v52, %s1037_s16  ;;  %v580_v55 = vmul.f32 %v578_v51, %v1154_v13 }
 0x1d0   : > { %v518_v56 = vpop.f32.mrf.mxu1 }
 0x1d1   : > { %v842_v57 = vpack.c.bf16 %v530_v53, %v530_v53  ;;  %v529_v58 = vmul.f32 %v527_v54, %v1160_v16  ;;  %v579_v59 = vadd.f32 %v826_v47, %v518_v56  ;;  %v582_v60 = vadd.f32 %v1142_v4, %v580_v55  ;;  %604 = vrot.lane.b32.xlu1 %v518_v56, %s1037_s16 }
 0x1d3   : > { %541 = vst.msk [vmem:[%s1181_s18] sm:$0xf] %vm540_vm5, %v842_v57  ;;  %v531_v61 = vadd.f32 %v1137_v2, %v529_v58  ;;  %v581_v62 = vmul.f32 %v579_v59, %v1160_v16  ;;  %v846_v63 = vpack.c.bf16 %v582_v60, %v582_v60 }
 0x1d5   : > { %v843_v0 = vpack.c.bf16 %v531_v61, %v531_v61  ;;  %v583_v1 = vadd.f32 %v1137_v2, %v581_v62  ;;  %829 = vst.msk [vmem:[%s1181_s18 + $0x10] sm:$0xf] %vm540_vm5, %v846_v63 }
 0x1d7   : > { %542 = vst.msk [vmem:[%s1181_s18 + $0x4] sm:$0xf] %vm540_vm5, %v843_v0  ;;  %v847_v3 = vpack.c.bf16 %v583_v1, %v583_v1 }
 0x1d9   : > { %830 = vst.msk [vmem:[%s1181_s18 + $0x14] sm:$0xf] %vm540_vm5, %v847_v3 }
 0x1e0   : > { %v661_v28 = vld [vmem:[%s1181_s18 + $0x10] sm:$0xff] (%p1100_p3)  }
 0x1e1   : > { %662 = vst [vmem:[%s636_s8 + $0x20] sm:$0xff] (%p1100_p3), %v661_v28  }
 0x23d   : > { %v551_v6 = vpop.permute.xlu0 %550 }
 0x23e   : > { %v556_v8 = vadd.f32 %v821_v5, %v551_v6 }
 0x23f   : > { %v603_v9 = vpop.permute.xlu1 %602 }
 0x240   : > { %v558_v10 = vmul.f32 %v556_v8, %v1154_v13  ;;  %v608_v11 = vadd.f32 %v831_v7, %v603_v9 }
 0x241   : > { %v553_v12 = vpop.permute.xlu0 %552 }
 0x242   : > { %v560_v14 = vadd.f32 %v1142_v4, %v558_v10  ;;  %v610_v15 = vmul.f32 %v608_v11, %v1154_v13  ;;  %v557_v17 = vadd.f32 %v821_v5, %v553_v12 }
 0x243   : > { %v605_v18 = vpop.permute.xlu1 %604 }
 0x244   : > { %v844_v19 = vpack.c.bf16 %v560_v14, %v560_v14  ;;  %v612_v20 = vadd.f32 %v1142_v4, %v610_v15  ;;  %v559_v21 = vmul.f32 %v557_v17, %v1160_v16  ;;  %v609_v22 = vadd.f32 %v831_v7, %v605_v18  ;;  %v653_v4 = vld [vmem:[%s1181_s18] sm:$0xff] (%p1100_p3)  }
 0x245   : > { %654 = vst [vmem:[%s636_s8] sm:$0xff] (%p1100_p3), %v653_v4  }
 0x246   : > { %824 = vst.msk [vmem:[%s1181_s18 + $0x8] sm:$0xf] %vm540_vm5, %v844_v19  ;;  %v848_v23 = vpack.c.bf16 %v612_v20, %v612_v20  ;;  %v561_v24 = vadd.f32 %v1137_v2, %v559_v21  ;;  %v611_v25 = vmul.f32 %v609_v22, %v1160_v16 }
 0x248   : > { %834 = vst.msk [vmem:[%s1181_s18 + $0x18] sm:$0xf] %vm540_vm5, %v848_v23  ;;  %v845_v26 = vpack.c.bf16 %v561_v24, %v561_v24  ;;  %v613_v13 = vadd.f32 %v1137_v2, %v611_v25  ;;  %631 = sbr.rel (!%p1100_p3) target bundleno = 597 (0x255), region = 52 }
 0x24a   : > { %825 = vst.msk [vmem:[%s1181_s18 + $0xc] sm:$0xf] %vm540_vm5, %v845_v26  ;;  %v849_v27 = vpack.c.bf16 %v613_v13, %v613_v13 }
 0x24c   : > { %835 = vst.msk [vmem:[%s1181_s18 + $0x1c] sm:$0xf] %vm540_vm5, %v849_v27 }
 0x251   : > { %v657_v16 = vld [vmem:[%s1181_s18 + $0x8] sm:$0xff]  }
 0x252   : > { %658 = vst [vmem:[%s636_s8 + $0x10] sm:$0xff] %v657_v16  }
 0x253   : > { %v665_v2 = vld [vmem:[%s1181_s18 + $0x18] sm:$0xff]  }
 0x254   : > { %666 = vst [vmem:[%s636_s8 + $0x30] sm:$0xff] %v665_v2  }
 0x255 PF: > { %s16_s22 = sadd.s32 1, %s1029_s22   ;;  %s1250_s18 = smov %s1017_s19 }
 0x256   : > { %p13_p3 = scmp.ge.s32.totalorder %s16_s22, 4   ;;  %s1251_s19 = smov %s1117_s30 }
 0x257   : > { %s1252_s20 = smov %s1025_s21  ;;  %s1253_s21 = smov %s1255_s24 }
 0x258   :  { %15 = sbr.rel (!%p13_p3) target bundleno = 3 (0x3), region = 123 }
 0x25d   :  { %718 = vsyncpa [#allocation4], 1 }
 0x25e   :  { %720 = vsyncpa [#allocation4 + $0x1], 1 }

// kernel: time_mixer_forward.9
= control target key start
LH: loop header
LB: loop body
LE: loop exit
PB: predicated region body
PF: predicated region fallthrough
CT: control target
= control target key end

     0   :  { %vm22_vm0 = vcmask 523264   ;;  %v485_v1 = vmov 0   ;;  %v486_v2 = vmov 0.0   ;;  %vm203_vm1 = vcmask 519168   ;;  %s487_s5 = smov 64   ;;  %s611_s1 = inlined_call_operand.vmem [shape: bf16[64,192], index: 1, kind: input, shape index: {}]   ;;  %s612_s0 = inlined_call_operand.vmem [shape: bf16[32,64], index: 0, kind: input, shape index: {}]   ;;  %s613_s2 = inlined_call_operand.vmem [shape: bf16[128,64], index: 2, kind: input, shape index: {}]   ;;  %s614_s3 = inlined_call_operand.vmem [shape: bf16[32,64], index: 3, kind: output, shape index: {0}]   ;;  %s615_s4 = inlined_call_operand.vmem [shape: bf16[32,64], index: 4, kind: output, shape index: {1}]  }
   0x1   :  { %v447_v0 = vld [vmem:[%s611_s1 + $0x34] ss:$8 sps:$4 sm:$0xff]   ;;  %139 = vmatprep.mubr.bf16.mxu0 %v485_v1  ;;  %23 = vst.msk [vmem:[#allocation2 + $0x8] sm:$0xff] %vm22_vm0, %v486_v2  ;;  %25 = vst.msk [vmem:[#allocation2 + $0x18] sm:$0xff] %vm22_vm0, %v486_v2  ;;  %v449_v3 = vld [vmem:[%s611_s1 + $0x30] ss:$8 sps:$4 sm:$0xff]  }
   0x2   :  { %27 = vst.msk [vmem:[#allocation2 + $0x28] sm:$0xff] %vm22_vm0, %v486_v2  ;;  %29 = vst.msk [vmem:[#allocation2 + $0x38] sm:$0xff] %vm22_vm0, %v486_v2  ;;  %115 = vmatprep.subr.bf16.mxu0 %v447_v0  ;;  %v450_v4 = vld [vmem:[%s611_s1 + $0x24] ss:$8 sps:$4 sm:$0xff]   ;;  %v452_v5 = vld [vmem:[%s611_s1 + $0x20] ss:$8 sps:$4 sm:$0xff]  }
   0x3   :  { %116 = vmatpush1.bf16.msra.mxu0 %v449_v3  ;;  %v453_v6 = vld [vmem:[%s611_s1 + $0x14] ss:$8 sps:$4 sm:$0xff]   ;;  %v455_v7 = vld [vmem:[%s611_s1 + $0x10] ss:$8 sps:$4 sm:$0xff]   ;;  %v456_v8 = vld [vmem:[%s611_s1 + $0x4] ss:$8 sps:$4 sm:$0xff]  }
   0x4   :  { %117 = vmatprep.subr.bf16.mxu0 %v450_v4  ;;  %v458_v9 = vld [vmem:[%s611_s1] ss:$8 sps:$4 sm:$0xff]   ;;  %v461_v12 = vld [vmem:[%s613_s2 + $0x38] sm:$0xff]   ;;  %v462_v13 = vld [vmem:[%s613_s2 + $0x30] sm:$0xff]  }
   0x5   :  { %v459_v10 = vld [vmem:[%s612_s0] sm:$0xff]   ;;  %v460_v11 = vld [vmem:[%s612_s0 + $0x8] sm:$0xff]   ;;  %424 = vmatprep.subr.bf16.mxu1 %v461_v12  ;;  %v465_v16 = vld [vmem:[%s613_s2 + $0x18] sm:$0xff]  }
   0x6   :  { %425 = vmatpush3.bf16.msra.mxu1 %v461_v12  ;;  %v463_v14 = vld [vmem:[%s613_s2 + $0x28] sm:$0xff]   ;;  %v464_v15 = vld [vmem:[%s613_s2 + $0x20] sm:$0xff]   ;;  %v466_v29 = vld [vmem:[%s613_s2 + $0x10] sm:$0xff]  }
   0x7   :  { %118 = vmatpush1.bf16.msra.mxu0 %v452_v5  ;;  %426 = vmatprep.subr.bf16.mxu1 %v462_v13  ;;  %v467_v41 = vld [vmem:[%s613_s2 + $0x8] sm:$0xff]   ;;  %v468_v45 = vld [vmem:[%s613_s2] sm:$0xff]  }
   0x8   :  { %119 = vmatprep.subr.bf16.mxu0 %v453_v6  ;;  %v31_v18 = vld [vmem:[#allocation2 + $0x8] sm:$0xff]  ;;  %v33_v23 = vld [vmem:[#allocation2 + $0x18] sm:$0xff] }
   0x9   :  { %v35_v28 = vld [vmem:[#allocation2 + $0x28] sm:$0xff]  ;;  %v37_v34 = vld [vmem:[#allocation2 + $0x38] sm:$0xff] }
   0xa   :  { %427 = vmatpush3.bf16.msra.mxu1 %v462_v13 }
   0xb   :  { %120 = vmatpush1.bf16.msra.mxu0 %v455_v7  ;;  %428 = vmatprep.subr.bf16.mxu1 %v463_v14 }
   0xc   :  { %121 = vmatprep.subr.bf16.mxu0 %v456_v8 }
   0xe   :  { %429 = vmatpush3.bf16.msra.mxu1 %v463_v14 }
   0xf   :  { %122 = vmatpush1.bf16.msra.mxu0 %v458_v9  ;;  %430 = vmatprep.subr.bf16.mxu1 %v464_v15 }
  0x12   :  { %388 = vmatmul.mubr.msk.bf16.vlgmr.msra.gmra.mxu0 %vm22_vm0, %v459_v10  ;;  %431 = vmatpush3.bf16.msra.mxu1 %v464_v15 }
  0x13   :  { %149 = vmatprep.mubr.bf16.mxu0 %v485_v1  ;;  %432 = vmatprep.subr.bf16.mxu1 %v465_v16 }
  0x16   :  { %433 = vmatpush3.bf16.msra.mxu1 %v465_v16 }
  0x17   :  { %434 = vmatprep.subr.bf16.mxu1 %v466_v29 }
  0x1a   :  { %389 = vmatmul.mubr.msk.bf16.gmra.mxu0 %vm22_vm0, %v460_v11  ;;  %435 = vmatpush3.bf16.msra.mxu1 %v466_v29 }
  0x1b   :  { %436 = vmatprep.subr.bf16.mxu1 %v467_v41 }
  0x1e   :  { %437 = vmatpush3.bf16.msra.mxu1 %v467_v41 }
  0x1f   :  { %438 = vmatprep.subr.bf16.mxu1 %v468_v45 }
  0x22   :  { %439 = vmatpush3.bf16.msra.mxu1 %v468_v45 }
  0xd2   :  { %v141_v17 = vpop.f32.mrf.mxu0 }
  0xd3   :  { %v406_v21 = vpack.c.bf16 %v141_v17, %v141_v17  ;;  %469 = vtanh.f32 %v141_v17 }
  0xd4   :  { %v143_v19 = vpop.f32.mrf.mxu0 }
  0xd5   :  { %v161_v20 = vadd.f32 %v143_v19, %v31_v18  ;;  %204 = vst.msk [vmem:[%s614_s3] sm:$0xf] %vm203_vm1, %v406_v21 }
  0xd6   :  { %v145_v22 = vpop.f32.mrf.mxu0 }
  0xd7   :  { %169 = vst.msk [vmem:[#allocation2 + $0x8] sm:$0xff] %vm22_vm0, %v161_v20  ;;  %471 = vtanh.f32 %v145_v22  ;;  %v407_v26 = vpack.c.bf16 %v145_v22, %v145_v22 }
  0xd8   :  { %v147_v24 = vpop.f32.mrf.mxu0 }
  0xd9   :  { %v163_v25 = vadd.f32 %v147_v24, %v33_v23  ;;  %205 = vst.msk [vmem:[%s614_s3 + $0x4] sm:$0xf] %vm203_vm1, %v407_v26 }
  0xda   :  { %v151_v27 = vpop.f32.mrf.mxu0 }
  0xdb   :  { %171 = vst.msk [vmem:[#allocation2 + $0x18] sm:$0xff] %vm22_vm0, %v163_v25  ;;  %v408_v32 = vpack.c.bf16 %v151_v27, %v151_v27  ;;  %473 = vtanh.f32 %v151_v27 }
  0xdc   :  { %v153_v30 = vpop.f32.mrf.mxu0 }
  0xdd   :  { %v165_v31 = vadd.f32 %v153_v30, %v35_v28  ;;  %206 = vst.msk [vmem:[%s614_s3 + $0x8] sm:$0xf] %vm203_vm1, %v408_v32 }
  0xde   :  { %v155_v33 = vpop.f32.mrf.mxu0  ;;  %v180_v35 = vld [vmem:[#allocation2 + $0x8] sm:$0xff] }
  0xdf   :  { %173 = vst.msk [vmem:[#allocation2 + $0x28] sm:$0xff] %vm22_vm0, %v165_v31  ;;  %475 = vtanh.f32 %v155_v33  ;;  %v409_v38 = vpack.c.bf16 %v155_v33, %v155_v33 }
  0xe0   :  { %v157_v36 = vpop.f32.mrf.mxu0  ;;  %477 = vtanh.f32 %v180_v35  ;;  %v470_v40 = vpop.eup %469 }
  0xe1   :  { %v167_v37 = vadd.f32 %v157_v36, %v37_v34  ;;  %207 = vst.msk [vmem:[%s614_s3 + $0xc] sm:$0xf] %vm203_vm1, %v409_v38 }
  0xe2   :  { %v182_v39 = vld [vmem:[#allocation2 + $0x18] sm:$0xff] }
  0xe3   :  { %175 = vst.msk [vmem:[#allocation2 + $0x38] sm:$0xff] %vm22_vm0, %v167_v37  ;;  %479 = vtanh.f32 %v182_v39 }
  0xe4   :  { %v472_v42 = vpop.eup %471 }
  0xe5   :  { %v216_v43 = vpack.c.bf16 %v472_v42, %v470_v40 }
  0xe6   :  { %v184_v44 = vld [vmem:[#allocation2 + $0x28] sm:$0xff] }
  0xe7   :  { %240 = vrot.lane.b32.xlu0 %v216_v43, %s487_s5  ;;  %481 = vtanh.f32 %v184_v44 }
  0xe8   :  { %v474_v47 = vpop.eup %473 }
  0xea   :  { %v186_v46 = vld [vmem:[#allocation2 + $0x38] sm:$0xff] }
  0xeb   :  { %483 = vtanh.f32 %v186_v46 }
  0xec   :  { %v476_v48 = vpop.eup %475 }
  0xed   :  { %v478_v49 = vpop.eup %477  ;;  %v218_v50 = vpack.c.bf16 %v476_v48, %v474_v47 }
  0xef   :  { %244 = vrot.lane.b32.xlu1 %v218_v50, %s487_s5 }
  0xf0   :  { %v480_v51 = vpop.eup %479 }
  0xf1   :  { %v217_v52 = vpack.c.bf16 %v480_v51, %v478_v49 }
  0xf3   :  { %242 = vrot.lane.b32.xlu0 %v217_v52, %s487_s5 }
  0xf4   :  { %v482_v53 = vpop.eup %481 }
  0xf8   :  { %v484_v54 = vpop.eup %483 }
  0xf9   :  { %v219_v55 = vpack.c.bf16 %v484_v54, %v482_v53 }
  0xfb   :  { %246 = vrot.lane.b32.xlu1 %v219_v55, %s487_s5 }
 0x159   :  { %v241_v56 = vpop.permute.xlu0 %240 }
 0x161   :  { %v245_v59 = vpop.permute.xlu1 %244 }
 0x165   :  { %v243_v57 = vpop.permute.xlu0 %242 }
 0x166   :  { %v249_v58 = vsel %vm22_vm0, %v241_v56, %v243_v57 }
 0x167   :  { %440 = vmatprep.mubr.bf16.mxu1 %v249_v58 }
 0x16d   :  { %v247_v60 = vpop.permute.xlu1 %246 }
 0x16e   :  { %v250_v61 = vsel %vm22_vm0, %v245_v59, %v247_v60 }
 0x16f   :  { %441 = vmatmul.mubr.bf16.vlgmr.msra.gmra.mxu1 %v250_v61 }
 0x22f   :  { %v442_v62 = vpop.f32.mrf.mxu1 }
 0x230   :  { %v412_v63 = vpack.c.bf16 %v442_v62, %v442_v62 }
 0x231   :  { %v335_v0 = vpop.f32.mrf.mxu1 }
 0x232   :  { %368 = vst.msk [vmem:[%s615_s4 + $0x8] sm:$0xf] %vm203_vm1, %v412_v63  ;;  %v410_v1 = vpack.c.bf16 %v335_v0, %v335_v0 }
 0x233   :  { %v443_v2 = vpop.f32.mrf.mxu1 }
 0x234   :  { %366 = vst.msk [vmem:[%s615_s4] sm:$0xf] %vm203_vm1, %v410_v1  ;;  %v413_v3 = vpack.c.bf16 %v443_v2, %v443_v2 }
 0x235   :  { %v338_v4 = vpop.f32.mrf.mxu1 }
 0x236   :  { %369 = vst.msk [vmem:[%s615_s4 + $0xc] sm:$0xf] %vm203_vm1, %v413_v3  ;;  %v411_v5 = vpack.c.bf16 %v338_v4, %v338_v4 }
 0x238   :  { %367 = vst.msk [vmem:[%s615_s4 + $0x4] sm:$0xf] %vm203_vm1, %v411_v5 }

// kernel: time_mixer_forward.13
= control target key start
LH: loop header
LB: loop body
LE: loop exit
PB: predicated region body
PF: predicated region fallthrough
CT: control target
= control target key end

     0   :  { %v44_v24 = vlaneseq  ;;  %v1241_v34 = vmov 0   ;;  %vm172_vm1 = vcmask 785408   ;;  %vm248_vm3 = vcmask 261120   ;;  %s1676_s0 = inlined_call_operand.vmem [shape: bf16[32,96], index: 0, kind: input, shape index: {}]   ;;  %s1677_s2 = inlined_call_operand.vmem [shape: bf16[96,192], index: 2, kind: input, shape index: {}]   ;;  %s1678_s3 = inlined_call_operand.vmem [shape: bf16[32,128], index: 3, kind: input, shape index: {}]   ;;  %s1679_s1 = inlined_call_operand.vmem [shape: bf16[32,96], index: 1, kind: input, shape index: {}]   ;;  %s1680_s5 = inlined_call_operand.vmem [shape: f32[64,2], index: 5, kind: input, shape index: {}]   ;;  %s1681_s4 = inlined_call_operand.vmem [shape: f32[4,64], index: 4, kind: input, shape index: {}]   ;;  %s1682_s6 = inlined_call_operand.vmem [shape: bf16[32,64], index: 6, kind: output, shape index: {0}]   ;;  %s1683_s8 = inlined_call_operand.vmem [shape: bf16[32,64], index: 8, kind: output, shape index: {2}]   ;;  %s1684_s7 = inlined_call_operand.vmem [shape: bf16[32,64], index: 7, kind: output, shape index: {1}]   ;;  %s1685_s9 = inlined_call_operand.vmem [shape: bf16[32,64], index: 9, kind: output, shape index: {3}]  }
   0x1   :  { %v996_v0 = vld [vmem:[%s1676_s0 + $0x8] sm:$0xff]   ;;  %v981_v1 = vld [vmem:[%s1676_s0] sm:$0xff]   ;;  %v1116_v5 = vld [vmem:[%s1677_s2 + $0x54] ss:$8 sps:$4 sm:$0xff]   ;;  %211 = vmatprep.mubr.bf16.mxu0 %v1241_v34  ;;  %vm823_vm4 = vcmask 519168   ;;  %vm505_vm5 = vcmask 523264  }
   0x2   :  { %v1298_v2 = vunpack.c.l.bf16 %v996_v0  ;;  %v1300_v3 = vunpack.c.h.bf16 %v996_v0  ;;  %v1302_v4 = vunpack.c.l.bf16 %v981_v1  ;;  %v1118_v6 = vld [vmem:[%s1677_s2 + $0x50] ss:$8 sps:$4 sm:$0xff]   ;;  %v1310_v7 = vunpack.c.h.bf16 %v981_v1  ;;  %183 = vmatprep.subr.bf16.mxu0 %v1116_v5  ;;  %v1119_v8 = vld [vmem:[%s1677_s2 + $0x44] ss:$8 sps:$4 sm:$0xff]   ;;  %v1121_v9 = vld [vmem:[%s1677_s2 + $0x40] ss:$8 sps:$4 sm:$0xff]  }
   0x3   :  { %184 = vmatpush1.bf16.msra.mxu0 %v1118_v6  ;;  %v1122_v10 = vld [vmem:[%s1678_s3 + $0x8] sm:$0xff]   ;;  %v989_v11 = vld [vmem:[%s1679_s1] sm:$0xff]   ;;  %v1123_v12 = vld [vmem:[%s1677_s2 + $0x34] ss:$8 sps:$4 sm:$0xff]   ;;  %v45_v36 = vand.u32 127, %v44_v24  ;;  %vm603_vm6 = vcmask 15360  }
   0x4   :  { %1136 = vtanh.f32 %v1298_v2  ;;  %185 = vmatprep.subr.bf16.mxu0 %v1119_v8  ;;  %1026 = vmatprep.subr.bf16.mxu1 %v1122_v10  ;;  %v990_v13 = vunpack.c.l.bf16 %v989_v11  ;;  %v991_v14 = vunpack.c.h.bf16 %v989_v11  ;;  %v1125_v15 = vld [vmem:[%s1677_s2 + $0x30] ss:$8 sps:$4 sm:$0xff]   ;;  %v1126_v16 = vld [vmem:[%s1678_s3] sm:$0xff]   ;;  %v997_v21 = vld [vmem:[%s1679_s1 + $0x8] sm:$0xff]   ;;  %s1240_s1 = smov 64   ;;  %v1111_v32 = vpack.i.bf16 %v1300_v3, %v1298_v2 }
   0x5   :  { %1138 = vtanh.f32 %v1300_v3  ;;  %1027 = vmatpush3.bf16.msra.mxu1 %v1122_v10  ;;  %v1127_v17 = vld [vmem:[%s1677_s2 + $0x24] ss:$8 sps:$4 sm:$0xff]   ;;  %v1129_v18 = vld [vmem:[%s1677_s2 + $0x20] ss:$8 sps:$4 sm:$0xff]   ;;  %v994_v25 = vunpack.c.l.bf16 %v997_v21  ;;  %v995_v26 = vunpack.c.h.bf16 %v997_v21  ;;  %v1130_v28 = vld [vmem:[%s1677_s2 + $0x14] ss:$8 sps:$4 sm:$0xff]   ;;  %v1101_v35 = vpack.i.bf16 %v1310_v7, %v1302_v4 }
   0x6   :  { %1140 = vtanh.f32 %v1302_v4  ;;  %1028 = vmatprep.subr.bf16.mxu1 %v1126_v16  ;;  %v1132_v29 = vld [vmem:[%s1677_s2 + $0x10] ss:$8 sps:$4 sm:$0xff]   ;;  %v1133_v30 = vld [vmem:[%s1677_s2 + $0x4] ss:$8 sps:$4 sm:$0xff]   ;;  %v1135_v37 = vld [vmem:[%s1677_s2] ss:$8 sps:$4 sm:$0xff]  }
   0x7   :  { %1142 = vtanh.f32 %v1310_v7  ;;  %186 = vmatpush1.bf16.msra.mxu0 %v1121_v9  ;;  %v1361_v33 = vld [vmem:[%s1680_s5 + $0x38] sm:$0xff]  ;;  %vm46_vm0 = vcmp.lt.s32.totalorder %v45_v36, 64  ;;  %vm57_vm2 = vcmp.lt.s32.totalorder %v45_v36, 16  ;;  %v1376_v5 = vld [vmem:[%s1680_s5 + $0x30] sm:$0xff]  ;;  %v1382_v6 = vld [vmem:[%s1680_s5 + $0x28] sm:$0xff]  ;;  %v1408_v11 = vshrl.u32 %v44_v24, 7 }
   0x8   :  { %187 = vmatprep.subr.bf16.mxu0 %v1123_v12  ;;  %1144 = vtanh.f32 %v990_v13  ;;  %v1391_v8 = vld [vmem:[%s1680_s5 + $0x20] sm:$0xff]  ;;  %v1398_v9 = vld [vmem:[%s1680_s5 + $0x18] sm:$0xff]  ;;  %v1405_v10 = vld [vmem:[%s1680_s5 + $0x10] sm:$0xff] }
   0x9   :  { %1146 = vtanh.f32 %v991_v14  ;;  %1029 = vmatpush3.bf16.msra.mxu1 %v1126_v16  ;;  %v1415_v12 = vld [vmem:[%s1680_s5 + $0x8] sm:$0xff] }
   0xa   :  { %1148 = vtanh.f32 %v994_v25  ;;  %1034 = vmatprep.subr.mxu1 %v1361_v33 }
   0xb   :  { %188 = vmatpush1.bf16.msra.mxu0 %v1125_v15  ;;  %1150 = vtanh.f32 %v995_v26  ;;  %v1429_v15 = vld [vmem:[%s1681_s4] sm:$0xf] }
   0xc   :  { %189 = vmatprep.subr.bf16.mxu0 %v1127_v17 }
   0xf   :  { %190 = vmatpush1.bf16.msra.mxu0 %v1129_v18 }
  0x10   :  { %191 = vmatprep.subr.bf16.mxu0 %v1130_v28 }
  0x11   :  { %v1137_v19 = vpop.eup %1136 }
  0x12   :  { %v1139_v20 = vpop.eup %1138 }
  0x13   :  { %v1141_v22 = vpop.eup %1140  ;;  %v1106_v23 = vpack.i.bf16 %v1139_v20, %v1137_v19  ;;  %192 = vmatpush1.bf16.msra.mxu0 %v1132_v29 }
  0x14   :  { %v1143_v27 = vpop.eup %1142  ;;  %193 = vmatprep.subr.bf16.mxu0 %v1133_v30 }
  0x15   :  { %1107 = vrot.lane.b32.xlu1 %v1106_v23, %s1240_s1  ;;  %v1096_v31 = vpack.i.bf16 %v1143_v27, %v1141_v22  ;;  %v1145_v38 = vpop.eup %1144 }
  0x16   :  { %v1147_v39 = vpop.eup %1146  ;;  %v51_v40 = vsel %vm46_vm0, %v1145_v38, %v990_v13  ;;  %v1422_v13 = vld [vmem:[%s1680_s5] sm:$0xff] }
  0x17   :  { %1097 = vrot.lane.b32.xlu0 %v1096_v31, %s1240_s1  ;;  %194 = vmatpush1.bf16.msra.mxu0 %v1135_v37  ;;  %v52_v41 = vsel %vm46_vm0, %v1147_v39, %v991_v14  ;;  %v1149_v43 = vpop.eup %1148  ;;  %v307_v14 = vsub.s32 0, %v1408_v11 }
  0x18   :  { %v55_v42 = vpack.c.bf16 %v52_v41, %v51_v40  ;;  %v1151_v44 = vpop.eup %1150  ;;  %v53_v45 = vsel %vm46_vm0, %v1149_v43, %v994_v25  ;;  %1056 = vmatprep.subr.msk.mxu0 %vm603_vm6, %v1361_v33 }
  0x19   :  { %1112 = vrot.lane.b32.xlu1 %v1111_v32, %s1240_s1  ;;  %v54_v46 = vsel %vm46_vm0, %v1151_v44, %v995_v26  ;;  %v308_v16 = vrot.slane %v1429_v15, %v307_v14 }
  0x1a   :  { %922 = vmatmul.mubr.msk.bf16.vlgmr.msra.gmra.mxu0 %vm172_vm1, %v55_v42  ;;  %v56_v47 = vpack.c.bf16 %v54_v46, %v53_v45 }
  0x1b   :  { %1102 = vrot.lane.b32.xlu0 %v1101_v35, %s1240_s1  ;;  %221 = vmatprep.mubr.bf16.mxu0 %v1241_v34 }
  0x1c   :  { %1057 = vmatpush3.xpose.msk.msra.mxu0 %vm603_vm6, %v1361_v33 }
  0x1d   :  { %1058 = vmatprep.subr.msk.mxu0 %vm603_vm6, %v1376_v5 }
  0x20   :  { %1059 = vmatpush3.xpose.msk.msra.mxu0 %vm603_vm6, %v1376_v5 }
  0x21   :  { %1060 = vmatprep.subr.msk.mxu0 %vm603_vm6, %v1382_v6 }
  0x22   :  { %923 = vmatmul.mubr.msk.bf16.gmra.mxu0 %vm172_vm1, %v56_v47 }
  0x24   :  { %1061 = vmatpush3.xpose.msk.msra.mxu0 %vm603_vm6, %v1382_v6 }
  0x25   :  { %1062 = vmatprep.subr.msk.mxu0 %vm603_vm6, %v1391_v8 }
  0x28   :  { %1063 = vmatpush3.xpose.msk.msra.mxu0 %vm603_vm6, %v1391_v8 }
  0x29   :  { %1064 = vmatprep.subr.msk.mxu0 %vm603_vm6, %v1398_v9 }
  0x2c   :  { %1065 = vmatpush3.xpose.msk.msra.mxu0 %vm603_vm6, %v1398_v9 }
  0x2d   :  { %1066 = vmatprep.subr.msk.mxu0 %vm603_vm6, %v1405_v10 }
  0x30   :  { %1067 = vmatpush3.xpose.msk.msra.mxu0 %vm603_vm6, %v1405_v10 }
  0x31   :  { %1068 = vmatprep.subr.msk.mxu0 %vm603_vm6, %v1415_v12 }
  0x34   :  { %1069 = vmatpush3.xpose.msk.msra.mxu0 %vm603_vm6, %v1415_v12 }
  0x35   :  { %1070 = vmatprep.subr.msk.mxu0 %vm603_vm6, %v1422_v13 }
  0x38   :  { %1071 = vmatpush3.xpose.msk.msra.mxu0 %vm603_vm6, %v1422_v13 }
  0x87   :  { %v1108_v48 = vpop.permute.xlu1 %1107 }
  0x88   :  { %v1110_v51 = vunpack.i.h.bf16 %v1108_v48  ;;  %v1109_v52 = vunpack.i.l.bf16 %v1108_v48 }
  0x89   :  { %v1098_v49 = vpop.permute.xlu0 %1097 }
  0x8a   :  { %v1100_v55 = vunpack.i.h.bf16 %v1098_v49  ;;  %v1099_v56 = vunpack.i.l.bf16 %v1098_v49 }
  0x8b   :  { %v1113_v50 = vpop.permute.xlu1 %1112 }
  0x8c   :  { %v1115_v53 = vunpack.i.h.bf16 %v1113_v50  ;;  %v1114_v54 = vunpack.i.l.bf16 %v1113_v50 }
  0x8d   :  { %v1103_v57 = vpop.permute.xlu0 %1102 }
  0x8e   :  { %v96_v58 = vsel %vm57_vm2, %v1109_v52, %v1114_v54  ;;  %v97_v59 = vsel %vm57_vm2, %v1110_v51, %v1115_v53  ;;  %v1105_v60 = vunpack.i.h.bf16 %v1103_v57  ;;  %v1104_v61 = vunpack.i.l.bf16 %v1103_v57 }
  0x8f   :  { %v99_v62 = vpack.c.bf16 %v97_v59, %v96_v58 }
  0x90   :  { %v94_v63 = vsel %vm57_vm2, %v1099_v56, %v1104_v61  ;;  %v95_v0 = vsel %vm57_vm2, %v1100_v55, %v1105_v60 }
  0x91   :  { %v98_v1 = vpack.c.bf16 %v95_v0, %v94_v63 }
  0x93   :  { %1030 = vmatprep.mubr.msk.bf16.mxu1 %vm248_vm3, %v98_v1 }
  0x94   :  { %1031 = vmatmul.mubr.msk.bf16.vlgmr.msra.gmra.mxu1 %vm248_vm3, %v99_v62 }
  0x95   :  { %1035 = vmatpush3.msra.mxu1 %v1361_v33 }
  0x96   :  { %1036 = vmatprep.subr.mxu1 %v1376_v5 }
  0x97   :  { %1037 = vmatpush3.msra.mxu1 %v1376_v5 }
  0x98   :  { %1038 = vmatprep.subr.mxu1 %v1382_v6 }
  0x99   :  { %1039 = vmatpush3.msra.mxu1 %v1382_v6 }
  0x9a   :  { %1040 = vmatprep.subr.mxu1 %v1391_v8 }
  0x9b   :  { %1041 = vmatpush3.msra.mxu1 %v1391_v8 }
  0x9c   :  { %1042 = vmatprep.subr.mxu1 %v1398_v9 }
  0x9d   :  { %1043 = vmatpush3.msra.mxu1 %v1398_v9 }
  0x9e   :  { %1044 = vmatprep.subr.mxu1 %v1405_v10 }
  0x9f   :  { %1045 = vmatpush3.msra.mxu1 %v1405_v10 }
  0xa0   :  { %1046 = vmatprep.subr.mxu1 %v1415_v12 }
  0xa1   :  { %1047 = vmatpush3.msra.mxu1 %v1415_v12 }
  0xa2   :  { %1048 = vmatprep.subr.mxu1 %v1422_v13 }
  0xa3   :  { %1049 = vmatpush3.msra.mxu1 %v1422_v13 }
  0xa4   :  { %1078 = vmatprep.subr.msk.mxu1 %vm603_vm6, %v1361_v33 }
  0xda   :  { %v1433_v17 = vpop.f32.mrf.mxu0 }
  0xdb   :  { %v309_v18 = vadd.f32 %v308_v16, %v1433_v17 }
  0xdc   :  { %v1436_v19 = vpop.f32.mrf.mxu0 }
  0xdd   :  { %v313_v20 = vsub.f32 0.0, %v309_v18 }
  0xde   :  { %v1438_v21 = vpop.f32.mrf.mxu0 }
  0xdf   :  { %v321_v22 = vand.u32 2147483647, %v313_v20  ;;  %v310_v23 = vadd.f32 %v308_v16, %v1438_v21  ;;  %v317_v53 = vmax.f32 %v313_v20, 0.0 }
  0xe0   :  { %v1441_v24 = vpop.f32.mrf.mxu0 }
  0xe1   :  { %v325_v25 = vsub.f32 0.0, %v321_v22  ;;  %v314_v26 = vsub.f32 0.0, %v310_v23 }
  0xe2   :  { %v1443_v27 = vpop.f32.mrf.mxu0 }
  0xe3   :  { %v329_v28 = vmul.f32 1.442695, %v325_v25  ;;  %v322_v29 = vand.u32 2147483647, %v314_v26  ;;  %v311_v30 = vadd.f32 %v308_v16, %v1443_v27  ;;  %v318_v57 = vmax.f32 %v314_v26, 0.0 }
  0xe4   :  { %v1446_v31 = vpop.f32.mrf.mxu0 }
  0xe5   :  { %1152 = vpow2.f32 %v329_v28  ;;  %v326_v32 = vsub.f32 0.0, %v322_v29  ;;  %v315_v34 = vsub.f32 0.0, %v311_v30 }
  0xe6   :  { %v1448_v35 = vpop.f32.mrf.mxu0 }
  0xe7   :  { %v331_v36 = vmul.f32 1.442695, %v326_v32  ;;  %v312_v37 = vadd.f32 %v308_v16, %v1448_v35  ;;  %v323_v38 = vand.u32 2147483647, %v315_v34  ;;  %v319_v63 = vmax.f32 %v315_v34, 0.0 }
  0xe9   :  { %1154 = vpow2.f32 %v331_v36  ;;  %v316_v39 = vsub.f32 0.0, %v312_v37  ;;  %v327_v40 = vsub.f32 0.0, %v323_v38 }
  0xeb   :  { %v324_v41 = vand.u32 2147483647, %v316_v39  ;;  %v333_v42 = vmul.f32 1.442695, %v327_v40  ;;  %v320_v20 = vmax.f32 %v316_v39, 0.0 }
  0xed   :  { %v328_v43 = vsub.f32 0.0, %v324_v41  ;;  %1156 = vpow2.f32 %v333_v42 }
  0xef   :  { %v335_v44 = vmul.f32 1.442695, %v328_v43 }
  0xf1   :  { %1158 = vpow2.f32 %v335_v44 }
  0xf2   :  { %v1153_v45 = vpop.eup %1152 }
  0xf3   :  { %v337_v46 = vadd.f32 1.0, %v1153_v45 }
  0xf5   :  { %1160 = vlog2.f32 %v337_v46 }
  0xf6   :  { %v1155_v47 = vpop.eup %1154 }
  0xf7   :  { %v338_v48 = vadd.f32 1.0, %v1155_v47 }
  0xf9   :  { %1162 = vlog2.f32 %v338_v48 }
  0xfa   :  { %v1157_v49 = vpop.eup %1156 }
  0xfb   :  { %v339_v50 = vadd.f32 1.0, %v1157_v49 }
  0xfd   :  { %1164 = vlog2.f32 %v339_v50 }
  0xfe   :  { %v1159_v51 = vpop.eup %1158 }
  0xff   :  { %v340_v52 = vadd.f32 1.0, %v1159_v51 }
 0x101   :  { %1166 = vlog2.f32 %v340_v52 }
 0x102   :  { %v1161_v54 = vpop.eup %1160 }
 0x103   :  { %v342_v55 = vmul.f32 0.6931472, %v1161_v54 }
 0x105   :  { %v349_v56 = vadd.f32 %v342_v55, %v317_v53 }
 0x106   :  { %v1163_v58 = vpop.eup %1162 }
 0x107   :  { %v353_v59 = vsub.f32 0.0, %v349_v56  ;;  %v344_v60 = vmul.f32 0.6931472, %v1163_v58 }
 0x109   :  { %v1451_v61 = vadd.f32 -0.5, %v353_v59  ;;  %v350_v62 = vadd.f32 %v344_v60, %v318_v57 }
 0x10a   :  { %v1165_v0 = vpop.eup %1164 }
 0x10b   :  { %v964_v1 = vpack.c.bf16 %v1451_v61, %v1451_v61  ;;  %v354_v14 = vsub.f32 0.0, %v350_v62  ;;  %v346_v16 = vmul.f32 0.6931472, %v1165_v0 }
 0x10d   :  { %824 = vst.msk [vmem:[%s1682_s6] sm:$0xf] %vm823_vm4, %v964_v1  ;;  %v1459_v18 = vadd.f32 -0.5, %v354_v14  ;;  %v351_v23 = vadd.f32 %v346_v16, %v319_v63 }
 0x10e   :  { %v1167_v22 = vpop.eup %1166 }
 0x10f   :  { %v965_v25 = vpack.c.bf16 %v1459_v18, %v1459_v18  ;;  %v348_v26 = vmul.f32 0.6931472, %v1167_v22  ;;  %v355_v28 = vsub.f32 0.0, %v351_v23 }
 0x111   :  { %825 = vst.msk [vmem:[%s1682_s6 + $0x4] sm:$0xf] %vm823_vm4, %v965_v25  ;;  %v352_v29 = vadd.f32 %v348_v26, %v320_v20  ;;  %v1467_v30 = vadd.f32 -0.5, %v355_v28 }
 0x113   :  { %v356_v32 = vsub.f32 0.0, %v352_v29  ;;  %v966_v34 = vpack.c.bf16 %v1467_v30, %v1467_v30 }
 0x115   :  { %v1471_v36 = vadd.f32 -0.5, %v356_v32  ;;  %826 = vst.msk [vmem:[%s1682_s6 + $0x8] sm:$0xf] %vm823_vm4, %v966_v34 }
 0x117   :  { %v967_v37 = vpack.c.bf16 %v1471_v36, %v1471_v36 }
 0x119   :  { %827 = vst.msk [vmem:[%s1682_s6 + $0xc] sm:$0xf] %vm823_vm4, %v967_v37 }
 0x154   :  { %v1032_v38 = vpop.f32.mrf.mxu1 }
 0x155   :  { %v1490_v43 = vadd.f32 %v1032_v38, %v1298_v2 }
 0x156   :  { %v289_v39 = vpop.f32.mrf.mxu1 }
 0x157   :  { %v1484_v40 = vadd.f32 %v1302_v4, %v289_v39  ;;  %449 = vrot.lane.b32.xlu0 %v289_v39, %s1240_s1  ;;  %v503_v48 = vmul.f32 %v1490_v43, %v1490_v43 }
 0x158   :  { %v1033_v41 = vpop.f32.mrf.mxu1 }
 0x159   :  { %v501_v42 = vmul.f32 %v1484_v40, %v1484_v40  ;;  %v1499_v46 = vadd.f32 %v1033_v41, %v1300_v3 }
 0x15a   :  { %v292_v44 = vpop.f32.mrf.mxu1 }
 0x15b   :  { %v1493_v45 = vadd.f32 %v1310_v7, %v292_v44  ;;  %453 = vrot.lane.b32.xlu0 %v1032_v38, %s1240_s1  ;;  %1050 = vmatprep.mubr.msk.f32.mxu1 %vm505_vm5, %v501_v42  ;;  %v504_v49 = vmul.f32 %v1499_v46, %v1499_v46 }
 0x15c   :  { %451 = vrot.lane.b32.xlu1 %v292_v44, %s1240_s1 }
 0x15d   :  { %v502_v47 = vmul.f32 %v1493_v45, %v1493_v45 }
 0x15f   :  { %1051 = vmatmul.mubr.msk.f32.vlgmr.msra.gmra.mxu1 %vm505_vm5, %v502_v47  ;;  %369 = vrot.lane.b32.xlu0 %v1433_v17, %s1240_s1 }
 0x160   :  { %455 = vrot.lane.b32.xlu1 %v1033_v41, %s1240_s1  ;;  %1053 = vmatprep.mubr.msk.f32.mxu1 %vm505_vm5, %v503_v48 }
 0x161   :  { %1086 = vmatpush3.xpose.msk.msra.mxu1 %vm603_vm6, %v1361_v33  ;;  %v411_v33 = vsub.s32 2, %v1408_v11 }
 0x162   :  { %1079 = vmatprep.subr.msk.mxu1 %vm603_vm6, %v1376_v5 }
 0x163   :  { %1054 = vmatmul.mubr.msk.f32.gmra.mxu1 %vm505_vm5, %v504_v49  ;;  %373 = vrot.lane.b32.xlu0 %v1443_v27, %s1240_s1 }
 0x164   :  { %371 = vrot.lane.b32.xlu1 %v1438_v21, %s1240_s1  ;;  %v229_v21 = vpop.f32.mrf.mxu0 }
 0x165   :  { %1087 = vmatpush3.xpose.msk.msra.mxu1 %vm603_vm6, %v1376_v5  ;;  %v412_v5 = vrot.slane %v1429_v15, %v411_v33 }
 0x166   :  { %1080 = vmatprep.subr.msk.mxu1 %vm603_vm6, %v1382_v6 }
 0x167   :  { %v415_v17 = vadd.f32 %v412_v5, %v1446_v31  ;;  %v416_v53 = vadd.f32 %v412_v5, %v229_v21 }
 0x168   :  { %375 = vrot.lane.b32.xlu1 %v1448_v35, %s1240_s1 }
 0x169   :  { %1088 = vmatpush3.xpose.msk.msra.mxu1 %vm603_vm6, %v1382_v6  ;;  %v443_v6 = vsub.s32 3, %v1408_v11  ;;  %v419_v52 = vsub.f32 0.0, %v415_v17  ;;  %v420_v60 = vsub.f32 0.0, %v416_v53 }
 0x16a   :  { %1081 = vmatprep.subr.msk.mxu1 %vm603_vm6, %v1391_v8 }
 0x16b   :  { %v425_v59 = vmul.f32 1.442695, %v419_v52  ;;  %v427_v22 = vmul.f32 1.442695, %v420_v60 }
 0x16d   :  { %1089 = vmatpush3.xpose.msk.msra.mxu1 %vm603_vm6, %v1391_v8  ;;  %v413_v8 = vadd.f32 %v412_v5, %v1436_v19 }
 0x16e   :  { %1082 = vmatprep.subr.msk.mxu1 %vm603_vm6, %v1398_v9 }
 0x171   :  { %1090 = vmatpush3.xpose.msk.msra.mxu1 %vm603_vm6, %v1398_v9  ;;  %v414_v9 = vadd.f32 %v412_v5, %v1441_v24 }
 0x172   :  { %1083 = vmatprep.subr.msk.mxu1 %vm603_vm6, %v1405_v10 }
 0x173   :  { %v418_v35 = vsub.f32 0.0, %v414_v9 }
 0x175   :  { %1091 = vmatpush3.xpose.msk.msra.mxu1 %vm603_vm6, %v1405_v10  ;;  %v444_v10 = vrot.slane %v1429_v15, %v443_v6  ;;  %v423_v56 = vmul.f32 1.442695, %v418_v35 }
 0x176   :  { %1084 = vmatprep.subr.msk.mxu1 %vm603_vm6, %v1415_v12 }
 0x179   :  { %1092 = vmatpush3.xpose.msk.msra.mxu1 %vm603_vm6, %v1415_v12  ;;  %v417_v12 = vsub.f32 0.0, %v413_v8 }
 0x17a   :  { %1085 = vmatprep.subr.msk.mxu1 %vm603_vm6, %v1422_v13 }
 0x17b   :  { %v421_v51 = vmul.f32 1.442695, %v417_v12 }
 0x17d   :  { %1093 = vmatpush3.xpose.msk.msra.mxu1 %vm603_vm6, %v1422_v13  ;;  %v363_v13 = vsub.s32 1, %v1408_v11  ;;  %1168 = vpow2.f32 %v421_v51 }
 0x17f   :  { %v364_v58 = vrot.slane %v1429_v15, %v363_v13 }
 0x18a   :  { %v1169_v47 = vpop.eup %1168 }
 0x18b   :  { %v429_v6 = vadd.f32 1.0, %v1169_v47 }
 0x1c9   :  { %v450_v27 = vpop.permute.xlu0 %449 }
 0x1ca   :  { %v461_v50 = vadd.f32 %v450_v27, %v444_v10 }
 0x1cc   :  { %v465_v54 = vsub.f32 0.0, %v461_v50 }
 0x1cd   :  { %v454_v55 = vpop.permute.xlu0 %453 }
 0x1ce   :  { %v469_v19 = vmul.f32 1.442695, %v465_v54  ;;  %v463_v57 = vadd.f32 %v454_v55, %v444_v10  ;;  %v452_v24 = vpop.permute.xlu1 %451 }
 0x1cf   :  { %v462_v31 = vadd.f32 %v452_v24, %v444_v10 }
 0x1d0   :  { %1170 = vpow2.f32 %v469_v19  ;;  %v467_v62 = vsub.f32 0.0, %v463_v57 }
 0x1d1   :  { %v466_v63 = vsub.f32 0.0, %v462_v31  ;;  %v370_v0 = vpop.permute.xlu0 %369  ;;  %1172 = vpow2.f32 %v423_v56 }
 0x1d2   :  { %v473_v11 = vmul.f32 1.442695, %v467_v62  ;;  %v456_v1 = vpop.permute.xlu1 %455  ;;  %v381_v14 = vadd.f32 %v370_v0, %v364_v58  ;;  %1174 = vpow2.f32 %v425_v59 }
 0x1d3   :  { %v471_v16 = vmul.f32 1.442695, %v466_v63  ;;  %v464_v20 = vadd.f32 %v456_v1, %v444_v10 }
 0x1d4   :  { %1176 = vpow2.f32 %v473_v11  ;;  %v385_v23 = vsub.f32 0.0, %v381_v14 }
 0x1d5   :  { %1178 = vpow2.f32 %v471_v16  ;;  %v468_v15 = vsub.f32 0.0, %v464_v20  ;;  %v374_v25 = vpop.permute.xlu0 %373 }
 0x1d6   :  { %v389_v26 = vmul.f32 1.442695, %v385_v23  ;;  %v383_v28 = vadd.f32 %v374_v25, %v364_v58  ;;  %v372_v29 = vpop.permute.xlu1 %371  ;;  %1180 = vpow2.f32 %v427_v22 }
 0x1d7   :  { %v475_v32 = vmul.f32 1.442695, %v468_v15  ;;  %v382_v34 = vadd.f32 %v372_v29, %v364_v58 }
 0x1d8   :  { %1182 = vpow2.f32 %v389_v26  ;;  %v387_v37 = vsub.f32 0.0, %v383_v28 }
 0x1d9   :  { %1184 = vpow2.f32 %v475_v32  ;;  %v386_v38 = vsub.f32 0.0, %v382_v34 }
 0x1da   :  { %v393_v39 = vmul.f32 1.442695, %v387_v37  ;;  %v376_v41 = vpop.permute.xlu1 %375 }
 0x1db   :  { %v391_v42 = vmul.f32 1.442695, %v386_v38  ;;  %v384_v44 = vadd.f32 %v376_v41, %v364_v58 }
 0x1dc   :  { %1186 = vpow2.f32 %v393_v39 }
 0x1dd   :  { %v1171_v48 = vpop.eup %1170  ;;  %1188 = vpow2.f32 %v391_v42  ;;  %v388_v49 = vsub.f32 0.0, %v384_v44 }
 0x1de   :  { %v477_v33 = vadd.f32 1.0, %v1171_v48  ;;  %v1173_v5 = vpop.eup %1172 }
 0x1df   :  { %v395_v8 = vmul.f32 1.442695, %v388_v49  ;;  %v1175_v9 = vpop.eup %1174  ;;  %v430_v17 = vadd.f32 1.0, %v1173_v5 }
 0x1e0   :  { %1190 = vrcp.f32 %v477_v33  ;;  %v431_v27 = vadd.f32 1.0, %v1175_v9 }
 0x1e1   :  { %v1177_v10 = vpop.eup %1176  ;;  %1192 = vpow2.f32 %v395_v8 }
 0x1e2   :  { %v1179_v12 = vpop.eup %1178  ;;  %v479_v21 = vadd.f32 1.0, %v1177_v10  ;;  %1194 = vrcp.f32 %v429_v6 }
 0x1e3   :  { %v478_v35 = vadd.f32 1.0, %v1179_v12  ;;  %v1181_v50 = vpop.eup %1180 }
 0x1e4   :  { %1196 = vrcp.f32 %v479_v21  ;;  %v432_v54 = vadd.f32 1.0, %v1181_v50 }
 0x1e5   :  { %v1183_v13 = vpop.eup %1182  ;;  %1198 = vrcp.f32 %v478_v35 }
 0x1e6   :  { %v1185_v51 = vpop.eup %1184  ;;  %1200 = vrcp.f32 %v430_v17  ;;  %v397_v52 = vadd.f32 1.0, %v1183_v13 }
 0x1e7   :  { %1202 = vrcp.f32 %v431_v27  ;;  %v480_v53 = vadd.f32 1.0, %v1185_v51 }
 0x1e8   :  { %1204 = vrcp.f32 %v397_v52 }
 0x1e9   :  { %v1187_v55 = vpop.eup %1186  ;;  %1206 = vrcp.f32 %v480_v53 }
 0x1ea   :  { %v1189_v56 = vpop.eup %1188  ;;  %v399_v19 = vadd.f32 1.0, %v1187_v55  ;;  %1208 = vrcp.f32 %v432_v54 }
 0x1eb   :  { %v398_v57 = vadd.f32 1.0, %v1189_v56 }
 0x1ec   :  { %1210 = vrcp.f32 %v399_v19 }
 0x1ed   :  { %v1191_v24 = vpop.eup %1190  ;;  %1212 = vrcp.f32 %v398_v57 }
 0x1ee   :  { %v1193_v58 = vpop.eup %1192  ;;  %v791_v59 = vmul.f32 %v1191_v24, %v1451_v61 }
 0x1ef   :  { %v400_v31 = vadd.f32 1.0, %v1193_v58  ;;  %v1195_v60 = vpop.eup %1194 }
 0x1f0   :  { %v795_v62 = vmul.f32 1.442695, %v791_v59  ;;  %v779_v20 = vsub.f32 1.0, %v1195_v60 }
 0x1f1   :  { %v1197_v63 = vpop.eup %1196  ;;  %1214 = vrcp.f32 %v400_v31 }
 0x1f2   :  { %v1199_v0 = vpop.eup %1198  ;;  %1216 = vpow2.f32 %v795_v62  ;;  %v793_v11 = vmul.f32 %v1197_v63, %v1467_v30  ;;  %v771_v30 = vmul.f32 %v1195_v60, %v1302_v4 }
 0x1f3   :  { %v1201_v1 = vpop.eup %1200  ;;  %v792_v14 = vmul.f32 %v1199_v0, %v1459_v18 }
 0x1f4   :  { %v1203_v16 = vpop.eup %1202  ;;  %v799_v22 = vmul.f32 1.442695, %v793_v11  ;;  %v780_v34 = vsub.f32 1.0, %v1201_v1 }
 0x1f5   :  { %v1595_v23 = vpop.eup %1204  ;;  %v797_v15 = vmul.f32 1.442695, %v792_v14  ;;  %v781_v29 = vsub.f32 1.0, %v1203_v16 }
 0x1f6   :  { %v1207_v25 = vpop.eup %1206  ;;  %1218 = vpow2.f32 %v799_v22  ;;  %v775_v61 = vmul.f32 %v1595_v23, %v1302_v4  ;;  %v772_v4 = vmul.f32 %v1201_v1, %v1310_v7 }
 0x1f7   :  { %1220 = vpow2.f32 %v797_v15  ;;  %v794_v26 = vmul.f32 %v1207_v25, %v1471_v36  ;;  %v1209_v28 = vpop.eup %1208  ;;  %v773_v36 = vmul.f32 %v1203_v16, %v1298_v2 }
 0x1f8   :  { %v783_v32 = vmul.f32 %v779_v20, %v775_v61  ;;  %v782_v48 = vsub.f32 1.0, %v1209_v28  ;;  %v774_v10 = vmul.f32 %v1209_v28, %v1300_v3 }
 0x1f9   :  { %v1601_v18 = vpop.eup %1210  ;;  %v801_v37 = vmul.f32 1.442695, %v794_v26 }
 0x1fa   :  { %v1603_v38 = vpop.eup %1212  ;;  %v777_v39 = vmul.f32 %v1601_v18, %v1298_v2  ;;  %v787_v42 = vadd.f32 %v783_v32, %v771_v30 }
 0x1fb   :  { %1222 = vpow2.f32 %v801_v37  ;;  %v776_v41 = vmul.f32 %v1603_v38, %v1310_v7 }
 0x1fc   :  { %v785_v44 = vmul.f32 %v781_v29, %v777_v39 }
 0x1fd   :  { %v784_v47 = vmul.f32 %v780_v34, %v776_v41 }
 0x1fe   :  { %v1611_v49 = vpop.eup %1214  ;;  %v789_v8 = vadd.f32 %v785_v44, %v773_v36 }
 0x1ff   :  { %v1217_v33 = vpop.eup %1216  ;;  %v778_v5 = vmul.f32 %v1611_v49, %v1300_v3  ;;  %v788_v9 = vadd.f32 %v784_v47, %v772_v4 }
 0x200   :  { %v803_v6 = vmul.f32 %v1217_v33, %v787_v42 }
 0x201   :  { %v786_v12 = vmul.f32 %v782_v48, %v778_v5 }
 0x202   :  { %v972_v17 = vpack.c.bf16 %v803_v6, %v803_v6 }
 0x203   :  { %v1219_v2 = vpop.eup %1218  ;;  %v790_v35 = vadd.f32 %v786_v12, %v774_v10 }
 0x204   :  { %v1221_v21 = vpop.eup %1220  ;;  %862 = vst.msk [vmem:[%s1683_s8] sm:$0xf] %vm823_vm4, %v972_v17  ;;  %v805_v7 = vmul.f32 %v1219_v2, %v789_v8 }
 0x205   :  { %v804_v27 = vmul.f32 %v1221_v21, %v788_v9 }
 0x206   :  { %v974_v50 = vpack.c.bf16 %v805_v7, %v805_v7 }
 0x207   :  { %v973_v13 = vpack.c.bf16 %v804_v27, %v804_v27 }
 0x208   :  { %v1223_v51 = vpop.eup %1222  ;;  %864 = vst.msk [vmem:[%s1683_s8 + $0x8] sm:$0xf] %vm823_vm4, %v974_v50 }
 0x209   :  { %863 = vst.msk [vmem:[%s1683_s8 + $0x4] sm:$0xf] %vm823_vm4, %v973_v13  ;;  %v806_v3 = vmul.f32 %v1223_v51, %v790_v35 }
 0x20b   :  { %v975_v52 = vpack.c.bf16 %v806_v3, %v806_v3 }
 0x20d   :  { %865 = vst.msk [vmem:[%s1683_s8 + $0xc] sm:$0xf] %vm823_vm4, %v975_v52 }
 0x21f   :  { %v1052_v53 = vpop.f32.mrf.mxu1 }
 0x221   :  { %v584_v54 = vpop.f32.mrf.mxu1 }
 0x222   :  { %1072 = vmatprep.mubr.msk.f32.mxu0 %vm603_vm6, %v584_v54 }
 0x223   :  { %v1055_v55 = vpop.f32.mrf.mxu1  ;;  %1073 = vmatmul.mubr.msk.f32.vlgmr.msra.gmra.mxu0 %vm603_vm6, %v1052_v53 }
 0x225   :  { %v594_v56 = vpop.f32.mrf.mxu1 }
 0x226   :  { %1075 = vmatprep.mubr.msk.f32.mxu1 %vm603_vm6, %v594_v56 }
 0x227   :  { %1076 = vmatmul.mubr.msk.f32.vlgmr.msra.gmra.mxu1 %vm603_vm6, %v1055_v55 }
 0x2e3   :  { %v1074_v19 = vpop.f32.mrf.mxu0 }
 0x2e4   :  { %1224 = vrsqrt.f32 %v1074_v19  ;;  %vm734_vm7 = vcmp.eq.f32.partialorder %v1074_v19, inf  ;;  %v737_v62 = vand.u32 2147483648, %v1074_v19  ;;  %vm736_vm8 = vcmp.eq.f32.partialorder %v1074_v19, 0.0 }
 0x2e5   :  { %v706_v57 = vpop.f32.mrf.mxu0 }
 0x2e6   :  { %1226 = vrsqrt.f32 %v706_v57  ;;  %vm727_vm9 = vcmp.eq.f32.partialorder %v706_v57, inf  ;;  %v730_v14 = vand.u32 2147483648, %v706_v57  ;;  %vm729_vm10 = vcmp.eq.f32.partialorder %v706_v57, 0.0 }
 0x2e7   :  { %v1077_v24 = vpop.f32.mrf.mxu1 }
 0x2e8   :  { %1228 = vrsqrt.f32 %v1077_v24  ;;  %vm748_vm11 = vcmp.eq.f32.partialorder %v1077_v24, inf  ;;  %vm750_vm12 = vcmp.eq.f32.partialorder %v1077_v24, 0.0  ;;  %v751_v61 = vand.u32 2147483648, %v1077_v24 }
 0x2e9   :  { %v716_v58 = vpop.f32.mrf.mxu1 }
 0x2ea   :  { %1230 = vrsqrt.f32 %v716_v58  ;;  %vm741_vm13 = vcmp.eq.f32.partialorder %v716_v58, inf  ;;  %v744_v32 = vand.u32 2147483648, %v716_v58  ;;  %vm743_vm14 = vcmp.eq.f32.partialorder %v716_v58, 0.0 }
 0x2f1   :  { %v1225_v59 = vpop.eup %1224 }
 0x2f2   :  { %v733_v31 = vmul.f32 %v1225_v59, %v1074_v19 }
 0x2f3   :  { %v1227_v60 = vpop.eup %1226 }
 0x2f4   :  { %v735_v63 = vsel %vm734_vm7, %v1074_v19, %v733_v31  ;;  %v726_v0 = vmul.f32 %v1227_v60, %v706_v57 }
 0x2f5   :  { %v1229_v11 = vpop.eup %1228  ;;  %v738_v1 = vsel %vm736_vm8, %v737_v62, %v735_v63 }
 0x2f6   :  { %v754_v16 = vmax.f32 %v738_v1, 1e-12  ;;  %v728_v20 = vsel %vm727_vm9, %v706_v57, %v726_v0  ;;  %v747_v22 = vmul.f32 %v1229_v11, %v1077_v24 }
 0x2f7   :  { %v1231_v15 = vpop.eup %1230  ;;  %v731_v25 = vsel %vm729_vm10, %v730_v14, %v728_v20 }
 0x2f8   :  { %1232 = vrcp.f32 %v754_v16  ;;  %v753_v26 = vmax.f32 %v731_v25, 1e-12  ;;  %v749_v28 = vsel %vm748_vm11, %v1077_v24, %v747_v22  ;;  %v740_v30 = vmul.f32 %v1231_v15, %v716_v58 }
 0x2f9   :  { %v752_v29 = vsel %vm750_vm12, %v751_v61, %v749_v28 }
 0x2fa   :  { %1234 = vrcp.f32 %v753_v26  ;;  %v756_v34 = vmax.f32 %v752_v29, 1e-12  ;;  %v742_v37 = vsel %vm741_vm13, %v716_v58, %v740_v30 }
 0x2fb   :  { %v745_v39 = vsel %vm743_vm14, %v744_v32, %v742_v37 }
 0x2fc   :  { %1236 = vrcp.f32 %v756_v34  ;;  %v755_v41 = vmax.f32 %v745_v39, 1e-12 }
 0x2fe   :  { %1238 = vrcp.f32 %v755_v41 }
 0x305   :  { %v1233_v36 = vpop.eup %1232 }
 0x306   :  { %v760_v42 = vmul.f32 %v1233_v36, %v1493_v45 }
 0x307   :  { %v1235_v44 = vpop.eup %1234 }
 0x308   :  { %v969_v4 = vpack.c.bf16 %v760_v42, %v760_v42  ;;  %v758_v47 = vmul.f32 %v1235_v44, %v1484_v40 }
 0x309   :  { %v1237_v48 = vpop.eup %1236 }
 0x30a   :  { %843 = vst.msk [vmem:[%s1684_s7 + $0x4] sm:$0xf] %vm823_vm4, %v969_v4  ;;  %v765_v33 = vpack.c.bf16 %v760_v42, %v758_v47  ;;  %v968_v5 = vpack.c.bf16 %v758_v47, %v758_v47  ;;  %v764_v6 = vmul.f32 %v1237_v48, %v1499_v46 }
 0x30b   :  { %v1239_v8 = vpop.eup %1238 }
 0x30c   :  { %v767_v9 = vunpack.c.l.bf16 %v765_v33  ;;  %v768_v10 = vunpack.c.h.bf16 %v765_v33  ;;  %842 = vst.msk [vmem:[%s1684_s7] sm:$0xf] %vm823_vm4, %v968_v5  ;;  %v971_v45 = vpack.c.bf16 %v764_v6, %v764_v6  ;;  %v762_v40 = vmul.f32 %v1239_v8, %v1490_v43 }
 0x30e   :  { %v866_v12 = vsub.f32 0.0, %v767_v9  ;;  %v867_v17 = vsub.f32 0.0, %v768_v10  ;;  %845 = vst.msk [vmem:[%s1684_s7 + $0xc] sm:$0xf] %vm823_vm4, %v971_v45  ;;  %v766_v2 = vpack.c.bf16 %v764_v6, %v762_v40  ;;  %v970_v46 = vpack.c.bf16 %v762_v40, %v762_v40 }
 0x310   :  { %v870_v21 = vmul.f32 %v1595_v23, %v866_v12  ;;  %v871_v7 = vmul.f32 %v1603_v38, %v867_v17  ;;  %v769_v27 = vunpack.c.l.bf16 %v766_v2  ;;  %v770_v35 = vunpack.c.h.bf16 %v766_v2  ;;  %844 = vst.msk [vmem:[%s1684_s7 + $0x8] sm:$0xf] %vm823_vm4, %v970_v46 }
 0x312   :  { %v976_v43 = vpack.c.bf16 %v870_v21, %v870_v21  ;;  %v977_v50 = vpack.c.bf16 %v871_v7, %v871_v7  ;;  %v868_v13 = vsub.f32 0.0, %v769_v27  ;;  %v869_v51 = vsub.f32 0.0, %v770_v35 }
 0x314   :  { %890 = vst.msk [vmem:[%s1685_s9] sm:$0xf] %vm823_vm4, %v976_v43  ;;  %891 = vst.msk [vmem:[%s1685_s9 + $0x4] sm:$0xf] %vm823_vm4, %v977_v50  ;;  %v872_v23 = vmul.f32 %v1601_v18, %v868_v13  ;;  %v873_v38 = vmul.f32 %v1611_v49, %v869_v51 }
 0x316   :  { %v978_v3 = vpack.c.bf16 %v872_v23, %v872_v23  ;;  %v979_v52 = vpack.c.bf16 %v873_v38, %v873_v38 }
 0x318   :  { %892 = vst.msk [vmem:[%s1685_s9 + $0x8] sm:$0xf] %vm823_vm4, %v978_v3  ;;  %893 = vst.msk [vmem:[%s1685_s9 + $0xc] sm:$0xf] %vm823_vm4, %v979_v52 }

// kernel: time_mixer_forward.11
= control target key start
LH: loop header
LB: loop body
LE: loop exit
PB: predicated region body
PF: predicated region fallthrough
CT: control target
= control target key end

     0   :  { %vm16_vm0 = vcmask 523264   ;;  %v208_v1 = vmov 0.0   ;;  %vm158_vm1 = vcmask 519168   ;;  %s264_s1 = inlined_call_operand.vmem [shape: bf16[64,64], index: 1, kind: input, shape index: {}]   ;;  %s265_s0 = inlined_call_operand.vmem [shape: bf16[32,64], index: 0, kind: input, shape index: {}]   ;;  %s266_s2 = inlined_call_operand.vmem [shape: bf16[32,64], index: 2, kind: output, shape index: {}]  }
   0x1   :  { %v202_v0 = vld [vmem:[%s264_s1 + $0x18] sm:$0xff]   ;;  %19 = vst.msk [vmem:[#allocation2 + $0x10] sm:$0xff] %vm16_vm0, %v208_v1  ;;  %17 = vst.msk [vmem:[#allocation2] sm:$0xff] %vm16_vm0, %v208_v1  ;;  %v203_v2 = vld [vmem:[%s264_s1 + $0x10] sm:$0xff]  }
   0x2   :  { %18 = vst.msk [vmem:[#allocation2 + $0x8] sm:$0xff] %vm16_vm0, %v208_v1  ;;  %20 = vst.msk [vmem:[#allocation2 + $0x18] sm:$0xff] %vm16_vm0, %v208_v1  ;;  %189 = vmatprep.subr.bf16.mxu0 %v202_v0  ;;  %v204_v3 = vld [vmem:[%s264_s1 + $0x8] sm:$0xff]   ;;  %v206_v4 = vld [vmem:[%s265_s0] sm:$0xff]  }
   0x3   :  { %190 = vmatpush3.bf16.msra.mxu0 %v202_v0  ;;  %197 = vmatprep.mubr.msk.bf16.mxu0 %vm16_vm0, %v206_v4  ;;  %v205_v5 = vld [vmem:[%s264_s1] sm:$0xff]   ;;  %v207_v6 = vld [vmem:[%s265_s0 + $0x8] sm:$0xff]  }
   0x4   :  { %191 = vmatprep.subr.bf16.mxu0 %v203_v2 }
   0x7   :  { %192 = vmatpush3.bf16.msra.mxu0 %v203_v2 }
   0x8   :  { %193 = vmatprep.subr.bf16.mxu0 %v204_v3  ;;  %v23_v7 = vld [vmem:[#allocation2 + $0x10] sm:$0xff]  ;;  %v21_v9 = vld [vmem:[#allocation2] sm:$0xff] }
   0x9   :  { %v24_v12 = vld [vmem:[#allocation2 + $0x18] sm:$0xff]  ;;  %v22_v15 = vld [vmem:[#allocation2 + $0x8] sm:$0xff] }
   0xb   :  { %194 = vmatpush3.bf16.msra.mxu0 %v204_v3 }
   0xc   :  { %195 = vmatprep.subr.bf16.mxu0 %v205_v5 }
   0xf   :  { %196 = vmatpush3.bf16.msra.mxu0 %v205_v5 }
  0x12   :  { %198 = vmatmul.mubr.msk.bf16.vlgmr.msra.gmra.mxu0 %vm16_vm0, %v207_v6 }
  0xd2   :  { %v199_v8 = vpop.f32.mrf.mxu0 }
  0xd3   :  { %v129_v10 = vadd.f32 %v199_v8, %v23_v7 }
  0xd4   :  { %v112_v11 = vpop.f32.mrf.mxu0 }
  0xd5   :  { %133 = vst.msk [vmem:[#allocation2 + $0x10] sm:$0xff] %vm16_vm0, %v129_v10  ;;  %v127_v13 = vadd.f32 %v112_v11, %v21_v9 }
  0xd6   :  { %v200_v14 = vpop.f32.mrf.mxu0 }
  0xd7   :  { %131 = vst.msk [vmem:[#allocation2] sm:$0xff] %vm16_vm0, %v127_v13  ;;  %v130_v16 = vadd.f32 %v200_v14, %v24_v12 }
  0xd8   :  { %v115_v17 = vpop.f32.mrf.mxu0 }
  0xd9   :  { %134 = vst.msk [vmem:[#allocation2 + $0x18] sm:$0xff] %vm16_vm0, %v130_v16  ;;  %v128_v18 = vadd.f32 %v115_v17, %v22_v15 }
  0xdb   :  { %132 = vst.msk [vmem:[#allocation2 + $0x8] sm:$0xff] %vm16_vm0, %v128_v18 }
  0xdc   :  { %v140_v19 = vld [vmem:[#allocation2 + $0x10] sm:$0xff] }
  0xdd   :  { %v181_v20 = vpack.c.bf16 %v140_v19, %v140_v19 }
  0xde   :  { %v138_v21 = vld [vmem:[#allocation2] sm:$0xff] }
  0xdf   :  { %161 = vst.msk [vmem:[%s266_s2 + $0x8] sm:$0xf] %vm158_vm1, %v181_v20  ;;  %v179_v22 = vpack.c.bf16 %v138_v21, %v138_v21 }
  0xe0   :  { %v141_v23 = vld [vmem:[#allocation2 + $0x18] sm:$0xff] }
  0xe1   :  { %159 = vst.msk [vmem:[%s266_s2] sm:$0xf] %vm158_vm1, %v179_v22  ;;  %v182_v24 = vpack.c.bf16 %v141_v23, %v141_v23 }
  0xe2   :  { %v139_v25 = vld [vmem:[#allocation2 + $0x8] sm:$0xff] }
  0xe3   :  { %162 = vst.msk [vmem:[%s266_s2 + $0xc] sm:$0xf] %vm158_vm1, %v182_v24  ;;  %v180_v26 = vpack.c.bf16 %v139_v25, %v139_v25 }
  0xe5   :  { %160 = vst.msk [vmem:[%s266_s2 + $0x4] sm:$0xf] %vm158_vm1, %v180_v26 }

// kernel: time_mixer_forward.15
= control target key start
LH: loop header
LB: loop body
LE: loop exit
PB: predicated region body
PF: predicated region fallthrough
CT: control target
= control target key end

     0   :  { %vm17_vm0 = vcmask 523264   ;;  %v246_v2 = vmov 0.0   ;;  %s296_s0 = inlined_call_operand.vmem [shape: bf16[32,64], index: 0, kind: input, shape index: {}]   ;;  %s297_s1 = inlined_call_operand.vmem [shape: bf16[64,64], index: 1, kind: input, shape index: {}]   ;;  %s298_s2 = inlined_call_operand.hbm [shape: bf16[32,64], index: 2, kind: output, shape index: {}]  }
   0x1   :  { %v218_v0 = vld [vmem:[%s297_s1 + $0x18] sm:$0xff]   ;;  %v219_v1 = vld [vmem:[%s297_s1 + $0x10] sm:$0xff]   ;;  %20 = vst.msk [vmem:[#allocation2 + $0x10] sm:$0xff] %vm17_vm0, %v246_v2  ;;  %18 = vst.msk [vmem:[#allocation2] sm:$0xff] %vm17_vm0, %v246_v2 }
   0x2   :  { %202 = vmatprep.subr.bf16.mxu0 %v218_v0  ;;  %19 = vst.msk [vmem:[#allocation2 + $0x8] sm:$0xff] %vm17_vm0, %v246_v2  ;;  %21 = vst.msk [vmem:[#allocation2 + $0x18] sm:$0xff] %vm17_vm0, %v246_v2  ;;  %v220_v3 = vld [vmem:[%s297_s1 + $0x8] sm:$0xff]   ;;  %v222_v4 = vld [vmem:[%s296_s0] sm:$0xff]  }
   0x3   :  { %203 = vmatpush3.bf16.msra.mxu0 %v218_v0  ;;  %210 = vmatprep.mubr.msk.bf16.mxu0 %vm17_vm0, %v222_v4 }
   0x4   :  { %204 = vmatprep.subr.bf16.mxu0 %v219_v1 }
   0x5   :  { %7 = vsyncpa [#allocation4], 0  ;;  %v221_v5 = vld [vmem:[%s297_s1] sm:$0xff]   ;;  %v223_v6 = vld [vmem:[%s296_s0 + $0x8] sm:$0xff]   ;;  %vm159_vm1 = vcmask 519168   ;;  %s247_s0 = smov [#allocation3]  }
   0x6   :  { %s169_s1 = sshll.u32 %s247_s0, 4  ;;  %s170_s1 = int_to_ptr.vmem [resolvable:$true] %s169_s1 }
   0x7   :  { %205 = vmatpush3.bf16.msra.mxu0 %v219_v1  ;;  %s224_s21 = scalar_lea.vmem %s170_s1, 256  ;;  %p229_p1 = scmp.lt.s32.totalorder %s170_s1, %s170_s1 }
   0x8   :  { %206 = vmatprep.subr.bf16.mxu0 %v220_v3  ;;  %v24_v7 = vld [vmem:[#allocation2 + $0x10] sm:$0xff]  ;;  %v22_v9 = vld [vmem:[#allocation2] sm:$0xff]  ;;  %p225_p0 = scmp.ne.s32.totalorder %s170_s1, %s224_s21  ;;  %p230_p2 = scmp.lt.s32.totalorder %s224_s21, %s224_s21 }
   0x9   :  { %v25_v12 = vld [vmem:[#allocation2 + $0x18] sm:$0xff]  ;;  %v23_v15 = vld [vmem:[#allocation2 + $0x8] sm:$0xff] }
   0xa   :  { %p231_p3 = por %p230_p2, %p229_p1 }
   0xb   :  { %207 = vmatpush3.bf16.msra.mxu0 %v220_v3 }
   0xc   :  { %208 = vmatprep.subr.bf16.mxu0 %v221_v5  ;;  %p232_p4 = pnand %p231_p3, %p225_p0 }
   0xf   :  { %209 = vmatpush3.bf16.msra.mxu0 %v221_v5 }
  0x12   :  { %211 = vmatmul.mubr.msk.bf16.vlgmr.msra.gmra.mxu0 %vm17_vm0, %v223_v6 }
  0xd2   :  { %v212_v8 = vpop.f32.mrf.mxu0 }
  0xd3   :  { %v130_v10 = vadd.f32 %v212_v8, %v24_v7 }
  0xd4   :  { %v113_v11 = vpop.f32.mrf.mxu0 }
  0xd5   :  { %134 = vst.msk [vmem:[#allocation2 + $0x10] sm:$0xff] %vm17_vm0, %v130_v10  ;;  %v128_v13 = vadd.f32 %v113_v11, %v22_v9 }
  0xd6   :  { %v213_v14 = vpop.f32.mrf.mxu0 }
  0xd7   :  { %132 = vst.msk [vmem:[#allocation2] sm:$0xff] %vm17_vm0, %v128_v13  ;;  %v131_v16 = vadd.f32 %v213_v14, %v25_v12 }
  0xd8   :  { %v116_v17 = vpop.f32.mrf.mxu0 }
  0xd9   :  { %135 = vst.msk [vmem:[#allocation2 + $0x18] sm:$0xff] %vm17_vm0, %v131_v16  ;;  %v129_v18 = vadd.f32 %v116_v17, %v23_v15 }
  0xdb   :  { %133 = vst.msk [vmem:[#allocation2 + $0x8] sm:$0xff] %vm17_vm0, %v129_v18 }
  0xdc   :  { %v141_v19 = vld [vmem:[#allocation2 + $0x10] sm:$0xff] }
  0xdd   :  { %v194_v20 = vpack.c.bf16 %v141_v19, %v141_v19 }
  0xde   :  { %v139_v21 = vld [vmem:[#allocation2] sm:$0xff] }
  0xdf   :  { %v192_v22 = vpack.c.bf16 %v139_v21, %v139_v21  ;;  %162 = vst.msk [vmem:[#allocation3 + $0x8] sm:$0xf] %vm159_vm1, %v194_v20 }
  0xe0   :  { %v142_v23 = vld [vmem:[#allocation2 + $0x18] sm:$0xff] }
  0xe1   :  { %v195_v24 = vpack.c.bf16 %v142_v23, %v142_v23  ;;  %160 = vst.msk [vmem:[#allocation3] sm:$0xf] %vm159_vm1, %v192_v22 }
  0xe2   :  { %v140_v25 = vld [vmem:[#allocation2 + $0x8] sm:$0xff] }
  0xe3   :  { %v193_v26 = vpack.c.bf16 %v140_v25, %v140_v25  ;;  %163 = vst.msk [vmem:[#allocation3 + $0xc] sm:$0xf] %vm159_vm1, %v195_v24 }
  0xe5   :  { %161 = vst.msk [vmem:[#allocation3 + $0x4] sm:$0xf] %vm159_vm1, %v193_v26 }
  0xe6   :  { %235 = shalt.err (!%p232_p4)
}
  0xe7   :  { %s248_s22 = smov 64   ;;  %s249_s23 = smov 4  }
  0xe8   :  { %175 = dma.vmem_to_hbm [thread:$0]  %s170_s1, 256, %s298_s2, [#allocation4], %s248_s22, %s248_s22, %s249_s23  }
  0xe9   :  { %244 = dma.done.wait [#allocation4], 256  }
  0xea   :  { %245 = vsyncadd [#allocation4], 4294967040 }
  0xeb   :  { %179 = vsyncpa [#allocation4], 1 }

// kernel: time_mixer_forward.14
= control target key start
LH: loop header
LB: loop body
LE: loop exit
PB: predicated region body
PF: predicated region fallthrough
CT: control target
= control target key end

     0   :  { %s11486_s17 = smov 0   ;;  %s11488_s18 = smov 0   ;;  %s13974_s0 = inlined_call_operand.vmem [shape: bf16[2,16,64], index: 0, kind: input, shape index: {}]   ;;  %s13975_s1 = inlined_call_operand.vmem [shape: bf16[2,16,64], index: 1, kind: input, shape index: {}]   ;;  %s13976_s2 = inlined_call_operand.vmem [shape: bf16[2,16,64], index: 2, kind: input, shape index: {}]   ;;  %s13977_s3 = inlined_call_operand.vmem [shape: bf16[2,16,64], index: 3, kind: input, shape index: {}]   ;;  %s13978_s4 = inlined_call_operand.vmem [shape: bf16[2,16,64], index: 4, kind: input, shape index: {}]   ;;  %s13979_s5 = inlined_call_operand.vmem [shape: bf16[2,16,64], index: 5, kind: input, shape index: {}]   ;;  %s13980_s6 = inlined_call_operand.vmem [shape: bf16[2,16,64], index: 6, kind: input, shape index: {}]   ;;  %s13981_s7 = inlined_call_operand.vmem [shape: f32[1,64], index: 7, kind: input, shape index: {}]   ;;  %s13982_s8 = inlined_call_operand.vmem [shape: f32[1,64], index: 8, kind: input, shape index: {}]   ;;  %s13983_s9 = inlined_call_operand.vmem [shape: f32[1,64], index: 9, kind: input, shape index: {}]   ;;  %s13984_s10 = inlined_call_operand.vmem [shape: f32[64,2], index: 10, kind: input, shape index: {}]   ;;  %s13985_s11 = inlined_call_operand.vmem [shape: bf16[2,16,64], index: 11, kind: output, shape index: {}]  }
   0x1   :  { %s11490_s19 = smov 0  }
   0x2 LB: > { %s33_s20 = sadd.s32 1, %s11400_s18  ;;  %p9455_p0 = scmp.ge.s32.totalorder %s11404_s19, 1  ;;  %s11404_s19 = sphi %s11490_s19, %s21_s19   ;;  %s11400_s18 = sphi %s11488_s18, %s14217_s18   ;;  %s11396_s17 = sphi %s11486_s17, %s14216_s17  }
   0x3   : > { %p35_p1 = scmp.ge.s32.totalorder %s33_s20, 2  ;;  %p460_p2 = scmp.lt.s32.totalorder %s11404_s19, 3 }
   0x5   : > { %s14219_s20 = smov (%p35_p1, %s33_s20), 0  ;;  %p461_p3 = pnand %p9455_p0, %p460_p2 }
   0x7   : > { %464 = sbr.rel (%p461_p3) target bundleno = 11885 (0x2e6d), region = 64 }
   0xc   : > { %p563_p4 = scmp.lt.s32.totalorder %s11396_s17, 1  ;;  %vm646_vm0 = vcmask 523264   ;;  %v14020_v0 = vmov 0.0   ;;  %vm11407_vm1 = vmmov 0   ;;  %vm785_vm2 = vcmask 261120   ;;  %s11424_s25 = smov 96  }
   0xd   : > { %9997 = vmatprep.subr.mxu0 %v14020_v0  ;;  %650 = vst.msk [vmem:[#allocation2 + $0x18] sm:$0xff] %vm646_vm0, %v14020_v0  ;;  %647 = vst.msk [vmem:[#allocation2] sm:$0xff] %vm646_vm0, %v14020_v0  ;;  %10005 = vmatprep.mubr.msk.f32.mxu0 %vm11407_vm1, %v14020_v0  ;;  %v14018_v28 = vmov 0   ;;  %v14015_v48 = vmov 1   ;;  %v14010_v51 = vmov 2   ;;  %v14008_v52 = vmov 3  }
   0xe   : > { %648 = vst.msk [vmem:[#allocation2 + $0x8] sm:$0xff] %vm646_vm0, %v14020_v0  ;;  %649 = vst.msk [vmem:[#allocation2 + $0x10] sm:$0xff] %vm646_vm0, %v14020_v0  ;;  %s14221_s17 = smov (!%p563_p4, %s11396_s17), 1  ;;  %10030 = vmatprep.subr.mxu1 %v14020_v0  ;;  %10038 = vmatprep.mubr.msk.f32.mxu1 %vm11407_vm1, %v14020_v0  ;;  %v14004_v53 = vmov 4   ;;  %v14000_v54 = vmov 5   ;;  %v13998_v55 = vmov 6   ;;  %v903_v57 = vlaneseq }
   0xf   : > { %s11518_s21 = sshll.u32 %s14221_s17, 3  ;;  %v13996_v60 = vmov 7   ;;  %vm4396_vm3 = vcmask 1040384   ;;  %vm4398_vm4 = vcmask 1041408   ;;  %vm4400_vm5 = vcmask 1042432   ;;  %s11425_s26 = smov 32  }
  0x10   : > { %s590_s24 = scalar_lea.vmem %s13976_s2, %s11518_s21  ;;  %s11528_s27 = scalar_lea.vmem %s13978_s4, %s11518_s21  ;;  %v11679_v59 = vshrl.u32 %v903_v57, 7  ;;  %vm4402_vm6 = vcmask 1043456   ;;  %vm4404_vm7 = vcmask 1044480   ;;  %vm4406_vm8 = vcmask 1045504  }
  0x11   : > { %s620_s30 = scalar_lea.vmem %s13979_s5, %s11518_s21  ;;  %v9598_v1 = vld [vmem:[%s590_s24] sm:$0xff]   ;;  %s580_s14 = scalar_lea.vmem %s13975_s1, %s11518_s21  ;;  %vm4408_vm9 = vcmask 1046528   ;;  %vm8601_vm10 = vcmask 523520   ;;  %vm8762_vm11 = vcmask 15360   ;;  %vm9253_vm12 = vcmask 519168  }
  0x12   : > { %v11534_v2 = vunpack.c.l.bf16 %v9598_v1  ;;  %v11536_v3 = vld [vmem:[%s620_s30] sm:$0xff]   ;;  %v11543_v5 = vunpack.c.h.bf16 %v9598_v1  ;;  %s11676_s17 = scalar_lea.vmem %s13977_s3, %s11518_s21  ;;  %v11688_v1 = vsub.s32 0, %v11679_v59  ;;  %s11712_s24 = scalar_lea.vmem %s13974_s0, %s11518_s21 }
  0x13   : > { %v14019_v4 = vunpack.c.l.bf16 %v11536_v3  ;;  %v14017_v6 = vunpack.c.h.bf16 %v11536_v3  ;;  %v9594_v7 = vld [vmem:[%s580_s14] sm:$0xff]   ;;  %s630_s13 = scalar_lea.vmem %s13980_s6, %s11518_s21 }
  0x14   : > { %14091 = vst [vmem:[#allocation3_spill] sm:$0xff] %v11534_v2  ;;  %14092 = vst [vmem:[#allocation4_spill] sm:$0xff] %v11543_v5  ;;  %v11546_v8 = vld [vmem:[#allocation2 + $0x18] sm:$0xff]  ;;  %v9606_v9 = vld [vmem:[%s11528_s27] sm:$0xff]   ;;  %v9595_v10 = vunpack.c.l.bf16 %v9594_v7  ;;  %v9596_v11 = vunpack.c.h.bf16 %v9594_v7 }
  0x15   : > { %9998 = vmatpush3.msra.mxu0 %v11546_v8  ;;  %v11550_v12 = vld [vmem:[#allocation2 + $0x10] sm:$0xff]  ;;  %v10859_v13 = vpack.i.bf16 %v11534_v2, %v14019_v4  ;;  %v11556_v14 = vld [vmem:[#allocation2 + $0x8] sm:$0xff]  ;;  %v11559_v17 = vunpack.c.l.bf16 %v9606_v9  ;;  %v10861_v18 = vpack.i.bf16 %v11543_v5, %v14017_v6  ;;  %v11565_v19 = vld [vmem:[#allocation2] sm:$0xff] }
  0x16   : > { %9999 = vmatprep.subr.mxu0 %v14020_v0  ;;  %v659_v15 = vmul.f32 1.442695, %v9595_v10  ;;  %v661_v16 = vmul.f32 1.442695, %v9596_v11  ;;  %v9602_v61 = vld [vmem:[%s11676_s17] sm:$0xff]  }
  0x17   : > { %10000 = vmatpush3.msra.mxu0 %v11550_v12  ;;  %10860 = vxpose.xlu1.b32.start [1/2] (short) (narrow) %v10859_v13, 32  ;;  %v11685_v63 = vunpack.c.l.bf16 %v9602_v61 }
  0x18   : > { %10001 = vmatprep.subr.mxu0 %v14020_v0  ;;  %11367 = vpow2.f32 %v659_v15 }
  0x19   : > { %10002 = vmatpush3.msra.mxu0 %v11556_v14  ;;  %11369 = vpow2.f32 %v661_v16  ;;  %14095 = vst [vmem:[#allocation7_spill] sm:$0xff] %v11685_v63  ;;  %v11696_v11 = vrot.slane %v11685_v63, %v11688_v1 }
  0x1a   : > { %10003 = vmatprep.subr.mxu0 %v14020_v0 }
  0x1b   : > { %10004 = vmatpush3.msra.mxu0 %v11565_v19  ;;  %10862 = vxpose.xlu1.b32.end [2/2] (short) (narrow) %v10861_v18, 32  ;;  %14096 = vst [vmem:[#allocation8_spill] sm:$0xff] %v11696_v11 }
  0x1c   : > { %10006 = vmatmul.mubr.msk.f32.vlgmr.msra.gmra.mxu0 %vm785_vm2, %v11559_v17  ;;  %10008 = vmatprep.subr.mxu0 %v14020_v0 }
  0x1d   : > { %10016 = vmatprep.mubr.msk.f32.mxu0 %vm11407_vm1, %v14020_v0 }
  0x25   : > { %v11368_v20 = vpop.eup %11367 }
  0x26   : > { %v11370_v21 = vpop.eup %11369  ;;  %v663_v22 = vsub.f32 0.0, %v11368_v20 }
  0x27   : > { %v664_v23 = vsub.f32 0.0, %v11370_v21 }
  0x28   : > { %v665_v24 = vmul.f32 1.442695, %v663_v22 }
  0x29   : > { %v667_v25 = vmul.f32 1.442695, %v664_v23 }
  0x2a   : > { %11371 = vpow2.f32 %v665_v24 }
  0x2b   : > { %11373 = vpow2.f32 %v667_v25 }
  0x37   : > { %v11575_v26 = vpop.eup %11371 }
  0x38   : > { %14093 = vst [vmem:[#allocation5_spill] sm:$0xff] %v11575_v26  ;;  %689 = vxpose.xlu0.b32.start [1/2] (short) (narrow) %v11575_v26, 32  ;;  %v11578_v27 = vpop.eup %11373 }
  0x39   : > { %14094 = vst [vmem:[#allocation6_spill] sm:$0xff] %v11578_v27  ;;  %10883 = vset.pattern.permute.xlu1 %v14018_v28 }
  0x3c   : > { %690 = vxpose.xlu0.b32.end [2/2] (short) (narrow) %v11578_v27, 32 }
  0x65   : > { %10894 = vset.pattern.permute.xlu0 %v14018_v28 }
  0x93   : > { %v10863_v29 = vpop.trf.xlu1 }
  0x94   : > { %v10864_v31 = vunpack.i.l.bf16 %v10863_v29  ;;  %v11603_v46 = vunpack.i.h.bf16 %v10863_v29 }
  0x97   : > { %v10868_v30 = vpop.trf.xlu1 }
  0x98   : > { %v10869_v34 = vunpack.i.l.bf16 %v10868_v30  ;;  %v11607_v47 = vunpack.i.h.bf16 %v10868_v30 }
  0x9b   : > { %v10873_v32 = vpop.trf.xlu1 }
  0x9c   : > { %v10877_v33 = vunpack.i.h.bf16 %v10873_v32  ;;  %v10874_v35 = vunpack.i.l.bf16 %v10873_v32 }
  0x9e   : > { %v11583_v37 = vpack.i.bf16 %v10864_v31, %v10877_v33 }
  0x9f   : > { %v10878_v36 = vpop.trf.xlu1 }
  0xa0   : > { %v10882_v38 = vunpack.i.h.bf16 %v10878_v36  ;;  %v10879_v39 = vunpack.i.l.bf16 %v10878_v36 }
  0xa2   : > { %v11585_v40 = vpack.i.bf16 %v10874_v35, %v10879_v39  ;;  %v11587_v41 = vpack.i.bf16 %v10869_v34, %v10882_v38  ;;  %v13994_v39 = vmov 8  }
  0xa4   : > { %10885 = vperm.xlu1 %10883, %v11585_v40  }
  0xa8   : > { %10890 = vperm.xlu1 %10883, %v11587_v41  }
  0xb4   : > { %v11591_v42 = vpop.trf.xlu0 }
  0xb8   : > { %v11593_v43 = vpop.trf.xlu0 }
  0xb9   : > { %866 = vperm.xlu1 %10883, %v11593_v43  }
  0xbc   : > { %v11596_v44 = vpop.trf.xlu0 }
  0xbd   : > { %871 = vperm.xlu1 %10883, %v11596_v44  }
  0xc0   : > { %v11599_v45 = vpop.trf.xlu0 }
  0xc1   : > { %861 = vperm.xlu1 %10883, %v11591_v42   ;;  %876 = vperm.xlu0 %10894, %v11599_v45  }
  0xc5   : > { %917 = vperm.xlu1 %10883, %v11603_v46   ;;  %10896 = vperm.xlu0 %10894, %v11583_v37  }
  0xc9   : > { %10900 = vset.pattern.permute.xlu1 %v14015_v48  ;;  %922 = vperm.xlu0 %10894, %v11607_v47  }
  0xca   : > { %10902 = vperm.xlu1 %10900, %v11585_v40  }
  0xcd   : > { %10906 = vset.pattern.permute.xlu0 %v14015_v48 }
  0xce   : > { %1102 = vperm.xlu1 %10900, %v11596_v44   ;;  %10908 = vperm.xlu0 %10906, %v11587_v41  }
  0xd2   : > { %1098 = vperm.xlu1 %10900, %v11593_v43   ;;  %1106 = vperm.xlu0 %10906, %v11599_v45  }
  0xd6   : > { %1094 = vperm.xlu1 %10900, %v11591_v42   ;;  %10913 = vperm.xlu0 %10906, %v11583_v37  }
  0xda   : > { %1142 = vperm.xlu1 %10900, %v11603_v46   ;;  %1146 = vperm.xlu0 %10906, %v11607_v47  }
  0xdc   : > { %v11621_v49 = vpop.f32.mrf.mxu0 }
  0xdd   : > { %v906_v10 = vrot.slane %v11621_v49, %v11688_v1 }
  0xde   : > { %v10007_v50 = vpop.f32.mrf.mxu0  ;;  %10917 = vset.pattern.permute.xlu1 %v14010_v51  ;;  %10923 = vset.pattern.permute.xlu0 %v14010_v51 }
  0xdf   : > { %10919 = vperm.xlu1 %10917, %v11585_v40   ;;  %10925 = vperm.xlu0 %10923, %v11587_v41   ;;  %v9590_v50 = vld [vmem:[%s11712_s24] sm:$0xff]  }
  0xe3   : > { %1324 = vperm.xlu1 %10917, %v11596_v44   ;;  %1328 = vperm.xlu0 %10923, %v11599_v45  }
  0xe7   : > { %1320 = vperm.xlu1 %10917, %v11593_v43   ;;  %10930 = vperm.xlu0 %10923, %v11583_v37  }
  0xeb   : > { %1316 = vperm.xlu1 %10917, %v11591_v42   ;;  %1368 = vperm.xlu0 %10923, %v11607_v47  }
  0xef   : > { %1364 = vperm.xlu1 %10917, %v11603_v46   ;;  %10940 = vset.pattern.permute.xlu0 %v14008_v52 }
  0xf0   : > { %10942 = vperm.xlu0 %10940, %v11587_v41  }
  0xf3   : > { %10934 = vset.pattern.permute.xlu1 %v14008_v52 }
  0xf4   : > { %10936 = vperm.xlu1 %10934, %v11585_v40   ;;  %1550 = vperm.xlu0 %10940, %v11599_v45  }
  0xf8   : > { %1546 = vperm.xlu1 %10934, %v11596_v44   ;;  %10947 = vperm.xlu0 %10940, %v11583_v37  }
  0xfc   : > { %1542 = vperm.xlu1 %10934, %v11593_v43   ;;  %1590 = vperm.xlu0 %10940, %v11607_v47  }
 0x100   : > { %1538 = vperm.xlu1 %10934, %v11591_v42   ;;  %10951 = vset.pattern.permute.xlu0 %v14004_v53 }
 0x101   : > { %1772 = vperm.xlu0 %10951, %v11599_v45  }
 0x104   : > { %1586 = vperm.xlu1 %10934, %v11603_v46  }
 0x105   : > { %10959 = vperm.xlu0 %10951, %v11587_v41  }
 0x108   : > { %10952 = vset.pattern.permute.xlu1 %v14004_v53 }
 0x109   : > { %10954 = vperm.xlu1 %10952, %v11585_v40   ;;  %10964 = vperm.xlu0 %10951, %v11583_v37  }
 0x10d   : > { %1768 = vperm.xlu1 %10952, %v11596_v44   ;;  %1812 = vperm.xlu0 %10951, %v11607_v47  }
 0x111   : > { %1764 = vperm.xlu1 %10952, %v11593_v43   ;;  %10968 = vset.pattern.permute.xlu0 %v14000_v54 }
 0x112   : > { %1994 = vperm.xlu0 %10968, %v11599_v45  }
 0x115   : > { %1760 = vperm.xlu1 %10952, %v11591_v42  }
 0x116   : > { %10976 = vperm.xlu0 %10968, %v11587_v41  }
 0x119   : > { %1808 = vperm.xlu1 %10952, %v11603_v46  }
 0x11a   : > { %10981 = vperm.xlu0 %10968, %v11583_v37  }
 0x11d   : > { %10969 = vset.pattern.permute.xlu1 %v14000_v54 }
 0x11e   : > { %10971 = vperm.xlu1 %10969, %v11585_v40   ;;  %2034 = vperm.xlu0 %10968, %v11607_v47  }
 0x11f   : > { %v10886_v56 = vpop.permute.xlu1 %10885 }
 0x120   : > { %v10887_v9 = vunpack.i.l.bf16 %v10886_v56  ;;  %v10888_v15 = vunpack.i.h.bf16 %v10886_v56 }
 0x122   : > { %1990 = vperm.xlu1 %10969, %v11596_v44   ;;  %10985 = vset.pattern.permute.xlu0 %v13998_v55  ;;  %v910_v18 = vmul.f32 %v10887_v9, %v906_v10  ;;  %v909_v29 = vmul.f32 %v10888_v15, %v906_v10  ;;  %v13988_v15 = vmov 10  }
 0x123   : > { %2216 = vperm.xlu0 %10985, %v11599_v45   ;;  %v10891_v58 = vpop.permute.xlu1 %10890 }
 0x124   : > { %v10892_v13 = vunpack.i.l.bf16 %v10891_v58  ;;  %v10893_v21 = vunpack.i.h.bf16 %v10891_v58 }
 0x126   : > { %1986 = vperm.xlu1 %10969, %v11593_v43   ;;  %v942_v24 = vmul.f32 %v10892_v13, %v11696_v11  ;;  %v13992_v13 = vmov 9  }
 0x127   : > { %10993 = vperm.xlu0 %10985, %v11587_v41  }
 0x12a   : > { %1982 = vperm.xlu1 %10969, %v11591_v42  }
 0x12b   : > { %10998 = vperm.xlu0 %10985, %v11583_v37  }
 0x12e   : > { %2030 = vperm.xlu1 %10969, %v11603_v46  }
 0x12f   : > { %2256 = vperm.xlu0 %10985, %v11607_v47  }
 0x132   : > { %10986 = vset.pattern.permute.xlu1 %v13998_v55 }
 0x133   : > { %10988 = vperm.xlu1 %10986, %v11585_v40   ;;  %11002 = vset.pattern.permute.xlu0 %v13996_v60 }
 0x134   : > { %v867_v62 = vpop.permute.xlu1 %866  ;;  %2438 = vperm.xlu0 %11002, %v11599_v45  }
 0x135   : > { %v880_v31 = vmul.f32 %v867_v62, %v11556_v14 }
 0x137   : > { %2212 = vperm.xlu1 %10986, %v11596_v44  }
 0x138   : > { %v872_v7 = vpop.permute.xlu1 %871  ;;  %11010 = vperm.xlu0 %11002, %v11587_v41  }
 0x139   : > { %v881_v22 = vmul.f32 %v872_v7, %v11550_v12  ;;  %v11730_v7 = vunpack.c.l.bf16 %v9590_v50  ;;  %v14006_v50 = vmov 14  }
 0x13b   : > { %2208 = vperm.xlu1 %10986, %v11593_v43   ;;  %v913_v12 = vadd.f32 %v909_v29, %v881_v22 }
 0x13c   : > { %11015 = vperm.xlu0 %11002, %v11583_v37   ;;  %v877_v16 = vpop.permute.xlu0 %876  ;;  %v862_v23 = vpop.permute.xlu1 %861 }
 0x13d   : > { %v882_v20 = vmul.f32 %v877_v16, %v11546_v8  ;;  %v908_v8 = vmul.f32 %v10893_v21, %v906_v10  ;;  %v879_v35 = vmul.f32 %v862_v23, %v11565_v19  ;;  %v13986_v21 = vmov 11  }
 0x13f   : > { %v914_v25 = vadd.f32 %v910_v18, %v882_v20  ;;  %2204 = vperm.xlu1 %10986, %v11591_v42   ;;  %v912_v56 = vadd.f32 %v908_v8, %v880_v31  ;;  %v14002_v8 = vmov 13  }
 0x140   : > { %2478 = vperm.xlu0 %11002, %v11607_v47   ;;  %v10897_v30 = vpop.permute.xlu0 %10896  ;;  %v918_v14 = vpop.permute.xlu1 %917 }
 0x141   : > { %v11706_v32 = vadd.f32 %v942_v24, %v914_v25  ;;  %v10899_v33 = vunpack.i.h.bf16 %v10897_v30  ;;  %v10898_v34 = vunpack.i.l.bf16 %v10897_v30  ;;  %v939_v61 = vmul.f32 %v11696_v11, %v918_v14 }
 0x142   : > { %v13990_v25 = vmov 12  }
 0x143   : > { %v907_v36 = vmul.f32 %v10899_v33, %v906_v10  ;;  %v941_v38 = vmul.f32 %v10898_v34, %v11696_v11  ;;  %2252 = vperm.xlu1 %10986, %v11603_v46   ;;  %10009 = vmatpush3.msra.mxu0 %v11706_v32  ;;  %v14012_v10 = vrot.slane %v11559_v17, 1 }
 0x144   : > { %11019 = vset.pattern.permute.xlu0 %v13994_v39  ;;  %v923_v49 = vpop.permute.xlu0 %922  ;;  %10010 = vmatprep.subr.mxu0 %v14020_v0 }
 0x145   : > { %v911_v57 = vadd.f32 %v907_v36, %v879_v35  ;;  %v940_v58 = vmul.f32 %v11696_v11, %v923_v49  ;;  %2660 = vperm.xlu0 %11019, %v11599_v45   ;;  %v11723_v19 = vadd.f32 %v941_v38, %v913_v12  ;;  %v11777_v16 = vpop.permute.xlu1 %10902 }
 0x146   : > { %v10904_v6 = vunpack.i.l.bf16 %v11777_v16 }
 0x147   : > { %v11726_v62 = vadd.f32 %v940_v58, %v912_v56  ;;  %11003 = vset.pattern.permute.xlu1 %v13996_v60  ;;  %10011 = vmatpush3.msra.mxu0 %v11723_v19  ;;  %v11736_v9 = vadd.f32 %v939_v61, %v911_v57 }
 0x148   : > { %11005 = vperm.xlu1 %11003, %v11585_v40   ;;  %10012 = vmatprep.subr.mxu0 %v14020_v0 }
 0x149   : > { %11027 = vperm.xlu0 %11019, %v11587_v41   ;;  %10013 = vmatpush3.msra.mxu0 %v11726_v62  ;;  %v11782_v18 = vpop.permute.xlu1 %1102  ;;  %v11809_v29 = vpop.permute.xlu0 %10908 }
 0x14a   : > { %10014 = vmatprep.subr.mxu0 %v14020_v0 }
 0x14b   : > { %10015 = vmatpush3.msra.mxu0 %v11736_v9 }
 0x14c   : > { %2434 = vperm.xlu1 %11003, %v11596_v44   ;;  %10017 = vmatmul.mubr.msk.f32.vlgmr.msra.gmra.mxu0 %vm785_vm2, %v11730_v7 }
 0x14d   : > { %10019 = vmatprep.subr.mxu0 %v14020_v0  ;;  %11032 = vperm.xlu0 %11019, %v11583_v37   ;;  %v11787_v20 = vpop.permute.xlu1 %1098  ;;  %v11816_v31 = vpop.permute.xlu0 %1106 }
 0x14e   : > { %10020 = vmatpush3.msra.mxu0 %v11706_v32  ;;  %10027 = vmatprep.mubr.msk.f32.mxu0 %vm11407_vm1, %v14020_v0  ;;  %v1112_v4 = vmul.f32 %v11816_v31, %v11706_v32 }
 0x14f   : > { %10021 = vmatprep.subr.mxu0 %v14020_v0 }
 0x150   : > { %10022 = vmatpush3.msra.mxu0 %v11723_v19  ;;  %2430 = vperm.xlu1 %11003, %v11593_v43  }
 0x151   : > { %10023 = vmatprep.subr.mxu0 %v14020_v0  ;;  %2700 = vperm.xlu0 %11019, %v11607_v47   ;;  %v11793_v22 = vpop.permute.xlu1 %1094  ;;  %v11823_v34 = vpop.permute.xlu0 %10913 }
 0x152   : > { %10024 = vmatpush3.msra.mxu0 %v11726_v62  ;;  %v10915_v11 = vunpack.i.l.bf16 %v11823_v34 }
 0x153   : > { %10025 = vmatprep.subr.mxu0 %v14020_v0 }
 0x154   : > { %10026 = vmatpush3.msra.mxu0 %v11736_v9  ;;  %2426 = vperm.xlu1 %11003, %v11591_v42  }
 0x155   : > { %10028 = vmatmul.mubr.msk.f32.vlgmr.msra.gmra.mxu0 %vm785_vm2, %v14012_v10  ;;  %11036 = vset.pattern.permute.xlu0 %v13992_v13  ;;  %v11798_v23 = vpop.permute.xlu1 %1142  ;;  %v11831_v35 = vpop.permute.xlu0 %1146 }
 0x156   : > { %2882 = vperm.xlu0 %11036, %v11599_v45   ;;  %10041 = vmatprep.subr.mxu0 %v14020_v0 }
 0x157   : > { %10049 = vmatprep.mubr.msk.f32.mxu0 %vm11407_vm1, %v14020_v0 }
 0x158   : > { %2474 = vperm.xlu1 %11003, %v11603_v46  }
 0x15a   : > { %11044 = vperm.xlu0 %11036, %v11587_v41   ;;  %v11804_v24 = vpop.permute.xlu1 %10919  ;;  %v11838_v38 = vpop.permute.xlu0 %10925 }
 0x15c   : > { %11020 = vset.pattern.permute.xlu1 %v13994_v39 }
 0x15d   : > { %11022 = vperm.xlu1 %11020, %v11585_v40  }
 0x15e   : > { %11049 = vperm.xlu0 %11036, %v11583_v37   ;;  %v11812_v30 = vpop.permute.xlu1 %1324  ;;  %v11845_v49 = vpop.permute.xlu0 %1328 }
 0x161   : > { %2656 = vperm.xlu1 %11020, %v11596_v44  }
 0x162   : > { %2922 = vperm.xlu0 %11036, %v11607_v47   ;;  %v11819_v33 = vpop.permute.xlu1 %1320  ;;  %v11853_v57 = vpop.permute.xlu0 %10930 }
 0x165   : > { %2652 = vperm.xlu1 %11020, %v11593_v43  }
 0x166   : > { %11053 = vset.pattern.permute.xlu0 %v13988_v15  ;;  %v11826_v12 = vpop.permute.xlu1 %1316  ;;  %v11861_v61 = vpop.permute.xlu0 %1368 }
 0x167   : > { %3104 = vperm.xlu0 %11053, %v11599_v45  }
 0x169   : > { %2648 = vperm.xlu1 %11020, %v11591_v42  }
 0x16a   : > { %v11834_v36 = vpop.permute.xlu1 %1364 }
 0x16b   : > { %11061 = vperm.xlu0 %11053, %v11587_v41  }
 0x16d   : > { %2696 = vperm.xlu1 %11020, %v11603_v46  }
 0x16f   : > { %11066 = vperm.xlu0 %11053, %v11583_v37   ;;  %v11841_v14 = vpop.permute.xlu1 %10936 }
 0x171   : > { %11037 = vset.pattern.permute.xlu1 %v13992_v13 }
 0x172   : > { %11039 = vperm.xlu1 %11037, %v11585_v40  }
 0x173   : > { %3144 = vperm.xlu0 %11053, %v11607_v47   ;;  %v11849_v56 = vpop.permute.xlu1 %1546 }
 0x176   : > { %2878 = vperm.xlu1 %11037, %v11596_v44  }
 0x177   : > { %11070 = vset.pattern.permute.xlu0 %v13986_v21  ;;  %v11857_v58 = vpop.permute.xlu1 %1542 }
 0x178   : > { %3326 = vperm.xlu0 %11070, %v11599_v45  }
 0x17a   : > { %2874 = vperm.xlu1 %11037, %v11593_v43  }
 0x17c   : > { %11078 = vperm.xlu0 %11070, %v11587_v41  }
 0x17e   : > { %2870 = vperm.xlu1 %11037, %v11591_v42  }
 0x180   : > { %11083 = vperm.xlu0 %11070, %v11583_v37  }
 0x182   : > { %2918 = vperm.xlu1 %11037, %v11603_v46  }
 0x184   : > { %3366 = vperm.xlu0 %11070, %v11607_v47  }
 0x186   : > { %11054 = vset.pattern.permute.xlu1 %v13988_v15  ;;  %v14013_v15 = vmov 15  }
 0x187   : > { %11056 = vperm.xlu1 %11054, %v11585_v40  }
 0x188   : > { %11087 = vset.pattern.permute.xlu0 %v13990_v25 }
 0x189   : > { %3548 = vperm.xlu0 %11087, %v11599_v45  }
 0x18b   : > { %3100 = vperm.xlu1 %11054, %v11596_v44  }
 0x18d   : > { %11095 = vperm.xlu0 %11087, %v11587_v41  }
 0x18f   : > { %3096 = vperm.xlu1 %11054, %v11593_v43  }
 0x191   : > { %11100 = vperm.xlu0 %11087, %v11583_v37  }
 0x193   : > { %3092 = vperm.xlu1 %11054, %v11591_v42  }
 0x195   : > { %3588 = vperm.xlu0 %11087, %v11607_v47  }
 0x197   : > { %3140 = vperm.xlu1 %11054, %v11603_v46  }
 0x199   : > { %11104 = vset.pattern.permute.xlu0 %v14002_v8 }
 0x19a   : > { %3770 = vperm.xlu0 %11104, %v11599_v45  }
 0x19b   : > { %11071 = vset.pattern.permute.xlu1 %v13986_v21  ;;  %v11864_v21 = vpop.permute.xlu1 %1538 }
 0x19c   : > { %11073 = vperm.xlu1 %11071, %v11585_v40  }
 0x19e   : > { %11112 = vperm.xlu0 %11104, %v11587_v41  }
 0x19f   : > { %v11872_v13 = vpop.permute.xlu1 %1586 }
 0x1a0   : > { %3322 = vperm.xlu1 %11071, %v11596_v44  }
 0x1a2   : > { %11117 = vperm.xlu0 %11104, %v11583_v37  }
 0x1a3   : > { %v11878_v60 = vpop.permute.xlu1 %10954 }
 0x1a4   : > { %3318 = vperm.xlu1 %11071, %v11593_v43  }
 0x1a6   : > { %3810 = vperm.xlu0 %11104, %v11607_v47  }
 0x1a8   : > { %3314 = vperm.xlu1 %11071, %v11591_v42  }
 0x1aa   : > { %11121 = vset.pattern.permute.xlu0 %v14006_v50 }
 0x1ab   : > { %3992 = vperm.xlu0 %11121, %v11599_v45  }
 0x1ac   : > { %3362 = vperm.xlu1 %11071, %v11603_v46  }
 0x1af   : > { %11129 = vperm.xlu0 %11121, %v11587_v41  }
 0x1b0   : > { %11088 = vset.pattern.permute.xlu1 %v13990_v25  ;;  %v11868_v25 = vpop.permute.xlu0 %10942 }
 0x1b1   : > { %11090 = vperm.xlu1 %11088, %v11585_v40  }
 0x1b3   : > { %11134 = vperm.xlu0 %11121, %v11583_v37  }
 0x1b4   : > { %v11876_v39 = vpop.permute.xlu0 %1550 }
 0x1b5   : > { %3544 = vperm.xlu1 %11088, %v11596_v44  }
 0x1b7   : > { %4032 = vperm.xlu0 %11121, %v11607_v47  }
 0x1b8   : > { %v11883_v55 = vpop.permute.xlu0 %10947 }
 0x1b9   : > { %3540 = vperm.xlu1 %11088, %v11593_v43  }
 0x1bb   : > { %11138 = vset.pattern.permute.xlu0 %v14013_v15 }
 0x1bc   : > { %4214 = vperm.xlu0 %11138, %v11599_v45   ;;  %v11886_v45 = vpop.permute.xlu1 %1768 }
 0x1bd   : > { %3536 = vperm.xlu1 %11088, %v11591_v42  }
 0x1c0   : > { %11146 = vperm.xlu0 %11138, %v11587_v41   ;;  %v11890_v41 = vpop.permute.xlu1 %1764 }
 0x1c1   : > { %3584 = vperm.xlu1 %11088, %v11603_v46  }
 0x1c4   : > { %11151 = vperm.xlu0 %11138, %v11583_v37   ;;  %v11893_v54 = vpop.permute.xlu1 %1760 }
 0x1c5   : > { %11105 = vset.pattern.permute.xlu1 %v14002_v8 }
 0x1c6   : > { %11107 = vperm.xlu1 %11105, %v11585_v40  }
 0x1c8   : > { %4254 = vperm.xlu0 %11138, %v11607_v47   ;;  %v11898_v37 = vpop.permute.xlu1 %1808 }
 0x1ca   : > { %3766 = vperm.xlu1 %11105, %v11596_v44  }
 0x1cc   : > { %v11901_v47 = vpop.permute.xlu1 %10971 }
 0x1ce   : > { %3762 = vperm.xlu1 %11105, %v11593_v43  }
 0x1d0   : > { %v11905_v8 = vpop.permute.xlu1 %1990 }
 0x1d2   : > { %3758 = vperm.xlu1 %11105, %v11591_v42  }
 0x1d4   : > { %v11908_v53 = vpop.permute.xlu1 %1986 }
 0x1d6   : > { %3806 = vperm.xlu1 %11105, %v11603_v46  }
 0x1da   : > { %11122 = vset.pattern.permute.xlu1 %v14006_v50  ;;  %v11912_v50 = vpop.permute.xlu1 %1982 }
 0x1db   : > { %11124 = vperm.xlu1 %11122, %v11585_v40  }
 0x1de   : > { %v11916_v52 = vpop.permute.xlu1 %2030 }
 0x1df   : > { %3988 = vperm.xlu1 %11122, %v11596_v44  }
 0x1e2   : > { %v11919_v51 = vpop.permute.xlu1 %10988 }
 0x1e3   : > { %3984 = vperm.xlu1 %11122, %v11593_v43  }
 0x1e7   : > { %3980 = vperm.xlu1 %11122, %v11591_v42  }
 0x1eb   : > { %4028 = vperm.xlu1 %11122, %v11603_v46  }
 0x1ef   : > { %11139 = vset.pattern.permute.xlu1 %v14013_v15 }
 0x1f0   : > { %11141 = vperm.xlu1 %11139, %v11585_v40   ;;  %v14022_v40 = vsub.s32 1, %v11679_v59 }
 0x1f4   : > { %4210 = vperm.xlu1 %11139, %v11596_v44   ;;  %v11929_v44 = vrot.slane %v11685_v63, %v14022_v40  ;;  %v10916_v40 = vunpack.i.h.bf16 %v11823_v34 }
 0x1f8   : > { %4206 = vperm.xlu1 %11139, %v11593_v43   ;;  %v10910_v43 = vunpack.i.l.bf16 %v11809_v29 }
 0x1fa   : > { %v1164_v2 = vmul.f32 %v10910_v43, %v11929_v44 }
 0x1fc   : > { %4202 = vperm.xlu1 %11139, %v11591_v42   ;;  %v10905_v42 = vunpack.i.h.bf16 %v11777_v16 }
 0x200   : > { %4250 = vperm.xlu1 %11139, %v11603_v46  }
 0x204   : > { %11160 = vset.pattern.permute.xlu1 %v14018_v28  ;;  %v1111_v28 = vmul.f32 %v11782_v18, %v11723_v19 }
 0x20c   : > { %v11923_v10 = vpop.f32.mrf.mxu0 }
 0x20e   : > { %v10018_v15 = vpop.f32.mrf.mxu0 }
 0x20f   : > { %v10911_v15 = vunpack.i.h.bf16 %v11809_v29  ;;  %v1109_v29 = vmul.f32 %v11793_v22, %v11736_v9  ;;  %v10922_v9 = vunpack.i.h.bf16 %v11804_v24  ;;  %v10927_v22 = vunpack.i.l.bf16 %v11838_v38 }
 0x215   : > { %v1089_v48 = vpop.f32.mrf.mxu0 }
 0x216   : > { %v1132_v46 = vrot.slane %v1089_v48, %v11688_v1  ;;  %v1110_v48 = vmul.f32 %v11787_v20, %v11726_v62 }
 0x217   : > { %v10029_v0 = vpop.f32.mrf.mxu0 }
 0x218   : > { %v1136_v27 = vmul.f32 %v10904_v6, %v1132_v46  ;;  %v1135_v5 = vmul.f32 %v10905_v42, %v1132_v46  ;;  %v1134_v16 = vmul.f32 %v10911_v15, %v1132_v46  ;;  %v1133_v18 = vmul.f32 %v10916_v40, %v1132_v46 }
 0x219   : > { %v1163_v0 = vmul.f32 %v10915_v11, %v11929_v44  ;;  %v1162_v6 = vmul.f32 %v11929_v44, %v11831_v35  ;;  %v14097_v42 = vmov 0.0   ;;  %v10921_v35 = vunpack.i.l.bf16 %v11804_v24 }
 0x21a   : > { %v1140_v26 = vadd.f32 %v1136_v27, %v1112_v4  ;;  %v1139_v19 = vadd.f32 %v1135_v5, %v1111_v28  ;;  %v1138_v31 = vadd.f32 %v1134_v16, %v1110_v48  ;;  %v1137_v43 = vadd.f32 %v1133_v18, %v1109_v29 }
 0x21b   : > { %v1161_v4 = vmul.f32 %v11929_v44, %v11798_v23  ;;  %v1381_v28 = vsub.s32 2, %v11679_v59  ;;  %v10928_v40 = vunpack.i.h.bf16 %v11838_v38  ;;  %v10933_v16 = vunpack.i.h.bf16 %v11853_v57 }
 0x21c   : > { %v1168_v32 = vadd.f32 %v1164_v2, %v1140_v26  ;;  %v1167_v34 = vadd.f32 %v1163_v0, %v1139_v19  ;;  %v1166_v5 = vadd.f32 %v1162_v6, %v1138_v31  ;;  %v14037_v2 = vrot.slane %v11730_v7, 1 }
 0x21d   : > { %v1242_v26 = vrot.slane %v11559_v17, 2  ;;  %v1165_v27 = vadd.f32 %v1161_v4, %v1137_v43  ;;  %v11979_v20 = vrot.slane %v11685_v63, %v1381_v28  ;;  %v10932_v48 = vunpack.i.l.bf16 %v11853_v57 }
 0x21e   : > { %10031 = vmatpush3.msra.mxu1 %v1168_v32  ;;  %10042 = vmatpush3.msra.mxu0 %v1168_v32  ;;  %v1334_v18 = vmul.f32 %v11845_v49, %v1168_v32  ;;  %v1333_v29 = vmul.f32 %v11812_v30, %v1167_v34  ;;  %v1332_v43 = vmul.f32 %v11819_v33, %v1166_v5 }
 0x21f   : > { %10032 = vmatprep.subr.mxu1 %v14097_v42  ;;  %10043 = vmatprep.subr.mxu0 %v14097_v42  ;;  %v1386_v6 = vmul.f32 %v10927_v22, %v11979_v20  ;;  %v1384_v49 = vmul.f32 %v11979_v20, %v11861_v61  ;;  %v1383_v33 = vmul.f32 %v11979_v20, %v11834_v36  ;;  %v14056_v61 = vrot.slane %v11559_v17, 3 }
 0x220   : > { %10033 = vmatpush3.msra.mxu1 %v1167_v34  ;;  %10044 = vmatpush3.msra.mxu0 %v1167_v34  ;;  %v1603_v36 = vsub.s32 3, %v11679_v59 }
 0x221   : > { %10034 = vmatprep.subr.mxu1 %v14097_v42  ;;  %10045 = vmatprep.subr.mxu0 %v14097_v42 }
 0x222   : > { %10035 = vmatpush3.msra.mxu1 %v1166_v5  ;;  %10046 = vmatpush3.msra.mxu0 %v1166_v5 }
 0x223   : > { %10036 = vmatprep.subr.mxu1 %v14097_v42  ;;  %10047 = vmatprep.subr.mxu0 %v14097_v42 }
 0x224   : > { %10037 = vmatpush3.msra.mxu1 %v1165_v27  ;;  %10048 = vmatpush3.msra.mxu0 %v1165_v27 }
 0x225   : > { %10039 = vmatmul.mubr.msk.f32.vlgmr.msra.gmra.mxu1 %vm785_vm2, %v14037_v2  ;;  %10050 = vmatmul.mubr.msk.f32.vlgmr.msra.gmra.mxu0 %vm785_vm2, %v1242_v26 }
 0x226   : > { %10052 = vmatprep.subr.mxu1 %v14097_v42  ;;  %10063 = vmatprep.subr.mxu0 %v14097_v42 }
 0x227   : > { %10060 = vmatprep.mubr.msk.f32.mxu1 %vm11407_vm1, %v14097_v42  ;;  %10071 = vmatprep.mubr.msk.f32.mxu0 %vm11407_vm1, %v14097_v42 }
 0x2e5   : > { %v11973_v11 = vpop.f32.mrf.mxu1  ;;  %v1311_v62 = vpop.f32.mrf.mxu0 }
 0x2e6   : > { %v1354_v23 = vrot.slane %v1311_v62, %v11688_v1  ;;  %v1385_v62 = vmul.f32 %v10932_v48, %v11979_v20 }
 0x2e7   : > { %v10051_v46 = vpop.f32.mrf.mxu0  ;;  %v10040_v15 = vpop.f32.mrf.mxu1 }
 0x2e8   : > { %v1357_v19 = vmul.f32 %v10922_v9, %v1354_v23  ;;  %v1356_v0 = vmul.f32 %v10928_v40, %v1354_v23  ;;  %v1358_v31 = vmul.f32 %v10921_v35, %v1354_v23  ;;  %v1355_v24 = vmul.f32 %v10933_v16, %v1354_v23 }
 0x2e9   : > { %v1331_v46 = vmul.f32 %v11826_v12, %v1165_v27  ;;  %v14035_v12 = vrot.slane %v11730_v7, 2  ;;  %v4355_v27 = vrot.slane %v11973_v11, 7  ;;  %v12022_v9 = vrot.slane %v11685_v63, %v1603_v36 }
 0x2ea   : > { %v1362_v4 = vadd.f32 %v1358_v31, %v1334_v18  ;;  %v1361_v38 = vadd.f32 %v1357_v19, %v1333_v29  ;;  %v1360_v57 = vadd.f32 %v1356_v0, %v1332_v43  ;;  %v10944_v35 = vunpack.i.l.bf16 %v11868_v25 }
 0x2eb   : > { %v1359_v32 = vadd.f32 %v1355_v24, %v1331_v46  ;;  %v10939_v40 = vunpack.i.h.bf16 %v11841_v14  ;;  %v10945_v19 = vunpack.i.h.bf16 %v11868_v25  ;;  %v10938_v11 = vunpack.i.l.bf16 %v11841_v14 }
 0x2ec   : > { %v1390_v15 = vadd.f32 %v1386_v6, %v1362_v4  ;;  %v1389_v30 = vadd.f32 %v1385_v62, %v1361_v38  ;;  %v1388_v34 = vadd.f32 %v1384_v49, %v1360_v57  ;;  %v4397_v18 = vsel %vm4396_vm3, %v11923_v10, %v4355_v27 }
 0x2ed   : > { %v1387_v5 = vadd.f32 %v1383_v33, %v1359_v32  ;;  %v10950_v31 = vunpack.i.h.bf16 %v11883_v55  ;;  %v10949_v6 = vunpack.i.l.bf16 %v11883_v55  ;;  %v1608_v14 = vmul.f32 %v10944_v35, %v12022_v9  ;;  %v1591_v32 = vpop.permute.xlu0 %1590 }
 0x2ee   : > { %10053 = vmatpush3.msra.mxu1 %v1390_v15  ;;  %10064 = vmatpush3.msra.mxu0 %v1390_v15  ;;  %v1556_v62 = vmul.f32 %v11876_v39, %v1390_v15  ;;  %v1555_v25 = vmul.f32 %v11849_v56, %v1389_v30  ;;  %v1554_v49 = vmul.f32 %v11857_v58, %v1388_v34  ;;  %v1825_v35 = vsub.s32 4, %v11679_v59 }
 0x2ef   : > { %10054 = vmatprep.subr.mxu1 %v14097_v42  ;;  %10065 = vmatprep.subr.mxu0 %v14097_v42  ;;  %v1607_v55 = vmul.f32 %v10949_v6, %v12022_v9  ;;  %v1605_v58 = vmul.f32 %v12022_v9, %v11872_v13  ;;  %v10956_v6 = vunpack.i.l.bf16 %v11878_v60 }
 0x2f0   : > { %10055 = vmatpush3.msra.mxu1 %v1389_v30  ;;  %10066 = vmatpush3.msra.mxu0 %v1389_v30  ;;  %v14055_v30 = vrot.slane %v11559_v17, 4 }
 0x2f1   : > { %10056 = vmatprep.subr.mxu1 %v14097_v42  ;;  %10067 = vmatprep.subr.mxu0 %v14097_v42  ;;  %v1773_v13 = vpop.permute.xlu0 %1772 }
 0x2f2   : > { %10057 = vmatpush3.msra.mxu1 %v1388_v34  ;;  %10068 = vmatpush3.msra.mxu0 %v1388_v34 }
 0x2f3   : > { %10058 = vmatprep.subr.mxu1 %v14097_v42  ;;  %10069 = vmatprep.subr.mxu0 %v14097_v42 }
 0x2f4   : > { %10059 = vmatpush3.msra.mxu1 %v1387_v5  ;;  %10070 = vmatpush3.msra.mxu0 %v1387_v5 }
 0x2f5   : > { %10061 = vmatmul.mubr.msk.f32.vlgmr.msra.gmra.mxu1 %vm785_vm2, %v14035_v12  ;;  %10072 = vmatmul.mubr.msk.f32.vlgmr.msra.gmra.mxu0 %vm785_vm2, %v14056_v61 }
 0x2f6   : > { %10074 = vmatprep.subr.mxu1 %v14097_v42  ;;  %10085 = vmatprep.subr.mxu0 %v14097_v42 }
 0x2f7   : > { %10082 = vmatprep.mubr.msk.f32.mxu1 %vm11407_vm1, %v14097_v42  ;;  %10093 = vmatprep.mubr.msk.f32.mxu0 %vm11407_vm1, %v14097_v42 }
 0x3b5   : > { %v1460_v22 = vpop.f32.mrf.mxu1  ;;  %v1533_v23 = vpop.f32.mrf.mxu0 }
 0x3b6   : > { %v4358_v16 = vrot.slane %v1460_v22, 6  ;;  %v1576_v48 = vrot.slane %v1533_v23, %v11688_v1  ;;  %v1553_v22 = vmul.f32 %v11864_v21, %v1387_v5  ;;  %v1606_v23 = vmul.f32 %v12022_v9, %v1591_v32  ;;  %v10960_v5 = vpop.permute.xlu0 %10959 }
 0x3b7   : > { %v10073_v29 = vpop.f32.mrf.mxu0  ;;  %v10062_v0 = vpop.f32.mrf.mxu1  ;;  %v14036_v21 = vrot.slane %v11730_v7, 3 }
 0x3b8   : > { %v12034_v43 = vsel %vm4398_vm4, %v4397_v18, %v4358_v16  ;;  %v1579_v24 = vmul.f32 %v10939_v40, %v1576_v48  ;;  %v1578_v4 = vmul.f32 %v10945_v19, %v1576_v48  ;;  %v1580_v38 = vmul.f32 %v10938_v11, %v1576_v48 }
 0x3b9   : > { %v1577_v46 = vmul.f32 %v10950_v31, %v1576_v48  ;;  %v12069_v16 = vrot.slane %v11685_v63, %v1825_v35  ;;  %v10961_v11 = vunpack.i.l.bf16 %v10960_v5  ;;  %v10957_v18 = vunpack.i.h.bf16 %v11878_v60 }
 0x3ba   : > { %v1584_v10 = vadd.f32 %v1580_v38, %v1556_v62  ;;  %v1583_v57 = vadd.f32 %v1579_v24, %v1555_v25  ;;  %v1582_v27 = vadd.f32 %v1578_v4, %v1554_v49  ;;  %v10965_v40 = vpop.permute.xlu0 %10964  ;;  %v10962_v31 = vunpack.i.h.bf16 %v10960_v5 }
 0x3bb   : > { %v1581_v56 = vadd.f32 %v1577_v46, %v1553_v22  ;;  %v10967_v38 = vunpack.i.h.bf16 %v10965_v40  ;;  %v10966_v62 = vunpack.i.l.bf16 %v10965_v40  ;;  %v1830_v32 = vmul.f32 %v10961_v11, %v12069_v16 }
 0x3bc   : > { %v1612_v33 = vadd.f32 %v1608_v14, %v1584_v10  ;;  %v1611_v39 = vadd.f32 %v1607_v55, %v1583_v57  ;;  %v1610_v15 = vadd.f32 %v1606_v23, %v1582_v27 }
 0x3bd   : > { %v1609_v34 = vadd.f32 %v1605_v58, %v1581_v56  ;;  %v1829_v56 = vmul.f32 %v10966_v62, %v12069_v16 }
 0x3be   : > { %10075 = vmatpush3.msra.mxu1 %v1612_v33  ;;  %10086 = vmatpush3.msra.mxu0 %v1612_v33  ;;  %v1778_v57 = vmul.f32 %v1773_v13, %v1612_v33  ;;  %v1777_v49 = vmul.f32 %v11886_v45, %v1611_v39  ;;  %v1776_v60 = vmul.f32 %v11890_v41, %v1610_v15  ;;  %v1813_v23 = vpop.permute.xlu0 %1812 }
 0x3bf   : > { %10076 = vmatprep.subr.mxu1 %v14097_v42  ;;  %10087 = vmatprep.subr.mxu0 %v14097_v42  ;;  %v1828_v40 = vmul.f32 %v12069_v16, %v1813_v23  ;;  %v1827_v41 = vmul.f32 %v12069_v16, %v11898_v37 }
 0x3c0   : > { %10077 = vmatpush3.msra.mxu1 %v1611_v39  ;;  %10088 = vmatpush3.msra.mxu0 %v1611_v39 }
 0x3c1   : > { %10078 = vmatprep.subr.mxu1 %v14097_v42  ;;  %10089 = vmatprep.subr.mxu0 %v14097_v42 }
 0x3c2   : > { %10079 = vmatpush3.msra.mxu1 %v1610_v15  ;;  %10090 = vmatpush3.msra.mxu0 %v1610_v15  ;;  %v14054_v15 = vrot.slane %v11559_v17, 5  ;;  %v1995_v37 = vpop.permute.xlu0 %1994 }
 0x3c3   : > { %10080 = vmatprep.subr.mxu1 %v14097_v42  ;;  %10091 = vmatprep.subr.mxu0 %v14097_v42 }
 0x3c4   : > { %10081 = vmatpush3.msra.mxu1 %v1609_v34  ;;  %10092 = vmatpush3.msra.mxu0 %v1609_v34 }
 0x3c5   : > { %10083 = vmatmul.mubr.msk.f32.vlgmr.msra.gmra.mxu1 %vm785_vm2, %v14036_v21  ;;  %10094 = vmatmul.mubr.msk.f32.vlgmr.msra.gmra.mxu0 %vm785_vm2, %v14055_v30 }
 0x3c6   : > { %10096 = vmatprep.subr.mxu1 %v14097_v42  ;;  %10107 = vmatprep.subr.mxu0 %v14097_v42  ;;  %v10977_v13 = vpop.permute.xlu0 %10976 }
 0x3c7   : > { %10104 = vmatprep.mubr.msk.f32.mxu1 %vm11407_vm1, %v14097_v42  ;;  %10115 = vmatprep.mubr.msk.f32.mxu0 %vm11407_vm1, %v14097_v42 }
 0x485   : > { %v1682_v48 = vpop.f32.mrf.mxu1  ;;  %v1755_v19 = vpop.f32.mrf.mxu0 }
 0x486   : > { %v4361_v29 = vrot.slane %v1682_v48, 5  ;;  %v1798_v0 = vrot.slane %v1755_v19, %v11688_v1  ;;  %v2047_v48 = vsub.s32 5, %v11679_v59  ;;  %v10982_v19 = vpop.permute.xlu0 %10981 }
 0x487   : > { %v10095_v24 = vpop.f32.mrf.mxu0  ;;  %v10084_v4 = vpop.f32.mrf.mxu1 }
 0x488   : > { %v12076_v25 = vsel %vm4400_vm5, %v12034_v43, %v4361_v29  ;;  %v1801_v14 = vmul.f32 %v10957_v18, %v1798_v0  ;;  %v1800_v46 = vmul.f32 %v10962_v31, %v1798_v0  ;;  %v1802_v10 = vmul.f32 %v10956_v6, %v1798_v0 }
 0x489   : > { %v1799_v55 = vmul.f32 %v10967_v38, %v1798_v0  ;;  %v1775_v43 = vmul.f32 %v11893_v54, %v1609_v34  ;;  %v14034_v54 = vrot.slane %v11730_v7, 4  ;;  %v12110_v11 = vrot.slane %v11685_v63, %v2047_v48 }
 0x48a   : > { %v1806_v27 = vadd.f32 %v1802_v10, %v1778_v57  ;;  %v1805_v22 = vadd.f32 %v1801_v14, %v1777_v49  ;;  %v1804_v5 = vadd.f32 %v1800_v46, %v1776_v60  ;;  %v10978_v0 = vunpack.i.l.bf16 %v10977_v13 }
 0x48b   : > { %v1803_v45 = vadd.f32 %v1799_v55, %v1775_v43  ;;  %v10974_v31 = vunpack.i.h.bf16 %v11901_v47  ;;  %v10979_v4 = vunpack.i.h.bf16 %v10977_v13  ;;  %v10973_v38 = vunpack.i.l.bf16 %v11901_v47  ;;  %v2035_v43 = vpop.permute.xlu0 %2034 }
 0x48c   : > { %v1834_v58 = vadd.f32 %v1830_v32, %v1806_v27  ;;  %v1833_v33 = vadd.f32 %v1829_v56, %v1805_v22  ;;  %v1832_v39 = vadd.f32 %v1828_v40, %v1804_v5  ;;  %v10984_v46 = vunpack.i.h.bf16 %v10982_v19 }
 0x48d   : > { %v1831_v34 = vadd.f32 %v1827_v41, %v1803_v45  ;;  %v10983_v10 = vunpack.i.l.bf16 %v10982_v19  ;;  %v2052_v60 = vmul.f32 %v10978_v0, %v12110_v11  ;;  %v2050_v13 = vmul.f32 %v12110_v11, %v2035_v43 }
 0x48e   : > { %10097 = vmatpush3.msra.mxu1 %v1834_v58  ;;  %10108 = vmatpush3.msra.mxu0 %v1834_v58  ;;  %v2000_v27 = vmul.f32 %v1995_v37, %v1834_v58  ;;  %v1999_v22 = vmul.f32 %v11905_v8, %v1833_v33  ;;  %v1998_v47 = vmul.f32 %v11908_v53, %v1832_v39  ;;  %v2213_v37 = vpop.permute.xlu1 %2212 }
 0x48f   : > { %10098 = vmatprep.subr.mxu1 %v14097_v42  ;;  %10109 = vmatprep.subr.mxu0 %v14097_v42  ;;  %v2051_v40 = vmul.f32 %v10983_v10, %v12110_v11  ;;  %v2049_v53 = vmul.f32 %v12110_v11, %v11916_v52  ;;  %v2217_v52 = vpop.permute.xlu0 %2216  ;;  %v10990_v10 = vunpack.i.l.bf16 %v11919_v51 }
 0x490   : > { %10099 = vmatpush3.msra.mxu1 %v1833_v33  ;;  %10110 = vmatpush3.msra.mxu0 %v1833_v33 }
 0x491   : > { %10100 = vmatprep.subr.mxu1 %v14097_v42  ;;  %10111 = vmatprep.subr.mxu0 %v14097_v42 }
 0x492   : > { %10101 = vmatpush3.msra.mxu1 %v1832_v39  ;;  %10112 = vmatpush3.msra.mxu0 %v1832_v39  ;;  %v14053_v39 = vrot.slane %v11559_v17, 6 }
 0x493   : > { %10102 = vmatprep.subr.mxu1 %v14097_v42  ;;  %10113 = vmatprep.subr.mxu0 %v14097_v42  ;;  %v10994_v19 = vpop.permute.xlu0 %10993 }
 0x494   : > { %10103 = vmatpush3.msra.mxu1 %v1831_v34  ;;  %10114 = vmatpush3.msra.mxu0 %v1831_v34 }
 0x495   : > { %10105 = vmatmul.mubr.msk.f32.vlgmr.msra.gmra.mxu1 %vm785_vm2, %v14034_v54  ;;  %10116 = vmatmul.mubr.msk.f32.vlgmr.msra.gmra.mxu0 %vm785_vm2, %v14054_v15 }
 0x496   : > { %10118 = vmatprep.subr.mxu1 %v14097_v42  ;;  %10129 = vmatprep.subr.mxu0 %v14097_v42 }
 0x497   : > { %10126 = vmatprep.mubr.msk.f32.mxu1 %vm11407_vm1, %v14097_v42  ;;  %10137 = vmatprep.mubr.msk.f32.mxu0 %vm11407_vm1, %v14097_v42  ;;  %v10999_v0 = vpop.permute.xlu0 %10998 }
 0x555   : > { %v1904_v18 = vpop.f32.mrf.mxu1  ;;  %v1977_v29 = vpop.f32.mrf.mxu0 }
 0x556   : > { %v4364_v6 = vrot.slane %v1904_v18, 4  ;;  %v2020_v24 = vrot.slane %v1977_v29, %v11688_v1  ;;  %v2269_v18 = vsub.s32 6, %v11679_v59  ;;  %v2209_v29 = vpop.permute.xlu1 %2208 }
 0x557   : > { %v10117_v62 = vpop.f32.mrf.mxu0  ;;  %v10106_v14 = vpop.f32.mrf.mxu1 }
 0x558   : > { %v12117_v57 = vsel %vm4402_vm6, %v12076_v25, %v4364_v6  ;;  %v2023_v49 = vmul.f32 %v10974_v31, %v2020_v24  ;;  %v2022_v32 = vmul.f32 %v10979_v4, %v2020_v24  ;;  %v2024_v55 = vmul.f32 %v10973_v38, %v2020_v24 }
 0x559   : > { %v2021_v23 = vmul.f32 %v10984_v46, %v2020_v24  ;;  %v1997_v25 = vmul.f32 %v11912_v50, %v1831_v34  ;;  %v14033_v50 = vrot.slane %v11730_v7, 5  ;;  %v12151_v31 = vrot.slane %v11685_v63, %v2269_v18 }
 0x55a   : > { %v2028_v56 = vadd.f32 %v2024_v55, %v2000_v27  ;;  %v2027_v5 = vadd.f32 %v2023_v49, %v1999_v22  ;;  %v2026_v41 = vadd.f32 %v2022_v32, %v1998_v47  ;;  %v10995_v4 = vunpack.i.l.bf16 %v10994_v19  ;;  %v2205_v22 = vpop.permute.xlu1 %2204 }
 0x55b   : > { %v2025_v8 = vadd.f32 %v2021_v23, %v1997_v25  ;;  %v10991_v38 = vunpack.i.h.bf16 %v11919_v51  ;;  %v10996_v46 = vunpack.i.h.bf16 %v10994_v19  ;;  %v11001_v55 = vunpack.i.h.bf16 %v10999_v0 }
 0x55c   : > { %v2056_v45 = vadd.f32 %v2052_v60, %v2028_v56  ;;  %v2055_v58 = vadd.f32 %v2051_v40, %v2027_v5  ;;  %v2054_v33 = vadd.f32 %v2050_v13, %v2026_v41  ;;  %v11000_v27 = vunpack.i.l.bf16 %v10999_v0 }
 0x55d   : > { %v2053_v34 = vadd.f32 %v2049_v53, %v2025_v8  ;;  %v2274_v40 = vmul.f32 %v10995_v4, %v12151_v31  ;;  %v2257_v8 = vpop.permute.xlu0 %2256 }
 0x55e   : > { %10119 = vmatpush3.msra.mxu1 %v2056_v45  ;;  %10130 = vmatpush3.msra.mxu0 %v2056_v45  ;;  %v2222_v47 = vmul.f32 %v2217_v52, %v2056_v45  ;;  %v2221_v43 = vmul.f32 %v2213_v37, %v2055_v58  ;;  %v2220_v51 = vmul.f32 %v2209_v29, %v2054_v33  ;;  %v14052_v52 = vrot.slane %v11559_v17, 7 }
 0x55f   : > { %10120 = vmatprep.subr.mxu1 %v14097_v42  ;;  %10131 = vmatprep.subr.mxu0 %v14097_v42  ;;  %v2273_v53 = vmul.f32 %v11000_v27, %v12151_v31 }
 0x560   : > { %10121 = vmatpush3.msra.mxu1 %v2055_v58  ;;  %10132 = vmatpush3.msra.mxu0 %v2055_v58 }
 0x561   : > { %10122 = vmatprep.subr.mxu1 %v14097_v42  ;;  %10133 = vmatprep.subr.mxu0 %v14097_v42  ;;  %v2439_v4 = vpop.permute.xlu0 %2438 }
 0x562   : > { %10123 = vmatpush3.msra.mxu1 %v2054_v33  ;;  %10134 = vmatpush3.msra.mxu0 %v2054_v33 }
 0x563   : > { %10124 = vmatprep.subr.mxu1 %v14097_v42  ;;  %10135 = vmatprep.subr.mxu0 %v14097_v42 }
 0x564   : > { %10125 = vmatpush3.msra.mxu1 %v2053_v34  ;;  %10136 = vmatpush3.msra.mxu0 %v2053_v34 }
 0x565   : > { %10127 = vmatmul.mubr.msk.f32.vlgmr.msra.gmra.mxu1 %vm785_vm2, %v14033_v50  ;;  %10138 = vmatmul.mubr.msk.f32.vlgmr.msra.gmra.mxu0 %vm785_vm2, %v14053_v39 }
 0x566   : > { %10140 = vmatprep.subr.mxu1 %v14097_v42  ;;  %10151 = vmatprep.subr.mxu0 %v14097_v42 }
 0x567   : > { %10148 = vmatprep.mubr.msk.f32.mxu1 %vm11407_vm1, %v14097_v42  ;;  %10159 = vmatprep.mubr.msk.f32.mxu0 %vm11407_vm1, %v14097_v42 }
 0x625   : > { %v2126_v6 = vpop.f32.mrf.mxu1  ;;  %v2199_v24 = vpop.f32.mrf.mxu0 }
 0x626   : > { %v4367_v62 = vrot.slane %v2126_v6, 3  ;;  %v2242_v14 = vrot.slane %v2199_v24, %v11688_v1  ;;  %v2219_v6 = vmul.f32 %v2205_v22, %v2053_v34  ;;  %v2253_v24 = vpop.permute.xlu1 %2252  ;;  %v14031_v34 = vrot.slane %v11730_v7, 6 }
 0x627   : > { %v10139_v49 = vpop.f32.mrf.mxu0  ;;  %v10128_v32 = vpop.f32.mrf.mxu1  ;;  %v2271_v58 = vmul.f32 %v12151_v31, %v2253_v24 }
 0x628   : > { %v12158_v60 = vsel %vm4404_vm7, %v12117_v57, %v4367_v62  ;;  %v2245_v23 = vmul.f32 %v10991_v38, %v2242_v14  ;;  %v2244_v56 = vmul.f32 %v10996_v46, %v2242_v14  ;;  %v2246_v5 = vmul.f32 %v10990_v10, %v2242_v14 }
 0x629   : > { %v2243_v41 = vmul.f32 %v11001_v55, %v2242_v14  ;;  %v2272_v57 = vmul.f32 %v12151_v31, %v2257_v8  ;;  %v11011_v14 = vpop.permute.xlu0 %11010  ;;  %v2491_v46 = vsub.s32 7, %v11679_v59 }
 0x62a   : > { %v2250_v25 = vadd.f32 %v2246_v5, %v2222_v47  ;;  %v2249_v13 = vadd.f32 %v2245_v23, %v2221_v43  ;;  %v2248_v0 = vadd.f32 %v2244_v56, %v2220_v51  ;;  %v11006_v29 = vpop.permute.xlu1 %11005  ;;  %v11012_v22 = vunpack.i.l.bf16 %v11011_v14 }
 0x62b   : > { %v2247_v45 = vadd.f32 %v2243_v41, %v2219_v6  ;;  %v12188_v32 = vrot.slane %v11685_v63, %v2491_v46  ;;  %v11008_v23 = vunpack.i.h.bf16 %v11006_v29  ;;  %v11013_v47 = vunpack.i.h.bf16 %v11011_v14 }
 0x62c   : > { %v2278_v19 = vadd.f32 %v2274_v40, %v2250_v25  ;;  %v2277_v38 = vadd.f32 %v2273_v53, %v2249_v13  ;;  %v2276_v33 = vadd.f32 %v2272_v57, %v2248_v0  ;;  %v11007_v43 = vunpack.i.l.bf16 %v11006_v29 }
 0x62d   : > { %v2275_v37 = vadd.f32 %v2271_v58, %v2247_v45  ;;  %v11016_v49 = vpop.permute.xlu0 %11015  ;;  %v2496_v45 = vmul.f32 %v11012_v22, %v12188_v32 }
 0x62e   : > { %10141 = vmatpush3.msra.mxu1 %v2278_v19  ;;  %10152 = vmatpush3.msra.mxu0 %v2278_v19  ;;  %v2435_v62 = vpop.permute.xlu1 %2434  ;;  %v11018_v25 = vunpack.i.h.bf16 %v11016_v49  ;;  %v11017_v13 = vunpack.i.l.bf16 %v11016_v49  ;;  %v2444_v24 = vmul.f32 %v2439_v4, %v2278_v19 }
 0x62f   : > { %10142 = vmatprep.subr.mxu1 %v14097_v42  ;;  %10153 = vmatprep.subr.mxu0 %v14097_v42  ;;  %v2443_v57 = vmul.f32 %v2435_v62, %v2277_v38  ;;  %v11379_v62 = vld [vmem:[%s11528_s27] sm:$0xff]  }
 0x630   : > { %10143 = vmatpush3.msra.mxu1 %v2277_v38  ;;  %10154 = vmatpush3.msra.mxu0 %v2277_v38 }
 0x631   : > { %10144 = vmatprep.subr.mxu1 %v14097_v42  ;;  %10155 = vmatprep.subr.mxu0 %v14097_v42 }
 0x632   : > { %10145 = vmatpush3.msra.mxu1 %v2276_v33  ;;  %10156 = vmatpush3.msra.mxu0 %v2276_v33  ;;  %v2431_v10 = vpop.permute.xlu1 %2430 }
 0x633   : > { %10146 = vmatprep.subr.mxu1 %v14097_v42  ;;  %10157 = vmatprep.subr.mxu0 %v14097_v42  ;;  %v2442_v29 = vmul.f32 %v2431_v10, %v2276_v33  ;;  %v12202_v10 = vunpack.c.h.bf16 %v11379_v62 }
 0x634   : > { %10147 = vmatpush3.msra.mxu1 %v2275_v37  ;;  %10158 = vmatpush3.msra.mxu0 %v2275_v37 }
 0x635   : > { %10149 = vmatmul.mubr.msk.f32.vlgmr.msra.gmra.mxu1 %vm785_vm2, %v14031_v34  ;;  %10160 = vmatmul.mubr.msk.f32.vlgmr.msra.gmra.mxu0 %vm785_vm2, %v14052_v52 }
 0x636   : > { %10162 = vmatprep.subr.mxu1 %v14097_v42  ;;  %10173 = vmatprep.subr.mxu0 %v14097_v42  ;;  %v2427_v51 = vpop.permute.xlu1 %2426 }
 0x637   : > { %10170 = vmatprep.mubr.msk.f32.mxu1 %vm11407_vm1, %v14097_v42  ;;  %10181 = vmatprep.mubr.msk.f32.mxu0 %vm11407_vm1, %v14097_v42  ;;  %v2441_v34 = vmul.f32 %v2427_v51, %v2275_v37  ;;  %v14032_v37 = vrot.slane %v11730_v7, 7 }
 0x6f5   : > { %v2348_v55 = vpop.f32.mrf.mxu1  ;;  %v2421_v27 = vpop.f32.mrf.mxu0 }
 0x6f6   : > { %v4370_v56 = vrot.slane %v2348_v55, 2  ;;  %v2464_v5 = vrot.slane %v2421_v27, %v11688_v1  ;;  %v2479_v27 = vpop.permute.xlu0 %2478 }
 0x6f7   : > { %v10161_v40 = vpop.f32.mrf.mxu0  ;;  %v10150_v41 = vpop.f32.mrf.mxu1 }
 0x6f8   : > { %v12193_v8 = vsel %vm4406_vm8, %v12158_v60, %v4370_v56  ;;  %v2467_v53 = vmul.f32 %v11008_v23, %v2464_v5  ;;  %v2466_v0 = vmul.f32 %v11013_v47, %v2464_v5  ;;  %v2468_v6 = vmul.f32 %v11007_v43, %v2464_v5  ;;  %v2475_v60 = vpop.permute.xlu1 %2474 }
 0x6f9   : > { %v2465_v58 = vmul.f32 %v11018_v25, %v2464_v5  ;;  %v2495_v40 = vmul.f32 %v11017_v13, %v12188_v32  ;;  %v2494_v23 = vmul.f32 %v12188_v32, %v2479_v27  ;;  %v2493_v33 = vmul.f32 %v12188_v32, %v2475_v60  ;;  %v11380_v25 = vld [vmem:[%s11676_s17] sm:$0xff]  }
 0x6fa   : > { %v2472_v55 = vadd.f32 %v2468_v6, %v2444_v24  ;;  %v2471_v14 = vadd.f32 %v2467_v53, %v2443_v57  ;;  %v2470_v41 = vadd.f32 %v2466_v0, %v2442_v29  ;;  %v2661_v56 = vpop.permute.xlu0 %2660  ;;  %v12221_v13 = vunpack.c.h.bf16 %v11380_v25 }
 0x6fb   : > { %v2469_v38 = vadd.f32 %v2465_v58, %v2441_v34 }
 0x6fc   : > { %v2500_v49 = vadd.f32 %v2496_v45, %v2472_v55  ;;  %v2499_v19 = vadd.f32 %v2495_v40, %v2471_v14  ;;  %v2498_v4 = vadd.f32 %v2494_v23, %v2470_v41  ;;  %v11023_v22 = vpop.permute.xlu1 %11022  ;;  %14098 = vst [vmem:[#allocation9_spill] sm:$0xff] %v12221_v13  ;;  %v12225_v53 = vrot.slane %v12221_v13, %v11688_v1 }
 0x6fd   : > { %v2497_v34 = vadd.f32 %v2493_v33, %v2469_v38  ;;  %v11025_v24 = vunpack.i.h.bf16 %v11023_v22  ;;  %v11024_v58 = vunpack.i.l.bf16 %v11023_v22 }
 0x6fe   : > { %10163 = vmatpush3.msra.mxu1 %v2500_v49  ;;  %10174 = vmatpush3.msra.mxu0 %v2500_v49  ;;  %v11028_v47 = vpop.permute.xlu0 %11027  ;;  %v2666_v25 = vmul.f32 %v2661_v56, %v2500_v49 }
 0x6ff   : > { %10164 = vmatprep.subr.mxu1 %v14097_v42  ;;  %10175 = vmatprep.subr.mxu0 %v14097_v42  ;;  %v11030_v0 = vunpack.i.h.bf16 %v11028_v47  ;;  %v11029_v6 = vunpack.i.l.bf16 %v11028_v47 }
 0x700   : > { %10165 = vmatpush3.msra.mxu1 %v2499_v19  ;;  %10176 = vmatpush3.msra.mxu0 %v2499_v19  ;;  %v2657_v5 = vpop.permute.xlu1 %2656 }
 0x701   : > { %10166 = vmatprep.subr.mxu1 %v14097_v42  ;;  %10177 = vmatprep.subr.mxu0 %v14097_v42  ;;  %v2665_v60 = vmul.f32 %v2657_v5, %v2499_v19  ;;  %v2718_v47 = vmul.f32 %v11029_v6, %v12225_v53 }
 0x702   : > { %10167 = vmatpush3.msra.mxu1 %v2498_v4  ;;  %10178 = vmatpush3.msra.mxu0 %v2498_v4  ;;  %v11033_v51 = vpop.permute.xlu0 %11032 }
 0x703   : > { %10168 = vmatprep.subr.mxu1 %v14097_v42  ;;  %10179 = vmatprep.subr.mxu0 %v14097_v42  ;;  %v11035_v27 = vunpack.i.h.bf16 %v11033_v51  ;;  %v11034_v40 = vunpack.i.l.bf16 %v11033_v51 }
 0x704   : > { %10169 = vmatpush3.msra.mxu1 %v2497_v34  ;;  %10180 = vmatpush3.msra.mxu0 %v2497_v34  ;;  %v2653_v43 = vpop.permute.xlu1 %2652 }
 0x705   : > { %10171 = vmatmul.mubr.msk.f32.vlgmr.msra.gmra.mxu1 %vm785_vm2, %v14032_v37  ;;  %10182 = vmatmul.mubr.msk.f32.vlgmr.msra.gmra.mxu0 %vm785_vm2, %v12202_v10  ;;  %v2717_v51 = vmul.f32 %v11034_v40, %v12225_v53  ;;  %v14101_v40 = vsub.s32 1, %v11679_v59 }
 0x706   : > { %10184 = vmatprep.subr.mxu1 %v14097_v42  ;;  %10195 = vmatprep.subr.mxu0 %v14097_v42  ;;  %v2701_v54 = vpop.permute.xlu0 %2700 }
 0x707   : > { %10203 = vmatprep.mubr.msk.f32.mxu0 %vm11407_vm1, %v14097_v42  ;;  %10192 = vmatprep.mubr.msk.f32.mxu1 %vm11407_vm1, %v14097_v42  ;;  %v2716_v49 = vmul.f32 %v12225_v53, %v2701_v54  ;;  %v11381_v54 = vld [vmem:[%s11712_s24] sm:$0xff]   ;;  %s640_s24 = scalar_lea.vmem %s13985_s11, %s11518_s21 }
 0x708   : > { %v2649_v55 = vpop.permute.xlu1 %2648 }
 0x709   : > { %v2663_v5 = vmul.f32 %v2649_v55, %v2497_v34  ;;  %v14038_v34 = vrot.slane %v12202_v10, 1 }
 0x7c5   : > { %v2570_v57 = vpop.f32.mrf.mxu1  ;;  %v2643_v45 = vpop.f32.mrf.mxu0 }
 0x7c6   : > { %v4373_v14 = vrot.slane %v2570_v57, 1  ;;  %v2686_v29 = vrot.slane %v2643_v45, %v11688_v1  ;;  %v2664_v45 = vmul.f32 %v2653_v43, %v2498_v4  ;;  %v12242_v43 = vunpack.c.h.bf16 %v11381_v54 }
 0x7c7   : > { %v10183_v41 = vpop.f32.mrf.mxu0  ;;  %v10172_v23 = vpop.f32.mrf.mxu1 }
 0x7c8   : > { %v2688_v38 = vmul.f32 %v11030_v0, %v2686_v29  ;;  %v2689_v33 = vmul.f32 %v11025_v24, %v2686_v29  ;;  %v2690_v62 = vmul.f32 %v11024_v58, %v2686_v29  ;;  %v12231_v37 = vsel %vm4408_vm9, %v12193_v8, %v4373_v14  ;;  %v2697_v0 = vpop.permute.xlu1 %2696  ;;  %14100 = vst [vmem:[#allocation11_spill] sm:$0xff] %v12242_v43  ;;  %v2883_v58 = vpop.permute.xlu0 %2882 }
 0x7c9   : > { %14099 = vst [vmem:[#allocation10_spill] sm:$0xff] %v12231_v37  ;;  %v2687_v22 = vmul.f32 %v11035_v27, %v2686_v29  ;;  %v2715_v8 = vmul.f32 %v12225_v53, %v2697_v0 }
 0x7ca   : > { %v2694_v57 = vadd.f32 %v2690_v62, %v2666_v25  ;;  %v2693_v50 = vadd.f32 %v2689_v33, %v2665_v60  ;;  %v2692_v19 = vadd.f32 %v2688_v38, %v2664_v45  ;;  %v12260_v60 = vrot.slane %v12221_v13, %v14101_v40 }
 0x7cb   : > { %v2691_v6 = vadd.f32 %v2687_v22, %v2663_v5 }
 0x7cc   : > { %v2722_v41 = vadd.f32 %v2718_v47, %v2694_v57  ;;  %v2721_v56 = vadd.f32 %v2717_v51, %v2693_v50  ;;  %v2720_v4 = vadd.f32 %v2716_v49, %v2692_v19  ;;  %v11040_v24 = vpop.permute.xlu1 %11039  ;;  %v11045_v14 = vpop.permute.xlu0 %11044 }
 0x7cd   : > { %v2719_v50 = vadd.f32 %v2715_v8, %v2691_v6  ;;  %v11046_v23 = vunpack.i.l.bf16 %v11045_v14  ;;  %v11047_v33 = vunpack.i.h.bf16 %v11045_v14  ;;  %v11042_v62 = vunpack.i.h.bf16 %v11040_v24 }
 0x7ce   : > { %10185 = vmatpush3.msra.mxu1 %v2722_v41  ;;  %10196 = vmatpush3.msra.mxu0 %v2722_v41  ;;  %v11041_v25 = vunpack.i.l.bf16 %v11040_v24  ;;  %v2888_v19 = vmul.f32 %v2883_v58, %v2722_v41 }
 0x7cf   : > { %10186 = vmatprep.subr.mxu1 %v14097_v42  ;;  %10197 = vmatprep.subr.mxu0 %v14097_v42  ;;  %v2940_v8 = vmul.f32 %v11046_v23, %v12260_v60 }
 0x7d0   : > { %10187 = vmatpush3.msra.mxu1 %v2721_v56  ;;  %10198 = vmatpush3.msra.mxu0 %v2721_v56  ;;  %v2879_v55 = vpop.permute.xlu1 %2878  ;;  %v11050_v27 = vpop.permute.xlu0 %11049 }
 0x7d1   : > { %10188 = vmatprep.subr.mxu1 %v14097_v42  ;;  %10199 = vmatprep.subr.mxu0 %v14097_v42  ;;  %v11052_v22 = vunpack.i.h.bf16 %v11050_v27  ;;  %v11051_v57 = vunpack.i.l.bf16 %v11050_v27  ;;  %v2887_v6 = vmul.f32 %v2879_v55, %v2721_v56 }
 0x7d2   : > { %10189 = vmatpush3.msra.mxu1 %v2720_v4  ;;  %10200 = vmatpush3.msra.mxu0 %v2720_v4 }
 0x7d3   : > { %10190 = vmatprep.subr.mxu1 %v14097_v42  ;;  %10201 = vmatprep.subr.mxu0 %v14097_v42  ;;  %v2939_v24 = vmul.f32 %v11051_v57, %v12260_v60 }
 0x7d4   : > { %10191 = vmatpush3.msra.mxu1 %v2719_v50  ;;  %10202 = vmatpush3.msra.mxu0 %v2719_v50  ;;  %v2875_v29 = vpop.permute.xlu1 %2874  ;;  %v2923_v14 = vpop.permute.xlu0 %2922 }
 0x7d5   : > { %10204 = vmatmul.mubr.msk.f32.vlgmr.msra.gmra.mxu0 %vm785_vm2, %v14038_v34  ;;  %10206 = vmatprep.subr.mxu1 %v14097_v42  ;;  %v2886_v21 = vmul.f32 %v2875_v29, %v2720_v4 }
 0x7d6   : > { %10217 = vmatprep.subr.mxu0 %v14097_v42  ;;  %10193 = vmatmul.mubr.msk.f32.vlgmr.msra.gmra.mxu1 %vm785_vm2, %v12242_v43 }
 0x7d7   : > { %10225 = vmatprep.mubr.msk.f32.mxu0 %vm11407_vm1, %v14097_v42  ;;  %10214 = vmatprep.mubr.msk.f32.mxu1 %vm11407_vm1, %v14097_v42 }
 0x7d8   : > { %v2871_v45 = vpop.permute.xlu1 %2870  ;;  %v3105_v55 = vpop.permute.xlu0 %3104 }
 0x7d9   : > { %v2885_v34 = vmul.f32 %v2871_v45, %v2719_v50 }
 0x7dc   : > { %v2919_v27 = vpop.permute.xlu1 %2918  ;;  %v11062_v23 = vpop.permute.xlu0 %11061 }
 0x7dd   : > { %v2937_v56 = vmul.f32 %v12260_v60, %v2919_v27  ;;  %v11064_v57 = vunpack.i.h.bf16 %v11062_v23 }
 0x895   : > { %v2865_v38 = vpop.f32.mrf.mxu0 }
 0x896   : > { %v2908_v47 = vrot.slane %v2865_v38, %v11688_v1 }
 0x897   : > { %v10205_v51 = vpop.f32.mrf.mxu0 }
 0x898   : > { %v2910_v5 = vmul.f32 %v11047_v33, %v2908_v47  ;;  %v2911_v0 = vmul.f32 %v11042_v62, %v2908_v47  ;;  %v2912_v49 = vmul.f32 %v11041_v25, %v2908_v47  ;;  %v2909_v54 = vmul.f32 %v11052_v22, %v2908_v47  ;;  %v11067_v62 = vpop.permute.xlu0 %11066 }
 0x899   : > { %v2938_v51 = vmul.f32 %v12260_v60, %v2923_v14  ;;  %v12290_v25 = vrot.slane %v12221_v13, %v1381_v28  ;;  %v11063_v47 = vunpack.i.l.bf16 %v11062_v23 }
 0x89a   : > { %v2916_v40 = vadd.f32 %v2912_v49, %v2888_v19  ;;  %v2915_v12 = vadd.f32 %v2911_v0, %v2887_v6  ;;  %v2914_v38 = vadd.f32 %v2910_v5, %v2886_v21  ;;  %v2913_v58 = vadd.f32 %v2909_v54, %v2885_v34  ;;  %v11057_v34 = vpop.permute.xlu1 %11056 }
 0x89b   : > { %v14040_v21 = vrot.slane %v12202_v10, 2  ;;  %v11059_v45 = vunpack.i.h.bf16 %v11057_v34  ;;  %v11058_v19 = vunpack.i.l.bf16 %v11057_v34  ;;  %v11069_v0 = vunpack.i.h.bf16 %v11067_v62 }
 0x89c   : > { %v2944_v2 = vadd.f32 %v2940_v8, %v2916_v40  ;;  %v2943_v41 = vadd.f32 %v2939_v24, %v2915_v12  ;;  %v2942_v4 = vadd.f32 %v2938_v51, %v2914_v38  ;;  %v2941_v50 = vadd.f32 %v2937_v56, %v2913_v58  ;;  %v3145_v23 = vpop.permute.xlu0 %3144 }
 0x89d   : > { %v14039_v12 = vrot.slane %v12242_v43, 1  ;;  %v11068_v49 = vunpack.i.l.bf16 %v11067_v62  ;;  %v3162_v27 = vmul.f32 %v11063_v47, %v12290_v25 }
 0x89e   : > { %10207 = vmatpush3.msra.mxu1 %v2944_v2  ;;  %10218 = vmatpush3.msra.mxu0 %v2944_v2  ;;  %v3101_v29 = vpop.permute.xlu1 %3100  ;;  %v3110_v54 = vmul.f32 %v3105_v55, %v2944_v2 }
 0x89f   : > { %10208 = vmatprep.subr.mxu1 %v14097_v42  ;;  %10219 = vmatprep.subr.mxu0 %v14097_v42  ;;  %v3109_v38 = vmul.f32 %v3101_v29, %v2943_v41  ;;  %v3161_v34 = vmul.f32 %v11068_v49, %v12290_v25 }
 0x8a0   : > { %10209 = vmatpush3.msra.mxu1 %v2943_v41  ;;  %10220 = vmatpush3.msra.mxu0 %v2943_v41  ;;  %v3327_v47 = vpop.permute.xlu0 %3326 }
 0x8a1   : > { %10210 = vmatprep.subr.mxu1 %v14097_v42  ;;  %10221 = vmatprep.subr.mxu0 %v14097_v42 }
 0x8a2   : > { %10211 = vmatpush3.msra.mxu1 %v2942_v4  ;;  %10222 = vmatpush3.msra.mxu0 %v2942_v4  ;;  %v3097_v33 = vpop.permute.xlu1 %3096 }
 0x8a3   : > { %10212 = vmatprep.subr.mxu1 %v14097_v42  ;;  %10223 = vmatprep.subr.mxu0 %v14097_v42  ;;  %v3108_v56 = vmul.f32 %v3097_v33, %v2942_v4 }
 0x8a4   : > { %10213 = vmatpush3.msra.mxu1 %v2941_v50  ;;  %10224 = vmatpush3.msra.mxu0 %v2941_v50 }
 0x8a5   : > { %10226 = vmatmul.mubr.msk.f32.vlgmr.msra.gmra.mxu0 %vm785_vm2, %v14040_v21  ;;  %10228 = vmatprep.subr.mxu1 %v14097_v42 }
 0x8a6   : > { %10239 = vmatprep.subr.mxu0 %v14097_v42  ;;  %10247 = vmatprep.mubr.msk.f32.mxu0 %vm11407_vm1, %v14097_v42  ;;  %v3093_v6 = vpop.permute.xlu1 %3092 }
 0x8a7   : > { %10215 = vmatmul.mubr.msk.f32.vlgmr.msra.gmra.mxu1 %vm785_vm2, %v14039_v12  ;;  %v3107_v21 = vmul.f32 %v3093_v6, %v2941_v50  ;;  %v14042_v50 = vrot.slane %v12202_v10, 3 }
 0x8a8   : > { %10236 = vmatprep.mubr.msk.f32.mxu1 %vm11407_vm1, %v14097_v42 }
 0x8aa   : > { %v3141_v62 = vpop.permute.xlu1 %3140 }
 0x8ab   : > { %v3159_v41 = vmul.f32 %v12290_v25, %v3141_v62 }
 0x8ae   : > { %v11074_v33 = vpop.permute.xlu1 %11073 }
 0x965   : > { %v3087_v22 = vpop.f32.mrf.mxu0 }
 0x966   : > { %v3130_v5 = vrot.slane %v3087_v22, %v11688_v1 }
 0x967   : > { %v10227_v8 = vpop.f32.mrf.mxu0 }
 0x968   : > { %v3132_v40 = vmul.f32 %v11064_v57, %v3130_v5  ;;  %v3133_v14 = vmul.f32 %v11059_v45, %v3130_v5  ;;  %v3134_v24 = vmul.f32 %v11058_v19, %v3130_v5  ;;  %v3131_v28 = vmul.f32 %v11069_v0, %v3130_v5  ;;  %v3323_v57 = vpop.permute.xlu1 %3322  ;;  %v11079_v45 = vpop.permute.xlu0 %11078 }
 0x969   : > { %v3160_v8 = vmul.f32 %v12290_v25, %v3145_v23  ;;  %v12320_v0 = vrot.slane %v12221_v13, %v1603_v36  ;;  %v11080_v49 = vunpack.i.l.bf16 %v11079_v45 }
 0x96a   : > { %v3138_v51 = vadd.f32 %v3134_v24, %v3110_v54  ;;  %v3137_v58 = vadd.f32 %v3133_v14, %v3109_v38  ;;  %v3136_v22 = vadd.f32 %v3132_v40, %v3108_v56  ;;  %v3135_v55 = vadd.f32 %v3131_v28, %v3107_v21 }
 0x96b   : > { %v14041_v21 = vrot.slane %v12242_v43, 2  ;;  %v11081_v54 = vunpack.i.h.bf16 %v11079_v45  ;;  %v11076_v40 = vunpack.i.h.bf16 %v11074_v33  ;;  %v11075_v14 = vunpack.i.l.bf16 %v11074_v33 }
 0x96c   : > { %v3166_v12 = vadd.f32 %v3162_v27, %v3138_v51  ;;  %v3165_v2 = vadd.f32 %v3161_v34, %v3137_v58  ;;  %v3164_v4 = vadd.f32 %v3160_v8, %v3136_v22  ;;  %v3163_v29 = vadd.f32 %v3159_v41, %v3135_v55  ;;  %v3319_v19 = vpop.permute.xlu1 %3318  ;;  %v11084_v5 = vpop.permute.xlu0 %11083 }
 0x96d   : > { %v11086_v38 = vunpack.i.h.bf16 %v11084_v5  ;;  %v11085_v27 = vunpack.i.l.bf16 %v11084_v5  ;;  %v3384_v62 = vmul.f32 %v11080_v49, %v12320_v0 }
 0x96e   : > { %10229 = vmatpush3.msra.mxu1 %v3166_v12  ;;  %10240 = vmatpush3.msra.mxu0 %v3166_v12  ;;  %v3332_v58 = vmul.f32 %v3327_v47, %v3166_v12  ;;  %v3331_v22 = vmul.f32 %v3323_v57, %v3165_v2  ;;  %v3330_v41 = vmul.f32 %v3319_v19, %v3164_v4 }
 0x96f   : > { %10230 = vmatprep.subr.mxu1 %v14097_v42  ;;  %10241 = vmatprep.subr.mxu0 %v14097_v42  ;;  %v3383_v33 = vmul.f32 %v11085_v27, %v12320_v0 }
 0x970   : > { %10231 = vmatpush3.msra.mxu1 %v3165_v2  ;;  %10242 = vmatpush3.msra.mxu0 %v3165_v2  ;;  %v3315_v28 = vpop.permute.xlu1 %3314  ;;  %v3367_v45 = vpop.permute.xlu0 %3366 }
 0x971   : > { %10232 = vmatprep.subr.mxu1 %v14097_v42  ;;  %10243 = vmatprep.subr.mxu0 %v14097_v42 }
 0x972   : > { %10233 = vmatpush3.msra.mxu1 %v3164_v4  ;;  %10244 = vmatpush3.msra.mxu0 %v3164_v4 }
 0x973   : > { %10234 = vmatprep.subr.mxu1 %v14097_v42  ;;  %10245 = vmatprep.subr.mxu0 %v14097_v42 }
 0x974   : > { %10235 = vmatpush3.msra.mxu1 %v3163_v29  ;;  %10246 = vmatpush3.msra.mxu0 %v3163_v29  ;;  %v3363_v5 = vpop.permute.xlu1 %3362  ;;  %v3549_v49 = vpop.permute.xlu0 %3548 }
 0x975   : > { %10248 = vmatmul.mubr.msk.f32.vlgmr.msra.gmra.mxu0 %vm785_vm2, %v14042_v50  ;;  %10250 = vmatprep.subr.mxu1 %v14097_v42  ;;  %v3329_v50 = vmul.f32 %v3315_v28, %v3163_v29  ;;  %v3381_v2 = vmul.f32 %v12320_v0, %v3363_v5  ;;  %v14044_v29 = vrot.slane %v12202_v10, 4 }
 0x976   : > { %10261 = vmatprep.subr.mxu0 %v14097_v42  ;;  %10269 = vmatprep.mubr.msk.f32.mxu0 %vm11407_vm1, %v14097_v42 }
 0x977   : > { %10237 = vmatmul.mubr.msk.f32.vlgmr.msra.gmra.mxu1 %vm785_vm2, %v14041_v21 }
 0x978   : > { %10258 = vmatprep.mubr.msk.f32.mxu1 %vm11407_vm1, %v14097_v42  ;;  %v11091_v19 = vpop.permute.xlu1 %11090 }
 0xa35   : > { %v3309_v6 = vpop.f32.mrf.mxu0 }
 0xa36   : > { %v3352_v24 = vrot.slane %v3309_v6, %v11688_v1 }
 0xa37   : > { %v10249_v51 = vpop.f32.mrf.mxu0 }
 0xa38   : > { %v3354_v56 = vmul.f32 %v11081_v54, %v3352_v24  ;;  %v3355_v23 = vmul.f32 %v11076_v40, %v3352_v24  ;;  %v3356_v34 = vmul.f32 %v11075_v14, %v3352_v24  ;;  %v3353_v36 = vmul.f32 %v11086_v38, %v3352_v24  ;;  %v3545_v54 = vpop.permute.xlu1 %3544  ;;  %v11096_v40 = vpop.permute.xlu0 %11095 }
 0xa39   : > { %v3382_v51 = vmul.f32 %v12320_v0, %v3367_v45  ;;  %v12350_v38 = vrot.slane %v12221_v13, %v1825_v35  ;;  %v11097_v27 = vunpack.i.l.bf16 %v11096_v40 }
 0xa3a   : > { %v3360_v8 = vadd.f32 %v3356_v34, %v3332_v58  ;;  %v3359_v55 = vadd.f32 %v3355_v23, %v3331_v22  ;;  %v3358_v6 = vadd.f32 %v3354_v56, %v3330_v41  ;;  %v3357_v47 = vadd.f32 %v3353_v36, %v3329_v50 }
 0xa3b   : > { %v14043_v50 = vrot.slane %v12242_v43, 3  ;;  %v11098_v58 = vunpack.i.h.bf16 %v11096_v40  ;;  %v11093_v56 = vunpack.i.h.bf16 %v11091_v19  ;;  %v11092_v23 = vunpack.i.l.bf16 %v11091_v19 }
 0xa3c   : > { %v3388_v21 = vadd.f32 %v3384_v62, %v3360_v8  ;;  %v3387_v12 = vadd.f32 %v3383_v33, %v3359_v55  ;;  %v3386_v4 = vadd.f32 %v3382_v51, %v3358_v6  ;;  %v3385_v57 = vadd.f32 %v3381_v2, %v3357_v47  ;;  %v3541_v14 = vpop.permute.xlu1 %3540  ;;  %v11101_v24 = vpop.permute.xlu0 %11100 }
 0xa3d   : > { %v11103_v22 = vunpack.i.h.bf16 %v11101_v24  ;;  %v11102_v62 = vunpack.i.l.bf16 %v11101_v24  ;;  %v3606_v5 = vmul.f32 %v11097_v27, %v12350_v38 }
 0xa3e   : > { %10251 = vmatpush3.msra.mxu1 %v3388_v21  ;;  %10262 = vmatpush3.msra.mxu0 %v3388_v21  ;;  %v3554_v55 = vmul.f32 %v3549_v49, %v3388_v21  ;;  %v3553_v6 = vmul.f32 %v3545_v54, %v3387_v12  ;;  %v3552_v2 = vmul.f32 %v3541_v14, %v3386_v4 }
 0xa3f   : > { %10252 = vmatprep.subr.mxu1 %v14097_v42  ;;  %10263 = vmatprep.subr.mxu0 %v14097_v42  ;;  %v3605_v19 = vmul.f32 %v11102_v62, %v12350_v38 }
 0xa40   : > { %10253 = vmatpush3.msra.mxu1 %v3387_v12  ;;  %10264 = vmatpush3.msra.mxu0 %v3387_v12  ;;  %v3537_v36 = vpop.permute.xlu1 %3536  ;;  %v3589_v40 = vpop.permute.xlu0 %3588 }
 0xa41   : > { %10254 = vmatprep.subr.mxu1 %v14097_v42  ;;  %10265 = vmatprep.subr.mxu0 %v14097_v42 }
 0xa42   : > { %10255 = vmatpush3.msra.mxu1 %v3386_v4  ;;  %10266 = vmatpush3.msra.mxu0 %v3386_v4 }
 0xa43   : > { %10256 = vmatprep.subr.mxu1 %v14097_v42  ;;  %10267 = vmatprep.subr.mxu0 %v14097_v42 }
 0xa44   : > { %10257 = vmatpush3.msra.mxu1 %v3385_v57  ;;  %10268 = vmatpush3.msra.mxu0 %v3385_v57  ;;  %v3585_v24 = vpop.permute.xlu1 %3584  ;;  %v3771_v27 = vpop.permute.xlu0 %3770 }
 0xa45   : > { %10270 = vmatmul.mubr.msk.f32.vlgmr.msra.gmra.mxu0 %vm785_vm2, %v14044_v29  ;;  %10272 = vmatprep.subr.mxu1 %v14097_v42  ;;  %v3551_v29 = vmul.f32 %v3537_v36, %v3385_v57  ;;  %v3603_v12 = vmul.f32 %v12350_v38, %v3585_v24  ;;  %v14046_v57 = vrot.slane %v12202_v10, 5 }
 0xa46   : > { %10283 = vmatprep.subr.mxu0 %v14097_v42  ;;  %10291 = vmatprep.mubr.msk.f32.mxu0 %vm11407_vm1, %v14097_v42 }
 0xa47   : > { %10259 = vmatmul.mubr.msk.f32.vlgmr.msra.gmra.mxu1 %vm785_vm2, %v14043_v50 }
 0xa48   : > { %10280 = vmatprep.mubr.msk.f32.mxu1 %vm11407_vm1, %v14097_v42  ;;  %v11108_v14 = vpop.permute.xlu1 %11107 }
 0xb05   : > { %v3531_v28 = vpop.f32.mrf.mxu0 }
 0xb06   : > { %v3574_v34 = vrot.slane %v3531_v28, %v11688_v1 }
 0xb07   : > { %v10271_v8 = vpop.f32.mrf.mxu0 }
 0xb08   : > { %v3576_v41 = vmul.f32 %v11098_v58, %v3574_v34  ;;  %v3577_v45 = vmul.f32 %v11093_v56, %v3574_v34  ;;  %v3578_v33 = vmul.f32 %v11092_v23, %v3574_v34  ;;  %v3575_v35 = vmul.f32 %v11103_v22, %v3574_v34  ;;  %v3767_v58 = vpop.permute.xlu1 %3766  ;;  %v11113_v56 = vpop.permute.xlu0 %11112 }
 0xb09   : > { %v3604_v8 = vmul.f32 %v12350_v38, %v3589_v40  ;;  %v12380_v22 = vrot.slane %v12221_v13, %v2047_v48  ;;  %v11114_v62 = vunpack.i.l.bf16 %v11113_v56 }
 0xb0a   : > { %v3582_v51 = vadd.f32 %v3578_v33, %v3554_v55  ;;  %v3581_v47 = vadd.f32 %v3577_v45, %v3553_v6  ;;  %v3580_v28 = vadd.f32 %v3576_v41, %v3552_v2  ;;  %v3579_v49 = vadd.f32 %v3575_v35, %v3551_v29 }
 0xb0b   : > { %v14045_v29 = vrot.slane %v12242_v43, 4  ;;  %v11115_v55 = vunpack.i.h.bf16 %v11113_v56  ;;  %v11110_v41 = vunpack.i.h.bf16 %v11108_v14  ;;  %v11109_v45 = vunpack.i.l.bf16 %v11108_v14 }
 0xb0c   : > { %v3610_v50 = vadd.f32 %v3606_v5, %v3582_v51  ;;  %v3609_v21 = vadd.f32 %v3605_v19, %v3581_v47  ;;  %v3608_v4 = vadd.f32 %v3604_v8, %v3580_v28  ;;  %v3607_v54 = vadd.f32 %v3603_v12, %v3579_v49  ;;  %v3763_v23 = vpop.permute.xlu1 %3762  ;;  %v11118_v34 = vpop.permute.xlu0 %11117 }
 0xb0d   : > { %v11120_v6 = vunpack.i.h.bf16 %v11118_v34  ;;  %v11119_v5 = vunpack.i.l.bf16 %v11118_v34  ;;  %v3828_v24 = vmul.f32 %v11114_v62, %v12380_v22 }
 0xb0e   : > { %10273 = vmatpush3.msra.mxu1 %v3610_v50  ;;  %10284 = vmatpush3.msra.mxu0 %v3610_v50  ;;  %v3776_v47 = vmul.f32 %v3771_v27, %v3610_v50  ;;  %v3775_v28 = vmul.f32 %v3767_v58, %v3609_v21  ;;  %v3774_v12 = vmul.f32 %v3763_v23, %v3608_v4 }
 0xb0f   : > { %10274 = vmatprep.subr.mxu1 %v14097_v42  ;;  %10285 = vmatprep.subr.mxu0 %v14097_v42  ;;  %v3827_v14 = vmul.f32 %v11119_v5, %v12380_v22 }
 0xb10   : > { %10275 = vmatpush3.msra.mxu1 %v3609_v21  ;;  %10286 = vmatpush3.msra.mxu0 %v3609_v21  ;;  %v3759_v35 = vpop.permute.xlu1 %3758  ;;  %v3811_v56 = vpop.permute.xlu0 %3810 }
 0xb11   : > { %10276 = vmatprep.subr.mxu1 %v14097_v42  ;;  %10287 = vmatprep.subr.mxu0 %v14097_v42 }
 0xb12   : > { %10277 = vmatpush3.msra.mxu1 %v3608_v4  ;;  %10288 = vmatpush3.msra.mxu0 %v3608_v4 }
 0xb13   : > { %10278 = vmatprep.subr.mxu1 %v14097_v42  ;;  %10289 = vmatprep.subr.mxu0 %v14097_v42 }
 0xb14   : > { %10279 = vmatpush3.msra.mxu1 %v3607_v54  ;;  %10290 = vmatpush3.msra.mxu0 %v3607_v54  ;;  %v3807_v34 = vpop.permute.xlu1 %3806  ;;  %v3993_v62 = vpop.permute.xlu0 %3992 }
 0xb15   : > { %10292 = vmatmul.mubr.msk.f32.vlgmr.msra.gmra.mxu0 %vm785_vm2, %v14046_v57  ;;  %10294 = vmatprep.subr.mxu1 %v14097_v42  ;;  %v3773_v57 = vmul.f32 %v3759_v35, %v3607_v54  ;;  %v3825_v21 = vmul.f32 %v12380_v22, %v3807_v34  ;;  %v14048_v54 = vrot.slane %v12202_v10, 6 }
 0xb16   : > { %10305 = vmatprep.subr.mxu0 %v14097_v42  ;;  %10313 = vmatprep.mubr.msk.f32.mxu0 %vm11407_vm1, %v14097_v42 }
 0xb17   : > { %10281 = vmatmul.mubr.msk.f32.vlgmr.msra.gmra.mxu1 %vm785_vm2, %v14045_v29 }
 0xb18   : > { %10302 = vmatprep.mubr.msk.f32.mxu1 %vm11407_vm1, %v14097_v42  ;;  %v11125_v23 = vpop.permute.xlu1 %11124 }
 0xbd5   : > { %v3753_v36 = vpop.f32.mrf.mxu0 }
 0xbd6   : > { %v3796_v33 = vrot.slane %v3753_v36, %v11688_v1 }
 0xbd7   : > { %v10293_v51 = vpop.f32.mrf.mxu0 }
 0xbd8   : > { %v3798_v2 = vmul.f32 %v11115_v55, %v3796_v33  ;;  %v3799_v40 = vmul.f32 %v11110_v41, %v3796_v33  ;;  %v3800_v19 = vmul.f32 %v11109_v45, %v3796_v33  ;;  %v3797_v48 = vmul.f32 %v11120_v6, %v3796_v33  ;;  %v3989_v55 = vpop.permute.xlu1 %3988  ;;  %v11130_v41 = vpop.permute.xlu0 %11129 }
 0xbd9   : > { %v3826_v51 = vmul.f32 %v12380_v22, %v3811_v56  ;;  %v12410_v6 = vrot.slane %v12221_v13, %v2269_v18  ;;  %v11131_v5 = vunpack.i.l.bf16 %v11130_v41 }
 0xbda   : > { %v3804_v8 = vadd.f32 %v3800_v19, %v3776_v47  ;;  %v3803_v49 = vadd.f32 %v3799_v40, %v3775_v28  ;;  %v3802_v36 = vadd.f32 %v3798_v2, %v3774_v12  ;;  %v3801_v27 = vadd.f32 %v3797_v48, %v3773_v57 }
 0xbdb   : > { %v14047_v57 = vrot.slane %v12242_v43, 5  ;;  %v11132_v47 = vunpack.i.h.bf16 %v11130_v41  ;;  %v11127_v2 = vunpack.i.h.bf16 %v11125_v23  ;;  %v11126_v40 = vunpack.i.l.bf16 %v11125_v23 }
 0xbdc   : > { %v3832_v29 = vadd.f32 %v3828_v24, %v3804_v8  ;;  %v3831_v50 = vadd.f32 %v3827_v14, %v3803_v49  ;;  %v3830_v4 = vadd.f32 %v3826_v51, %v3802_v36  ;;  %v3829_v58 = vadd.f32 %v3825_v21, %v3801_v27  ;;  %v3985_v45 = vpop.permute.xlu1 %3984  ;;  %v11135_v33 = vpop.permute.xlu0 %11134 }
 0xbdd   : > { %v11137_v28 = vunpack.i.h.bf16 %v11135_v33  ;;  %v11136_v24 = vunpack.i.l.bf16 %v11135_v33  ;;  %v4050_v34 = vmul.f32 %v11131_v5, %v12410_v6 }
 0xbde   : > { %10295 = vmatpush3.msra.mxu1 %v3832_v29  ;;  %10306 = vmatpush3.msra.mxu0 %v3832_v29  ;;  %v3998_v49 = vmul.f32 %v3993_v62, %v3832_v29  ;;  %v3997_v36 = vmul.f32 %v3989_v55, %v3831_v50  ;;  %v3996_v21 = vmul.f32 %v3985_v45, %v3830_v4 }
 0xbdf   : > { %10296 = vmatprep.subr.mxu1 %v14097_v42  ;;  %10307 = vmatprep.subr.mxu0 %v14097_v42  ;;  %v4049_v23 = vmul.f32 %v11136_v24, %v12410_v6  ;;  %v12440_v24 = vrot.slane %v12221_v13, %v2491_v46 }
 0xbe0   : > { %10297 = vmatpush3.msra.mxu1 %v3831_v50  ;;  %10308 = vmatpush3.msra.mxu0 %v3831_v50  ;;  %v3981_v48 = vpop.permute.xlu1 %3980  ;;  %v4033_v41 = vpop.permute.xlu0 %4032 }
 0xbe1   : > { %10298 = vmatprep.subr.mxu1 %v14097_v42  ;;  %10309 = vmatprep.subr.mxu0 %v14097_v42  ;;  %14102 = vst [vmem:[#allocation12_spill] sm:$0xff] %v12440_v24 }
 0xbe2   : > { %10299 = vmatpush3.msra.mxu1 %v3830_v4  ;;  %10310 = vmatpush3.msra.mxu0 %v3830_v4 }
 0xbe3   : > { %10300 = vmatprep.subr.mxu1 %v14097_v42  ;;  %10311 = vmatprep.subr.mxu0 %v14097_v42 }
 0xbe4   : > { %10301 = vmatpush3.msra.mxu1 %v3829_v58  ;;  %10312 = vmatpush3.msra.mxu0 %v3829_v58  ;;  %v4029_v33 = vpop.permute.xlu1 %4028  ;;  %v4215_v5 = vpop.permute.xlu0 %4214 }
 0xbe5   : > { %10314 = vmatmul.mubr.msk.f32.vlgmr.msra.gmra.mxu0 %vm785_vm2, %v14048_v54  ;;  %10316 = vmatprep.subr.mxu1 %v14097_v42  ;;  %v3995_v54 = vmul.f32 %v3981_v48, %v3829_v58  ;;  %v4047_v50 = vmul.f32 %v12410_v6, %v4029_v33  ;;  %v14050_v58 = vrot.slane %v12202_v10, 7 }
 0xbe6   : > { %10327 = vmatprep.subr.mxu0 %v14097_v42  ;;  %10335 = vmatprep.mubr.msk.f32.mxu0 %vm11407_vm1, %v14097_v42 }
 0xbe7   : > { %10303 = vmatmul.mubr.msk.f32.vlgmr.msra.gmra.mxu1 %vm785_vm2, %v14047_v57 }
 0xbe8   : > { %10324 = vmatprep.mubr.msk.f32.mxu1 %vm11407_vm1, %v14097_v42  ;;  %v11142_v45 = vpop.permute.xlu1 %11141 }
 0xca5   : > { %v3975_v35 = vpop.f32.mrf.mxu0 }
 0xca6   : > { %v4018_v19 = vrot.slane %v3975_v35, %v11688_v1 }
 0xca7   : > { %v10315_v8 = vpop.f32.mrf.mxu0 }
 0xca8   : > { %v4020_v12 = vmul.f32 %v11132_v47, %v4018_v19  ;;  %v4021_v56 = vmul.f32 %v11127_v2, %v4018_v19  ;;  %v4022_v14 = vmul.f32 %v11126_v40, %v4018_v19  ;;  %v4019_v18 = vmul.f32 %v11137_v28, %v4018_v19  ;;  %v4211_v47 = vpop.permute.xlu1 %4210  ;;  %v11147_v2 = vpop.permute.xlu0 %11146 }
 0xca9   : > { %v4048_v8 = vmul.f32 %v12410_v6, %v4033_v41  ;;  %v11149_v48 = vunpack.i.h.bf16 %v11147_v2 }
 0xcaa   : > { %v4026_v51 = vadd.f32 %v4022_v14, %v3998_v49  ;;  %v4025_v27 = vadd.f32 %v4021_v56, %v3997_v36  ;;  %v4024_v35 = vadd.f32 %v4020_v12, %v3996_v21  ;;  %v4023_v62 = vadd.f32 %v4019_v18, %v3995_v54 }
 0xcab   : > { %v14049_v54 = vrot.slane %v12242_v43, 6  ;;  %v11148_v49 = vunpack.i.l.bf16 %v11147_v2  ;;  %v11143_v18 = vunpack.i.l.bf16 %v11142_v45 }
 0xcac   : > { %v4054_v57 = vadd.f32 %v4050_v34, %v4026_v51  ;;  %v4053_v29 = vadd.f32 %v4049_v23, %v4025_v27  ;;  %v4052_v4 = vadd.f32 %v4048_v8, %v4024_v35  ;;  %v4051_v55 = vadd.f32 %v4047_v50, %v4023_v62  ;;  %v4207_v40 = vpop.permute.xlu1 %4206  ;;  %v11152_v19 = vpop.permute.xlu0 %11151 }
 0xcad   : > { %v11153_v12 = vunpack.i.l.bf16 %v11152_v19  ;;  %v11154_v14 = vunpack.i.h.bf16 %v11152_v19  ;;  %v11144_v34 = vunpack.i.h.bf16 %v11142_v45  ;;  %v4272_v50 = vmul.f32 %v11148_v49, %v12440_v24  ;;  %v14106_v49 = vld [vmem:[#allocation3_spill] sm:$0xff] }
 0xcae   : > { %10317 = vmatpush3.msra.mxu1 %v4054_v57  ;;  %10328 = vmatpush3.msra.mxu0 %v4054_v57  ;;  %v4220_v41 = vmul.f32 %v4215_v5, %v4054_v57  ;;  %v4219_v23 = vmul.f32 %v4211_v47, %v4053_v29  ;;  %v4218_v35 = vmul.f32 %v4207_v40, %v4052_v4  ;;  %v14103_v40 = vunpack.c.l.bf16 %v11536_v3 }
 0xcaf   : > { %10318 = vmatprep.subr.mxu1 %v14097_v42  ;;  %10329 = vmatprep.subr.mxu0 %v14097_v42  ;;  %v4271_v2 = vmul.f32 %v11153_v12, %v12440_v24  ;;  %v14107_v12 = vld [vmem:[#allocation4_spill] sm:$0xff] }
 0xcb0   : > { %10319 = vmatpush3.msra.mxu1 %v4053_v29  ;;  %10330 = vmatpush3.msra.mxu0 %v4053_v29  ;;  %v4203_v28 = vpop.permute.xlu1 %4202  ;;  %v4255_v36 = vpop.permute.xlu0 %4254 }
 0xcb1   : > { %10320 = vmatprep.subr.mxu1 %v14097_v42  ;;  %10331 = vmatprep.subr.mxu0 %v14097_v42  ;;  %v4217_v33 = vmul.f32 %v4203_v28, %v4051_v55  ;;  %v4270_v19 = vmul.f32 %v12440_v24, %v4255_v36  ;;  %v14104_v28 = vunpack.c.h.bf16 %v11536_v3  ;;  %v14108_v36 = vld [vmem:[#allocation6_spill] sm:$0xff] }
 0xcb2   : > { %10321 = vmatpush3.msra.mxu1 %v4052_v4  ;;  %10332 = vmatpush3.msra.mxu0 %v4052_v4 }
 0xcb3   : > { %10322 = vmatprep.subr.mxu1 %v14097_v42  ;;  %10333 = vmatprep.subr.mxu0 %v14097_v42 }
 0xcb4   : > { %10323 = vmatpush3.msra.mxu1 %v4051_v55  ;;  %10334 = vmatpush3.msra.mxu0 %v4051_v55  ;;  %v4251_v51 = vpop.permute.xlu1 %4250 }
 0xcb5   : > { %10336 = vmatmul.mubr.msk.f32.vlgmr.msra.gmra.mxu0 %vm785_vm2, %v14050_v58  ;;  %10338 = vmatprep.subr.mxu1 %v14097_v42  ;;  %v4269_v45 = vmul.f32 %v12440_v24, %v4251_v51 }
 0xcb6   : > { %10349 = vmatprep.subr.mxu0 %v14097_v42  ;;  %10357 = vmatprep.mubr.msk.f32.mxu0 %vm11407_vm1, %v14097_v42 }
 0xcb7   : > { %10325 = vmatmul.mubr.msk.f32.vlgmr.msra.gmra.mxu1 %vm785_vm2, %v14049_v54 }
 0xcb8   : > { %10346 = vmatprep.mubr.msk.f32.mxu1 %vm11407_vm1, %v14097_v42 }
 0xd75   : > { %v4197_v56 = vpop.f32.mrf.mxu0 }
 0xd76   : > { %v4240_v27 = vrot.slane %v4197_v56, %v11688_v1 }
 0xd77   : > { %v10337_v21 = vpop.f32.mrf.mxu0 }
 0xd78   : > { %v4241_v59 = vmul.f32 %v11154_v14, %v4240_v27  ;;  %v4242_v8 = vmul.f32 %v11149_v48, %v4240_v27  ;;  %v4243_v46 = vmul.f32 %v11144_v34, %v4240_v27  ;;  %v4244_v62 = vmul.f32 %v11143_v18, %v4240_v27  ;;  %v14105_v48 = vld [vmem:[#allocation5_spill] sm:$0xff] }
 0xd79   : > { %v11155_v14 = vpack.i.bf16 %v14107_v12, %v14106_v49 }
 0xd7a   : > { %v4248_v54 = vadd.f32 %v4244_v62, %v4220_v41  ;;  %v4247_v58 = vadd.f32 %v4243_v46, %v4219_v23  ;;  %v4246_v56 = vadd.f32 %v4242_v8, %v4218_v35  ;;  %v4245_v21 = vadd.f32 %v4241_v59, %v4217_v33 }
 0xd7b   : > { %v14109_v46 = vmov 0  }
 0xd7c   : > { %v4276_v57 = vadd.f32 %v4272_v50, %v4248_v54  ;;  %v4275_v29 = vadd.f32 %v4271_v2, %v4247_v58  ;;  %v4274_v4 = vadd.f32 %v4270_v19, %v4246_v56  ;;  %v4273_v55 = vadd.f32 %v4269_v45, %v4245_v21 }
 0xd7e   : > { %10339 = vmatpush3.msra.mxu1 %v4276_v57  ;;  %4353 = vst.msk [vmem:[#allocation2 + $0x18] sm:$0xff] %vm785_vm2, %v4276_v57  ;;  %4352 = vst.msk [vmem:[#allocation2 + $0x10] sm:$0xff] %vm785_vm2, %v4275_v29 }
 0xd7f   : > { %4351 = vst.msk [vmem:[#allocation2 + $0x8] sm:$0xff] %vm785_vm2, %v4274_v4  ;;  %4350 = vst.msk [vmem:[#allocation2] sm:$0xff] %vm785_vm2, %v4273_v55  ;;  %10340 = vmatprep.subr.mxu1 %v14097_v42 }
 0xd80   : > { %10341 = vmatpush3.msra.mxu1 %v4275_v29 }
 0xd81   : > { %10342 = vmatprep.subr.mxu1 %v14097_v42 }
 0xd82   : > { %10343 = vmatpush3.msra.mxu1 %v4274_v4 }
 0xd83   : > { %10344 = vmatprep.subr.mxu1 %v14097_v42 }
 0xd84   : > { %10345 = vmatpush3.msra.mxu1 %v4273_v55 }
 0xd85   : > { %v12454_v58 = vld [vmem:[#allocation2 + $0x18] sm:$0xff]  ;;  %v12456_v54 = vld [vmem:[#allocation2 + $0x10] sm:$0xff]  ;;  %10360 = vmatprep.subr.mxu1 %v14097_v42 }
 0xd86   : > { %4553 = vrot.lane.b32.xlu0 %v12454_v58, %s11424_s25  ;;  %4551 = vrot.lane.b32.xlu1 %v12456_v54, %s11424_s25  ;;  %v12463_v5 = vld [vmem:[#allocation2 + $0x8] sm:$0xff]  ;;  %v12465_v47 = vld [vmem:[#allocation2] sm:$0xff] }
 0xd8a   : > { %4549 = vrot.lane.b32.xlu0 %v12463_v5, %s11424_s25  ;;  %4547 = vrot.lane.b32.xlu1 %v12465_v47, %s11424_s25 }
 0xd8e   : > { %4541 = vrot.lane.b32.xlu0 %v11559_v17, %s11424_s25  ;;  %4503 = vrot.lane.b32.xlu1 %v14103_v40, %s11424_s25 }
 0xd92   : > { %4505 = vrot.lane.b32.xlu0 %v14104_v28, %s11424_s25  ;;  %4423 = vrot.lane.b32.xlu1 %v14105_v48, %s11424_s25 }
 0xd96   : > { %4425 = vrot.lane.b32.xlu0 %v14108_v36, %s11424_s25  ;;  %11156 = vrot.lane.b32.xlu1 %v11155_v14, %s11424_s25 }
 0xdf8   : > { %v4554_v34 = vpop.permute.xlu0 %4553  ;;  %v4552_v18 = vpop.permute.xlu1 %4551 }
 0xdf9   : > { %10350 = vmatpush3.msra.mxu0 %v4554_v34 }
 0xdfa   : > { %10351 = vmatprep.subr.mxu0 %v14097_v42 }
 0xdfb   : > { %10352 = vmatpush3.msra.mxu0 %v4552_v18 }
 0xdfc   : > { %10353 = vmatprep.subr.mxu0 %v14097_v42  ;;  %v4550_v3 = vpop.permute.xlu0 %4549  ;;  %v4548_v51 = vpop.permute.xlu1 %4547 }
 0xdfd   : > { %10354 = vmatpush3.msra.mxu0 %v4550_v3 }
 0xdfe   : > { %10355 = vmatprep.subr.mxu0 %v14097_v42 }
 0xdff   : > { %10356 = vmatpush3.msra.mxu0 %v4548_v51 }
 0xe00   : > { %v4542_v27 = vpop.permute.xlu0 %4541  ;;  %v4504_v41 = vpop.permute.xlu1 %4503  ;;  %10371 = vmatprep.subr.mxu0 %v14097_v42 }
 0xe01   : > { %10358 = vmatmul.mubr.msk.f32.vlgmr.msra.gmra.mxu0 %vm785_vm2, %v4542_v27  ;;  %4509 = vxpose.xlu0.b32.start [1/2] (short) (narrow) %v4504_v41, 32 }
 0xe02   : > { %10379 = vmatprep.mubr.msk.f32.mxu0 %vm11407_vm1, %v14097_v42 }
 0xe04   : > { %v4506_v23 = vpop.permute.xlu0 %4505  ;;  %v4424_v35 = vpop.permute.xlu1 %4423 }
 0xe05   : > { %4510 = vxpose.xlu0.b32.end [2/2] (short) (narrow) %v4506_v23, 32 }
 0xe08   : > { %v11157_v33 = vpop.permute.xlu1 %11156  ;;  %v4426_v62 = vpop.permute.xlu0 %4425 }
 0xe09   : > { %v11158_v59 = vunpack.i.l.bf16 %v11157_v33  ;;  %v11159_v8 = vunpack.i.h.bf16 %v11157_v33 }
 0xe0e   : > { %4469 = vxpose.xlu0.b32.start [1/2] (short) (narrow) %v11158_v59, 32 }
 0xe12   : > { %4470 = vxpose.xlu0.b32.end [2/2] (short) (narrow) %v11159_v8, 32  ;;  %v14110_v8 = vmov 1  }
 0xe3b   : > { %11171 = vset.pattern.permute.xlu0 %v14109_v46 }
 0xe7d   : > { %v12494_v50 = vpop.trf.xlu0 }
 0xe81   : > { %v12496_v2 = vpop.trf.xlu0 }
 0xe82   : > { %v11166_v21 = vpack.i.bf16 %v12494_v50, %v12496_v2 }
 0xe85   : > { %v12498_v19 = vpop.trf.xlu0 }
 0xe89   : > { %v12500_v45 = vpop.trf.xlu0 }
 0xe8a   : > { %v11161_v56 = vpack.i.bf16 %v12498_v19, %v12500_v45 }
 0xe8c   : > { %11162 = vperm.xlu1 %11160, %v11161_v56  }
 0xe8d   : > { %v4485_v55 = vpop.trf.xlu0 }
 0xe90   : > { %11167 = vperm.xlu1 %11160, %v11166_v21  }
 0xe91   : > { %v4486_v28 = vpop.trf.xlu0 }
 0xe92   : > { %v12522_v59 = vpack.i.bf16 %v4485_v55, %v4486_v28 }
 0xe95   : > { %v4487_v14 = vpop.trf.xlu0 }
 0xe99   : > { %v4488_v34 = vpop.trf.xlu0 }
 0xe9a   : > { %v12513_v3 = vpack.i.bf16 %v4487_v14, %v4488_v34 }
 0xeb9   : > { %4429 = vxpose.xlu1.b32.start [1/2] (short) (narrow) %v4424_v35, 32 }
 0xebd   : > { %4430 = vxpose.xlu1.b32.end [2/2] (short) (narrow) %v4426_v62, 32 }
 0xec1   : > { %v4627_v57 = vpop.f32.mrf.mxu0 }
 0xec2   : > { %v4678_v41 = vrot.slane %v4627_v57, %v11688_v1 }
 0xec3   : > { %v10359_v29 = vpop.f32.mrf.mxu0 }
 0xec4   : > { %v14051_v29 = vrot.slane %v12242_v43, 7 }
 0xec6   : > { %10347 = vmatmul.mubr.msk.f32.vlgmr.msra.gmra.mxu1 %vm785_vm2, %v14051_v29 }
 0xec7   : > { %10368 = vmatprep.mubr.msk.f32.mxu1 %vm11407_vm1, %v14097_v42 }
 0xf07   : > { %v11163_v4 = vpop.permute.xlu1 %11162 }
 0xf08   : > { %v11164_v27 = vunpack.i.l.bf16 %v11163_v4  ;;  %v11165_v23 = vunpack.i.h.bf16 %v11163_v4 }
 0xf0a   : > { %v4682_v35 = vmul.f32 %v11164_v27, %v4678_v41  ;;  %v4681_v46 = vmul.f32 %v11165_v23, %v4678_v41 }
 0xf0b   : > { %v11168_v40 = vpop.permute.xlu1 %11167 }
 0xf0c   : > { %v11169_v33 = vunpack.i.l.bf16 %v11168_v40  ;;  %v11170_v62 = vunpack.i.h.bf16 %v11168_v40 }
 0xf0e   : > { %v4680_v56 = vmul.f32 %v11169_v33, %v4678_v41  ;;  %v4679_v21 = vmul.f32 %v11170_v62, %v4678_v41 }
 0xf35   : > { %v12506_v48 = vpop.trf.xlu1 }
 0xf39   : > { %v12508_v36 = vpop.trf.xlu1 }
 0xf3d   : > { %v12510_v18 = vpop.trf.xlu1 }
 0xf3e   : > { %4643 = vperm.xlu1 %11160, %v12510_v18  }
 0xf41   : > { %v12515_v51 = vpop.trf.xlu1 }
 0xf42   : > { %4648 = vperm.xlu0 %11171, %v12515_v51   ;;  %11173 = vperm.xlu1 %11160, %v12513_v3  }
 0xf46   : > { %4638 = vperm.xlu0 %11171, %v12508_v36   ;;  %4633 = vperm.xlu1 %11160, %v12506_v48  }
 0xf4a   : > { %11178 = vperm.xlu0 %11171, %v12522_v59   ;;  %4693 = vrot.lane.b32.xlu1 %v4682_v35, %s11425_s26  ;;  %v14111_v35 = vld [vmem:[#allocation8_spill] sm:$0xff] }
 0xf4b   : > { %11183 = vset.pattern.permute.xlu1 %v14110_v8 }
 0xf4e   : > { %4691 = vrot.lane.b32.xlu0 %v4681_v46, %s11425_s26  ;;  %4689 = vrot.lane.b32.xlu1 %v4680_v56, %s11425_s26 }
 0xf4f   : > { %11182 = vset.pattern.permute.xlu0 %v14110_v8 }
 0xf52   : > { %4687 = vrot.lane.b32.xlu0 %v4679_v21, %s11425_s26 }
 0xfb9   : > { %v4644_v57 = vpop.permute.xlu1 %4643 }
 0xfba   : > { %v4653_v62 = vmul.f32 %v4644_v57, %v12456_v54 }
 0xfbd   : > { %v11174_v4 = vpop.permute.xlu1 %11173  ;;  %v4649_v55 = vpop.permute.xlu0 %4648 }
 0xfbe   : > { %v11175_v14 = vunpack.i.l.bf16 %v11174_v4  ;;  %v4654_v34 = vmul.f32 %v4649_v55, %v12454_v58  ;;  %v11176_v27 = vunpack.i.h.bf16 %v11174_v4 }
 0xfc0   : > { %v4726_v33 = vmul.f32 %v11175_v14, %v14111_v35  ;;  %v4725_v29 = vmul.f32 %v11176_v27, %v14111_v35 }
 0xfc1   : > { %v4634_v40 = vpop.permute.xlu1 %4633  ;;  %v4639_v28 = vpop.permute.xlu0 %4638 }
 0xfc2   : > { %v4652_v56 = vmul.f32 %v4639_v28, %v12463_v5  ;;  %v4651_v14 = vmul.f32 %v4634_v40, %v12465_v47 }
 0xfc5   : > { %v11179_v41 = vpop.permute.xlu0 %11178  ;;  %v4694_v23 = vpop.permute.xlu1 %4693 }
 0xfc6   : > { %v11180_v8 = vunpack.i.l.bf16 %v11179_v41  ;;  %v4702_v46 = vadd.f32 %v4694_v23, %v4654_v34  ;;  %v11181_v15 = vunpack.i.h.bf16 %v11179_v41 }
 0xfc8   : > { %v12541_v21 = vadd.f32 %v4726_v33, %v4702_v46  ;;  %v4724_v58 = vmul.f32 %v11180_v8, %v14111_v35  ;;  %v4723_v57 = vmul.f32 %v11181_v15, %v14111_v35  ;;  %v14113_v15 = vmov 2  }
 0xfc9   : > { %v4692_v52 = vpop.permute.xlu0 %4691  ;;  %v4690_v39 = vpop.permute.xlu1 %4689 }
 0xfca   : > { %v4701_v4 = vadd.f32 %v4692_v52, %v4653_v62  ;;  %v4700_v55 = vadd.f32 %v4690_v39, %v4652_v56  ;;  %4743 = vrot.lane.b32.xlu1 %v12541_v21, %s11424_s25  ;;  %v14112_v52 = vrot.slane %v11559_v17, 1 }
 0xfcc   : > { %v12548_v34 = vadd.f32 %v4725_v29, %v4701_v4  ;;  %v12550_v54 = vadd.f32 %v4724_v58, %v4700_v55 }
 0xfcd   : > { %v4688_v5 = vpop.permute.xlu0 %4687 }
 0xfce   : > { %v4699_v28 = vadd.f32 %v4688_v5, %v4651_v14  ;;  %4739 = vrot.lane.b32.xlu1 %v12550_v54, %s11424_s25  ;;  %4741 = vrot.lane.b32.xlu0 %v12548_v34, %s11424_s25 }
 0xfd0   : > { %v12557_v39 = vadd.f32 %v4723_v57, %v4699_v28 }
 0xfd2   : > { %4821 = vrot.lane.b32.xlu1 %v14112_v52, %s11424_s25  ;;  %4737 = vrot.lane.b32.xlu0 %v12557_v39, %s11424_s25 }
 0xfd6   : > { %4924 = vperm.xlu1 %11183, %v12498_v19   ;;  %4928 = vperm.xlu0 %11182, %v12500_v45  }
 0xfda   : > { %4920 = vperm.xlu1 %11183, %v12496_v2   ;;  %4916 = vperm.xlu0 %11182, %v12494_v50  }
 0xfde   : > { %4908 = vperm.xlu1 %11183, %v12515_v51   ;;  %4904 = vperm.xlu0 %11182, %v12510_v18  }
 0xfe2   : > { %11185 = vperm.xlu1 %11183, %v12513_v3   ;;  %4900 = vperm.xlu0 %11182, %v12508_v36  }
 0xfe6   : > { %4896 = vperm.xlu1 %11183, %v12506_v48   ;;  %11190 = vperm.xlu0 %11182, %v12522_v59  }
 0xfea   : > { %11194 = vset.pattern.permute.xlu0 %v14113_v15  ;;  %11195 = vset.pattern.permute.xlu1 %v14113_v15 }
0x103c   : > { %v4744_v47 = vpop.permute.xlu1 %4743 }
0x103d   : > { %10361 = vmatpush3.msra.mxu1 %v4744_v47  ;;  %10372 = vmatpush3.msra.mxu0 %v4744_v47 }
0x103e   : > { %10362 = vmatprep.subr.mxu1 %v14097_v42  ;;  %10373 = vmatprep.subr.mxu0 %v14097_v42 }
0x1040   : > { %v4740_v29 = vpop.permute.xlu1 %4739  ;;  %v4742_v40 = vpop.permute.xlu0 %4741 }
0x1041   : > { %10363 = vmatpush3.msra.mxu1 %v4742_v40  ;;  %10374 = vmatpush3.msra.mxu0 %v4742_v40 }
0x1042   : > { %10364 = vmatprep.subr.mxu1 %v14097_v42  ;;  %10375 = vmatprep.subr.mxu0 %v14097_v42 }
0x1043   : > { %10365 = vmatpush3.msra.mxu1 %v4740_v29  ;;  %10376 = vmatpush3.msra.mxu0 %v4740_v29 }
0x1044   : > { %10366 = vmatprep.subr.mxu1 %v14097_v42  ;;  %10377 = vmatprep.subr.mxu0 %v14097_v42  ;;  %v4738_v27 = vpop.permute.xlu0 %4737  ;;  %v4822_v41 = vpop.permute.xlu1 %4821 }
0x1045   : > { %10367 = vmatpush3.msra.mxu1 %v4738_v27  ;;  %10378 = vmatpush3.msra.mxu0 %v4738_v27 }
0x1046   : > { %10380 = vmatmul.mubr.msk.f32.vlgmr.msra.gmra.mxu0 %vm785_vm2, %v4822_v41  ;;  %10393 = vmatprep.subr.mxu0 %v14097_v42 }
0x1047   : > { %10401 = vmatprep.mubr.msk.f32.mxu0 %vm11407_vm1, %v14097_v42  ;;  %10382 = vmatprep.subr.mxu1 %v14097_v42 }
0x1051   : > { %v4925_v23 = vpop.permute.xlu1 %4924  ;;  %v4929_v35 = vpop.permute.xlu0 %4928 }
0x1055   : > { %v4921_v58 = vpop.permute.xlu1 %4920  ;;  %v4917_v4 = vpop.permute.xlu0 %4916 }
0x1059   : > { %v4909_v5 = vpop.permute.xlu1 %4908  ;;  %v4905_v57 = vpop.permute.xlu0 %4904 }
0x105a   : > { %v4914_v27 = vmul.f32 %v4909_v5, %v12541_v21  ;;  %v4913_v41 = vmul.f32 %v4905_v57, %v12548_v34 }
0x105d   : > { %v11186_v28 = vpop.permute.xlu1 %11185  ;;  %v4901_v52 = vpop.permute.xlu0 %4900 }
0x105e   : > { %v11188_v15 = vunpack.i.h.bf16 %v11186_v28  ;;  %v11187_v40 = vunpack.i.l.bf16 %v11186_v28 }
0x1061   : > { %v4897_v47 = vpop.permute.xlu1 %4896  ;;  %v11191_v29 = vpop.permute.xlu0 %11190 }
0x1106   : > { %v4891_v33 = vpop.f32.mrf.mxu0 }
0x1107   : > { %v4934_v8 = vrot.slane %v4891_v33, %v11688_v1 }
0x1108   : > { %v10381_v46 = vpop.f32.mrf.mxu0 }
0x1109   : > { %v4938_v62 = vmul.f32 %v4934_v8, %v4929_v35  ;;  %v4937_v56 = vmul.f32 %v4934_v8, %v4925_v23  ;;  %v4936_v55 = vmul.f32 %v4934_v8, %v4921_v58  ;;  %v4935_v14 = vmul.f32 %v4934_v8, %v4917_v4 }
0x110a   : > { %v4977_v23 = vmul.f32 %v11188_v15, %v11929_v44  ;;  %v11193_v35 = vunpack.i.h.bf16 %v11191_v29  ;;  %v4978_v46 = vmul.f32 %v11187_v40, %v11929_v44  ;;  %v4912_v4 = vmul.f32 %v4901_v52, %v12550_v54 }
0x110b   : > { %4949 = vrot.lane.b32.xlu1 %v4938_v62, %s11425_s26  ;;  %4947 = vrot.lane.b32.xlu0 %v4937_v56, %s11425_s26  ;;  %v11192_v62 = vunpack.i.l.bf16 %v11191_v29 }
0x110c   : > { %v4975_v21 = vmul.f32 %v11193_v35, %v11929_v44 }
0x110d   : > { %v4976_v57 = vmul.f32 %v11192_v62, %v11929_v44  ;;  %v14114_v44 = vmov 3  }
0x110f   : > { %4945 = vrot.lane.b32.xlu1 %v4936_v55, %s11425_s26  ;;  %4943 = vrot.lane.b32.xlu0 %v4935_v14, %s11425_s26  ;;  %v4911_v55 = vmul.f32 %v4897_v47, %v12557_v39 }
0x117d   : > { %v4950_v33 = vpop.permute.xlu1 %4949  ;;  %v4948_v8 = vpop.permute.xlu0 %4947 }
0x117e   : > { %v4958_v56 = vadd.f32 %v4950_v33, %v4914_v27  ;;  %v4957_v58 = vadd.f32 %v4948_v8, %v4913_v41 }
0x1180   : > { %v12598_v14 = vadd.f32 %v4978_v46, %v4958_v56  ;;  %v12600_v28 = vadd.f32 %v4977_v23, %v4957_v58 }
0x1181   : > { %v4946_v34 = vpop.permute.xlu1 %4945  ;;  %v4944_v5 = vpop.permute.xlu0 %4943 }
0x1182   : > { %v4956_v15 = vadd.f32 %v4946_v34, %v4912_v4  ;;  %v4955_v30 = vadd.f32 %v4944_v5, %v4911_v55  ;;  %4995 = vrot.lane.b32.xlu1 %v12598_v14, %s11424_s25  ;;  %4993 = vrot.lane.b32.xlu0 %v12600_v28, %s11424_s25 }
0x1184   : > { %v12608_v54 = vadd.f32 %v4976_v57, %v4956_v15  ;;  %v12610_v39 = vadd.f32 %v4975_v21, %v4955_v30 }
0x1186   : > { %4991 = vrot.lane.b32.xlu1 %v12608_v54, %s11424_s25  ;;  %4989 = vrot.lane.b32.xlu0 %v12610_v39, %s11424_s25 }
0x118a   : > { %5073 = vrot.lane.b32.xlu1 %v1242_v26, %s11424_s25  ;;  %5180 = vperm.xlu0 %11194, %v12500_v45  }
0x118e   : > { %5176 = vperm.xlu1 %11195, %v12498_v19   ;;  %5168 = vperm.xlu0 %11194, %v12494_v50  }
0x1192   : > { %5172 = vperm.xlu1 %11195, %v12496_v2   ;;  %5156 = vperm.xlu0 %11194, %v12510_v18  }
0x1196   : > { %5160 = vperm.xlu1 %11195, %v12515_v51   ;;  %5152 = vperm.xlu0 %11194, %v12508_v36  }
0x119a   : > { %11197 = vperm.xlu1 %11195, %v12513_v3   ;;  %11202 = vperm.xlu0 %11194, %v12522_v59  }
0x119e   : > { %5148 = vperm.xlu1 %11195, %v12506_v48   ;;  %11206 = vset.pattern.permute.xlu0 %v14114_v44 }
0x11a2   : > { %11207 = vset.pattern.permute.xlu1 %v14114_v44 }
0x11f4   : > { %v12631_v26 = vpop.permute.xlu1 %4995  ;;  %v12633_v30 = vpop.permute.xlu0 %4993 }
0x11f5   : > { %10394 = vmatpush3.msra.mxu0 %v12631_v26 }
0x11f6   : > { %10395 = vmatprep.subr.mxu0 %v14097_v42 }
0x11f7   : > { %10396 = vmatpush3.msra.mxu0 %v12633_v30 }
0x11f8   : > { %v12638_v52 = vpop.permute.xlu1 %4991  ;;  %10397 = vmatprep.subr.mxu0 %v14097_v42  ;;  %v12642_v47 = vpop.permute.xlu0 %4989 }
0x11f9   : > { %10398 = vmatpush3.msra.mxu0 %v12638_v52 }
0x11fa   : > { %10399 = vmatprep.subr.mxu0 %v14097_v42 }
0x11fb   : > { %10400 = vmatpush3.msra.mxu0 %v12642_v47 }
0x11fc   : > { %v5074_v29 = vpop.permute.xlu1 %5073  ;;  %10415 = vmatprep.subr.mxu0 %v14097_v42 }
0x11fd   : > { %10402 = vmatmul.mubr.msk.f32.vlgmr.msra.gmra.mxu0 %vm785_vm2, %v5074_v29 }
0x11fe   : > { %10423 = vmatprep.mubr.msk.f32.mxu0 %vm11407_vm1, %v14097_v42 }
0x1205   : > { %v5181_v40 = vpop.permute.xlu0 %5180 }
0x1209   : > { %v5177_v27 = vpop.permute.xlu1 %5176  ;;  %v5169_v46 = vpop.permute.xlu0 %5168 }
0x120d   : > { %v5173_v62 = vpop.permute.xlu1 %5172  ;;  %v5157_v4 = vpop.permute.xlu0 %5156 }
0x120e   : > { %v5165_v29 = vmul.f32 %v5157_v4, %v12600_v28 }
0x1211   : > { %v5161_v55 = vpop.permute.xlu1 %5160  ;;  %v5153_v21 = vpop.permute.xlu0 %5152 }
0x1215   : > { %v11198_v34 = vpop.permute.xlu1 %11197  ;;  %v11203_v5 = vpop.permute.xlu0 %11202 }
0x1216   : > { %v11200_v15 = vunpack.i.h.bf16 %v11198_v34  ;;  %v11199_v44 = vunpack.i.l.bf16 %v11198_v34 }
0x1219   : > { %v5149_v57 = vpop.permute.xlu1 %5148 }
0x12bd   : > { %v5143_v41 = vpop.f32.mrf.mxu0 }
0x12be   : > { %v5186_v23 = vrot.slane %v5143_v41, %v11688_v1  ;;  %v11204_v41 = vunpack.i.l.bf16 %v11203_v5 }
0x12bf   : > { %v10403_v35 = vpop.f32.mrf.mxu0 }
0x12c0   : > { %v5190_v33 = vmul.f32 %v5186_v23, %v5181_v40  ;;  %v5189_v8 = vmul.f32 %v5186_v23, %v5177_v27  ;;  %v5188_v56 = vmul.f32 %v5186_v23, %v5173_v62  ;;  %v5187_v58 = vmul.f32 %v5186_v23, %v5169_v46 }
0x12c1   : > { %v5166_v40 = vmul.f32 %v5161_v55, %v12598_v14  ;;  %v11205_v27 = vunpack.i.h.bf16 %v11203_v5  ;;  %v5228_v55 = vmul.f32 %v11204_v41, %v11979_v20 }
0x12c2   : > { %5201 = vrot.lane.b32.xlu1 %v5190_v33, %s11425_s26  ;;  %5199 = vrot.lane.b32.xlu0 %v5189_v8, %s11425_s26  ;;  %v5229_v33 = vmul.f32 %v11200_v15, %v11979_v20  ;;  %v5230_v8 = vmul.f32 %v11199_v44, %v11979_v20 }
0x12c3   : > { %v5227_v14 = vmul.f32 %v11205_v27, %v11979_v20  ;;  %v14115_v20 = vrot.slane %v11559_v17, 3 }
0x12c6   : > { %5197 = vrot.lane.b32.xlu1 %v5188_v56, %s11425_s26  ;;  %5195 = vrot.lane.b32.xlu0 %v5187_v58, %s11425_s26  ;;  %v5164_v56 = vmul.f32 %v5153_v21, %v12608_v54  ;;  %v5163_v58 = vmul.f32 %v5149_v57, %v12610_v39  ;;  %v14116_v21 = vmov 4  }
0x1334   : > { %v5202_v35 = vpop.permute.xlu1 %5201  ;;  %v5200_v23 = vpop.permute.xlu0 %5199 }
0x1335   : > { %v5210_v46 = vadd.f32 %v5202_v35, %v5166_v40  ;;  %v5209_v62 = vadd.f32 %v5200_v23, %v5165_v29 }
0x1337   : > { %v12661_v61 = vadd.f32 %v5230_v8, %v5210_v46  ;;  %v12663_v34 = vadd.f32 %v5229_v33, %v5209_v62 }
0x1338   : > { %v5198_v28 = vpop.permute.xlu1 %5197  ;;  %v5196_v4 = vpop.permute.xlu0 %5195 }
0x1339   : > { %v5208_v5 = vadd.f32 %v5198_v28, %v5164_v56  ;;  %v5207_v15 = vadd.f32 %v5196_v4, %v5163_v58  ;;  %5247 = vrot.lane.b32.xlu1 %v12661_v61, %s11424_s25  ;;  %5245 = vrot.lane.b32.xlu0 %v12663_v34, %s11424_s25 }
0x133b   : > { %v12671_v54 = vadd.f32 %v5228_v55, %v5208_v5  ;;  %v12673_v39 = vadd.f32 %v5227_v14, %v5207_v15 }
0x133d   : > { %5243 = vrot.lane.b32.xlu1 %v12671_v54, %s11424_s25  ;;  %5241 = vrot.lane.b32.xlu0 %v12673_v39, %s11424_s25 }
0x1341   : > { %5325 = vrot.lane.b32.xlu1 %v14115_v20, %s11424_s25  ;;  %5432 = vperm.xlu0 %11206, %v12500_v45  }
0x1345   : > { %5428 = vperm.xlu1 %11207, %v12498_v19   ;;  %5420 = vperm.xlu0 %11206, %v12494_v50  }
0x1349   : > { %5424 = vperm.xlu1 %11207, %v12496_v2   ;;  %5408 = vperm.xlu0 %11206, %v12510_v18  }
0x134d   : > { %5412 = vperm.xlu1 %11207, %v12515_v51   ;;  %5404 = vperm.xlu0 %11206, %v12508_v36  }
0x1351   : > { %11209 = vperm.xlu1 %11207, %v12513_v3   ;;  %11214 = vperm.xlu0 %11206, %v12522_v59  }
0x1355   : > { %5400 = vperm.xlu1 %11207, %v12506_v48   ;;  %11218 = vset.pattern.permute.xlu0 %v14116_v21 }
0x1359   : > { %11219 = vset.pattern.permute.xlu1 %v14116_v21 }
0x13ab   : > { %v12694_v57 = vpop.permute.xlu1 %5247  ;;  %v12696_v44 = vpop.permute.xlu0 %5245 }
0x13ac   : > { %10416 = vmatpush3.msra.mxu0 %v12694_v57 }
0x13ad   : > { %10417 = vmatprep.subr.mxu0 %v14097_v42 }
0x13ae   : > { %10418 = vmatpush3.msra.mxu0 %v12696_v44 }
0x13af   : > { %v12701_v29 = vpop.permute.xlu1 %5243  ;;  %10419 = vmatprep.subr.mxu0 %v14097_v42  ;;  %v12705_v40 = vpop.permute.xlu0 %5241 }
0x13b0   : > { %10420 = vmatpush3.msra.mxu0 %v12701_v29 }
0x13b1   : > { %10421 = vmatprep.subr.mxu0 %v14097_v42 }
0x13b2   : > { %10422 = vmatpush3.msra.mxu0 %v12705_v40 }
0x13b3   : > { %v5326_v27 = vpop.permute.xlu1 %5325  ;;  %10437 = vmatprep.subr.mxu0 %v14097_v42 }
0x13b4   : > { %10424 = vmatmul.mubr.msk.f32.vlgmr.msra.gmra.mxu0 %vm785_vm2, %v5326_v27 }
0x13b5   : > { %10445 = vmatprep.mubr.msk.f32.mxu0 %vm11407_vm1, %v14097_v42 }
0x13bc   : > { %v5433_v41 = vpop.permute.xlu0 %5432 }
0x13c0   : > { %v5429_v35 = vpop.permute.xlu1 %5428  ;;  %v5421_v56 = vpop.permute.xlu0 %5420 }
0x13c4   : > { %v5425_v58 = vpop.permute.xlu1 %5424  ;;  %v5409_v4 = vpop.permute.xlu0 %5408 }
0x13c8   : > { %v5413_v55 = vpop.permute.xlu1 %5412  ;;  %v5405_v5 = vpop.permute.xlu0 %5404 }
0x13c9   : > { %v5416_v63 = vmul.f32 %v5405_v5, %v12671_v54 }
0x13cc   : > { %v11210_v15 = vpop.permute.xlu1 %11209  ;;  %v11215_v20 = vpop.permute.xlu0 %11214 }
0x13cd   : > { %v11212_v27 = vunpack.i.h.bf16 %v11210_v15 }
0x13d0   : > { %v5401_v21 = vpop.permute.xlu1 %5400 }
0x13d1   : > { %v5415_v13 = vmul.f32 %v5401_v21, %v12673_v39 }
0x1474   : > { %v5395_v23 = vpop.f32.mrf.mxu0 }
0x1475   : > { %v5438_v33 = vrot.slane %v5395_v23, %v11688_v1  ;;  %v5418_v23 = vmul.f32 %v5413_v55, %v12661_v61 }
0x1476   : > { %v10425_v8 = vpop.f32.mrf.mxu0 }
0x1477   : > { %v5442_v46 = vmul.f32 %v5438_v33, %v5433_v41  ;;  %v5441_v62 = vmul.f32 %v5438_v33, %v5429_v35  ;;  %v5440_v14 = vmul.f32 %v5438_v33, %v5425_v58  ;;  %v5439_v28 = vmul.f32 %v5438_v33, %v5421_v56 }
0x1478   : > { %v11211_v41 = vunpack.i.l.bf16 %v11210_v15  ;;  %v5417_v35 = vmul.f32 %v5409_v4, %v12663_v34  ;;  %v11217_v8 = vunpack.i.h.bf16 %v11215_v20  ;;  %v5481_v56 = vmul.f32 %v11212_v27, %v12022_v9 }
0x1479   : > { %5453 = vrot.lane.b32.xlu1 %v5442_v46, %s11425_s26  ;;  %5451 = vrot.lane.b32.xlu0 %v5441_v62, %s11425_s26  ;;  %v11216_v46 = vunpack.i.l.bf16 %v11215_v20 }
0x147a   : > { %v5482_v58 = vmul.f32 %v11211_v41, %v12022_v9  ;;  %v5479_v61 = vmul.f32 %v11217_v8, %v12022_v9 }
0x147b   : > { %v5480_v55 = vmul.f32 %v11216_v46, %v12022_v9  ;;  %v14118_v9 = vmov 5  }
0x147d   : > { %5449 = vrot.lane.b32.xlu1 %v5440_v14, %s11425_s26  ;;  %5447 = vrot.lane.b32.xlu0 %v5439_v28, %s11425_s26 }
0x14eb   : > { %v5454_v62 = vpop.permute.xlu1 %5453  ;;  %v5452_v33 = vpop.permute.xlu0 %5451 }
0x14ec   : > { %v5462_v14 = vadd.f32 %v5454_v62, %v5418_v23  ;;  %v5461_v28 = vadd.f32 %v5452_v33, %v5417_v35 }
0x14ee   : > { %v12724_v12 = vadd.f32 %v5482_v58, %v5462_v14  ;;  %v12726_v15 = vadd.f32 %v5481_v56, %v5461_v28 }
0x14ef   : > { %v5450_v34 = vpop.permute.xlu1 %5449  ;;  %v5448_v4 = vpop.permute.xlu0 %5447 }
0x14f0   : > { %v5460_v20 = vadd.f32 %v5450_v34, %v5416_v63  ;;  %v5459_v27 = vadd.f32 %v5448_v4, %v5415_v13  ;;  %5499 = vrot.lane.b32.xlu1 %v12724_v12, %s11424_s25  ;;  %5497 = vrot.lane.b32.xlu0 %v12726_v15, %s11424_s25  ;;  %v14117_v63 = vrot.slane %v11559_v17, 4 }
0x14f2   : > { %v12734_v54 = vadd.f32 %v5480_v55, %v5460_v20  ;;  %v12736_v39 = vadd.f32 %v5479_v61, %v5459_v27 }
0x14f4   : > { %5495 = vrot.lane.b32.xlu1 %v12734_v54, %s11424_s25  ;;  %5493 = vrot.lane.b32.xlu0 %v12736_v39, %s11424_s25 }
0x14f8   : > { %5577 = vrot.lane.b32.xlu1 %v14117_v63, %s11424_s25  ;;  %5684 = vperm.xlu0 %11218, %v12500_v45  }
0x14fc   : > { %5680 = vperm.xlu1 %11219, %v12498_v19   ;;  %5672 = vperm.xlu0 %11218, %v12494_v50  }
0x1500   : > { %5676 = vperm.xlu1 %11219, %v12496_v2   ;;  %5660 = vperm.xlu0 %11218, %v12510_v18  }
0x1504   : > { %5664 = vperm.xlu1 %11219, %v12515_v51   ;;  %5656 = vperm.xlu0 %11218, %v12508_v36  }
0x1508   : > { %11221 = vperm.xlu1 %11219, %v12513_v3   ;;  %11226 = vperm.xlu0 %11218, %v12522_v59  }
0x150c   : > { %5652 = vperm.xlu1 %11219, %v12506_v48   ;;  %11230 = vset.pattern.permute.xlu0 %v14118_v9 }
0x1510   : > { %11231 = vset.pattern.permute.xlu1 %v14118_v9 }
0x1562   : > { %v12757_v13 = vpop.permute.xlu1 %5499  ;;  %v12759_v5 = vpop.permute.xlu0 %5497 }
0x1563   : > { %10438 = vmatpush3.msra.mxu0 %v12757_v13 }
0x1564   : > { %10439 = vmatprep.subr.mxu0 %v14097_v42 }
0x1565   : > { %10440 = vmatpush3.msra.mxu0 %v12759_v5 }
0x1566   : > { %v12764_v21 = vpop.permute.xlu1 %5495  ;;  %10441 = vmatprep.subr.mxu0 %v14097_v42  ;;  %v12768_v41 = vpop.permute.xlu0 %5493 }
0x1567   : > { %10442 = vmatpush3.msra.mxu0 %v12764_v21 }
0x1568   : > { %10443 = vmatprep.subr.mxu0 %v14097_v42 }
0x1569   : > { %10444 = vmatpush3.msra.mxu0 %v12768_v41 }
0x156a   : > { %v5578_v35 = vpop.permute.xlu1 %5577  ;;  %10459 = vmatprep.subr.mxu0 %v14097_v42 }
0x156b   : > { %10446 = vmatmul.mubr.msk.f32.vlgmr.msra.gmra.mxu0 %vm785_vm2, %v5578_v35 }
0x156c   : > { %10467 = vmatprep.mubr.msk.f32.mxu0 %vm11407_vm1, %v14097_v42 }
0x1573   : > { %v5685_v23 = vpop.permute.xlu0 %5684 }
0x1577   : > { %v5681_v8 = vpop.permute.xlu1 %5680  ;;  %v5673_v14 = vpop.permute.xlu0 %5672 }
0x157b   : > { %v5677_v28 = vpop.permute.xlu1 %5676  ;;  %v5661_v4 = vpop.permute.xlu0 %5660 }
0x157f   : > { %v5665_v55 = vpop.permute.xlu1 %5664  ;;  %v5657_v20 = vpop.permute.xlu0 %5656 }
0x1580   : > { %v5668_v49 = vmul.f32 %v5657_v20, %v12734_v54 }
0x1583   : > { %v11222_v27 = vpop.permute.xlu1 %11221  ;;  %v11227_v63 = vpop.permute.xlu0 %11226 }
0x1584   : > { %v11224_v35 = vunpack.i.h.bf16 %v11222_v27 }
0x1587   : > { %v5653_v9 = vpop.permute.xlu1 %5652 }
0x1588   : > { %v5667_v37 = vmul.f32 %v5653_v9, %v12736_v39 }
0x162b   : > { %v5647_v46 = vpop.f32.mrf.mxu0 }
0x162c   : > { %v5690_v62 = vrot.slane %v5647_v46, %v11688_v1  ;;  %v5670_v46 = vmul.f32 %v5665_v55, %v12724_v12 }
0x162d   : > { %v10447_v33 = vpop.f32.mrf.mxu0 }
0x162e   : > { %v5694_v56 = vmul.f32 %v5690_v62, %v5685_v23  ;;  %v5693_v58 = vmul.f32 %v5690_v62, %v5681_v8  ;;  %v5692_v61 = vmul.f32 %v5690_v62, %v5677_v28  ;;  %v5691_v34 = vmul.f32 %v5690_v62, %v5673_v14 }
0x162f   : > { %v11223_v23 = vunpack.i.l.bf16 %v11222_v27  ;;  %v5669_v8 = vmul.f32 %v5661_v4, %v12726_v15  ;;  %v11229_v33 = vunpack.i.h.bf16 %v11227_v63  ;;  %v5733_v14 = vmul.f32 %v11224_v35, %v12069_v16 }
0x1630   : > { %5705 = vrot.lane.b32.xlu1 %v5694_v56, %s11425_s26  ;;  %5703 = vrot.lane.b32.xlu0 %v5693_v58, %s11425_s26  ;;  %v11228_v56 = vunpack.i.l.bf16 %v11227_v63 }
0x1631   : > { %v5734_v28 = vmul.f32 %v11223_v23, %v12069_v16  ;;  %v5731_v12 = vmul.f32 %v11229_v33, %v12069_v16 }
0x1632   : > { %v5732_v55 = vmul.f32 %v11228_v56, %v12069_v16  ;;  %v14119_v16 = vrot.slane %v11559_v17, 5 }
0x1634   : > { %5701 = vrot.lane.b32.xlu1 %v5692_v61, %s11425_s26  ;;  %5699 = vrot.lane.b32.xlu0 %v5691_v34, %s11425_s26 }
0x16a2   : > { %v5706_v58 = vpop.permute.xlu1 %5705  ;;  %v5704_v62 = vpop.permute.xlu0 %5703 }
0x16a3   : > { %v5714_v61 = vadd.f32 %v5706_v58, %v5670_v46  ;;  %v5713_v34 = vadd.f32 %v5704_v62, %v5669_v8 }
0x16a5   : > { %v12787_v24 = vadd.f32 %v5734_v28, %v5714_v61  ;;  %v12789_v27 = vadd.f32 %v5733_v14, %v5713_v34 }
0x16a6   : > { %v5702_v15 = vpop.permute.xlu1 %5701  ;;  %v5700_v4 = vpop.permute.xlu0 %5699 }
0x16a7   : > { %v5712_v63 = vadd.f32 %v5702_v15, %v5668_v49  ;;  %v5711_v35 = vadd.f32 %v5700_v4, %v5667_v37  ;;  %5751 = vrot.lane.b32.xlu1 %v12787_v24, %s11424_s25  ;;  %5749 = vrot.lane.b32.xlu0 %v12789_v27, %s11424_s25  ;;  %v14120_v37 = vmov 6  }
0x16a9   : > { %v12797_v54 = vadd.f32 %v5732_v55, %v5712_v63  ;;  %v12799_v39 = vadd.f32 %v5731_v12, %v5711_v35 }
0x16ab   : > { %5747 = vrot.lane.b32.xlu1 %v12797_v54, %s11424_s25  ;;  %5745 = vrot.lane.b32.xlu0 %v12799_v39, %s11424_s25 }
0x16af   : > { %5829 = vrot.lane.b32.xlu1 %v14119_v16, %s11424_s25  ;;  %5936 = vperm.xlu0 %11230, %v12500_v45  }
0x16b3   : > { %5932 = vperm.xlu1 %11231, %v12498_v19   ;;  %5924 = vperm.xlu0 %11230, %v12494_v50  }
0x16b7   : > { %5928 = vperm.xlu1 %11231, %v12496_v2   ;;  %5912 = vperm.xlu0 %11230, %v12510_v18  }
0x16bb   : > { %5916 = vperm.xlu1 %11231, %v12515_v51   ;;  %5908 = vperm.xlu0 %11230, %v12508_v36  }
0x16bf   : > { %11233 = vperm.xlu1 %11231, %v12513_v3   ;;  %11238 = vperm.xlu0 %11230, %v12522_v59  }
0x16c3   : > { %5904 = vperm.xlu1 %11231, %v12506_v48   ;;  %11242 = vset.pattern.permute.xlu0 %v14120_v37 }
0x16c7   : > { %11243 = vset.pattern.permute.xlu1 %v14120_v37 }
0x1719   : > { %v12820_v49 = vpop.permute.xlu1 %5751  ;;  %v12822_v20 = vpop.permute.xlu0 %5749 }
0x171a   : > { %10460 = vmatpush3.msra.mxu0 %v12820_v49 }
0x171b   : > { %10461 = vmatprep.subr.mxu0 %v14097_v42 }
0x171c   : > { %10462 = vmatpush3.msra.mxu0 %v12822_v20 }
0x171d   : > { %v12827_v9 = vpop.permute.xlu1 %5747  ;;  %10463 = vmatprep.subr.mxu0 %v14097_v42  ;;  %v12831_v23 = vpop.permute.xlu0 %5745 }
0x171e   : > { %14121 = vst [vmem:[#allocation5_spill] sm:$0xff] %v12827_v9  ;;  %10464 = vmatpush3.msra.mxu0 %v12827_v9  ;;  %14122 = vst [vmem:[#allocation6_spill] sm:$0xff] %v12831_v23 }
0x171f   : > { %10465 = vmatprep.subr.mxu0 %v14097_v42 }
0x1720   : > { %10466 = vmatpush3.msra.mxu0 %v12831_v23 }
0x1721   : > { %v5830_v8 = vpop.permute.xlu1 %5829  ;;  %10481 = vmatprep.subr.mxu0 %v14097_v42 }
0x1722   : > { %10468 = vmatmul.mubr.msk.f32.vlgmr.msra.gmra.mxu0 %vm785_vm2, %v5830_v8 }
0x1723   : > { %10489 = vmatprep.mubr.msk.f32.mxu0 %vm11407_vm1, %v14097_v42 }
0x172a   : > { %v5937_v46 = vpop.permute.xlu0 %5936 }
0x172e   : > { %v5933_v33 = vpop.permute.xlu1 %5932  ;;  %v5925_v61 = vpop.permute.xlu0 %5924 }
0x1732   : > { %v5929_v34 = vpop.permute.xlu1 %5928  ;;  %v5913_v4 = vpop.permute.xlu0 %5912 }
0x1736   : > { %v5917_v55 = vpop.permute.xlu1 %5916  ;;  %v5909_v63 = vpop.permute.xlu0 %5908 }
0x1737   : > { %v5920_v43 = vmul.f32 %v5909_v63, %v12797_v54 }
0x173a   : > { %v11234_v35 = vpop.permute.xlu1 %11233  ;;  %v11239_v16 = vpop.permute.xlu0 %11238 }
0x173b   : > { %v11236_v8 = vunpack.i.h.bf16 %v11234_v35 }
0x173e   : > { %v5905_v37 = vpop.permute.xlu1 %5904 }
0x173f   : > { %v5919_v23 = vmul.f32 %v5905_v37, %v12799_v39 }
0x17e2   : > { %v5899_v56 = vpop.f32.mrf.mxu0 }
0x17e3   : > { %v5942_v58 = vrot.slane %v5899_v56, %v11688_v1  ;;  %v5922_v56 = vmul.f32 %v5917_v55, %v12787_v24 }
0x17e4   : > { %v10469_v62 = vpop.f32.mrf.mxu0 }
0x17e5   : > { %v5946_v14 = vmul.f32 %v5942_v58, %v5937_v46  ;;  %v5945_v28 = vmul.f32 %v5942_v58, %v5933_v33  ;;  %v5944_v12 = vmul.f32 %v5942_v58, %v5929_v34  ;;  %v5943_v15 = vmul.f32 %v5942_v58, %v5925_v61 }
0x17e6   : > { %v11235_v46 = vunpack.i.l.bf16 %v11234_v35  ;;  %v5921_v33 = vmul.f32 %v5913_v4, %v12789_v27  ;;  %v11241_v62 = vunpack.i.h.bf16 %v11239_v16  ;;  %v5985_v61 = vmul.f32 %v11236_v8, %v12110_v11 }
0x17e7   : > { %5957 = vrot.lane.b32.xlu1 %v5946_v14, %s11425_s26  ;;  %5955 = vrot.lane.b32.xlu0 %v5945_v28, %s11425_s26  ;;  %v11240_v14 = vunpack.i.l.bf16 %v11239_v16 }
0x17e8   : > { %v5986_v34 = vmul.f32 %v11235_v46, %v12110_v11  ;;  %v5983_v24 = vmul.f32 %v11241_v62, %v12110_v11 }
0x17e9   : > { %v5984_v55 = vmul.f32 %v11240_v14, %v12110_v11  ;;  %v14123_v11 = vrot.slane %v11559_v17, 6 }
0x17eb   : > { %5953 = vrot.lane.b32.xlu1 %v5944_v12, %s11425_s26  ;;  %5951 = vrot.lane.b32.xlu0 %v5943_v15, %s11425_s26 }
0x1859   : > { %v5958_v28 = vpop.permute.xlu1 %5957  ;;  %v5956_v58 = vpop.permute.xlu0 %5955 }
0x185a   : > { %v5966_v12 = vadd.f32 %v5958_v28, %v5922_v56  ;;  %v5965_v15 = vadd.f32 %v5956_v58, %v5921_v33 }
0x185c   : > { %v12850_v9 = vadd.f32 %v5986_v34, %v5966_v12  ;;  %v12852_v35 = vadd.f32 %v5985_v61, %v5965_v15 }
0x185d   : > { %v5954_v27 = vpop.permute.xlu1 %5953  ;;  %v5952_v4 = vpop.permute.xlu0 %5951 }
0x185e   : > { %v5964_v16 = vadd.f32 %v5954_v27, %v5920_v43  ;;  %v5963_v8 = vadd.f32 %v5952_v4, %v5919_v23  ;;  %6003 = vrot.lane.b32.xlu1 %v12850_v9, %s11424_s25  ;;  %6001 = vrot.lane.b32.xlu0 %v12852_v35, %s11424_s25  ;;  %v14124_v43 = vmov 7  }
0x1860   : > { %v12860_v54 = vadd.f32 %v5984_v55, %v5964_v16  ;;  %v12862_v39 = vadd.f32 %v5983_v24, %v5963_v8 }
0x1862   : > { %5999 = vrot.lane.b32.xlu1 %v12860_v54, %s11424_s25  ;;  %5997 = vrot.lane.b32.xlu0 %v12862_v39, %s11424_s25 }
0x1866   : > { %6081 = vrot.lane.b32.xlu1 %v14123_v11, %s11424_s25  ;;  %6188 = vperm.xlu0 %11242, %v12500_v45  }
0x186a   : > { %6184 = vperm.xlu1 %11243, %v12498_v19   ;;  %6176 = vperm.xlu0 %11242, %v12494_v50  }
0x186e   : > { %6180 = vperm.xlu1 %11243, %v12496_v2   ;;  %6164 = vperm.xlu0 %11242, %v12510_v18  }
0x1872   : > { %6168 = vperm.xlu1 %11243, %v12515_v51   ;;  %6160 = vperm.xlu0 %11242, %v12508_v36  }
0x1876   : > { %11245 = vperm.xlu1 %11243, %v12513_v3   ;;  %11250 = vperm.xlu0 %11242, %v12522_v59  }
0x187a   : > { %6156 = vperm.xlu1 %11243, %v12506_v48   ;;  %11254 = vset.pattern.permute.xlu0 %v14124_v43 }
0x187e   : > { %11255 = vset.pattern.permute.xlu1 %v14124_v43 }
0x18d0   : > { %v12883_v23 = vpop.permute.xlu1 %6003  ;;  %v12885_v63 = vpop.permute.xlu0 %6001 }
0x18d1   : > { %14125 = vst [vmem:[#allocation8_spill] sm:$0xff] %v12885_v63  ;;  %10482 = vmatpush3.msra.mxu0 %v12883_v23 }
0x18d2   : > { %10483 = vmatprep.subr.mxu0 %v14097_v42 }
0x18d3   : > { %10484 = vmatpush3.msra.mxu0 %v12885_v63 }
0x18d4   : > { %v12890_v37 = vpop.permute.xlu1 %5999  ;;  %10485 = vmatprep.subr.mxu0 %v14097_v42  ;;  %v12894_v46 = vpop.permute.xlu0 %5997 }
0x18d5   : > { %14126 = vst [vmem:[#allocation13_spill] sm:$0xff] %v12890_v37  ;;  %10486 = vmatpush3.msra.mxu0 %v12890_v37  ;;  %14127 = vst [vmem:[#allocation14_spill] sm:$0xff] %v12894_v46 }
0x18d6   : > { %10487 = vmatprep.subr.mxu0 %v14097_v42 }
0x18d7   : > { %10488 = vmatpush3.msra.mxu0 %v12894_v46 }
0x18d8   : > { %v6082_v33 = vpop.permute.xlu1 %6081  ;;  %10503 = vmatprep.subr.mxu0 %v14097_v42 }
0x18d9   : > { %10490 = vmatmul.mubr.msk.f32.vlgmr.msra.gmra.mxu0 %vm785_vm2, %v6082_v33 }
0x18da   : > { %10511 = vmatprep.mubr.msk.f32.mxu0 %vm11407_vm1, %v14097_v42 }
0x18e1   : > { %v6189_v56 = vpop.permute.xlu0 %6188 }
0x18e5   : > { %v6185_v62 = vpop.permute.xlu1 %6184  ;;  %v6177_v12 = vpop.permute.xlu0 %6176 }
0x18e9   : > { %v6181_v15 = vpop.permute.xlu1 %6180  ;;  %v6165_v4 = vpop.permute.xlu0 %6164 }
0x18ed   : > { %v6169_v55 = vpop.permute.xlu1 %6168  ;;  %v6161_v16 = vpop.permute.xlu0 %6160 }
0x18ee   : > { %v6172_v46 = vmul.f32 %v6161_v16, %v12860_v54 }
0x18f1   : > { %v11246_v8 = vpop.permute.xlu1 %11245  ;;  %v11251_v11 = vpop.permute.xlu0 %11250 }
0x18f2   : > { %v11248_v33 = vunpack.i.h.bf16 %v11246_v8 }
0x18f5   : > { %v6157_v43 = vpop.permute.xlu1 %6156 }
0x18f6   : > { %v6171_v37 = vmul.f32 %v6157_v43, %v12862_v39 }
0x1999   : > { %v6151_v14 = vpop.f32.mrf.mxu0 }
0x199a   : > { %v6194_v28 = vrot.slane %v6151_v14, %v11688_v1  ;;  %v6174_v14 = vmul.f32 %v6169_v55, %v12850_v9 }
0x199b   : > { %v10491_v58 = vpop.f32.mrf.mxu0 }
0x199c   : > { %v6198_v61 = vmul.f32 %v6194_v28, %v6189_v56  ;;  %v6197_v34 = vmul.f32 %v6194_v28, %v6185_v62  ;;  %v6196_v24 = vmul.f32 %v6194_v28, %v6181_v15  ;;  %v6195_v27 = vmul.f32 %v6194_v28, %v6177_v12 }
0x199d   : > { %v11247_v56 = vunpack.i.l.bf16 %v11246_v8  ;;  %v6173_v62 = vmul.f32 %v6165_v4, %v12852_v35  ;;  %v11253_v58 = vunpack.i.h.bf16 %v11251_v11  ;;  %v6237_v12 = vmul.f32 %v11248_v33, %v12151_v31 }
0x199e   : > { %6209 = vrot.lane.b32.xlu1 %v6198_v61, %s11425_s26  ;;  %6207 = vrot.lane.b32.xlu0 %v6197_v34, %s11425_s26  ;;  %v11252_v61 = vunpack.i.l.bf16 %v11251_v11 }
0x199f   : > { %v6238_v15 = vmul.f32 %v11247_v56, %v12151_v31  ;;  %v6235_v9 = vmul.f32 %v11253_v58, %v12151_v31 }
0x19a0   : > { %v6236_v55 = vmul.f32 %v11252_v61, %v12151_v31  ;;  %v14128_v31 = vrot.slane %v11559_v17, 7  ;;  %v14129_v17 = vmov 8  }
0x19a2   : > { %6205 = vrot.lane.b32.xlu1 %v6196_v24, %s11425_s26  ;;  %6203 = vrot.lane.b32.xlu0 %v6195_v27, %s11425_s26 }
0x1a10   : > { %v6210_v34 = vpop.permute.xlu1 %6209  ;;  %v6208_v28 = vpop.permute.xlu0 %6207 }
0x1a11   : > { %v6218_v24 = vadd.f32 %v6210_v34, %v6174_v14  ;;  %v6217_v27 = vadd.f32 %v6208_v28, %v6173_v62 }
0x1a13   : > { %v12913_v63 = vadd.f32 %v6238_v15, %v6218_v24  ;;  %v12915_v8 = vadd.f32 %v6237_v12, %v6217_v27 }
0x1a14   : > { %v6206_v35 = vpop.permute.xlu1 %6205  ;;  %v6204_v4 = vpop.permute.xlu0 %6203 }
0x1a15   : > { %v6216_v11 = vadd.f32 %v6206_v35, %v6172_v46  ;;  %v6215_v33 = vadd.f32 %v6204_v4, %v6171_v37  ;;  %6255 = vrot.lane.b32.xlu1 %v12913_v63, %s11424_s25  ;;  %6253 = vrot.lane.b32.xlu0 %v12915_v8, %s11424_s25 }
0x1a17   : > { %v12923_v54 = vadd.f32 %v6236_v55, %v6216_v11  ;;  %v12925_v39 = vadd.f32 %v6235_v9, %v6215_v33 }
0x1a19   : > { %6251 = vrot.lane.b32.xlu1 %v12923_v54, %s11424_s25  ;;  %6249 = vrot.lane.b32.xlu0 %v12925_v39, %s11424_s25 }
0x1a1d   : > { %6333 = vrot.lane.b32.xlu1 %v14128_v31, %s11424_s25  ;;  %6440 = vperm.xlu0 %11254, %v12500_v45  }
0x1a21   : > { %6436 = vperm.xlu1 %11255, %v12498_v19   ;;  %6428 = vperm.xlu0 %11254, %v12494_v50  }
0x1a25   : > { %6432 = vperm.xlu1 %11255, %v12496_v2   ;;  %6416 = vperm.xlu0 %11254, %v12510_v18  }
0x1a29   : > { %6420 = vperm.xlu1 %11255, %v12515_v51   ;;  %6412 = vperm.xlu0 %11254, %v12508_v36  }
0x1a2d   : > { %11257 = vperm.xlu1 %11255, %v12513_v3   ;;  %11262 = vperm.xlu0 %11254, %v12522_v59  }
0x1a31   : > { %6408 = vperm.xlu1 %11255, %v12506_v48   ;;  %11266 = vset.pattern.permute.xlu0 %v14129_v17 }
0x1a35   : > { %11267 = vset.pattern.permute.xlu1 %v14129_v17 }
0x1a87   : > { %v12946_v37 = vpop.permute.xlu1 %6255  ;;  %v12948_v46 = vpop.permute.xlu0 %6253 }
0x1a88   : > { %10504 = vmatpush3.msra.mxu0 %v12946_v37 }
0x1a89   : > { %10505 = vmatprep.subr.mxu0 %v14097_v42 }
0x1a8a   : > { %10506 = vmatpush3.msra.mxu0 %v12948_v46 }
0x1a8b   : > { %v12953_v16 = vpop.permute.xlu1 %6251  ;;  %10507 = vmatprep.subr.mxu0 %v14097_v42  ;;  %v12957_v43 = vpop.permute.xlu0 %6249 }
0x1a8c   : > { %14130 = vst [vmem:[#allocation15_spill] sm:$0xff] %v12953_v16  ;;  %10508 = vmatpush3.msra.mxu0 %v12953_v16  ;;  %14131 = vst [vmem:[#allocation16_spill] sm:$0xff] %v12957_v43 }
0x1a8d   : > { %10509 = vmatprep.subr.mxu0 %v14097_v42 }
0x1a8e   : > { %10510 = vmatpush3.msra.mxu0 %v12957_v43 }
0x1a8f   : > { %v6334_v56 = vpop.permute.xlu1 %6333  ;;  %10525 = vmatprep.subr.mxu0 %v14097_v42 }
0x1a90   : > { %10512 = vmatmul.mubr.msk.f32.vlgmr.msra.gmra.mxu0 %vm785_vm2, %v6334_v56 }
0x1a91   : > { %10533 = vmatprep.mubr.msk.f32.mxu0 %vm11407_vm1, %v14097_v42 }
0x1a98   : > { %v6441_v62 = vpop.permute.xlu0 %6440 }
0x1a9c   : > { %v6437_v14 = vpop.permute.xlu1 %6436  ;;  %v6429_v15 = vpop.permute.xlu0 %6428 }
0x1aa0   : > { %v6433_v24 = vpop.permute.xlu1 %6432  ;;  %v6417_v35 = vpop.permute.xlu0 %6416 }
0x1aa4   : > { %v6421_v4 = vpop.permute.xlu1 %6420  ;;  %v6413_v55 = vpop.permute.xlu0 %6412 }
0x1aa8   : > { %v11258_v11 = vpop.permute.xlu1 %11257  ;;  %v11263_v33 = vpop.permute.xlu0 %11262 }
0x1aa9   : > { %v11260_v17 = vunpack.i.h.bf16 %v11258_v11  ;;  %v11259_v56 = vunpack.i.l.bf16 %v11258_v11 }
0x1aac   : > { %v6409_v31 = vpop.permute.xlu1 %6408 }
0x1aad   : > { %v6423_v43 = vmul.f32 %v6409_v31, %v12925_v39 }
0x1b50   : > { %v6403_v58 = vpop.f32.mrf.mxu0 }
0x1b51   : > { %v6446_v61 = vrot.slane %v6403_v58, %v11688_v1  ;;  %v11265_v58 = vunpack.i.h.bf16 %v11263_v33 }
0x1b52   : > { %v10513_v34 = vpop.f32.mrf.mxu0 }
0x1b53   : > { %v6450_v28 = vmul.f32 %v6446_v61, %v6441_v62  ;;  %v6449_v12 = vmul.f32 %v6446_v61, %v6437_v14  ;;  %v6448_v27 = vmul.f32 %v6446_v61, %v6433_v24  ;;  %v6447_v9 = vmul.f32 %v6446_v61, %v6429_v15 }
0x1b54   : > { %v6425_v62 = vmul.f32 %v6417_v35, %v12915_v8  ;;  %v6426_v14 = vmul.f32 %v6421_v4, %v12913_v63  ;;  %v11264_v34 = vunpack.i.l.bf16 %v11263_v33  ;;  %v6490_v15 = vmul.f32 %v11259_v56, %v12188_v32 }
0x1b55   : > { %6461 = vrot.lane.b32.xlu1 %v6450_v28, %s11425_s26  ;;  %6459 = vrot.lane.b32.xlu0 %v6449_v12, %s11425_s26  ;;  %v6489_v12 = vmul.f32 %v11260_v17, %v12188_v32  ;;  %v6487_v63 = vmul.f32 %v11265_v58, %v12188_v32 }
0x1b56   : > { %v6488_v4 = vmul.f32 %v11264_v34, %v12188_v32  ;;  %v14132_v32 = vmov 9  }
0x1b59   : > { %6457 = vrot.lane.b32.xlu1 %v6448_v27, %s11425_s26  ;;  %6455 = vrot.lane.b32.xlu0 %v6447_v9, %s11425_s26  ;;  %v6424_v9 = vmul.f32 %v6413_v55, %v12923_v54 }
0x1bc7   : > { %v6462_v28 = vpop.permute.xlu1 %6461  ;;  %v6460_v61 = vpop.permute.xlu0 %6459 }
0x1bc8   : > { %v6470_v24 = vadd.f32 %v6462_v28, %v6426_v14  ;;  %v6469_v27 = vadd.f32 %v6460_v61, %v6425_v62 }
0x1bca   : > { %v12976_v16 = vadd.f32 %v6490_v15, %v6470_v24  ;;  %v12978_v11 = vadd.f32 %v6489_v12, %v6469_v27 }
0x1bcb   : > { %v6458_v8 = vpop.permute.xlu1 %6457  ;;  %v6456_v35 = vpop.permute.xlu0 %6455 }
0x1bcc   : > { %v6468_v33 = vadd.f32 %v6458_v8, %v6424_v9  ;;  %v6467_v17 = vadd.f32 %v6456_v35, %v6423_v43  ;;  %6507 = vrot.lane.b32.xlu1 %v12976_v16, %s11424_s25  ;;  %6505 = vrot.lane.b32.xlu0 %v12978_v11, %s11424_s25 }
0x1bce   : > { %v12986_v54 = vadd.f32 %v6488_v4, %v6468_v33  ;;  %v12988_v39 = vadd.f32 %v6487_v63, %v6467_v17 }
0x1bd0   : > { %6503 = vrot.lane.b32.xlu1 %v12986_v54, %s11424_s25  ;;  %6501 = vrot.lane.b32.xlu0 %v12988_v39, %s11424_s25 }
0x1bd4   : > { %6585 = vrot.lane.b32.xlu1 %v12202_v10, %s11424_s25  ;;  %6692 = vperm.xlu0 %11266, %v12500_v45  }
0x1bd8   : > { %6688 = vperm.xlu1 %11267, %v12498_v19   ;;  %6680 = vperm.xlu0 %11266, %v12494_v50  }
0x1bdc   : > { %6684 = vperm.xlu1 %11267, %v12496_v2   ;;  %6668 = vperm.xlu0 %11266, %v12510_v18  }
0x1be0   : > { %6672 = vperm.xlu1 %11267, %v12515_v51   ;;  %6664 = vperm.xlu0 %11266, %v12508_v36  }
0x1be4   : > { %11269 = vperm.xlu1 %11267, %v12513_v3   ;;  %11274 = vperm.xlu0 %11266, %v12522_v59  }
0x1be8   : > { %6660 = vperm.xlu1 %11267, %v12506_v48   ;;  %11278 = vset.pattern.permute.xlu0 %v14132_v32 }
0x1bec   : > { %11279 = vset.pattern.permute.xlu1 %v14132_v32 }
0x1c3e   : > { %v13008_v43 = vpop.permute.xlu1 %6507  ;;  %v13010_v55 = vpop.permute.xlu0 %6505 }
0x1c3f   : > { %14133 = vst [vmem:[#allocation17_spill] sm:$0xff] %v13010_v55  ;;  %10526 = vmatpush3.msra.mxu0 %v13008_v43 }
0x1c40   : > { %10527 = vmatprep.subr.mxu0 %v14097_v42 }
0x1c41   : > { %10528 = vmatpush3.msra.mxu0 %v13010_v55 }
0x1c42   : > { %v13015_v31 = vpop.permute.xlu1 %6503  ;;  %10529 = vmatprep.subr.mxu0 %v14097_v42  ;;  %v13019_v56 = vpop.permute.xlu0 %6501 }
0x1c43   : > { %14134 = vst [vmem:[#allocation18_spill] sm:$0xff] %v13015_v31  ;;  %10530 = vmatpush3.msra.mxu0 %v13015_v31  ;;  %14135 = vst [vmem:[#allocation19_spill] sm:$0xff] %v13019_v56 }
0x1c44   : > { %10531 = vmatprep.subr.mxu0 %v14097_v42 }
0x1c45   : > { %10532 = vmatpush3.msra.mxu0 %v13019_v56 }
0x1c46   : > { %v6586_v62 = vpop.permute.xlu1 %6585  ;;  %10547 = vmatprep.subr.mxu0 %v14097_v42 }
0x1c47   : > { %10534 = vmatmul.mubr.msk.f32.vlgmr.msra.gmra.mxu0 %vm785_vm2, %v6586_v62 }
0x1c48   : > { %10555 = vmatprep.mubr.msk.f32.mxu0 %vm11407_vm1, %v14097_v42 }
0x1c4f   : > { %v6693_v14 = vpop.permute.xlu0 %6692 }
0x1c53   : > { %v6689_v58 = vpop.permute.xlu1 %6688  ;;  %v6681_v24 = vpop.permute.xlu0 %6680 }
0x1c57   : > { %v6685_v27 = vpop.permute.xlu1 %6684  ;;  %v6669_v8 = vpop.permute.xlu0 %6668 }
0x1c5b   : > { %v6673_v35 = vpop.permute.xlu1 %6672  ;;  %v6665_v4 = vpop.permute.xlu0 %6664 }
0x1c5c   : > { %v6676_v56 = vmul.f32 %v6665_v4, %v12986_v54 }
0x1c5f   : > { %v11270_v33 = vpop.permute.xlu1 %11269  ;;  %v11275_v17 = vpop.permute.xlu0 %11274 }
0x1c60   : > { %v11272_v62 = vunpack.i.h.bf16 %v11270_v33 }
0x1c63   : > { %v6661_v32 = vpop.permute.xlu1 %6660 }
0x1c64   : > { %v6675_v31 = vmul.f32 %v6661_v32, %v12988_v39 }
0x1d07   : > { %v6655_v34 = vpop.f32.mrf.mxu0 }
0x1d08   : > { %v6698_v28 = vrot.slane %v6655_v34, %v11688_v1  ;;  %v6678_v34 = vmul.f32 %v6673_v35, %v12976_v16 }
0x1d09   : > { %v10535_v61 = vpop.f32.mrf.mxu0 }
0x1d0a   : > { %v6702_v12 = vmul.f32 %v6698_v28, %v6693_v14  ;;  %v6701_v15 = vmul.f32 %v6698_v28, %v6689_v58  ;;  %v6700_v9 = vmul.f32 %v6698_v28, %v6685_v27  ;;  %v6699_v63 = vmul.f32 %v6698_v28, %v6681_v24 }
0x1d0b   : > { %v11271_v14 = vunpack.i.l.bf16 %v11270_v33  ;;  %v6677_v58 = vmul.f32 %v6669_v8, %v12978_v11  ;;  %v11277_v61 = vunpack.i.h.bf16 %v11275_v17  ;;  %v6741_v24 = vmul.f32 %v11272_v62, %v12225_v53 }
0x1d0c   : > { %6713 = vrot.lane.b32.xlu1 %v6702_v12, %s11425_s26  ;;  %6711 = vrot.lane.b32.xlu0 %v6701_v15, %s11425_s26  ;;  %v11276_v12 = vunpack.i.l.bf16 %v11275_v17 }
0x1d0d   : > { %v6742_v27 = vmul.f32 %v11271_v14, %v12225_v53  ;;  %v6739_v16 = vmul.f32 %v11277_v61, %v12225_v53 }
0x1d0e   : > { %v6740_v35 = vmul.f32 %v11276_v12, %v12225_v53  ;;  %v14136_v53 = vrot.slane %v12202_v10, 1 }
0x1d10   : > { %6709 = vrot.lane.b32.xlu1 %v6700_v9, %s11425_s26  ;;  %6707 = vrot.lane.b32.xlu0 %v6699_v63, %s11425_s26 }
0x1d7e   : > { %v6714_v15 = vpop.permute.xlu1 %6713  ;;  %v6712_v28 = vpop.permute.xlu0 %6711 }
0x1d7f   : > { %v6722_v9 = vadd.f32 %v6714_v15, %v6678_v34  ;;  %v6721_v63 = vadd.f32 %v6712_v28, %v6677_v58 }
0x1d81   : > { %v13038_v55 = vadd.f32 %v6742_v27, %v6722_v9  ;;  %v13040_v33 = vadd.f32 %v6741_v24, %v6721_v63 }
0x1d82   : > { %v6710_v11 = vpop.permute.xlu1 %6709  ;;  %v6708_v8 = vpop.permute.xlu0 %6707 }
0x1d83   : > { %v6720_v17 = vadd.f32 %v6710_v11, %v6676_v56  ;;  %v6719_v62 = vadd.f32 %v6708_v8, %v6675_v31  ;;  %6759 = vrot.lane.b32.xlu1 %v13038_v55, %s11424_s25  ;;  %6757 = vrot.lane.b32.xlu0 %v13040_v33, %s11424_s25  ;;  %v14137_v31 = vmov 10  }
0x1d85   : > { %v13048_v54 = vadd.f32 %v6740_v35, %v6720_v17  ;;  %v13050_v39 = vadd.f32 %v6739_v16, %v6719_v62 }
0x1d87   : > { %6755 = vrot.lane.b32.xlu1 %v13048_v54, %s11424_s25  ;;  %6753 = vrot.lane.b32.xlu0 %v13050_v39, %s11424_s25 }
0x1d8b   : > { %6837 = vrot.lane.b32.xlu1 %v14136_v53, %s11424_s25  ;;  %6944 = vperm.xlu0 %11278, %v12500_v45  }
0x1d8f   : > { %6940 = vperm.xlu1 %11279, %v12498_v19   ;;  %6932 = vperm.xlu0 %11278, %v12494_v50  }
0x1d93   : > { %6936 = vperm.xlu1 %11279, %v12496_v2   ;;  %6920 = vperm.xlu0 %11278, %v12510_v18  }
0x1d97   : > { %6924 = vperm.xlu1 %11279, %v12515_v51   ;;  %6916 = vperm.xlu0 %11278, %v12508_v36  }
0x1d9b   : > { %11281 = vperm.xlu1 %11279, %v12513_v3   ;;  %11286 = vperm.xlu0 %11278, %v12522_v59  }
0x1d9f   : > { %6912 = vperm.xlu1 %11279, %v12506_v48   ;;  %11290 = vset.pattern.permute.xlu0 %v14137_v31 }
0x1da3   : > { %11291 = vset.pattern.permute.xlu1 %v14137_v31 }
0x1df5   : > { %v13071_v56 = vpop.permute.xlu1 %6759  ;;  %v13073_v4 = vpop.permute.xlu0 %6757 }
0x1df6   : > { %14138 = vst [vmem:[#allocation20_spill] sm:$0xff] %v13073_v4  ;;  %10548 = vmatpush3.msra.mxu0 %v13071_v56 }
0x1df7   : > { %10549 = vmatprep.subr.mxu0 %v14097_v42 }
0x1df8   : > { %10550 = vmatpush3.msra.mxu0 %v13073_v4 }
0x1df9   : > { %v13078_v32 = vpop.permute.xlu1 %6755  ;;  %10551 = vmatprep.subr.mxu0 %v14097_v42  ;;  %v13082_v14 = vpop.permute.xlu0 %6753 }
0x1dfa   : > { %14139 = vst [vmem:[#allocation21_spill] sm:$0xff] %v13078_v32  ;;  %10552 = vmatpush3.msra.mxu0 %v13078_v32  ;;  %14140 = vst [vmem:[#allocation22_spill] sm:$0xff] %v13082_v14 }
0x1dfb   : > { %10553 = vmatprep.subr.mxu0 %v14097_v42 }
0x1dfc   : > { %10554 = vmatpush3.msra.mxu0 %v13082_v14 }
0x1dfd   : > { %v6838_v58 = vpop.permute.xlu1 %6837  ;;  %10569 = vmatprep.subr.mxu0 %v14097_v42 }
0x1dfe   : > { %10556 = vmatmul.mubr.msk.f32.vlgmr.msra.gmra.mxu0 %vm785_vm2, %v6838_v58 }
0x1dff   : > { %10577 = vmatprep.mubr.msk.f32.mxu0 %vm11407_vm1, %v14097_v42 }
0x1e06   : > { %v6945_v34 = vpop.permute.xlu0 %6944 }
0x1e0a   : > { %v6941_v61 = vpop.permute.xlu1 %6940  ;;  %v6933_v9 = vpop.permute.xlu0 %6932 }
0x1e0e   : > { %v6937_v63 = vpop.permute.xlu1 %6936  ;;  %v6921_v8 = vpop.permute.xlu0 %6920 }
0x1e12   : > { %v6925_v35 = vpop.permute.xlu1 %6924  ;;  %v6917_v17 = vpop.permute.xlu0 %6916 }
0x1e13   : > { %v6928_v14 = vmul.f32 %v6917_v17, %v13048_v54 }
0x1e16   : > { %v11282_v62 = vpop.permute.xlu1 %11281  ;;  %v11287_v53 = vpop.permute.xlu0 %11286 }
0x1e17   : > { %v11284_v58 = vunpack.i.h.bf16 %v11282_v62 }
0x1e1a   : > { %v6913_v31 = vpop.permute.xlu1 %6912 }
0x1e1b   : > { %v6927_v32 = vmul.f32 %v6913_v31, %v13050_v39 }
0x1ebe   : > { %v6907_v12 = vpop.f32.mrf.mxu0 }
0x1ebf   : > { %v6950_v15 = vrot.slane %v6907_v12, %v11688_v1  ;;  %v6930_v12 = vmul.f32 %v6925_v35, %v13038_v55 }
0x1ec0   : > { %v10557_v28 = vpop.f32.mrf.mxu0 }
0x1ec1   : > { %v6954_v24 = vmul.f32 %v6950_v15, %v6945_v34  ;;  %v6953_v27 = vmul.f32 %v6950_v15, %v6941_v61  ;;  %v6952_v16 = vmul.f32 %v6950_v15, %v6937_v63  ;;  %v6951_v11 = vmul.f32 %v6950_v15, %v6933_v9 }
0x1ec2   : > { %v11283_v34 = vunpack.i.l.bf16 %v11282_v62  ;;  %v6929_v61 = vmul.f32 %v6921_v8, %v13040_v33  ;;  %v11289_v28 = vunpack.i.h.bf16 %v11287_v53  ;;  %v6993_v9 = vmul.f32 %v11284_v58, %v12260_v60 }
0x1ec3   : > { %6965 = vrot.lane.b32.xlu1 %v6954_v24, %s11425_s26  ;;  %6963 = vrot.lane.b32.xlu0 %v6953_v27, %s11425_s26  ;;  %v11288_v24 = vunpack.i.l.bf16 %v11287_v53 }
0x1ec4   : > { %v6994_v63 = vmul.f32 %v11283_v34, %v12260_v60  ;;  %v6991_v55 = vmul.f32 %v11289_v28, %v12260_v60 }
0x1ec5   : > { %v6992_v35 = vmul.f32 %v11288_v24, %v12260_v60  ;;  %v14141_v60 = vrot.slane %v12202_v10, 2 }
0x1ec7   : > { %6961 = vrot.lane.b32.xlu1 %v6952_v16, %s11425_s26  ;;  %6959 = vrot.lane.b32.xlu0 %v6951_v11, %s11425_s26 }
0x1f35   : > { %v6966_v27 = vpop.permute.xlu1 %6965  ;;  %v6964_v15 = vpop.permute.xlu0 %6963 }
0x1f36   : > { %v6974_v16 = vadd.f32 %v6966_v27, %v6930_v12  ;;  %v6973_v11 = vadd.f32 %v6964_v15, %v6929_v61 }
0x1f38   : > { %v13101_v4 = vadd.f32 %v6994_v63, %v6974_v16  ;;  %v13103_v62 = vadd.f32 %v6993_v9, %v6973_v11 }
0x1f39   : > { %v6962_v33 = vpop.permute.xlu1 %6961  ;;  %v6960_v8 = vpop.permute.xlu0 %6959 }
0x1f3a   : > { %v6972_v53 = vadd.f32 %v6962_v33, %v6928_v14  ;;  %v6971_v58 = vadd.f32 %v6960_v8, %v6927_v32  ;;  %7011 = vrot.lane.b32.xlu1 %v13101_v4, %s11424_s25  ;;  %7009 = vrot.lane.b32.xlu0 %v13103_v62, %s11424_s25  ;;  %v14142_v32 = vmov 11  }
0x1f3c   : > { %v13111_v54 = vadd.f32 %v6992_v35, %v6972_v53  ;;  %v13113_v39 = vadd.f32 %v6991_v55, %v6971_v58 }
0x1f3e   : > { %7007 = vrot.lane.b32.xlu1 %v13111_v54, %s11424_s25  ;;  %7005 = vrot.lane.b32.xlu0 %v13113_v39, %s11424_s25 }
0x1f42   : > { %7089 = vrot.lane.b32.xlu1 %v14141_v60, %s11424_s25  ;;  %7196 = vperm.xlu0 %11290, %v12500_v45  }
0x1f46   : > { %7192 = vperm.xlu1 %11291, %v12498_v19   ;;  %7184 = vperm.xlu0 %11290, %v12494_v50  }
0x1f4a   : > { %7188 = vperm.xlu1 %11291, %v12496_v2   ;;  %7172 = vperm.xlu0 %11290, %v12510_v18  }
0x1f4e   : > { %7176 = vperm.xlu1 %11291, %v12515_v51   ;;  %7168 = vperm.xlu0 %11290, %v12508_v36  }
0x1f52   : > { %11293 = vperm.xlu1 %11291, %v12513_v3   ;;  %11298 = vperm.xlu0 %11290, %v12522_v59  }
0x1f56   : > { %7164 = vperm.xlu1 %11291, %v12506_v48   ;;  %11302 = vset.pattern.permute.xlu0 %v14142_v32 }
0x1f5a   : > { %11303 = vset.pattern.permute.xlu1 %v14142_v32 }
0x1fac   : > { %v13134_v14 = vpop.permute.xlu1 %7011  ;;  %v13136_v17 = vpop.permute.xlu0 %7009 }
0x1fad   : > { %14143 = vst [vmem:[#allocation23_spill] sm:$0xff] %v13136_v17  ;;  %10570 = vmatpush3.msra.mxu0 %v13134_v14 }
0x1fae   : > { %10571 = vmatprep.subr.mxu0 %v14097_v42 }
0x1faf   : > { %10572 = vmatpush3.msra.mxu0 %v13136_v17 }
0x1fb0   : > { %v13141_v31 = vpop.permute.xlu1 %7007  ;;  %10573 = vmatprep.subr.mxu0 %v14097_v42  ;;  %v13145_v34 = vpop.permute.xlu0 %7005 }
0x1fb1   : > { %14144 = vst [vmem:[#allocation24_spill] sm:$0xff] %v13141_v31  ;;  %10574 = vmatpush3.msra.mxu0 %v13141_v31  ;;  %14145 = vst [vmem:[#allocation25_spill] sm:$0xff] %v13145_v34 }
0x1fb2   : > { %10575 = vmatprep.subr.mxu0 %v14097_v42 }
0x1fb3   : > { %10576 = vmatpush3.msra.mxu0 %v13145_v34 }
0x1fb4   : > { %v7090_v61 = vpop.permute.xlu1 %7089  ;;  %10591 = vmatprep.subr.mxu0 %v14097_v42 }
0x1fb5   : > { %10578 = vmatmul.mubr.msk.f32.vlgmr.msra.gmra.mxu0 %vm785_vm2, %v7090_v61 }
0x1fb6   : > { %10599 = vmatprep.mubr.msk.f32.mxu0 %vm11407_vm1, %v14097_v42 }
0x1fbd   : > { %v7197_v12 = vpop.permute.xlu0 %7196 }
0x1fc1   : > { %v7193_v28 = vpop.permute.xlu1 %7192  ;;  %v7185_v16 = vpop.permute.xlu0 %7184 }
0x1fc5   : > { %v7189_v11 = vpop.permute.xlu1 %7188  ;;  %v7173_v8 = vpop.permute.xlu0 %7172 }
0x1fc9   : > { %v7177_v35 = vpop.permute.xlu1 %7176  ;;  %v7169_v53 = vpop.permute.xlu0 %7168 }
0x1fca   : > { %v7180_v34 = vmul.f32 %v7169_v53, %v13111_v54 }
0x1fcd   : > { %v11294_v58 = vpop.permute.xlu1 %11293  ;;  %v11299_v60 = vpop.permute.xlu0 %11298 }
0x1fce   : > { %v11296_v61 = vunpack.i.h.bf16 %v11294_v58 }
0x1fd1   : > { %v7165_v32 = vpop.permute.xlu1 %7164 }
0x1fd2   : > { %v7179_v31 = vmul.f32 %v7165_v32, %v13113_v39 }
0x2075   : > { %v7159_v24 = vpop.f32.mrf.mxu0 }
0x2076   : > { %v7202_v27 = vrot.slane %v7159_v24, %v11688_v1  ;;  %v7182_v24 = vmul.f32 %v7177_v35, %v13101_v4 }
0x2077   : > { %v10579_v15 = vpop.f32.mrf.mxu0 }
0x2078   : > { %v7206_v9 = vmul.f32 %v7202_v27, %v7197_v12  ;;  %v7205_v63 = vmul.f32 %v7202_v27, %v7193_v28  ;;  %v7204_v55 = vmul.f32 %v7202_v27, %v7189_v11  ;;  %v7203_v33 = vmul.f32 %v7202_v27, %v7185_v16 }
0x2079   : > { %v11295_v12 = vunpack.i.l.bf16 %v11294_v58  ;;  %v7181_v28 = vmul.f32 %v7173_v8, %v13103_v62  ;;  %v11301_v15 = vunpack.i.h.bf16 %v11299_v60  ;;  %v7245_v16 = vmul.f32 %v11296_v61, %v12290_v25 }
0x207a   : > { %7217 = vrot.lane.b32.xlu1 %v7206_v9, %s11425_s26  ;;  %7215 = vrot.lane.b32.xlu0 %v7205_v63, %s11425_s26  ;;  %v11300_v9 = vunpack.i.l.bf16 %v11299_v60 }
0x207b   : > { %v7246_v11 = vmul.f32 %v11295_v12, %v12290_v25  ;;  %v7243_v4 = vmul.f32 %v11301_v15, %v12290_v25 }
0x207c   : > { %v7244_v35 = vmul.f32 %v11300_v9, %v12290_v25  ;;  %v14146_v25 = vrot.slane %v12202_v10, 3 }
0x207e   : > { %7213 = vrot.lane.b32.xlu1 %v7204_v55, %s11425_s26  ;;  %7211 = vrot.lane.b32.xlu0 %v7203_v33, %s11425_s26 }
0x20ec   : > { %v7218_v63 = vpop.permute.xlu1 %7217  ;;  %v7216_v27 = vpop.permute.xlu0 %7215 }
0x20ed   : > { %v7226_v55 = vadd.f32 %v7218_v63, %v7182_v24  ;;  %v7225_v33 = vadd.f32 %v7216_v27, %v7181_v28 }
0x20ef   : > { %v13164_v17 = vadd.f32 %v7246_v11, %v7226_v55  ;;  %v13166_v58 = vadd.f32 %v7245_v16, %v7225_v33 }
0x20f0   : > { %v7214_v62 = vpop.permute.xlu1 %7213  ;;  %v7212_v8 = vpop.permute.xlu0 %7211 }
0x20f1   : > { %v7224_v60 = vadd.f32 %v7214_v62, %v7180_v34  ;;  %v7223_v61 = vadd.f32 %v7212_v8, %v7179_v31  ;;  %7263 = vrot.lane.b32.xlu1 %v13164_v17, %s11424_s25  ;;  %7261 = vrot.lane.b32.xlu0 %v13166_v58, %s11424_s25  ;;  %v14147_v31 = vmov 12  }
0x20f3   : > { %v13174_v54 = vadd.f32 %v7244_v35, %v7224_v60  ;;  %v13176_v39 = vadd.f32 %v7243_v4, %v7223_v61 }
0x20f5   : > { %7259 = vrot.lane.b32.xlu1 %v13174_v54, %s11424_s25  ;;  %7257 = vrot.lane.b32.xlu0 %v13176_v39, %s11424_s25 }
0x20f9   : > { %7341 = vrot.lane.b32.xlu1 %v14146_v25, %s11424_s25  ;;  %7448 = vperm.xlu0 %11302, %v12500_v45  }
0x20fd   : > { %7444 = vperm.xlu1 %11303, %v12498_v19   ;;  %7436 = vperm.xlu0 %11302, %v12494_v50  }
0x2101   : > { %7440 = vperm.xlu1 %11303, %v12496_v2   ;;  %7424 = vperm.xlu0 %11302, %v12510_v18  }
0x2105   : > { %7428 = vperm.xlu1 %11303, %v12515_v51   ;;  %7420 = vperm.xlu0 %11302, %v12508_v36  }
0x2109   : > { %11305 = vperm.xlu1 %11303, %v12513_v3   ;;  %11310 = vperm.xlu0 %11302, %v12522_v59  }
0x210d   : > { %7416 = vperm.xlu1 %11303, %v12506_v48   ;;  %11314 = vset.pattern.permute.xlu0 %v14147_v31 }
0x2111   : > { %11315 = vset.pattern.permute.xlu1 %v14147_v31 }
0x2163   : > { %v13197_v34 = vpop.permute.xlu1 %7263  ;;  %v13199_v53 = vpop.permute.xlu0 %7261 }
0x2164   : > { %14148 = vst [vmem:[#allocation26_spill] sm:$0xff] %v13199_v53  ;;  %10592 = vmatpush3.msra.mxu0 %v13197_v34 }
0x2165   : > { %10593 = vmatprep.subr.mxu0 %v14097_v42 }
0x2166   : > { %10594 = vmatpush3.msra.mxu0 %v13199_v53 }
0x2167   : > { %v13204_v32 = vpop.permute.xlu1 %7259  ;;  %10595 = vmatprep.subr.mxu0 %v14097_v42  ;;  %v13208_v12 = vpop.permute.xlu0 %7257 }
0x2168   : > { %14149 = vst [vmem:[#allocation27_spill] sm:$0xff] %v13204_v32  ;;  %10596 = vmatpush3.msra.mxu0 %v13204_v32  ;;  %14150 = vst [vmem:[#allocation28_spill] sm:$0xff] %v13208_v12 }
0x2169   : > { %10597 = vmatprep.subr.mxu0 %v14097_v42 }
0x216a   : > { %10598 = vmatpush3.msra.mxu0 %v13208_v12 }
0x216b   : > { %v7342_v28 = vpop.permute.xlu1 %7341  ;;  %10613 = vmatprep.subr.mxu0 %v14097_v42 }
0x216c   : > { %10600 = vmatmul.mubr.msk.f32.vlgmr.msra.gmra.mxu0 %vm785_vm2, %v7342_v28 }
0x216d   : > { %10621 = vmatprep.mubr.msk.f32.mxu0 %vm11407_vm1, %v14097_v42 }
0x2174   : > { %v7449_v24 = vpop.permute.xlu0 %7448 }
0x2178   : > { %v7445_v15 = vpop.permute.xlu1 %7444  ;;  %v7437_v55 = vpop.permute.xlu0 %7436 }
0x217c   : > { %v7441_v33 = vpop.permute.xlu1 %7440  ;;  %v7425_v8 = vpop.permute.xlu0 %7424 }
0x2180   : > { %v7429_v35 = vpop.permute.xlu1 %7428  ;;  %v7421_v60 = vpop.permute.xlu0 %7420 }
0x2181   : > { %v7432_v12 = vmul.f32 %v7421_v60, %v13174_v54 }
0x2184   : > { %v11306_v61 = vpop.permute.xlu1 %11305  ;;  %v11311_v25 = vpop.permute.xlu0 %11310 }
0x2185   : > { %v11308_v28 = vunpack.i.h.bf16 %v11306_v61 }
0x2188   : > { %v7417_v31 = vpop.permute.xlu1 %7416 }
0x2189   : > { %v7431_v32 = vmul.f32 %v7417_v31, %v13176_v39 }
0x222c   : > { %v7411_v9 = vpop.f32.mrf.mxu0 }
0x222d   : > { %v7454_v63 = vrot.slane %v7411_v9, %v11688_v1  ;;  %v7434_v9 = vmul.f32 %v7429_v35, %v13164_v17 }
0x222e   : > { %v10601_v27 = vpop.f32.mrf.mxu0 }
0x222f   : > { %v7458_v16 = vmul.f32 %v7454_v63, %v7449_v24  ;;  %v7457_v11 = vmul.f32 %v7454_v63, %v7445_v15  ;;  %v7456_v4 = vmul.f32 %v7454_v63, %v7441_v33  ;;  %v7455_v62 = vmul.f32 %v7454_v63, %v7437_v55 }
0x2230   : > { %v11307_v24 = vunpack.i.l.bf16 %v11306_v61  ;;  %v7433_v15 = vmul.f32 %v7425_v8, %v13166_v58  ;;  %v11313_v27 = vunpack.i.h.bf16 %v11311_v25 }
0x2231   : > { %7469 = vrot.lane.b32.xlu1 %v7458_v16, %s11425_s26  ;;  %7467 = vrot.lane.b32.xlu0 %v7457_v11, %s11425_s26  ;;  %v11312_v16 = vunpack.i.l.bf16 %v11311_v25 }
0x2232   : > { %v7498_v55 = vmul.f32 %v11307_v24, %v12320_v0  ;;  %v7495_v17 = vmul.f32 %v11313_v27, %v12320_v0 }
0x2233   : > { %v7496_v35 = vmul.f32 %v11312_v16, %v12320_v0 }
0x2235   : > { %7465 = vrot.lane.b32.xlu1 %v7456_v4, %s11425_s26  ;;  %7463 = vrot.lane.b32.xlu0 %v7455_v62, %s11425_s26  ;;  %v7497_v4 = vmul.f32 %v11308_v28, %v12320_v0  ;;  %v14151_v0 = vrot.slane %v12202_v10, 4 }
0x22a3   : > { %v7470_v11 = vpop.permute.xlu1 %7469  ;;  %v7468_v63 = vpop.permute.xlu0 %7467 }
0x22a4   : > { %v7478_v33 = vadd.f32 %v7470_v11, %v7434_v9  ;;  %v7477_v62 = vadd.f32 %v7468_v63, %v7433_v15 }
0x22a6   : > { %v13227_v53 = vadd.f32 %v7498_v55, %v7478_v33  ;;  %v13229_v61 = vadd.f32 %v7497_v4, %v7477_v62 }
0x22a7   : > { %v7466_v58 = vpop.permute.xlu1 %7465  ;;  %v7464_v8 = vpop.permute.xlu0 %7463 }
0x22a8   : > { %v7476_v25 = vadd.f32 %v7466_v58, %v7432_v12  ;;  %v7475_v24 = vadd.f32 %v7464_v8, %v7431_v32  ;;  %7515 = vrot.lane.b32.xlu1 %v13227_v53, %s11424_s25  ;;  %7513 = vrot.lane.b32.xlu0 %v13229_v61, %s11424_s25  ;;  %v14152_v32 = vmov 13  }
0x22aa   : > { %v13237_v54 = vadd.f32 %v7496_v35, %v7476_v25  ;;  %v13239_v39 = vadd.f32 %v7495_v17, %v7475_v24 }
0x22ac   : > { %7511 = vrot.lane.b32.xlu1 %v13237_v54, %s11424_s25  ;;  %7509 = vrot.lane.b32.xlu0 %v13239_v39, %s11424_s25 }
0x22b0   : > { %7593 = vrot.lane.b32.xlu1 %v14151_v0, %s11424_s25  ;;  %7700 = vperm.xlu0 %11314, %v12500_v45  }
0x22b4   : > { %7696 = vperm.xlu1 %11315, %v12498_v19   ;;  %7688 = vperm.xlu0 %11314, %v12494_v50  }
0x22b8   : > { %7692 = vperm.xlu1 %11315, %v12496_v2   ;;  %7676 = vperm.xlu0 %11314, %v12510_v18  }
0x22bc   : > { %7680 = vperm.xlu1 %11315, %v12515_v51   ;;  %7672 = vperm.xlu0 %11314, %v12508_v36  }
0x22c0   : > { %11317 = vperm.xlu1 %11315, %v12513_v3   ;;  %11322 = vperm.xlu0 %11314, %v12522_v59  }
0x22c4   : > { %7668 = vperm.xlu1 %11315, %v12506_v48   ;;  %11326 = vset.pattern.permute.xlu0 %v14152_v32 }
0x22c8   : > { %11327 = vset.pattern.permute.xlu1 %v14152_v32 }
0x231a   : > { %v13260_v12 = vpop.permute.xlu1 %7515  ;;  %v13262_v60 = vpop.permute.xlu0 %7513 }
0x231b   : > { %14153 = vst [vmem:[#allocation29_spill] sm:$0xff] %v13262_v60  ;;  %10614 = vmatpush3.msra.mxu0 %v13260_v12 }
0x231c   : > { %10615 = vmatprep.subr.mxu0 %v14097_v42 }
0x231d   : > { %10616 = vmatpush3.msra.mxu0 %v13262_v60 }
0x231e   : > { %v13267_v31 = vpop.permute.xlu1 %7511  ;;  %10617 = vmatprep.subr.mxu0 %v14097_v42  ;;  %v13271_v28 = vpop.permute.xlu0 %7509 }
0x231f   : > { %14154 = vst [vmem:[#allocation30_spill] sm:$0xff] %v13267_v31  ;;  %10618 = vmatpush3.msra.mxu0 %v13267_v31  ;;  %14155 = vst [vmem:[#allocation31_spill] sm:$0xff] %v13271_v28 }
0x2320   : > { %10619 = vmatprep.subr.mxu0 %v14097_v42 }
0x2321   : > { %10620 = vmatpush3.msra.mxu0 %v13271_v28 }
0x2322   : > { %v7594_v15 = vpop.permute.xlu1 %7593  ;;  %10635 = vmatprep.subr.mxu0 %v14097_v42 }
0x2323   : > { %10622 = vmatmul.mubr.msk.f32.vlgmr.msra.gmra.mxu0 %vm785_vm2, %v7594_v15 }
0x2324   : > { %10643 = vmatprep.mubr.msk.f32.mxu0 %vm11407_vm1, %v14097_v42 }
0x232b   : > { %v7701_v9 = vpop.permute.xlu0 %7700 }
0x232f   : > { %v7697_v27 = vpop.permute.xlu1 %7696  ;;  %v7689_v4 = vpop.permute.xlu0 %7688 }
0x2333   : > { %v7693_v62 = vpop.permute.xlu1 %7692  ;;  %v7677_v8 = vpop.permute.xlu0 %7676 }
0x2337   : > { %v7681_v35 = vpop.permute.xlu1 %7680  ;;  %v7673_v25 = vpop.permute.xlu0 %7672 }
0x2338   : > { %v7684_v28 = vmul.f32 %v7673_v25, %v13237_v54 }
0x233b   : > { %v11318_v24 = vpop.permute.xlu1 %11317  ;;  %v11323_v0 = vpop.permute.xlu0 %11322 }
0x233c   : > { %v11320_v15 = vunpack.i.h.bf16 %v11318_v24 }
0x233f   : > { %v7669_v32 = vpop.permute.xlu1 %7668 }
0x2340   : > { %v7683_v31 = vmul.f32 %v7669_v32, %v13239_v39 }
0x23e3   : > { %v7663_v16 = vpop.f32.mrf.mxu0 }
0x23e4   : > { %v7706_v11 = vrot.slane %v7663_v16, %v11688_v1  ;;  %v7686_v16 = vmul.f32 %v7681_v35, %v13227_v53 }
0x23e5   : > { %v10623_v63 = vpop.f32.mrf.mxu0 }
0x23e6   : > { %v7710_v55 = vmul.f32 %v7706_v11, %v7701_v9  ;;  %v7709_v33 = vmul.f32 %v7706_v11, %v7697_v27  ;;  %v7708_v17 = vmul.f32 %v7706_v11, %v7693_v62  ;;  %v7707_v58 = vmul.f32 %v7706_v11, %v7689_v4 }
0x23e7   : > { %v11319_v9 = vunpack.i.l.bf16 %v11318_v24  ;;  %v7685_v27 = vmul.f32 %v7677_v8, %v13229_v61  ;;  %v11325_v63 = vunpack.i.h.bf16 %v11323_v0  ;;  %v7749_v4 = vmul.f32 %v11320_v15, %v12350_v38 }
0x23e8   : > { %7721 = vrot.lane.b32.xlu1 %v7710_v55, %s11425_s26  ;;  %7719 = vrot.lane.b32.xlu0 %v7709_v33, %s11425_s26  ;;  %v11324_v55 = vunpack.i.l.bf16 %v11323_v0 }
0x23e9   : > { %v7750_v62 = vmul.f32 %v11319_v9, %v12350_v38  ;;  %v7747_v53 = vmul.f32 %v11325_v63, %v12350_v38 }
0x23ea   : > { %v7748_v35 = vmul.f32 %v11324_v55, %v12350_v38  ;;  %v14156_v38 = vrot.slane %v12202_v10, 5 }
0x23ec   : > { %7717 = vrot.lane.b32.xlu1 %v7708_v17, %s11425_s26  ;;  %7715 = vrot.lane.b32.xlu0 %v7707_v58, %s11425_s26 }
0x245a   : > { %v7722_v33 = vpop.permute.xlu1 %7721  ;;  %v7720_v11 = vpop.permute.xlu0 %7719 }
0x245b   : > { %v7730_v17 = vadd.f32 %v7722_v33, %v7686_v16  ;;  %v7729_v58 = vadd.f32 %v7720_v11, %v7685_v27 }
0x245d   : > { %v13290_v60 = vadd.f32 %v7750_v62, %v7730_v17  ;;  %v13292_v24 = vadd.f32 %v7749_v4, %v7729_v58 }
0x245e   : > { %v7718_v61 = vpop.permute.xlu1 %7717  ;;  %v7716_v8 = vpop.permute.xlu0 %7715 }
0x245f   : > { %v7728_v0 = vadd.f32 %v7718_v61, %v7684_v28  ;;  %v7727_v15 = vadd.f32 %v7716_v8, %v7683_v31  ;;  %7767 = vrot.lane.b32.xlu1 %v13290_v60, %s11424_s25  ;;  %7765 = vrot.lane.b32.xlu0 %v13292_v24, %s11424_s25  ;;  %v14157_v31 = vmov 14  }
0x2461   : > { %v13300_v54 = vadd.f32 %v7748_v35, %v7728_v0  ;;  %v13302_v39 = vadd.f32 %v7747_v53, %v7727_v15 }
0x2463   : > { %7763 = vrot.lane.b32.xlu1 %v13300_v54, %s11424_s25  ;;  %7761 = vrot.lane.b32.xlu0 %v13302_v39, %s11424_s25 }
0x2467   : > { %7845 = vrot.lane.b32.xlu1 %v14156_v38, %s11424_s25  ;;  %7952 = vperm.xlu0 %11326, %v12500_v45  }
0x246b   : > { %7948 = vperm.xlu1 %11327, %v12498_v19   ;;  %7940 = vperm.xlu0 %11326, %v12494_v50  }
0x246f   : > { %7944 = vperm.xlu1 %11327, %v12496_v2   ;;  %7928 = vperm.xlu0 %11326, %v12510_v18  }
0x2473   : > { %7932 = vperm.xlu1 %11327, %v12515_v51   ;;  %7924 = vperm.xlu0 %11326, %v12508_v36  }
0x2477   : > { %11329 = vperm.xlu1 %11327, %v12513_v3   ;;  %11334 = vperm.xlu0 %11326, %v12522_v59  }
0x247b   : > { %7920 = vperm.xlu1 %11327, %v12506_v48   ;;  %11338 = vset.pattern.permute.xlu0 %v14157_v31 }
0x247f   : > { %11339 = vset.pattern.permute.xlu1 %v14157_v31 }
0x24d1   : > { %v13323_v28 = vpop.permute.xlu1 %7767  ;;  %v13325_v25 = vpop.permute.xlu0 %7765 }
0x24d2   : > { %14158 = vst [vmem:[#allocation32_spill] sm:$0xff] %v13325_v25  ;;  %10636 = vmatpush3.msra.mxu0 %v13323_v28 }
0x24d3   : > { %10637 = vmatprep.subr.mxu0 %v14097_v42 }
0x24d4   : > { %10638 = vmatpush3.msra.mxu0 %v13325_v25 }
0x24d5   : > { %v13330_v32 = vpop.permute.xlu1 %7763  ;;  %10639 = vmatprep.subr.mxu0 %v14097_v42  ;;  %v13334_v9 = vpop.permute.xlu0 %7761 }
0x24d6   : > { %14159 = vst [vmem:[#allocation33_spill] sm:$0xff] %v13330_v32  ;;  %10640 = vmatpush3.msra.mxu0 %v13330_v32  ;;  %14160 = vst [vmem:[#allocation34_spill] sm:$0xff] %v13334_v9 }
0x24d7   : > { %10641 = vmatprep.subr.mxu0 %v14097_v42 }
0x24d8   : > { %10642 = vmatpush3.msra.mxu0 %v13334_v9 }
0x24d9   : > { %v7846_v27 = vpop.permute.xlu1 %7845  ;;  %10657 = vmatprep.subr.mxu0 %v14097_v42 }
0x24da   : > { %10644 = vmatmul.mubr.msk.f32.vlgmr.msra.gmra.mxu0 %vm785_vm2, %v7846_v27 }
0x24db   : > { %10665 = vmatprep.mubr.msk.f32.mxu0 %vm11407_vm1, %v14097_v42 }
0x24e2   : > { %v7953_v16 = vpop.permute.xlu0 %7952 }
0x24e6   : > { %v7949_v63 = vpop.permute.xlu1 %7948  ;;  %v7941_v17 = vpop.permute.xlu0 %7940 }
0x24ea   : > { %v7945_v58 = vpop.permute.xlu1 %7944  ;;  %v7929_v8 = vpop.permute.xlu0 %7928 }
0x24ee   : > { %v7933_v35 = vpop.permute.xlu1 %7932  ;;  %v7925_v0 = vpop.permute.xlu0 %7924 }
0x24ef   : > { %v7936_v9 = vmul.f32 %v7925_v0, %v13300_v54 }
0x24f2   : > { %v11330_v15 = vpop.permute.xlu1 %11329  ;;  %v11335_v38 = vpop.permute.xlu0 %11334 }
0x24f3   : > { %v11332_v27 = vunpack.i.h.bf16 %v11330_v15 }
0x24f6   : > { %v7921_v31 = vpop.permute.xlu1 %7920 }
0x24f7   : > { %v7935_v32 = vmul.f32 %v7921_v31, %v13302_v39 }
0x259a   : > { %v7915_v55 = vpop.f32.mrf.mxu0 }
0x259b   : > { %v7958_v33 = vrot.slane %v7915_v55, %v11688_v1  ;;  %v7938_v55 = vmul.f32 %v7933_v35, %v13290_v60 }
0x259c   : > { %v10645_v11 = vpop.f32.mrf.mxu0 }
0x259d   : > { %v7962_v4 = vmul.f32 %v7958_v33, %v7953_v16  ;;  %v7961_v62 = vmul.f32 %v7958_v33, %v7949_v63  ;;  %v7960_v53 = vmul.f32 %v7958_v33, %v7945_v58  ;;  %v7959_v61 = vmul.f32 %v7958_v33, %v7941_v17 }
0x259e   : > { %v11331_v16 = vunpack.i.l.bf16 %v11330_v15  ;;  %v7937_v63 = vmul.f32 %v7929_v8, %v13292_v24  ;;  %v11337_v11 = vunpack.i.h.bf16 %v11335_v38  ;;  %v8001_v17 = vmul.f32 %v11332_v27, %v12380_v22 }
0x259f   : > { %7973 = vrot.lane.b32.xlu1 %v7962_v4, %s11425_s26  ;;  %7971 = vrot.lane.b32.xlu0 %v7961_v62, %s11425_s26  ;;  %v11336_v4 = vunpack.i.l.bf16 %v11335_v38 }
0x25a0   : > { %v8002_v58 = vmul.f32 %v11331_v16, %v12380_v22  ;;  %v7999_v60 = vmul.f32 %v11337_v11, %v12380_v22 }
0x25a1   : > { %v8000_v35 = vmul.f32 %v11336_v4, %v12380_v22  ;;  %v14161_v22 = vrot.slane %v12202_v10, 6 }
0x25a3   : > { %7969 = vrot.lane.b32.xlu1 %v7960_v53, %s11425_s26  ;;  %7967 = vrot.lane.b32.xlu0 %v7959_v61, %s11425_s26 }
0x2611   : > { %v7974_v62 = vpop.permute.xlu1 %7973  ;;  %v7972_v33 = vpop.permute.xlu0 %7971 }
0x2612   : > { %v7982_v53 = vadd.f32 %v7974_v62, %v7938_v55  ;;  %v7981_v61 = vadd.f32 %v7972_v33, %v7937_v63 }
0x2614   : > { %v13353_v25 = vadd.f32 %v8002_v58, %v7982_v53  ;;  %v13355_v15 = vadd.f32 %v8001_v17, %v7981_v61 }
0x2615   : > { %v7970_v24 = vpop.permute.xlu1 %7969  ;;  %v7968_v8 = vpop.permute.xlu0 %7967 }
0x2616   : > { %v7980_v38 = vadd.f32 %v7970_v24, %v7936_v9  ;;  %v7979_v27 = vadd.f32 %v7968_v8, %v7935_v32  ;;  %8019 = vrot.lane.b32.xlu1 %v13353_v25, %s11424_s25  ;;  %8017 = vrot.lane.b32.xlu0 %v13355_v15, %s11424_s25  ;;  %v14162_v32 = vmov 15  }
0x2618   : > { %v13363_v54 = vadd.f32 %v8000_v35, %v7980_v38  ;;  %v13365_v39 = vadd.f32 %v7999_v60, %v7979_v27 }
0x261a   : > { %8015 = vrot.lane.b32.xlu1 %v13363_v54, %s11424_s25  ;;  %8013 = vrot.lane.b32.xlu0 %v13365_v39, %s11424_s25 }
0x261e   : > { %8097 = vrot.lane.b32.xlu1 %v14161_v22, %s11424_s25  ;;  %8204 = vperm.xlu0 %11338, %v12500_v45  }
0x2622   : > { %8200 = vperm.xlu1 %11339, %v12498_v19   ;;  %8192 = vperm.xlu0 %11338, %v12494_v50  }
0x2626   : > { %8196 = vperm.xlu1 %11339, %v12496_v2   ;;  %8180 = vperm.xlu0 %11338, %v12510_v18  }
0x262a   : > { %8184 = vperm.xlu1 %11339, %v12515_v51   ;;  %8176 = vperm.xlu0 %11338, %v12508_v36  }
0x262e   : > { %11341 = vperm.xlu1 %11339, %v12513_v3   ;;  %11346 = vperm.xlu0 %11338, %v12522_v59  }
0x2632   : > { %8172 = vperm.xlu1 %11339, %v12506_v48   ;;  %11350 = vset.pattern.permute.xlu0 %v14162_v32 }
0x2636   : > { %11351 = vset.pattern.permute.xlu1 %v14162_v32 }
0x2688   : > { %v13386_v9 = vpop.permute.xlu1 %8019  ;;  %v13388_v0 = vpop.permute.xlu0 %8017 }
0x2689   : > { %14163 = vst [vmem:[#allocation35_spill] sm:$0xff] %v13388_v0  ;;  %10658 = vmatpush3.msra.mxu0 %v13386_v9 }
0x268a   : > { %10659 = vmatprep.subr.mxu0 %v14097_v42 }
0x268b   : > { %10660 = vmatpush3.msra.mxu0 %v13388_v0 }
0x268c   : > { %v13393_v31 = vpop.permute.xlu1 %8015  ;;  %10661 = vmatprep.subr.mxu0 %v14097_v42  ;;  %v13397_v16 = vpop.permute.xlu0 %8013 }
0x268d   : > { %14164 = vst [vmem:[#allocation36_spill] sm:$0xff] %v13393_v31  ;;  %10662 = vmatpush3.msra.mxu0 %v13393_v31  ;;  %14165 = vst [vmem:[#allocation37_spill] sm:$0xff] %v13397_v16 }
0x268e   : > { %10663 = vmatprep.subr.mxu0 %v14097_v42 }
0x268f   : > { %10664 = vmatpush3.msra.mxu0 %v13397_v16 }
0x2690   : > { %v8098_v63 = vpop.permute.xlu1 %8097  ;;  %10679 = vmatprep.subr.mxu0 %v14097_v42 }
0x2691   : > { %10666 = vmatmul.mubr.msk.f32.vlgmr.msra.gmra.mxu0 %vm785_vm2, %v8098_v63 }
0x2692   : > { %10687 = vmatprep.mubr.msk.f32.mxu0 %vm11407_vm1, %v14097_v42 }
0x2699   : > { %v8205_v55 = vpop.permute.xlu0 %8204 }
0x269d   : > { %v8201_v11 = vpop.permute.xlu1 %8200  ;;  %v8193_v53 = vpop.permute.xlu0 %8192 }
0x26a1   : > { %v8197_v61 = vpop.permute.xlu1 %8196  ;;  %v8181_v8 = vpop.permute.xlu0 %8180 }
0x26a5   : > { %v8185_v35 = vpop.permute.xlu1 %8184  ;;  %v8177_v38 = vpop.permute.xlu0 %8176 }
0x26a6   : > { %v8188_v16 = vmul.f32 %v8177_v38, %v13363_v54 }
0x26a9   : > { %v11342_v27 = vpop.permute.xlu1 %11341  ;;  %v11347_v22 = vpop.permute.xlu0 %11346 }
0x26aa   : > { %v11344_v63 = vunpack.i.h.bf16 %v11342_v27 }
0x26ad   : > { %v8173_v32 = vpop.permute.xlu1 %8172 }
0x26ae   : > { %v8187_v31 = vmul.f32 %v8173_v32, %v13365_v39 }
0x2751   : > { %v8167_v4 = vpop.f32.mrf.mxu0 }
0x2752   : > { %v8210_v62 = vrot.slane %v8167_v4, %v11688_v1  ;;  %v8190_v4 = vmul.f32 %v8185_v35, %v13353_v25 }
0x2753   : > { %v10667_v33 = vpop.f32.mrf.mxu0 }
0x2754   : > { %v8214_v17 = vmul.f32 %v8210_v62, %v8205_v55  ;;  %v8213_v58 = vmul.f32 %v8210_v62, %v8201_v11  ;;  %v8212_v60 = vmul.f32 %v8210_v62, %v8197_v61  ;;  %v8211_v24 = vmul.f32 %v8210_v62, %v8193_v53 }
0x2755   : > { %v11343_v55 = vunpack.i.l.bf16 %v11342_v27  ;;  %v8189_v11 = vmul.f32 %v8181_v8, %v13355_v15  ;;  %v11349_v33 = vunpack.i.h.bf16 %v11347_v22  ;;  %v8253_v53 = vmul.f32 %v11344_v63, %v12410_v6 }
0x2756   : > { %8225 = vrot.lane.b32.xlu1 %v8214_v17, %s11425_s26  ;;  %8223 = vrot.lane.b32.xlu0 %v8213_v58, %s11425_s26  ;;  %v11348_v17 = vunpack.i.l.bf16 %v11347_v22 }
0x2757   : > { %v8254_v61 = vmul.f32 %v11343_v55, %v12410_v6  ;;  %v8251_v25 = vmul.f32 %v11349_v33, %v12410_v6  ;;  %v14182_v33 = vld [vmem:[#allocation19_spill] sm:$0xff] }
0x2758   : > { %v8252_v35 = vmul.f32 %v11348_v17, %v12410_v6  ;;  %v14166_v6 = vrot.slane %v12202_v10, 7  ;;  %v14169_v10 = vrot.slane %v11730_v7, 2 }
0x275a   : > { %8221 = vrot.lane.b32.xlu1 %v8212_v60, %s11425_s26  ;;  %8219 = vrot.lane.b32.xlu0 %v8211_v24, %s11425_s26 }
0x27c8   : > { %v8226_v58 = vpop.permute.xlu1 %8225  ;;  %v8224_v62 = vpop.permute.xlu0 %8223 }
0x27c9   : > { %v8234_v60 = vadd.f32 %v8226_v58, %v8190_v4  ;;  %v8233_v24 = vadd.f32 %v8224_v62, %v8189_v11 }
0x27cb   : > { %v13416_v0 = vadd.f32 %v8254_v61, %v8234_v60  ;;  %v13418_v27 = vadd.f32 %v8253_v53, %v8233_v24  ;;  %v14183_v60 = vrot.slane %v11730_v7, 7 }
0x27cc   : > { %v8222_v15 = vpop.permute.xlu1 %8221  ;;  %v8220_v8 = vpop.permute.xlu0 %8219 }
0x27cd   : > { %v8232_v22 = vadd.f32 %v8222_v15, %v8188_v16  ;;  %v8231_v63 = vadd.f32 %v8220_v8, %v8187_v31  ;;  %8271 = vrot.lane.b32.xlu1 %v13416_v0, %s11424_s25  ;;  %8269 = vrot.lane.b32.xlu0 %v13418_v27, %s11424_s25  ;;  %v14167_v31 = vrot.slane %v11730_v7, 1  ;;  %v14168_v16 = vrot.slane %v11730_v7, 3 }
0x27cf   : > { %v13426_v54 = vadd.f32 %v8252_v35, %v8232_v22  ;;  %v13428_v39 = vadd.f32 %v8251_v25, %v8231_v63 }
0x27d1   : > { %8267 = vrot.lane.b32.xlu1 %v13426_v54, %s11424_s25  ;;  %8265 = vrot.lane.b32.xlu0 %v13428_v39, %s11424_s25 }
0x27d5   : > { %8349 = vrot.lane.b32.xlu1 %v14166_v6, %s11424_s25  ;;  %8456 = vperm.xlu0 %11350, %v12500_v45   ;;  %v14172_v45 = vrot.slane %v11730_v7, 6  ;;  %v2792_v6 = vpop.f32.mrf.mxu1 }
0x27d9   : > { %8452 = vperm.xlu1 %11351, %v12498_v19   ;;  %8444 = vperm.xlu0 %11350, %v12494_v50   ;;  %v14170_v50 = vrot.slane %v11730_v7, 4 }
0x27dd   : > { %8448 = vperm.xlu1 %11351, %v12496_v2   ;;  %4983 = vrot.lane.b32.xlu0 %v14167_v31, %s11424_s25  ;;  %v14171_v2 = vrot.slane %v11730_v7, 5  ;;  %v10194_v31 = vpop.f32.mrf.mxu1 }
0x27df   : > { %v11352_v19 = vpack.i.bf16 %v14171_v2, %v14170_v50 }
0x27e1   : > { %4731 = vrot.lane.b32.xlu1 %v11730_v7, %s11424_s25  ;;  %5487 = vrot.lane.b32.xlu0 %v14168_v16, %s11424_s25  ;;  %v3014_v16 = vpop.f32.mrf.mxu1 }
0x27e3   : > { %v10216_v50 = vpop.f32.mrf.mxu1 }
0x27e5   : > { %5235 = vrot.lane.b32.xlu1 %v14169_v10, %s11424_s25  ;;  %8436 = vperm.xlu0 %11350, %v12515_v51   ;;  %v4376_v10 = vrot.slane %v3014_v16, 7 }
0x27e7   : > { %v4410_v2 = vsel %vm4396_vm3, %v2792_v6, %v4376_v10  ;;  %v14192_v10 = vld [vmem:[#allocation20_spill] sm:$0xff] }
0x27e9   : > { %11353 = vrot.lane.b32.xlu1 %v11352_v19, %s11424_s25  ;;  %11358 = vperm.xlu0 %11350, %v12513_v3   ;;  %v3236_v19 = vpop.f32.mrf.mxu1 }
0x27ed   : > { %8432 = vperm.xlu1 %11351, %v12510_v18   ;;  %6243 = vrot.lane.b32.xlu0 %v14172_v45, %s11424_s25  ;;  %v4379_v45 = vrot.slane %v3236_v19, 6 }
0x27f1   : > { %8428 = vperm.xlu1 %11351, %v12508_v36   ;;  %11363 = vperm.xlu0 %11350, %v12522_v59  }
0x27f5   : > { %8424 = vperm.xlu1 %11351, %v12506_v48  }
0x283f   : > { %v13466_v51 = vpop.permute.xlu1 %8271  ;;  %v13468_v38 = vpop.permute.xlu0 %8269 }
0x2840   : > { %10680 = vmatpush3.msra.mxu0 %v13466_v51 }
0x2841   : > { %10681 = vmatprep.subr.mxu0 %v14097_v42 }
0x2842   : > { %10682 = vmatpush3.msra.mxu0 %v13468_v38 }
0x2843   : > { %v13473_v18 = vpop.permute.xlu1 %8267  ;;  %10683 = vmatprep.subr.mxu0 %v14097_v42  ;;  %v13477_v36 = vpop.permute.xlu0 %8265 }
0x2844   : > { %10684 = vmatpush3.msra.mxu0 %v13473_v18 }
0x2845   : > { %10685 = vmatprep.subr.mxu0 %v14097_v42 }
0x2846   : > { %10686 = vmatpush3.msra.mxu0 %v13477_v36 }
0x2847   : > { %v8350_v48 = vpop.permute.xlu1 %8349 }
0x2848   : > { %10688 = vmatmul.mubr.msk.f32.vlgmr.msra.gmra.mxu0 %vm785_vm2, %v8350_v48  ;;  %v10238_v48 = vpop.f32.mrf.mxu1 }
0x2850   : > { %v13484_v59 = vpop.permute.xlu0 %8456 }
0x2854   : > { %v13482_v3 = vpop.permute.xlu1 %8452  ;;  %v13489_v11 = vpop.permute.xlu0 %8444 }
0x2858   : > { %v13486_v32 = vpop.permute.xlu1 %8448  ;;  %v4984_v4 = vpop.permute.xlu0 %4983 }
0x285c   : > { %v4732_v55 = vpop.permute.xlu1 %4731 }
0x285d   : > { %10369 = vmatmul.mubr.msk.f32.vlgmr.msra.gmra.mxu1 %vm785_vm2, %v4732_v55 }
0x285e   : > { %10383 = vmatpush3.msra.mxu1 %v12631_v26  ;;  %10390 = vmatprep.mubr.msk.f32.mxu1 %vm11407_vm1, %v14097_v42 }
0x285f   : > { %10384 = vmatprep.subr.mxu1 %v14097_v42 }
0x2860   : > { %10385 = vmatpush3.msra.mxu1 %v12633_v30  ;;  %v5236_v26 = vpop.permute.xlu1 %5235  ;;  %v5488_v30 = vpop.permute.xlu0 %5487 }
0x2861   : > { %10386 = vmatprep.subr.mxu1 %v14097_v42 }
0x2862   : > { %10387 = vmatpush3.msra.mxu1 %v12638_v52 }
0x2863   : > { %10388 = vmatprep.subr.mxu1 %v14097_v42 }
0x2864   : > { %10389 = vmatpush3.msra.mxu1 %v12642_v47  ;;  %v11354_v52 = vpop.permute.xlu1 %11353 }
0x2865   : > { %10404 = vmatprep.subr.mxu1 %v14097_v42  ;;  %10391 = vmatmul.mubr.msk.f32.vlgmr.msra.gmra.mxu1 %vm785_vm2, %v4984_v4  ;;  %v11355_v47 = vunpack.i.l.bf16 %v11354_v52 }
0x2866   : > { %10405 = vmatpush3.msra.mxu1 %v12694_v57  ;;  %10412 = vmatprep.mubr.msk.f32.mxu1 %vm11407_vm1, %v14097_v42  ;;  %v14173_v57 = vld [vmem:[#allocation5_spill] sm:$0xff] }
0x2867   : > { %10406 = vmatprep.subr.mxu1 %v14097_v42 }
0x2868   : > { %10407 = vmatpush3.msra.mxu1 %v12696_v44  ;;  %v14174_v44 = vld [vmem:[#allocation6_spill] sm:$0xff]  ;;  %v8433_v4 = vpop.permute.xlu1 %8432 }
0x2869   : > { %10408 = vmatprep.subr.mxu1 %v14097_v42 }
0x286a   : > { %10409 = vmatpush3.msra.mxu1 %v12701_v29  ;;  %v13539_v29 = vpop.permute.xlu0 %8436 }
0x286b   : > { %10410 = vmatprep.subr.mxu1 %v14097_v42 }
0x286c   : > { %10411 = vmatpush3.msra.mxu1 %v12705_v40  ;;  %v14175_v40 = vld [vmem:[#allocation8_spill] sm:$0xff] }
0x286d   : > { %10426 = vmatprep.subr.mxu1 %v14097_v42  ;;  %10413 = vmatmul.mubr.msk.f32.vlgmr.msra.gmra.mxu1 %vm785_vm2, %v5236_v26  ;;  %v8429_v26 = vpop.permute.xlu1 %8428 }
0x286e   : > { %10427 = vmatpush3.msra.mxu1 %v12757_v13  ;;  %10434 = vmatprep.mubr.msk.f32.mxu1 %vm11407_vm1, %v14097_v42  ;;  %v11356_v13 = vunpack.i.h.bf16 %v11354_v52 }
0x286f   : > { %10428 = vmatprep.subr.mxu1 %v14097_v42 }
0x2870   : > { %10429 = vmatpush3.msra.mxu1 %v12759_v5  ;;  %v14176_v5 = vld [vmem:[#allocation13_spill] sm:$0xff] }
0x2871   : > { %10430 = vmatprep.subr.mxu1 %v14097_v42 }
0x2872   : > { %10431 = vmatpush3.msra.mxu1 %v12764_v21  ;;  %v14177_v21 = vld [vmem:[#allocation14_spill] sm:$0xff] }
0x2873   : > { %10432 = vmatprep.subr.mxu1 %v14097_v42 }
0x2874   : > { %10433 = vmatpush3.msra.mxu1 %v12768_v41  ;;  %v13548_v41 = vpop.permute.xlu0 %11358 }
0x2875   : > { %10448 = vmatprep.subr.mxu1 %v14097_v42  ;;  %10435 = vmatmul.mubr.msk.f32.vlgmr.msra.gmra.mxu1 %vm785_vm2, %v5488_v30  ;;  %v11361_v52 = vunpack.i.h.bf16 %v13548_v41 }
0x2876   : > { %10449 = vmatpush3.msra.mxu1 %v12820_v49  ;;  %10456 = vmatprep.mubr.msk.f32.mxu1 %vm11407_vm1, %v14097_v42  ;;  %v14178_v49 = vld [vmem:[#allocation15_spill] sm:$0xff] }
0x2877   : > { %10450 = vmatprep.subr.mxu1 %v14097_v42 }
0x2878   : > { %10451 = vmatpush3.msra.mxu1 %v12822_v20  ;;  %v6244_v20 = vpop.permute.xlu0 %6243 }
0x2879   : > { %10452 = vmatprep.subr.mxu1 %v14097_v42 }
0x287a   : > { %10453 = vmatpush3.msra.mxu1 %v14173_v57  ;;  %v8425_v57 = vpop.permute.xlu1 %8424 }
0x287b   : > { %10454 = vmatprep.subr.mxu1 %v14097_v42  ;;  %v8439_v6 = vmul.f32 %v8425_v57, %v13428_v39 }
0x287c   : > { %10455 = vmatpush3.msra.mxu1 %v14174_v44 }
0x287d   : > { %10470 = vmatprep.subr.mxu1 %v14097_v42  ;;  %10457 = vmatmul.mubr.msk.f32.vlgmr.msra.gmra.mxu1 %vm785_vm2, %v11355_v47  ;;  %v11364_v47 = vpop.permute.xlu0 %11363 }
0x287e   : > { %10471 = vmatpush3.msra.mxu1 %v12883_v23  ;;  %10478 = vmatprep.mubr.msk.f32.mxu1 %vm11407_vm1, %v14097_v42  ;;  %v14179_v23 = vld [vmem:[#allocation16_spill] sm:$0xff] }
0x287f   : > { %10472 = vmatprep.subr.mxu1 %v14097_v42 }
0x2880   : > { %10473 = vmatpush3.msra.mxu1 %v14175_v40  ;;  %v11360_v40 = vunpack.i.l.bf16 %v13548_v41 }
0x2881   : > { %10474 = vmatprep.subr.mxu1 %v14097_v42 }
0x2882   : > { %10475 = vmatpush3.msra.mxu1 %v14176_v5 }
0x2883   : > { %10476 = vmatprep.subr.mxu1 %v14097_v42 }
0x2884   : > { %10477 = vmatpush3.msra.mxu1 %v14177_v21  ;;  %v8442_v21 = vmul.f32 %v13539_v29, %v13416_v0 }
0x2885   : > { %10492 = vmatprep.subr.mxu1 %v14097_v42  ;;  %10479 = vmatmul.mubr.msk.f32.vlgmr.msra.gmra.mxu1 %vm785_vm2, %v11356_v13 }
0x2886   : > { %10493 = vmatpush3.msra.mxu1 %v12946_v37  ;;  %10500 = vmatprep.mubr.msk.f32.mxu1 %vm11407_vm1, %v14097_v42  ;;  %v14180_v37 = vld [vmem:[#allocation17_spill] sm:$0xff] }
0x2887   : > { %10494 = vmatprep.subr.mxu1 %v14097_v42 }
0x2888   : > { %10495 = vmatpush3.msra.mxu1 %v12948_v46  ;;  %v14181_v46 = vld [vmem:[#allocation18_spill] sm:$0xff] }
0x2889   : > { %10496 = vmatprep.subr.mxu1 %v14097_v42 }
0x288a   : > { %10497 = vmatpush3.msra.mxu1 %v14178_v49  ;;  %v8441_v49 = vmul.f32 %v8433_v4, %v13418_v27 }
0x288b   : > { %10498 = vmatprep.subr.mxu1 %v14097_v42 }
0x288c   : > { %10499 = vmatpush3.msra.mxu1 %v14179_v23  ;;  %v14191_v23 = vld [vmem:[#allocation12_spill] sm:$0xff] }
0x288d   : > { %10514 = vmatprep.subr.mxu1 %v14097_v42  ;;  %10501 = vmatmul.mubr.msk.f32.vlgmr.msra.gmra.mxu1 %vm785_vm2, %v6244_v20 }
0x288e   : > { %10515 = vmatpush3.msra.mxu1 %v13008_v43  ;;  %10522 = vmatprep.mubr.msk.f32.mxu1 %vm11407_vm1, %v14097_v42 }
0x288f   : > { %10516 = vmatprep.subr.mxu1 %v14097_v42 }
0x2890   : > { %10517 = vmatpush3.msra.mxu1 %v14180_v37  ;;  %v8505_v37 = vmul.f32 %v11361_v52, %v14191_v23 }
0x2891   : > { %10518 = vmatprep.subr.mxu1 %v14097_v42 }
0x2892   : > { %10519 = vmatpush3.msra.mxu1 %v14181_v46 }
0x2893   : > { %10520 = vmatprep.subr.mxu1 %v14097_v42 }
0x2894   : > { %10521 = vmatpush3.msra.mxu1 %v14182_v33 }
0x2895   : > { %10536 = vmatprep.subr.mxu1 %v14097_v42 }
0x2908   : > { %v8419_v17 = vpop.f32.mrf.mxu0 }
0x2909   : > { %v8462_v43 = vrot.slane %v8419_v17, %v11688_v1  ;;  %v14184_v1 = vld [vmem:[#allocation11_spill] sm:$0xff] }
0x290a   : > { %v10689_v58 = vpop.f32.mrf.mxu0  ;;  %v14185_v25 = vrot.slane %v14184_v1, 1  ;;  %v14186_v15 = vrot.slane %v14184_v1, 2  ;;  %v14187_v8 = vrot.slane %v14184_v1, 3  ;;  %v14188_v35 = vrot.slane %v14184_v1, 4 }
0x290b   : > { %v8466_v62 = vmul.f32 %v8462_v43, %v13484_v59  ;;  %v8465_v53 = vmul.f32 %v8462_v43, %v13482_v3  ;;  %v8464_v61 = vmul.f32 %v8462_v43, %v13486_v32  ;;  %v8463_v24 = vmul.f32 %v8462_v43, %v13489_v11  ;;  %v3458_v59 = vpop.f32.mrf.mxu1 }
0x290c   : > { %v14189_v22 = vrot.slane %v14184_v1, 5  ;;  %v14190_v63 = vrot.slane %v14184_v1, 6  ;;  %v4411_v3 = vsel %vm4398_vm4, %v4410_v2, %v4379_v45  ;;  %v4382_v32 = vrot.slane %v3458_v59, 5  ;;  %v14193_v45 = vld [vmem:[#allocation21_spill] sm:$0xff]  ;;  %v14194_v59 = vld [vmem:[#allocation22_spill] sm:$0xff] }
0x290d   : > { %8477 = vrot.lane.b32.xlu1 %v8466_v62, %s11425_s26  ;;  %8475 = vrot.lane.b32.xlu0 %v8465_v53, %s11425_s26  ;;  %v10260_v55 = vpop.f32.mrf.mxu1  ;;  %v8506_v43 = vmul.f32 %v11360_v40, %v14191_v23  ;;  %v11365_v58 = vunpack.i.l.bf16 %v11364_v47 }
0x290e   : > { %v4412_v11 = vsel %vm4400_vm5, %v4411_v3, %v4382_v32 }
0x290f   : > { %v3680_v30 = vpop.f32.mrf.mxu1 }
0x2910   : > { %v4385_v44 = vrot.slane %v3680_v30, 4 }
0x2911   : > { %6495 = vrot.lane.b32.xlu0 %v14183_v60, %s11424_s25  ;;  %8473 = vrot.lane.b32.xlu1 %v8464_v61, %s11425_s26  ;;  %v10282_v13 = vpop.f32.mrf.mxu1  ;;  %v8440_v60 = vmul.f32 %v8429_v26, %v13426_v54  ;;  %v14196_v26 = vld [vmem:[#allocation23_spill] sm:$0xff] }
0x2912   : > { %v4413_v5 = vsel %vm4402_vm6, %v4412_v11, %v4385_v44  ;;  %v14195_v11 = vrot.slane %v14184_v1, 7  ;;  %v14198_v13 = vld [vmem:[#allocation25_spill] sm:$0xff] }
0x2913   : > { %v3902_v20 = vpop.f32.mrf.mxu1 }
0x2914   : > { %v4388_v17 = vrot.slane %v3902_v20, 3 }
0x2915   : > { %8471 = vrot.lane.b32.xlu1 %v8463_v24, %s11425_s26  ;;  %6747 = vrot.lane.b32.xlu0 %v14184_v1, %s11424_s25  ;;  %v10304_v41 = vpop.f32.mrf.mxu1 }
0x2916   : > { %v4414_v61 = vsel %vm4404_vm7, %v4413_v5, %v4388_v17 }
0x2917   : > { %v4124_v27 = vpop.f32.mrf.mxu1 }
0x2919   : > { %6999 = vrot.lane.b32.xlu1 %v14185_v25, %s11424_s25  ;;  %7251 = vrot.lane.b32.xlu0 %v14186_v15, %s11424_s25  ;;  %v4391_v15 = vrot.slane %v4124_v27, 2  ;;  %v14203_v27 = vld [vmem:[#allocation30_spill] sm:$0xff] }
0x291b   : > { %v4415_v54 = vsel %vm4406_vm8, %v4414_v61, %v4391_v15  ;;  %v14204_v15 = vld [vmem:[#allocation31_spill] sm:$0xff] }
0x291d   : > { %7503 = vrot.lane.b32.xlu1 %v14187_v8, %s11424_s25  ;;  %7755 = vrot.lane.b32.xlu0 %v14188_v35, %s11424_s25  ;;  %v11366_v8 = vunpack.i.h.bf16 %v11364_v47  ;;  %v8504_v35 = vmul.f32 %v11365_v58, %v14191_v23  ;;  %v14201_v58 = vld [vmem:[#allocation28_spill] sm:$0xff] }
0x291f   : > { %v8503_v2 = vmul.f32 %v11366_v8, %v14191_v23  ;;  %v14199_v23 = vld [vmem:[#allocation26_spill] sm:$0xff] }
0x2921   : > { %8007 = vrot.lane.b32.xlu1 %v14189_v22, %s11424_s25  ;;  %8259 = vrot.lane.b32.xlu0 %v14190_v63, %s11424_s25  ;;  %v10326_v63 = vpop.f32.mrf.mxu1 }
0x2922   : > { %v14205_v63 = vld [vmem:[#allocation32_spill] sm:$0xff] }
0x2923   : > { %v4346_v16 = vpop.f32.mrf.mxu1 }
0x2924   : > { %v4394_v55 = vrot.slane %v4346_v16, 1  ;;  %v14209_v16 = vld [vmem:[#allocation36_spill] sm:$0xff] }
0x2925   : > { %v10348_v19 = vpop.f32.mrf.mxu1 }
0x2926   : > { %v13652_v44 = vsel %vm4408_vm9, %v4415_v54, %v4394_v55  ;;  %v14206_v54 = vld [vmem:[#allocation33_spill] sm:$0xff] }
0x2927   : > { %v4817_v3 = vpop.f32.mrf.mxu1 }
0x2929   : > { %v10370_v32 = vpop.f32.mrf.mxu1 }
0x292a   : > { %v13755_v32 = vld [vmem:[%s13984_s10 + $0x18] sm:$0xff] }
0x292b   : > { %v5069_v4 = vpop.f32.mrf.mxu1 }
0x292c   : > { %v8607_v30 = vrot.slane %v5069_v4, 7 }
0x292d   : > { %v10392_v52 = vpop.f32.mrf.mxu1 }
0x292e   : > { %v8648_v57 = vsel %vm4396_vm3, %v4817_v3, %v8607_v30  ;;  %v13740_v3 = vld [vmem:[%s13984_s10 + $0x28] sm:$0xff]  ;;  %v13776_v30 = vld [vmem:[%s13984_s10] sm:$0xff] }
0x292f   : > { %v5321_v40 = vpop.f32.mrf.mxu1 }
0x2930   : > { %v8610_v5 = vrot.slane %v5321_v40, 6 }
0x297f   : > { %v8478_v46 = vpop.permute.xlu1 %8477  ;;  %v8476_v33 = vpop.permute.xlu0 %8475 }
0x2980   : > { %v8486_v62 = vadd.f32 %v8478_v46, %v8442_v21  ;;  %v8485_v53 = vadd.f32 %v8476_v33, %v8441_v49  ;;  %v10414_v21 = vpop.f32.mrf.mxu1  ;;  %v8649_v49 = vsel %vm4398_vm4, %v8648_v57, %v8610_v5  ;;  %v14200_v33 = vld [vmem:[#allocation27_spill] sm:$0xff] }
0x2982   : > { %v8510_v0 = vadd.f32 %v8506_v43, %v8486_v62  ;;  %v8509_v29 = vadd.f32 %v8505_v37, %v8485_v53  ;;  %v5573_v20 = vpop.f32.mrf.mxu1 }
0x2983   : > { %v6496_v24 = vpop.permute.xlu0 %6495  ;;  %v8474_v25 = vpop.permute.xlu1 %8473  ;;  %v8613_v37 = vrot.slane %v5573_v20, 5 }
0x2984   : > { %8605 = vst.msk [vmem:[#allocation2 + $0x18] sm:$0xff] %vm8601_vm10, %v8510_v0  ;;  %8604 = vst.msk [vmem:[#allocation2 + $0x10] sm:$0xff] %vm8601_vm10, %v8509_v29  ;;  %v8484_v22 = vadd.f32 %v8474_v25, %v8440_v60  ;;  %8521 = vrot.lane.b32.xlu0 %v8509_v29, %s11424_s25  ;;  %10523 = vmatmul.mubr.msk.f32.vlgmr.msra.gmra.mxu1 %vm785_vm2, %v6496_v24  ;;  %v10436_v46 = vpop.f32.mrf.mxu1  ;;  %v14202_v60 = vld [vmem:[#allocation29_spill] sm:$0xff] }
0x2985   : > { %10537 = vmatpush3.msra.mxu1 %v13071_v56  ;;  %8523 = vrot.lane.b32.xlu1 %v8510_v0, %s11424_s25  ;;  %v8650_v43 = vsel %vm4400_vm5, %v8649_v49, %v8613_v37 }
0x2986   : > { %v8508_v31 = vadd.f32 %v8504_v35, %v8484_v22  ;;  %10538 = vmatprep.subr.mxu1 %v14097_v42  ;;  %10544 = vmatprep.mubr.msk.f32.mxu1 %vm11407_vm1, %v14097_v42 }
0x2987   : > { %10539 = vmatpush3.msra.mxu1 %v14192_v10  ;;  %v8472_v50 = vpop.permute.xlu1 %8471  ;;  %v6748_v39 = vpop.permute.xlu0 %6747 }
0x2988   : > { %8603 = vst.msk [vmem:[#allocation2 + $0x8] sm:$0xff] %vm8601_vm10, %v8508_v31  ;;  %10540 = vmatprep.subr.mxu1 %v14097_v42  ;;  %v8483_v56 = vadd.f32 %v8472_v50, %v8439_v6  ;;  %v14210_v50 = vld [vmem:[#allocation37_spill] sm:$0xff] }
0x2989   : > { %10541 = vmatpush3.msra.mxu1 %v14193_v45  ;;  %8519 = vrot.lane.b32.xlu1 %v8508_v31, %s11424_s25  ;;  %v14207_v31 = vld [vmem:[#allocation34_spill] sm:$0xff] }
0x298a   : > { %v8507_v48 = vadd.f32 %v8503_v2, %v8483_v56  ;;  %10542 = vmatprep.subr.mxu1 %v14097_v42  ;;  %v13727_v45 = vld [vmem:[%s13984_s10 + $0x38] sm:$0xff] }
0x298b   : > { %10543 = vmatpush3.msra.mxu1 %v14194_v59  ;;  %v7000_v47 = vpop.permute.xlu1 %6999  ;;  %v7252_v17 = vpop.permute.xlu0 %7251  ;;  %10701 = vmatprep.subr.mxu0 %v13727_v45  ;;  %v13748_v59 = vld [vmem:[%s13984_s10 + $0x20] sm:$0xff] }
0x298c   : > { %8602 = vst.msk [vmem:[#allocation2] sm:$0xff] %vm8601_vm10, %v8507_v48  ;;  %10558 = vmatprep.subr.mxu1 %v14097_v42  ;;  %10545 = vmatmul.mubr.msk.f32.vlgmr.msra.gmra.mxu1 %vm785_vm2, %v6748_v39  ;;  %v13732_v39 = vld [vmem:[%s13984_s10 + $0x30] sm:$0xff] }
0x298d   : > { %10559 = vmatpush3.msra.mxu1 %v13134_v14  ;;  %8517 = vrot.lane.b32.xlu0 %v8507_v48, %s11424_s25  ;;  %v14197_v14 = vld [vmem:[#allocation24_spill] sm:$0xff] }
0x298e   : > { %10560 = vmatprep.subr.mxu1 %v14097_v42  ;;  %8511 = vrot.lane.b32.xlu1 %v14195_v11, %s11424_s25  ;;  %v13762_v11 = vld [vmem:[%s13984_s10 + $0x10] sm:$0xff] }
0x298f   : > { %10561 = vmatpush3.msra.mxu1 %v14196_v26  ;;  %10566 = vmatprep.mubr.msk.f32.mxu1 %vm11407_vm1, %v14097_v42  ;;  %v7504_v24 = vpop.permute.xlu1 %7503  ;;  %v7756_v6 = vpop.permute.xlu0 %7755  ;;  %v13769_v26 = vld [vmem:[%s13984_s10 + $0x8] sm:$0xff] }
0x2990   : > { %10562 = vmatprep.subr.mxu1 %v14097_v42  ;;  %10702 = vmatpush3.msra.mxu0 %v13727_v45 }
0x2991   : > { %10563 = vmatpush3.msra.mxu1 %v14197_v14  ;;  %10703 = vmatprep.subr.mxu0 %v13732_v39 }
0x2992   : > { %10564 = vmatprep.subr.mxu1 %v14097_v42  ;;  %10704 = vmatpush3.msra.mxu0 %v13732_v39 }
0x2993   : > { %10565 = vmatpush3.msra.mxu1 %v14198_v13  ;;  %v8008_v10 = vpop.permute.xlu1 %8007  ;;  %10705 = vmatprep.subr.mxu0 %v13740_v3 }
0x2994   : > { %10580 = vmatprep.subr.mxu1 %v14097_v42  ;;  %10567 = vmatmul.mubr.msk.f32.vlgmr.msra.gmra.mxu1 %vm785_vm2, %v7000_v47 }
0x2995   : > { %10581 = vmatpush3.msra.mxu1 %v13197_v34  ;;  %10588 = vmatprep.mubr.msk.f32.mxu1 %vm11407_vm1, %v14097_v42  ;;  %v5825_v34 = vpop.f32.mrf.mxu1 }
0x2996   : > { %10582 = vmatprep.subr.mxu1 %v14097_v42  ;;  %v8616_v62 = vrot.slane %v5825_v34, 4  ;;  %10706 = vmatpush3.msra.mxu0 %v13740_v3 }
0x2997   : > { %10583 = vmatpush3.msra.mxu1 %v14199_v23  ;;  %v10458_v53 = vpop.f32.mrf.mxu1  ;;  %10707 = vmatprep.subr.mxu0 %v13748_v59 }
0x2998   : > { %10584 = vmatprep.subr.mxu1 %v14097_v42  ;;  %v8651_v41 = vsel %vm4402_vm6, %v8650_v43, %v8616_v62  ;;  %10708 = vmatpush3.msra.mxu0 %v13748_v59 }
0x2999   : > { %10585 = vmatpush3.msra.mxu1 %v14200_v33  ;;  %v6077_v61 = vpop.f32.mrf.mxu1  ;;  %10709 = vmatprep.subr.mxu0 %v13755_v32 }
0x299a   : > { %10586 = vmatprep.subr.mxu1 %v14097_v42  ;;  %v8619_v0 = vrot.slane %v6077_v61, 3  ;;  %10710 = vmatpush3.msra.mxu0 %v13755_v32 }
0x299b   : > { %10587 = vmatpush3.msra.mxu1 %v14201_v58  ;;  %v10480_v29 = vpop.f32.mrf.mxu1  ;;  %10711 = vmatprep.subr.mxu0 %v13762_v11 }
0x299c   : > { %10602 = vmatprep.subr.mxu1 %v14097_v42  ;;  %10589 = vmatmul.mubr.msk.f32.vlgmr.msra.gmra.mxu1 %vm785_vm2, %v7252_v17  ;;  %v8652_v25 = vsel %vm4404_vm7, %v8651_v41, %v8619_v0 }
0x299d   : > { %10603 = vmatpush3.msra.mxu1 %v13260_v12  ;;  %10610 = vmatprep.mubr.msk.f32.mxu1 %vm11407_vm1, %v14097_v42  ;;  %v6329_v12 = vpop.f32.mrf.mxu1 }
0x299e   : > { %10604 = vmatprep.subr.mxu1 %v14097_v42  ;;  %v8622_v8 = vrot.slane %v6329_v12, 2  ;;  %10712 = vmatpush3.msra.mxu0 %v13762_v11 }
0x299f   : > { %10605 = vmatpush3.msra.mxu1 %v14202_v60  ;;  %v10502_v35 = vpop.f32.mrf.mxu1  ;;  %10713 = vmatprep.subr.mxu0 %v13769_v26 }
0x29a0   : > { %10606 = vmatprep.subr.mxu1 %v14097_v42  ;;  %v8653_v22 = vsel %vm4406_vm8, %v8652_v25, %v8622_v8  ;;  %10714 = vmatpush3.msra.mxu0 %v13769_v26 }
0x29a1   : > { %10607 = vmatpush3.msra.mxu1 %v14203_v27  ;;  %10715 = vmatprep.subr.mxu0 %v13776_v30  ;;  %v14211_v27 = vld [vmem:[#allocation10_spill] sm:$0xff] }
0x29a2   : > { %10608 = vmatprep.subr.mxu1 %v14097_v42  ;;  %10716 = vmatpush3.msra.mxu0 %v13776_v30 }
0x29a3   : > { %10609 = vmatpush3.msra.mxu1 %v14204_v15  ;;  %10739 = vmatprep.subr.mxu0 %v13727_v45 }
0x29a4   : > { %10624 = vmatprep.subr.mxu1 %v14097_v42  ;;  %10611 = vmatmul.mubr.msk.f32.vlgmr.msra.gmra.mxu1 %vm785_vm2, %v7504_v24 }
0x29a5   : > { %10625 = vmatpush3.msra.mxu1 %v13323_v28  ;;  %10632 = vmatprep.mubr.msk.f32.mxu1 %vm11407_vm1, %v14097_v42  ;;  %v14208_v28 = vld [vmem:[#allocation35_spill] sm:$0xff] }
0x29a6   : > { %10626 = vmatprep.subr.mxu1 %v14097_v42 }
0x29a7   : > { %10627 = vmatpush3.msra.mxu1 %v14205_v63 }
0x29a8   : > { %10628 = vmatprep.subr.mxu1 %v14097_v42 }
0x29a9   : > { %10629 = vmatpush3.msra.mxu1 %v14206_v54  ;;  %v14212_v54 = vld [vmem:[#allocation3_spill] sm:$0xff] }
0x29aa   : > { %10630 = vmatprep.subr.mxu1 %v14097_v42 }
0x29ab   : > { %10631 = vmatpush3.msra.mxu1 %v14207_v31  ;;  %v14213_v31 = vld [vmem:[#allocation4_spill] sm:$0xff] }
0x29ac   : > { %10646 = vmatprep.subr.mxu1 %v14097_v42  ;;  %10633 = vmatmul.mubr.msk.f32.vlgmr.msra.gmra.mxu1 %vm785_vm2, %v7756_v6  ;;  %v9062_v6 = vmul.f32 %v14212_v54, %v11730_v7 }
0x29ad   : > { %10647 = vmatpush3.msra.mxu1 %v13386_v9  ;;  %10654 = vmatprep.mubr.msk.f32.mxu1 %vm11407_vm1, %v14097_v42  ;;  %v8260_v9 = vpop.permute.xlu0 %8259 }
0x29ae   : > { %10648 = vmatprep.subr.mxu1 %v14097_v42 }
0x29af   : > { %10649 = vmatpush3.msra.mxu1 %v14208_v28  ;;  %v9063_v28 = vmul.f32 %v14213_v31, %v14184_v1 }
0x29b0   : > { %10650 = vmatprep.subr.mxu1 %v14097_v42 }
0x29b1   : > { %10651 = vmatpush3.msra.mxu1 %v14209_v16  ;;  %v9562_v16 = vld [vmem:[%s13983_s9] ss:$0 sm:$0xff] }
0x29b2   : > { %10652 = vmatprep.subr.mxu1 %v14097_v42 }
0x29b3   : > { %10653 = vmatpush3.msra.mxu1 %v14210_v50  ;;  %v9072_v50 = vmul.f32 %v9562_v16, %v9063_v28 }
0x29b4   : > { %10668 = vmatprep.subr.mxu1 %v14097_v42  ;;  %10655 = vmatmul.mubr.msk.f32.vlgmr.msra.gmra.mxu1 %vm785_vm2, %v8008_v10  ;;  %v9071_v10 = vmul.f32 %v9562_v16, %v9062_v6 }
0x29b5   : > { %10669 = vmatpush3.msra.mxu1 %v13466_v51  ;;  %10676 = vmatprep.mubr.msk.f32.mxu1 %vm11407_vm1, %v14097_v42 }
0x29b6   : > { %10670 = vmatprep.subr.mxu1 %v14097_v42 }
0x29b7   : > { %10671 = vmatpush3.msra.mxu1 %v13468_v38 }
0x29b8   : > { %10672 = vmatprep.subr.mxu1 %v14097_v42 }
0x29b9   : > { %10673 = vmatpush3.msra.mxu1 %v13473_v18 }
0x29ba   : > { %10674 = vmatprep.subr.mxu1 %v14097_v42 }
0x29bb   : > { %10675 = vmatpush3.msra.mxu1 %v13477_v36 }
0x29bc   : > { %10677 = vmatmul.mubr.msk.f32.vlgmr.msra.gmra.mxu1 %vm785_vm2, %v8260_v9  ;;  %10690 = vmatprep.subr.mxu1 %v14097_v42 }
0x29bd   : > { %10698 = vmatprep.mubr.msk.f32.mxu1 %vm11407_vm1, %v14097_v42 }
0x29f6   : > { %v8522_v2 = vpop.permute.xlu0 %8521 }
0x29f7   : > { %v8524_v51 = vpop.permute.xlu1 %8523 }
0x29f8   : > { %10691 = vmatpush3.msra.mxu1 %v8524_v51 }
0x29f9   : > { %10692 = vmatprep.subr.mxu1 %v14097_v42 }
0x29fa   : > { %10693 = vmatpush3.msra.mxu1 %v8522_v2 }
0x29fb   : > { %10694 = vmatprep.subr.mxu1 %v14097_v42  ;;  %v8520_v38 = vpop.permute.xlu1 %8519 }
0x29fc   : > { %10695 = vmatpush3.msra.mxu1 %v8520_v38 }
0x29fd   : > { %10696 = vmatprep.subr.mxu1 %v14097_v42 }
0x29ff   : > { %v8518_v18 = vpop.permute.xlu0 %8517 }
0x2a00   : > { %10697 = vmatpush3.msra.mxu1 %v8518_v18  ;;  %v8512_v36 = vpop.permute.xlu1 %8511 }
0x2a01   : > { %10699 = vmatmul.mubr.msk.f32.vlgmr.msra.gmra.mxu1 %vm785_vm2, %v8512_v36  ;;  %10720 = vmatprep.subr.msk.mxu1 %vm8762_vm11, %v13727_v45 }
0x2a02   : > { %10721 = vmatpush3.xpose.msk.msra.mxu1 %vm8762_vm11, %v13727_v45 }
0x2a03   : > { %10722 = vmatprep.subr.msk.mxu1 %vm8762_vm11, %v13732_v39 }
0x2a06   : > { %10723 = vmatpush3.xpose.msk.msra.mxu1 %vm8762_vm11, %v13732_v39 }
0x2a07   : > { %10724 = vmatprep.subr.msk.mxu1 %vm8762_vm11, %v13740_v3 }
0x2a0a   : > { %10725 = vmatpush3.xpose.msk.msra.mxu1 %vm8762_vm11, %v13740_v3 }
0x2a0b   : > { %10726 = vmatprep.subr.msk.mxu1 %vm8762_vm11, %v13748_v59 }
0x2a0e   : > { %10727 = vmatpush3.xpose.msk.msra.mxu1 %vm8762_vm11, %v13748_v59 }
0x2a0f   : > { %10728 = vmatprep.subr.msk.mxu1 %vm8762_vm11, %v13755_v32 }
0x2a12   : > { %10729 = vmatpush3.xpose.msk.msra.mxu1 %vm8762_vm11, %v13755_v32 }
0x2a13   : > { %10730 = vmatprep.subr.msk.mxu1 %vm8762_vm11, %v13762_v11 }
0x2a16   : > { %10731 = vmatpush3.xpose.msk.msra.mxu1 %vm8762_vm11, %v13762_v11 }
0x2a17   : > { %10732 = vmatprep.subr.msk.mxu1 %vm8762_vm11, %v13769_v26 }
0x2a1a   : > { %10733 = vmatpush3.xpose.msk.msra.mxu1 %vm8762_vm11, %v13769_v26 }
0x2a1b   : > { %10734 = vmatprep.subr.msk.mxu1 %vm8762_vm11, %v13776_v30 }
0x2a1e   : > { %10735 = vmatpush3.xpose.msk.msra.mxu1 %vm8762_vm11, %v13776_v30 }
0x2a1f   : > { %10777 = vmatprep.subr.mxu1 %v13727_v45 }
0x2a44   : > { %v6581_v56 = vpop.f32.mrf.mxu1 }
0x2a45   : > { %v8625_v19 = vrot.slane %v6581_v56, 1 }
0x2a46   : > { %v10524_v48 = vpop.f32.mrf.mxu1 }
0x2a47   : > { %v8654_v42 = vsel %vm4408_vm9, %v8653_v22, %v8625_v19 }
0x2a48   : > { %8664 = vrot.lane.b32.xlu0 %v8654_v42, %s11425_s26 }
0x2a4c   : > { %v6833_v55 = vpop.f32.mrf.mxu1 }
0x2a4e   : > { %v10546_v4 = vpop.f32.mrf.mxu1 }
0x2a4f   : > { %v9560_v4 = vld [vmem:[%s13981_s7] ss:$0 sm:$0xff] }
0x2a54   : > { %v7085_v52 = vpop.f32.mrf.mxu1 }
0x2a55   : > { %v8628_v14 = vrot.slane %v7085_v52, 7 }
0x2a56   : > { %v10568_v47 = vpop.f32.mrf.mxu1 }
0x2a57   : > { %v8655_v57 = vsel %vm4396_vm3, %v6833_v55, %v8628_v14  ;;  %v9561_v14 = vld [vmem:[%s13982_s8] ss:$0 sm:$0xff] }
0x2a58   : > { %v9614_v47 = vld [vmem:[%s630_s13] sm:$0xff]  }
0x2a5c   : > { %v7337_v40 = vpop.f32.mrf.mxu1 }
0x2a5d   : > { %v8631_v13 = vrot.slane %v7337_v40, 6 }
0x2a5e   : > { %v10590_v5 = vpop.f32.mrf.mxu1 }
0x2a5f   : > { %v8656_v21 = vsel %vm4398_vm4, %v8655_v57, %v8631_v13 }
0x2a64   : > { %v7589_v49 = vpop.f32.mrf.mxu1 }
0x2a65   : > { %v8634_v20 = vrot.slane %v7589_v49, 5 }
0x2a66   : > { %v10612_v23 = vpop.f32.mrf.mxu1 }
0x2a67   : > { %v8657_v37 = vsel %vm4400_vm5, %v8656_v21, %v8634_v20  ;;  %v14214_v21 = vld [vmem:[#allocation9_spill] sm:$0xff]  ;;  %v9616_v20 = vunpack.c.h.bf16 %v9614_v47 }
0x2a6c   : > { %v7841_v46 = vpop.f32.mrf.mxu1 }
0x2a6d   : > { %v8637_v33 = vrot.slane %v7841_v46, 4 }
0x2a6e   : > { %v10634_v17 = vpop.f32.mrf.mxu1 }
0x2a6f   : > { %v8658_v43 = vsel %vm4402_vm6, %v8657_v37, %v8637_v33  ;;  %v14215_v33 = vld [vmem:[#allocation7_spill] sm:$0xff] }
0x2a74   : > { %v8093_v34 = vpop.f32.mrf.mxu1 }
0x2a75   : > { %v8640_v58 = vrot.slane %v8093_v34, 3 }
0x2a76   : > { %v10656_v62 = vpop.f32.mrf.mxu1 }
0x2a77   : > { %v8659_v53 = vsel %vm4404_vm7, %v8658_v43, %v8640_v58  ;;  %v9615_v43 = vunpack.c.l.bf16 %v9614_v47 }
0x2a7c   : > { %v8345_v41 = vpop.f32.mrf.mxu1 }
0x2a7d   : > { %v8643_v61 = vrot.slane %v8345_v41, 2 }
0x2a7e   : > { %v10678_v60 = vpop.f32.mrf.mxu1 }
0x2a7f   : > { %v8660_v0 = vsel %vm4406_vm8, %v8659_v53, %v8643_v61 }
0x2aba   : > { %v8665_v29 = vpop.permute.xlu0 %8664 }
0x2abb   : > { %v13793_v24 = vsel %vm785_vm2, %v14211_v27, %v8665_v29 }
0x2abc   : > { %10717 = vmatprep.mubr.msk.f32.mxu0 %vm646_vm0, %v13793_v24 }
0x2ac1   : > { %v8597_v25 = vpop.f32.mrf.mxu1 }
0x2ac2   : > { %v8646_v12 = vrot.slane %v8597_v25, 1 }
0x2ac3   : > { %v10700_v15 = vpop.f32.mrf.mxu1 }
0x2ac4   : > { %v8661_v8 = vsel %vm4408_vm9, %v8660_v0, %v8646_v12 }
0x2ac5   : > { %8666 = vrot.lane.b32.xlu1 %v8661_v8, %s11425_s26 }
0x2b37   : > { %v8667_v35 = vpop.permute.xlu1 %8666 }
0x2b38   : > { %v13832_v22 = vsel %vm785_vm2, %v13652_v44, %v8667_v35 }
0x2b39   : > { %10718 = vmatmul.mubr.msk.f32.vlgmr.msra.gmra.mxu0 %vm646_vm0, %v13832_v22 }
0x2b3a   : > { %10740 = vmatpush3.msra.mxu0 %v13727_v45 }
0x2b3b   : > { %10741 = vmatprep.subr.mxu0 %v13732_v39 }
0x2b3c   : > { %10742 = vmatpush3.msra.mxu0 %v13732_v39 }
0x2b3d   : > { %10743 = vmatprep.subr.mxu0 %v13740_v3 }
0x2b3e   : > { %10744 = vmatpush3.msra.mxu0 %v13740_v3 }
0x2b3f   : > { %10745 = vmatprep.subr.mxu0 %v13748_v59 }
0x2b40   : > { %10746 = vmatpush3.msra.mxu0 %v13748_v59 }
0x2b41   : > { %10747 = vmatprep.subr.mxu0 %v13755_v32 }
0x2b42   : > { %10748 = vmatpush3.msra.mxu0 %v13755_v32 }
0x2b43   : > { %10749 = vmatprep.subr.mxu0 %v13762_v11 }
0x2b44   : > { %10750 = vmatpush3.msra.mxu0 %v13762_v11 }
0x2b45   : > { %10751 = vmatprep.subr.mxu0 %v13769_v26 }
0x2b46   : > { %10752 = vmatpush3.msra.mxu0 %v13769_v26 }
0x2b47   : > { %10753 = vmatprep.subr.mxu0 %v13776_v30 }
0x2b48   : > { %10754 = vmatpush3.msra.mxu0 %v13776_v30 }
0x2b49   : > { %10758 = vmatprep.subr.msk.mxu0 %vm8762_vm11, %v13727_v45 }
0x2bf9   : > { %v10719_v44 = vpop.f32.mrf.mxu0 }
0x2bfb   : > { %v8753_v63 = vpop.f32.mrf.mxu0 }
0x2bfc   : > { %10736 = vmatprep.mubr.msk.f32.mxu1 %vm8762_vm11, %v8753_v63 }
0x2bfd   : > { %10737 = vmatmul.mubr.msk.f32.vlgmr.msra.gmra.mxu1 %vm8762_vm11, %v10719_v44 }
0x2bfe   : > { %10778 = vmatpush3.msra.mxu1 %v13727_v45  ;;  %10793 = vmatprep.mubr.msk.f32.mxu1 %vm646_vm0, %v9071_v10 }
0x2bff   : > { %10779 = vmatprep.subr.mxu1 %v13732_v39 }
0x2c00   : > { %10780 = vmatpush3.msra.mxu1 %v13732_v39 }
0x2c01   : > { %10781 = vmatprep.subr.mxu1 %v13740_v3 }
0x2c02   : > { %10782 = vmatpush3.msra.mxu1 %v13740_v3 }
0x2c03   : > { %10783 = vmatprep.subr.mxu1 %v13748_v59 }
0x2c04   : > { %10784 = vmatpush3.msra.mxu1 %v13748_v59 }
0x2c05   : > { %10785 = vmatprep.subr.mxu1 %v13755_v32 }
0x2c06   : > { %10786 = vmatpush3.msra.mxu1 %v13755_v32 }
0x2c07   : > { %10787 = vmatprep.subr.mxu1 %v13762_v11 }
0x2c08   : > { %10788 = vmatpush3.msra.mxu1 %v13762_v11 }
0x2c09   : > { %10789 = vmatprep.subr.mxu1 %v13769_v26 }
0x2c0a   : > { %10790 = vmatpush3.msra.mxu1 %v13769_v26 }
0x2c0b   : > { %10791 = vmatprep.subr.mxu1 %v13776_v30 }
0x2c0c   : > { %10792 = vmatpush3.msra.mxu1 %v13776_v30 }
0x2c0d   : > { %10796 = vmatprep.subr.msk.mxu1 %vm8762_vm11, %v13727_v45  ;;  %10794 = vmatmul.mubr.msk.f32.vlgmr.msra.gmra.mxu1 %vm646_vm0, %v9072_v50 }
0x2c0e   : > { %10797 = vmatpush3.xpose.msk.msra.mxu1 %vm8762_vm11, %v13727_v45 }
0x2c0f   : > { %10798 = vmatprep.subr.msk.mxu1 %vm8762_vm11, %v13732_v39 }
0x2c12   : > { %10799 = vmatpush3.xpose.msk.msra.mxu1 %vm8762_vm11, %v13732_v39 }
0x2c13   : > { %10800 = vmatprep.subr.msk.mxu1 %vm8762_vm11, %v13740_v3 }
0x2c16   : > { %10801 = vmatpush3.xpose.msk.msra.mxu1 %vm8762_vm11, %v13740_v3 }
0x2c17   : > { %10802 = vmatprep.subr.msk.mxu1 %vm8762_vm11, %v13748_v59 }
0x2c1a   : > { %10803 = vmatpush3.xpose.msk.msra.mxu1 %vm8762_vm11, %v13748_v59 }
0x2c1b   : > { %10804 = vmatprep.subr.msk.mxu1 %vm8762_vm11, %v13755_v32 }
0x2c1e   : > { %10805 = vmatpush3.xpose.msk.msra.mxu1 %vm8762_vm11, %v13755_v32 }
0x2c1f   : > { %10806 = vmatprep.subr.msk.mxu1 %vm8762_vm11, %v13762_v11 }
0x2c22   : > { %10807 = vmatpush3.xpose.msk.msra.mxu1 %vm8762_vm11, %v13762_v11 }
0x2c23   : > { %10808 = vmatprep.subr.msk.mxu1 %vm8762_vm11, %v13769_v26 }
0x2c26   : > { %10809 = vmatpush3.xpose.msk.msra.mxu1 %vm8762_vm11, %v13769_v26 }
0x2c27   : > { %10810 = vmatprep.subr.msk.mxu1 %vm8762_vm11, %v13776_v30 }
0x2c2a   : > { %10811 = vmatpush3.xpose.msk.msra.mxu1 %vm8762_vm11, %v13776_v30 }
0x2cbd   : > { %v10738_v7 = vpop.f32.mrf.mxu1 }
0x2cbe   : > { %v8869_v1 = vmul.f32 0.03125, %v10738_v7 }
0x2cbf   : > { %v8859_v9 = vpop.f32.mrf.mxu1 }
0x2cc0   : > { %v8868_v51 = vmul.f32 0.03125, %v8859_v9  ;;  %v8871_v2 = vsub.f32 %v13832_v22, %v8869_v1 }
0x2cc2   : > { %v8870_v38 = vsub.f32 %v13793_v24, %v8868_v51  ;;  %v8873_v36 = vmul.f32 %v8871_v2, %v8871_v2 }
0x2cc4   : > { %v8872_v18 = vmul.f32 %v8870_v38, %v8870_v38 }
0x2cc6   : > { %10755 = vmatprep.mubr.msk.f32.mxu0 %vm646_vm0, %v8872_v18 }
0x2cc7   : > { %10756 = vmatmul.mubr.msk.f32.vlgmr.msra.gmra.mxu0 %vm646_vm0, %v8873_v36 }
0x2cc8   : > { %10759 = vmatpush3.xpose.msk.msra.mxu0 %vm8762_vm11, %v13727_v45 }
0x2cc9   : > { %10760 = vmatprep.subr.msk.mxu0 %vm8762_vm11, %v13732_v39 }
0x2ccc   : > { %10761 = vmatpush3.xpose.msk.msra.mxu0 %vm8762_vm11, %v13732_v39 }
0x2ccd   : > { %10762 = vmatprep.subr.msk.mxu0 %vm8762_vm11, %v13740_v3  ;;  %v10795_v56 = vpop.f32.mrf.mxu1 }
0x2ccf   : > { %v9145_v19 = vpop.f32.mrf.mxu1 }
0x2cd0   : > { %10763 = vmatpush3.xpose.msk.msra.mxu0 %vm8762_vm11, %v13740_v3  ;;  %10812 = vmatprep.mubr.msk.f32.mxu1 %vm8762_vm11, %v9145_v19 }
0x2cd1   : > { %10764 = vmatprep.subr.msk.mxu0 %vm8762_vm11, %v13748_v59  ;;  %10813 = vmatmul.mubr.msk.f32.vlgmr.msra.gmra.mxu1 %vm8762_vm11, %v10795_v56 }
0x2cd4   : > { %10765 = vmatpush3.xpose.msk.msra.mxu0 %vm8762_vm11, %v13748_v59 }
0x2cd5   : > { %10766 = vmatprep.subr.msk.mxu0 %vm8762_vm11, %v13755_v32 }
0x2cd8   : > { %10767 = vmatpush3.xpose.msk.msra.mxu0 %vm8762_vm11, %v13755_v32 }
0x2cd9   : > { %10768 = vmatprep.subr.msk.mxu0 %vm8762_vm11, %v13762_v11 }
0x2cdc   : > { %10769 = vmatpush3.xpose.msk.msra.mxu0 %vm8762_vm11, %v13762_v11 }
0x2cdd   : > { %10770 = vmatprep.subr.msk.mxu0 %vm8762_vm11, %v13769_v26 }
0x2ce0   : > { %10771 = vmatpush3.xpose.msk.msra.mxu0 %vm8762_vm11, %v13769_v26 }
0x2ce1   : > { %10772 = vmatprep.subr.msk.mxu0 %vm8762_vm11, %v13776_v30 }
0x2ce4   : > { %10773 = vmatpush3.xpose.msk.msra.mxu0 %vm8762_vm11, %v13776_v30 }
0x2d87   : > { %v10757_v45 = vpop.f32.mrf.mxu0 }
0x2d89   : > { %v8946_v39 = vpop.f32.mrf.mxu0 }
0x2d8a   : > { %10774 = vmatprep.mubr.msk.f32.mxu0 %vm8762_vm11, %v8946_v39 }
0x2d8b   : > { %10775 = vmatmul.mubr.msk.f32.vlgmr.msra.gmra.mxu0 %vm8762_vm11, %v10757_v45 }
0x2d91   : > { %v10814_v26 = vpop.f32.mrf.mxu1 }
0x2d92   : > { %v9236_v49 = vmul.f32 %v10814_v26, %v14214_v21 }
0x2d93   : > { %v9226_v13 = vpop.f32.mrf.mxu1 }
0x2d94   : > { %v9235_v17 = vmul.f32 %v14215_v33, %v9226_v13 }
0x2e4b   : > { %v10776_v48 = vpop.f32.mrf.mxu0 }
0x2e4c   : > { %v9037_v42 = vmul.f32 0.03125, %v10776_v48 }
0x2e4d   : > { %v9027_v3 = vpop.f32.mrf.mxu0 }
0x2e4e   : > { %v9039_v59 = vadd.f32 0.00064, %v9037_v42  ;;  %v9036_v32 = vmul.f32 0.03125, %v9027_v3 }
0x2e50   : > { %11375 = vrsqrt.f32 %v9039_v59  ;;  %v9038_v55 = vadd.f32 0.00064, %v9036_v32 }
0x2e52   : > { %11377 = vrsqrt.f32 %v9038_v55 }
0x2e5d   : > { %v11376_v11 = vpop.eup %11375 }
0x2e5e   : > { %v9043_v30 = vmul.f32 %v11376_v11, %v8871_v2 }
0x2e5f   : > { %v11378_v52 = vpop.eup %11377 }
0x2e60   : > { %v9052_v57 = vmul.f32 %v9560_v4, %v9043_v30  ;;  %v9042_v40 = vmul.f32 %v11378_v52, %v8870_v38 }
0x2e62   : > { %v9061_v5 = vadd.f32 %v9561_v14, %v9052_v57  ;;  %v9051_v23 = vmul.f32 %v9560_v4, %v9042_v40 }
0x2e64   : > { %v9242_v37 = vadd.f32 %v9236_v49, %v9061_v5  ;;  %v9060_v46 = vadd.f32 %v9561_v14, %v9051_v23 }
0x2e66   : > { %v9244_v34 = vmul.f32 %v9616_v20, %v9242_v37  ;;  %v9241_v58 = vadd.f32 %v9235_v17, %v9060_v46 }
0x2e68   : > { %v9588_v62 = vpack.c.bf16 %v9244_v34, %v9244_v34  ;;  %v9243_v53 = vmul.f32 %v9615_v43, %v9241_v58 }
0x2e6a   : > { %9255 = vst.msk [vmem:[%s640_s24 + $0x4] sm:$0xf] %vm9253_vm12, %v9588_v62  ;;  %v9587_v41 = vpack.c.bf16 %v9243_v53, %v9243_v53 }
0x2e6c   : > { %9254 = vst.msk [vmem:[%s640_s24] sm:$0xf] %vm9253_vm12, %v9587_v41 }
0x2e6d PF: > { %s21_s19 = sadd.s32 1, %s11404_s19   ;;  %s14216_s17 = smov %s11400_s18 }
0x2e6e   : > { %p18_p5 = scmp.ge.s32.totalorder %s21_s19, 4   ;;  %s14217_s18 = smov %s14219_s20 }
0x2e70   :  { %20 = sbr.rel (!%p18_p5) target bundleno = 2 (0x2), region = 116 }

</bundles_post_ra>
